<compile_context>
chip_gen: v5e
topology: v5e:2x2
jax: 0.10.0
libtpu: 0.0.40
codegen_flags: <defaults>
</compile_context>

<pallas_src>
import functools

import jax
import jax.numpy as jnp
from jax.experimental import pallas as pl
from jax.experimental.pallas import tpu as pltpu


# ----------------------------------------------------------------------------
# Kernel A: fused feature extractor (3x 3x3 conv, zero padding, LeakyReLU 0.2).
#
# The zero-padded image is flattened to one lane axis of length Np1=(H+2)*(W+2).
# Input / activation buffers carry Wp1+1 extra lanes on each side so every 3x3
# tap is a static lane-offset slice (shift by dh*Wp1+dw).  The im2col matrix
# [9*cin, Np1] is assembled in a shared VMEM scratch and each conv is a single
# MXU matmul  W[cout, 9*cin] @ P[9*cin, Np1]  (output lane-dense on Np1).
# ----------------------------------------------------------------------------
def _feature_kernel(xext_ref, w1_ref, b1_ref, w2_ref, b2_ref, w3_ref, b3_ref,
                    mask_ref, o_ref, act1_ref, act2_ref, p_ref, *, Wp1, Np1):
    off = Wp1 + 1                                    # staging offset in the ext buffers
    interior = mask_ref[...] > 0.0                   # [1, Np1] non-border mask

    def im2col(src_ref):
        """Gather the 9 shifted copies of src into p_ref -> [9*cin, Np1]."""
        cin = src_ref.shape[0]
        t = 0
        for dh in (-1, 0, 1):
            for dw in (-1, 0, 1):
                s = off + dh * Wp1 + dw
                p_ref[t * cin:(t + 1) * cin, :] = src_ref[:, s:s + Np1]
                t += 1
        return p_ref[0:9 * cin, :]

    def conv(p, w_ref, b_ref, leaky):
        a = jnp.dot(w_ref[...], p, preferred_element_type=jnp.float32) + b_ref[...]
        if leaky:
            a = jnp.maximum(a, 0.2 * a)              # LeakyReLU(0.2)
        # zero the 1-px padded border: this IS the next conv's zero padding, and
        # keeps any scratch garbage/NaNs confined to (discarded) border columns.
        return jnp.where(interior, a, 0.0)

    # layer 1: raw channels (zero-padded to 8 rows) -> 32, LeakyReLU
    a1 = conv(im2col(xext_ref), w1_ref, b1_ref, leaky=True)
    act1_ref[:, off:off + Np1] = a1
    # layer 2: 32 -> 16, LeakyReLU
    a2 = conv(im2col(act1_ref), w2_ref, b2_ref, leaky=True)
    act2_ref[:, off:off + Np1] = a2
    # layer 3: 16 -> 8 (no activation)
    o_ref[...] = conv(im2col(act2_ref), w3_ref, b3_ref, leaky=False)


def feature_extractor(x, params):
    """x: [B, C, H, W] (NCHW) -> features [B, 8, H, W]."""
    B, C, H, W = x.shape
    Hp1, Wp1 = H + 2, W + 2
    Np1 = Hp1 * Wp1
    ext = Wp1 + 1
    Next = Np1 + 2 * ext
    cin1 = ((C + 7) // 8) * 8                        # pad raw channels to a sublane tile

    # zero pad: channels to cin1, spatial by 1 (Conv2d padding=1), flatten padded
    # spatial onto lanes and extend by Wp1+1 zero lanes per side (tap slices).
    xp = jnp.pad(x, ((0, 0), (0, cin1 - C), (1, 1), (1, 1)))
    xext = jnp.pad(xp.reshape(B, cin1, Np1), ((0, 0), (0, 0), (ext, ext)))

    # interior (non-border) mask of the padded frame, flattened.
    row = jnp.arange(Hp1)
    col = jnp.arange(Wp1)
    interior = (((row[:, None] >= 1) & (row[:, None] <= H) &
                 (col[None, :] >= 1) & (col[None, :] <= W))
                .astype(jnp.float32).reshape(1, Np1))

    def wmat(w, cin_pad=None):
        # torch layout [cout, cin, 3, 3] -> [cout, 9*cin], K ordered (kh, kw, cin)
        co, ci = w.shape[0], w.shape[1]
        wt = jnp.transpose(w, (0, 2, 3, 1))
        if cin_pad is not None and cin_pad > ci:
            wt = jnp.pad(wt, ((0, 0), (0, 0), (0, 0), (0, cin_pad - ci)))
            ci = cin_pad
        return wt.reshape(co, 9 * ci)

    w1m = wmat(params["w1"], cin1)
    w2m = wmat(params["w2"])
    w3m = wmat(params["w3"])
    b1 = params["b1"].reshape(-1, 1)
    b2 = params["b2"].reshape(-1, 1)
    b3 = params["b3"].reshape(-1, 1)
    c1, c2, c3 = w1m.shape[0], w2m.shape[0], w3m.shape[0]
    kmax = max(w1m.shape[1], w2m.shape[1], w3m.shape[1])

    kern = functools.partial(_feature_kernel, Wp1=Wp1, Np1=Np1)
    feat = pl.pallas_call(
        kern,
        out_shape=jax.ShapeDtypeStruct((B, c3, Np1), jnp.float32),
        grid=(B,),
        in_specs=[
            pl.BlockSpec((None, cin1, Next), lambda b: (b, 0, 0)),
            pl.BlockSpec(w1m.shape, lambda b: (0, 0)),
            pl.BlockSpec((c1, 1), lambda b: (0, 0)),
            pl.BlockSpec(w2m.shape, lambda b: (0, 0)),
            pl.BlockSpec((c2, 1), lambda b: (0, 0)),
            pl.BlockSpec(w3m.shape, lambda b: (0, 0)),
            pl.BlockSpec((c3, 1), lambda b: (0, 0)),
            pl.BlockSpec((1, Np1), lambda b: (0, 0)),
        ],
        out_specs=pl.BlockSpec((None, c3, Np1), lambda b: (b, 0, 0)),
        scratch_shapes=[
            pltpu.VMEM((c1, Next), jnp.float32),     # layer-1 activation (extended)
            pltpu.VMEM((c2, Next), jnp.float32),     # layer-2 activation (extended)
            pltpu.VMEM((kmax, Np1), jnp.float32),    # shared im2col buffer
        ],
        compiler_params=pltpu.CompilerParams(dimension_semantics=("parallel",)),
    )(xext, w1m, b1, w2m, b2, w3m, b3, interior)

    # drop the (zeroed) conv border -> NCHW features
    return feat.reshape(B, c3, Hp1, Wp1)[:, :, 1:H + 1, 1:W + 1]


# ----------------------------------------------------------------------------
# Kernel B: fused multi-scale local std + 1x1 scale fusion + adaptive thresholds
#           + texture mask.
#
# Features arrive reflect-padded once with p = max(ws)//2, flattened to
# [C_feat*Hp, Wp] (W on lanes).  Per window size the ws x ws box sums of f and
# f^2 are two banded-ones MXU matmuls:
#     colsum = f     @ Bw[s]      ([C_feat*Hp, Wp] @ [Wp, W])
#     boxsum = Bh[s] @ colsum_c   ([H, Hp] @ [Hp, W], per feature channel)
# then var = E[x^2] - E[x]^2 on mean-shifted features (fp32-stable).
# ----------------------------------------------------------------------------
def _texture_mask_kernel(fpad_ref, x_ref, bw_ref, bh_ref, cw_ref, fw_ref, fb_ref,
                         o_ref, *, H, W, Hp, C_feat, window_sizes,
                         base_lower, base_upper):
    f = fpad_ref[...]                                          # [C_feat*Hp, Wp]
    # variance is shift-invariant; subtracting the global mean keeps
    # E[x^2]-E[x]^2 well conditioned in fp32.
    mu = jnp.mean(jnp.mean(f, axis=1, keepdims=True), axis=0, keepdims=True)
    fc = f - mu
    f2 = fc * fc

    std_maps = []
    for si, ws in enumerate(window_sizes):
        inv_n = 1.0 / float(ws * ws)
        bw = bw_ref[si]                                        # [Wp, W]
        bh = bh_ref[si]                                        # [H, Hp]
        cs1 = jnp.dot(fc, bw, preferred_element_type=jnp.float32)   # [C_feat*Hp, W]
        cs2 = jnp.dot(f2, bw, preferred_element_type=jnp.float32)
        acc = jnp.zeros((H, W), jnp.float32)
        for c in range(C_feat):
            r1 = jnp.dot(bh, cs1[c * Hp:(c + 1) * Hp, :],
                         preferred_element_type=jnp.float32)   # [H, W] window sums
            r2 = jnp.dot(bh, cs2[c * Hp:(c + 1) * Hp, :],
                         preferred_element_type=jnp.float32)
            m = r1 * inv_n
            v = jnp.maximum(r2 * inv_n - m * m, 0.0)
            acc = acc + jnp.sqrt(v + 1e-8)
        std_maps.append(acc * (1.0 / C_feat))                  # mean over channels

    # 1x1 scale fusion conv
    if len(window_sizes) > 1:
        fused = fb_ref[0] + fw_ref[0] * std_maps[0]
        for si in range(1, len(window_sizes)):
            fused = fused + fw_ref[si] * std_maps[si]          # [H, W]
    else:
        fused = std_maps[0]

    # adaptive thresholds (torch.std over dim=(2,3) is unbiased -> /(N-1))
    xb = x_ref[...]                                            # [C_raw, H, W]
    npix = float(H * W)

    def ssum(a):                                               # [C,H,W] -> [C,1,1]
        return jnp.sum(jnp.sum(a, axis=2, keepdims=True), axis=1, keepdims=True)

    xm = ssum(xb) * (1.0 / npix)
    gstd = jnp.sqrt(ssum((xb - xm) ** 2) * (1.0 / (npix - 1.0)))
    gfac = jnp.clip(gstd * 5.0, 0.5, 2.0)
    lower = base_lower * gfac
    upper = base_upper * gfac

    wx = xb * cw_ref[...]                                      # softmax(channel_weights)
    wm = ssum(wx) * (1.0 / npix)
    cstd = jnp.sqrt(ssum((wx - wm) ** 2) * (1.0 / (npix - 1.0)))
    cfac = jnp.clip(cstd * 2.0, 0.8, 1.2)
    lower = lower * cfac                                       # [C_raw, 1, 1]
    upper = upper * cfac

    inv_range = pl.reciprocal(upper - lower, approx=True)      # EUP, not VALU
    norm = jnp.clip((fused[None, :, :] - lower) * inv_range, 0.0, 1.0)
    o_ref[...] = pl.reciprocal(1.0 + jnp.exp(3.0 - 6.0 * norm), approx=True)  # sigmoid(6n-3)


def _box_band_matrices(H, W, window_sizes):
    """Static banded-ones matrices for the width / height box sums (per scale)."""
    pmax = max(ws // 2 for ws in window_sizes)
    Hp, Wp = H + 2 * pmax, W + 2 * pmax
    bws, bhs = [], []
    for ws in window_sizes:
        o = pmax - ws // 2
        j = jnp.arange(Wp)[:, None]
        w = jnp.arange(W)[None, :]
        bws.append(((j >= w + o) & (j < w + o + ws)).astype(jnp.float32))   # [Wp, W]
        i = jnp.arange(Hp)[None, :]
        h = jnp.arange(H)[:, None]
        bhs.append(((i >= h + o) & (i < h + o + ws)).astype(jnp.float32))   # [H, Hp]
    return jnp.stack(bws), jnp.stack(bhs)


# ----------------------------------------------------------------------------
# Full forward pass (adaptive_thresh=True path of the PyTorch module)
# ----------------------------------------------------------------------------
def raw_texture_detector_forward(x, params, window_sizes=(11, 25, 49),
                                 base_lower=0.05, base_upper=0.2, noise_map=None):
    x = x.astype(jnp.float32)                                  # [B, 4, H, W]
    B, C, H, W = x.shape
    pmax = max(ws // 2 for ws in window_sizes)
    assert H > pmax and W > pmax, (
        f"reflect padding needs H, W > {pmax} (largest window // 2)")

    feat = feature_extractor(x, params)                        # [B, 8, H, W]
    Cf = feat.shape[1]

    # one shared reflect pad (p = pmax) reproduces every per-scale reflect pad.
    fpad = jnp.pad(feat, ((0, 0), (0, 0), (pmax, pmax), (pmax, pmax)), mode="reflect")
    Hp, Wp = H + 2 * pmax, W + 2 * pmax
    fpad = fpad.reshape(B, Cf * Hp, Wp)                        # free reshape, W on lanes

    bw, bh = _box_band_matrices(H, W, window_sizes)            # [S, Wp, W], [S, H, Hp]
    cw = jax.nn.softmax(params["channel_weights"]).reshape(C, 1, 1)

    S = len(window_sizes)
    kern = functools.partial(_texture_mask_kernel, H=H, W=W, Hp=Hp, C_feat=Cf,
                             window_sizes=tuple(window_sizes),
                             base_lower=float(base_lower),
                             base_upper=float(base_upper))
    mask = pl.pallas_call(
        kern,
        out_shape=jax.ShapeDtypeStruct((B, C, H, W), jnp.float32),
        grid=(B,),
        in_specs=[
            pl.BlockSpec((None, Cf * Hp, Wp), lambda b: (b, 0, 0)),
            pl.BlockSpec((None, C, H, W), lambda b: (b, 0, 0, 0)),
            pl.BlockSpec((S, Wp, W), lambda b: (0, 0, 0)),
            pl.BlockSpec((S, H, Hp), lambda b: (0, 0, 0)),
            pl.BlockSpec((C, 1, 1), lambda b: (0, 0, 0)),
            pl.BlockSpec(memory_space=pltpu.MemorySpace.SMEM),
            pl.BlockSpec(memory_space=pltpu.MemorySpace.SMEM),
        ],
        out_specs=pl.BlockSpec((None, C, H, W), lambda b: (b, 0, 0, 0)),
        compiler_params=pltpu.CompilerParams(dimension_semantics=("parallel",)),
    )(fpad, x, bw, bh, cw, params["fusion_w"], params["fusion_b"])

    if noise_map is not None:                                  # elementwise glue
        mask = mask * jnp.exp(-3.0 * noise_map)
    return mask


def init_params(key, raw_channels=4, num_scales=3):
    ks = jax.random.split(key, 8)

    def rnd(k, shape, scale):
        return jax.random.normal(k, shape, jnp.float32) * scale

    # conv weights kept in the PyTorch [cout, cin, kh, kw] layout
    return dict(
        w1=rnd(ks[0], (32, raw_channels, 3, 3), 0.1), b1=rnd(ks[1], (32,), 0.01),
        w2=rnd(ks[2], (16, 32, 3, 3), 0.1),           b2=rnd(ks[3], (16,), 0.01),
        w3=rnd(ks[4], (8, 16, 3, 3), 0.1),            b3=rnd(ks[5], (8,), 0.01),
        channel_weights=jnp.ones((raw_channels,), jnp.float32) / raw_channels,
        fusion_w=rnd(ks[6], (num_scales,), 0.3),
        fusion_b=rnd(ks[7], (1,), 0.1),
    )


if __name__ == "__main__":
    key = jax.random.PRNGKey(0)
    kx, kp = jax.random.split(key)
    # H, W >= 25 so the reflect padding for the 49-window (pad=24) is valid,
    # same constraint as the PyTorch module.
    B, C, H, W = 2, 4, 32, 32
    x = jax.random.uniform(kx, (B, C, H, W), jnp.float32)
    params = init_params(kp, raw_channels=C, num_scales=3)

    mask = raw_texture_detector_forward(x, params)
    mask = jax.block_until_ready(mask)

    # adaptive thresholds are [B,4,1,1] so the broadcasted mask is [B,4,H,W]
    assert mask.shape == (B, C, H, W), mask.shape
    assert bool(jnp.all(jnp.isfinite(mask)))
    assert bool(jnp.all(mask >= 0.0)) and bool(jnp.all(mask <= 1.0))
    print("KERNEL_OK")
</pallas_src>

<mosaic_0001>
module attributes {stable_mosaic.version = 11 : i64} {
  func.func @_feature_kernel(%arg0: i32, %arg1: memref<1x8x1226xf32, #tpu.memory_space<vmem>>, %arg2: memref<32x72xf32, #tpu.memory_space<vmem>>, %arg3: memref<32x1xf32, #tpu.memory_space<vmem>>, %arg4: memref<16x288xf32, #tpu.memory_space<vmem>>, %arg5: memref<16x1xf32, #tpu.memory_space<vmem>>, %arg6: memref<8x144xf32, #tpu.memory_space<vmem>>, %arg7: memref<8x1xf32, #tpu.memory_space<vmem>>, %arg8: memref<1x1156xf32, #tpu.memory_space<vmem>>, %arg9: memref<1x8x1156xf32, #tpu.memory_space<vmem>>, %arg10: memref<32x1226xf32, #tpu.memory_space<vmem>>, %arg11: memref<16x1226xf32, #tpu.memory_space<vmem>>, %arg12: memref<288x1156xf32, #tpu.memory_space<vmem>>) attributes {dimension_semantics = [#tpu.dimension_semantics<parallel>], iteration_bounds = array<i64: 2>, scalar_prefetch = 0 : i64, scratch_operands = 3 : i64, tpu.core_type = #tpu.core_type<tc>, window_params = [{transform_indices = @transform_0, window_bounds = array<i64: 1, 8, 1226>}, {pipeline_mode = #tpu.pipeline_mode<synchronous>, transform_indices = @transform_1, window_bounds = array<i64: 32, 72>}, {pipeline_mode = #tpu.pipeline_mode<synchronous>, transform_indices = @transform_2, window_bounds = array<i64: 32, 1>}, {pipeline_mode = #tpu.pipeline_mode<synchronous>, transform_indices = @transform_3, window_bounds = array<i64: 16, 288>}, {pipeline_mode = #tpu.pipeline_mode<synchronous>, transform_indices = @transform_4, window_bounds = array<i64: 16, 1>}, {pipeline_mode = #tpu.pipeline_mode<synchronous>, transform_indices = @transform_5, window_bounds = array<i64: 8, 144>}, {pipeline_mode = #tpu.pipeline_mode<synchronous>, transform_indices = @transform_6, window_bounds = array<i64: 8, 1>}, {pipeline_mode = #tpu.pipeline_mode<synchronous>, transform_indices = @transform_7, window_bounds = array<i64: 1, 1156>}, {transform_indices = @transform_8, window_bounds = array<i64: 1, 8, 1156>}]} {
    %c0 = arith.constant 0 : index
    %c0_0 = arith.constant 0 : index
    %0 = vector.load %arg8[%c0, %c0_0] : memref<1x1156xf32, #tpu.memory_space<vmem>>, vector<1x1156xf32>
    %cst = arith.constant 0.000000e+00 : f32
    %1 = vector.broadcast %cst : f32 to vector<1x1156xf32>
    %2 = arith.cmpf ogt, %0, %1 : vector<1x1156xf32>
    %c0_1 = arith.constant 0 : index
    %c0_2 = arith.constant 0 : index
    %c0_3 = arith.constant 0 : index
    %3 = vector.load %arg1[%c0_1, %c0_2, %c0_3] : memref<1x8x1226xf32, #tpu.memory_space<vmem>>, vector<1x8x1156xf32>
    %4 = vector.shape_cast %3 : vector<1x8x1156xf32> to vector<8x1156xf32>
    %c0_4 = arith.constant 0 : index
    %c0_5 = arith.constant 0 : index
    %5 = vector.load %arg12[%c0_4, %c0_5] : memref<288x1156xf32, #tpu.memory_space<vmem>>, vector<8x1156xf32>
    tpu.vector_store %arg12[%c0_4, %c0_5], %4 {strides = array<i32>} : memref<288x1156xf32, #tpu.memory_space<vmem>>, vector<8x1156xf32>,
    %c0_6 = arith.constant 0 : index
    %c0_7 = arith.constant 0 : index
    %c1 = arith.constant 1 : index
    %6 = vector.load %arg1[%c0_6, %c0_7, %c1] : memref<1x8x1226xf32, #tpu.memory_space<vmem>>, vector<1x8x1156xf32>
    %7 = vector.shape_cast %6 : vector<1x8x1156xf32> to vector<8x1156xf32>
    %c8 = arith.constant 8 : index
    %c0_8 = arith.constant 0 : index
    %8 = vector.load %arg12[%c8, %c0_8] : memref<288x1156xf32, #tpu.memory_space<vmem>>, vector<8x1156xf32>
    tpu.vector_store %arg12[%c8, %c0_8], %7 {strides = array<i32>} : memref<288x1156xf32, #tpu.memory_space<vmem>>, vector<8x1156xf32>,
    %c0_9 = arith.constant 0 : index
    %c0_10 = arith.constant 0 : index
    %c2 = arith.constant 2 : index
    %9 = vector.load %arg1[%c0_9, %c0_10, %c2] : memref<1x8x1226xf32, #tpu.memory_space<vmem>>, vector<1x8x1156xf32>
    %10 = vector.shape_cast %9 : vector<1x8x1156xf32> to vector<8x1156xf32>
    %c16 = arith.constant 16 : index
    %c0_11 = arith.constant 0 : index
    %11 = vector.load %arg12[%c16, %c0_11] : memref<288x1156xf32, #tpu.memory_space<vmem>>, vector<8x1156xf32>
    tpu.vector_store %arg12[%c16, %c0_11], %10 {strides = array<i32>} : memref<288x1156xf32, #tpu.memory_space<vmem>>, vector<8x1156xf32>,
    %c0_12 = arith.constant 0 : index
    %c0_13 = arith.constant 0 : index
    %c34 = arith.constant 34 : index
    %12 = vector.load %arg1[%c0_12, %c0_13, %c34] : memref<1x8x1226xf32, #tpu.memory_space<vmem>>, vector<1x8x1156xf32>
    %13 = vector.shape_cast %12 : vector<1x8x1156xf32> to vector<8x1156xf32>
    %c24 = arith.constant 24 : index
    %c0_14 = arith.constant 0 : index
    %14 = vector.load %arg12[%c24, %c0_14] : memref<288x1156xf32, #tpu.memory_space<vmem>>, vector<8x1156xf32>
    tpu.vector_store %arg12[%c24, %c0_14], %13 {strides = array<i32>} : memref<288x1156xf32, #tpu.memory_space<vmem>>, vector<8x1156xf32>,
    %c0_15 = arith.constant 0 : index
    %c0_16 = arith.constant 0 : index
    %c35 = arith.constant 35 : index
    %15 = vector.load %arg1[%c0_15, %c0_16, %c35] : memref<1x8x1226xf32, #tpu.memory_space<vmem>>, vector<1x8x1156xf32>
    %16 = vector.shape_cast %15 : vector<1x8x1156xf32> to vector<8x1156xf32>
    %c32 = arith.constant 32 : index
    %c0_17 = arith.constant 0 : index
    %17 = vector.load %arg12[%c32, %c0_17] : memref<288x1156xf32, #tpu.memory_space<vmem>>, vector<8x1156xf32>
    tpu.vector_store %arg12[%c32, %c0_17], %16 {strides = array<i32>} : memref<288x1156xf32, #tpu.memory_space<vmem>>, vector<8x1156xf32>,
    %c0_18 = arith.constant 0 : index
    %c0_19 = arith.constant 0 : index
    %c36 = arith.constant 36 : index
    %18 = vector.load %arg1[%c0_18, %c0_19, %c36] : memref<1x8x1226xf32, #tpu.memory_space<vmem>>, vector<1x8x1156xf32>
    %19 = vector.shape_cast %18 : vector<1x8x1156xf32> to vector<8x1156xf32>
    %c40 = arith.constant 40 : index
    %c0_20 = arith.constant 0 : index
    %20 = vector.load %arg12[%c40, %c0_20] : memref<288x1156xf32, #tpu.memory_space<vmem>>, vector<8x1156xf32>
    tpu.vector_store %arg12[%c40, %c0_20], %19 {strides = array<i32>} : memref<288x1156xf32, #tpu.memory_space<vmem>>, vector<8x1156xf32>,
    %c0_21 = arith.constant 0 : index
    %c0_22 = arith.constant 0 : index
    %c68 = arith.constant 68 : index
    %21 = vector.load %arg1[%c0_21, %c0_22, %c68] : memref<1x8x1226xf32, #tpu.memory_space<vmem>>, vector<1x8x1156xf32>
    %22 = vector.shape_cast %21 : vector<1x8x1156xf32> to vector<8x1156xf32>
    %c48 = arith.constant 48 : index
    %c0_23 = arith.constant 0 : index
    %23 = vector.load %arg12[%c48, %c0_23] : memref<288x1156xf32, #tpu.memory_space<vmem>>, vector<8x1156xf32>
    tpu.vector_store %arg12[%c48, %c0_23], %22 {strides = array<i32>} : memref<288x1156xf32, #tpu.memory_space<vmem>>, vector<8x1156xf32>,
    %c0_24 = arith.constant 0 : index
    %c0_25 = arith.constant 0 : index
    %c69 = arith.constant 69 : index
    %24 = vector.load %arg1[%c0_24, %c0_25, %c69] : memref<1x8x1226xf32, #tpu.memory_space<vmem>>, vector<1x8x1156xf32>
    %25 = vector.shape_cast %24 : vector<1x8x1156xf32> to vector<8x1156xf32>
    %c56 = arith.constant 56 : index
    %c0_26 = arith.constant 0 : index
    %26 = vector.load %arg12[%c56, %c0_26] : memref<288x1156xf32, #tpu.memory_space<vmem>>, vector<8x1156xf32>
    tpu.vector_store %arg12[%c56, %c0_26], %25 {strides = array<i32>} : memref<288x1156xf32, #tpu.memory_space<vmem>>, vector<8x1156xf32>,
    %c0_27 = arith.constant 0 : index
    %c0_28 = arith.constant 0 : index
    %c70 = arith.constant 70 : index
    %27 = vector.load %arg1[%c0_27, %c0_28, %c70] : memref<1x8x1226xf32, #tpu.memory_space<vmem>>, vector<1x8x1156xf32>
    %28 = vector.shape_cast %27 : vector<1x8x1156xf32> to vector<8x1156xf32>
    %c64 = arith.constant 64 : index
    %c0_29 = arith.constant 0 : index
    %29 = vector.load %arg12[%c64, %c0_29] : memref<288x1156xf32, #tpu.memory_space<vmem>>, vector<8x1156xf32>
    tpu.vector_store %arg12[%c64, %c0_29], %28 {strides = array<i32>} : memref<288x1156xf32, #tpu.memory_space<vmem>>, vector<8x1156xf32>,
    %c0_30 = arith.constant 0 : index
    %c0_31 = arith.constant 0 : index
    %30 = vector.load %arg12[%c0_30, %c0_31] : memref<288x1156xf32, #tpu.memory_space<vmem>>, vector<72x1156xf32>
    %c0_32 = arith.constant 0 : index
    %c0_33 = arith.constant 0 : index
    %31 = vector.load %arg2[%c0_32, %c0_33] : memref<32x72xf32, #tpu.memory_space<vmem>>, vector<32x72xf32>
    %cst_34 = arith.constant dense<0.000000e+00> : vector<32x1156xf32>
    %32 = tpu.matmul %31, %30, %cst_34 {dimension_numbers = #tpu.dot_dimension_numbers<[1], [0], [0], [1], [0, 0, 1, 1], [], []>} : vector<32x72xf32>, vector<72x1156xf32>, vector<32x1156xf32> -> vector<32x1156xf32>
    %c0_35 = arith.constant 0 : index
    %c0_36 = arith.constant 0 : index
    %33 = vector.load %arg3[%c0_35, %c0_36] : memref<32x1xf32, #tpu.memory_space<vmem>>, vector<32x1xf32>
    %34 = vector.broadcast %33 : vector<32x1xf32> to vector<32x1156xf32>
    %35 = arith.addf %32, %34 : vector<32x1156xf32>
    %cst_37 = arith.constant 2.000000e-01 : f32
    %36 = vector.broadcast %cst_37 : f32 to vector<32x1156xf32>
    %37 = arith.mulf %36, %35 : vector<32x1156xf32>
    %38 = arith.maximumf %35, %37 : vector<32x1156xf32>
    %cst_38 = arith.constant 0.000000e+00 : f32
    %39 = vector.shape_cast %2 : vector<1x1156xi1> to vector<1x1156xi1>
    %40 = vector.broadcast %39 : vector<1x1156xi1> to vector<32x1156xi1>
    %41 = vector.broadcast %cst_38 : f32 to vector<32x1156xf32>
    %42 = arith.select %40, %38, %41 : vector<32x1156xi1>, vector<32x1156xf32>
    %c0_39 = arith.constant 0 : index
    %c35_40 = arith.constant 35 : index
    %43 = vector.load %arg10[%c0_39, %c35_40] : memref<32x1226xf32, #tpu.memory_space<vmem>>, vector<32x1156xf32>
    tpu.vector_store %arg10[%c0_39, %c35_40], %42 {strides = array<i32>} : memref<32x1226xf32, #tpu.memory_space<vmem>>, vector<32x1156xf32>,
    %c0_41 = arith.constant 0 : index
    %c0_42 = arith.constant 0 : index
    %44 = vector.load %arg10[%c0_41, %c0_42] : memref<32x1226xf32, #tpu.memory_space<vmem>>, vector<32x1156xf32>
    %c0_43 = arith.constant 0 : index
    %c0_44 = arith.constant 0 : index
    %45 = vector.load %arg12[%c0_43, %c0_44] : memref<288x1156xf32, #tpu.memory_space<vmem>>, vector<32x1156xf32>
    tpu.vector_store %arg12[%c0_43, %c0_44], %44 {strides = array<i32>} : memref<288x1156xf32, #tpu.memory_space<vmem>>, vector<32x1156xf32>,
    %c0_45 = arith.constant 0 : index
    %c1_46 = arith.constant 1 : index
    %46 = vector.load %arg10[%c0_45, %c1_46] : memref<32x1226xf32, #tpu.memory_space<vmem>>, vector<32x1156xf32>
    %c32_47 = arith.constant 32 : index
    %c0_48 = arith.constant 0 : index
    %47 = vector.load %arg12[%c32_47, %c0_48] : memref<288x1156xf32, #tpu.memory_space<vmem>>, vector<32x1156xf32>
    tpu.vector_store %arg12[%c32_47, %c0_48], %46 {strides = array<i32>} : memref<288x1156xf32, #tpu.memory_space<vmem>>, vector<32x1156xf32>,
    %c0_49 = arith.constant 0 : index
    %c2_50 = arith.constant 2 : index
    %48 = vector.load %arg10[%c0_49, %c2_50] : memref<32x1226xf32, #tpu.memory_space<vmem>>, vector<32x1156xf32>
    %c64_51 = arith.constant 64 : index
    %c0_52 = arith.constant 0 : index
    %49 = vector.load %arg12[%c64_51, %c0_52] : memref<288x1156xf32, #tpu.memory_space<vmem>>, vector<32x1156xf32>
    tpu.vector_store %arg12[%c64_51, %c0_52], %48 {strides = array<i32>} : memref<288x1156xf32, #tpu.memory_space<vmem>>, vector<32x1156xf32>,
    %c0_53 = arith.constant 0 : index
    %c34_54 = arith.constant 34 : index
    %50 = vector.load %arg10[%c0_53, %c34_54] : memref<32x1226xf32, #tpu.memory_space<vmem>>, vector<32x1156xf32>
    %c96 = arith.constant 96 : index
    %c0_55 = arith.constant 0 : index
    %51 = vector.load %arg12[%c96, %c0_55] : memref<288x1156xf32, #tpu.memory_space<vmem>>, vector<32x1156xf32>
    tpu.vector_store %arg12[%c96, %c0_55], %50 {strides = array<i32>} : memref<288x1156xf32, #tpu.memory_space<vmem>>, vector<32x1156xf32>,
    %c0_56 = arith.constant 0 : index
    %c35_57 = arith.constant 35 : index
    %52 = vector.load %arg10[%c0_56, %c35_57] : memref<32x1226xf32, #tpu.memory_space<vmem>>, vector<32x1156xf32>
    %c128 = arith.constant 128 : index
    %c0_58 = arith.constant 0 : index
    %53 = vector.load %arg12[%c128, %c0_58] : memref<288x1156xf32, #tpu.memory_space<vmem>>, vector<32x1156xf32>
    tpu.vector_store %arg12[%c128, %c0_58], %52 {strides = array<i32>} : memref<288x1156xf32, #tpu.memory_space<vmem>>, vector<32x1156xf32>,
    %c0_59 = arith.constant 0 : index
    %c36_60 = arith.constant 36 : index
    %54 = vector.load %arg10[%c0_59, %c36_60] : memref<32x1226xf32, #tpu.memory_space<vmem>>, vector<32x1156xf32>
    %c160 = arith.constant 160 : index
    %c0_61 = arith.constant 0 : index
    %55 = vector.load %arg12[%c160, %c0_61] : memref<288x1156xf32, #tpu.memory_space<vmem>>, vector<32x1156xf32>
    tpu.vector_store %arg12[%c160, %c0_61], %54 {strides = array<i32>} : memref<288x1156xf32, #tpu.memory_space<vmem>>, vector<32x1156xf32>,
    %c0_62 = arith.constant 0 : index
    %c68_63 = arith.constant 68 : index
    %56 = vector.load %arg10[%c0_62, %c68_63] : memref<32x1226xf32, #tpu.memory_space<vmem>>, vector<32x1156xf32>
    %c192 = arith.constant 192 : index
    %c0_64 = arith.constant 0 : index
    %57 = vector.load %arg12[%c192, %c0_64] : memref<288x1156xf32, #tpu.memory_space<vmem>>, vector<32x1156xf32>
    tpu.vector_store %arg12[%c192, %c0_64], %56 {strides = array<i32>} : memref<288x1156xf32, #tpu.memory_space<vmem>>, vector<32x1156xf32>,
    %c0_65 = arith.constant 0 : index
    %c69_66 = arith.constant 69 : index
    %58 = vector.load %arg10[%c0_65, %c69_66] : memref<32x1226xf32, #tpu.memory_space<vmem>>, vector<32x1156xf32>
    %c224 = arith.constant 224 : index
    %c0_67 = arith.constant 0 : index
    %59 = vector.load %arg12[%c224, %c0_67] : memref<288x1156xf32, #tpu.memory_space<vmem>>, vector<32x1156xf32>
    tpu.vector_store %arg12[%c224, %c0_67], %58 {strides = array<i32>} : memref<288x1156xf32, #tpu.memory_space<vmem>>, vector<32x1156xf32>,
    %c0_68 = arith.constant 0 : index
    %c70_69 = arith.constant 70 : index
    %60 = vector.load %arg10[%c0_68, %c70_69] : memref<32x1226xf32, #tpu.memory_space<vmem>>, vector<32x1156xf32>
    %c256 = arith.constant 256 : index
    %c0_70 = arith.constant 0 : index
    %61 = vector.load %arg12[%c256, %c0_70] : memref<288x1156xf32, #tpu.memory_space<vmem>>, vector<32x1156xf32>
    tpu.vector_store %arg12[%c256, %c0_70], %60 {strides = array<i32>} : memref<288x1156xf32, #tpu.memory_space<vmem>>, vector<32x1156xf32>,
    %c0_71 = arith.constant 0 : index
    %c0_72 = arith.constant 0 : index
    %62 = vector.load %arg12[%c0_71, %c0_72] : memref<288x1156xf32, #tpu.memory_space<vmem>>, vector<288x1156xf32>
    %c0_73 = arith.constant 0 : index
    %c0_74 = arith.constant 0 : index
    %63 = vector.load %arg4[%c0_73, %c0_74] : memref<16x288xf32, #tpu.memory_space<vmem>>, vector<16x288xf32>
    %cst_75 = arith.constant dense<0.000000e+00> : vector<16x1156xf32>
    %64 = tpu.matmul %63, %62, %cst_75 {dimension_numbers = #tpu.dot_dimension_numbers<[1], [0], [0], [1], [0, 0, 1, 1], [], []>} : vector<16x288xf32>, vector<288x1156xf32>, vector<16x1156xf32> -> vector<16x1156xf32>
    %c0_76 = arith.constant 0 : index
    %c0_77 = arith.constant 0 : index
    %65 = vector.load %arg5[%c0_76, %c0_77] : memref<16x1xf32, #tpu.memory_space<vmem>>, vector<16x1xf32>
    %66 = vector.broadcast %65 : vector<16x1xf32> to vector<16x1156xf32>
    %67 = arith.addf %64, %66 : vector<16x1156xf32>
    %cst_78 = arith.constant 2.000000e-01 : f32
    %68 = vector.broadcast %cst_78 : f32 to vector<16x1156xf32>
    %69 = arith.mulf %68, %67 : vector<16x1156xf32>
    %70 = arith.maximumf %67, %69 : vector<16x1156xf32>
    %cst_79 = arith.constant 0.000000e+00 : f32
    %71 = vector.shape_cast %2 : vector<1x1156xi1> to vector<1x1156xi1>
    %72 = vector.broadcast %71 : vector<1x1156xi1> to vector<16x1156xi1>
    %73 = vector.broadcast %cst_79 : f32 to vector<16x1156xf32>
    %74 = arith.select %72, %70, %73 : vector<16x1156xi1>, vector<16x1156xf32>
    %c0_80 = arith.constant 0 : index
    %c35_81 = arith.constant 35 : index
    %75 = vector.load %arg11[%c0_80, %c35_81] : memref<16x1226xf32, #tpu.memory_space<vmem>>, vector<16x1156xf32>
    tpu.vector_store %arg11[%c0_80, %c35_81], %74 {strides = array<i32>} : memref<16x1226xf32, #tpu.memory_space<vmem>>, vector<16x1156xf32>,
    %c0_82 = arith.constant 0 : index
    %c0_83 = arith.constant 0 : index
    %76 = vector.load %arg11[%c0_82, %c0_83] : memref<16x1226xf32, #tpu.memory_space<vmem>>, vector<16x1156xf32>
    %c0_84 = arith.constant 0 : index
    %c0_85 = arith.constant 0 : index
    %77 = vector.load %arg12[%c0_84, %c0_85] : memref<288x1156xf32, #tpu.memory_space<vmem>>, vector<16x1156xf32>
    tpu.vector_store %arg12[%c0_84, %c0_85], %76 {strides = array<i32>} : memref<288x1156xf32, #tpu.memory_space<vmem>>, vector<16x1156xf32>,
    %c0_86 = arith.constant 0 : index
    %c1_87 = arith.constant 1 : index
    %78 = vector.load %arg11[%c0_86, %c1_87] : memref<16x1226xf32, #tpu.memory_space<vmem>>, vector<16x1156xf32>
    %c16_88 = arith.constant 16 : index
    %c0_89 = arith.constant 0 : index
    %79 = vector.load %arg12[%c16_88, %c0_89] : memref<288x1156xf32, #tpu.memory_space<vmem>>, vector<16x1156xf32>
    tpu.vector_store %arg12[%c16_88, %c0_89], %78 {strides = array<i32>} : memref<288x1156xf32, #tpu.memory_space<vmem>>, vector<16x1156xf32>,
    %c0_90 = arith.constant 0 : index
    %c2_91 = arith.constant 2 : index
    %80 = vector.load %arg11[%c0_90, %c2_91] : memref<16x1226xf32, #tpu.memory_space<vmem>>, vector<16x1156xf32>
    %c32_92 = arith.constant 32 : index
    %c0_93 = arith.constant 0 : index
    %81 = vector.load %arg12[%c32_92, %c0_93] : memref<288x1156xf32, #tpu.memory_space<vmem>>, vector<16x1156xf32>
    tpu.vector_store %arg12[%c32_92, %c0_93], %80 {strides = array<i32>} : memref<288x1156xf32, #tpu.memory_space<vmem>>, vector<16x1156xf32>,
    %c0_94 = arith.constant 0 : index
    %c34_95 = arith.constant 34 : index
    %82 = vector.load %arg11[%c0_94, %c34_95] : memref<16x1226xf32, #tpu.memory_space<vmem>>, vector<16x1156xf32>
    %c48_96 = arith.constant 48 : index
    %c0_97 = arith.constant 0 : index
    %83 = vector.load %arg12[%c48_96, %c0_97] : memref<288x1156xf32, #tpu.memory_space<vmem>>, vector<16x1156xf32>
    tpu.vector_store %arg12[%c48_96, %c0_97], %82 {strides = array<i32>} : memref<288x1156xf32, #tpu.memory_space<vmem>>, vector<16x1156xf32>,
    %c0_98 = arith.constant 0 : index
    %c35_99 = arith.constant 35 : index
    %84 = vector.load %arg11[%c0_98, %c35_99] : memref<16x1226xf32, #tpu.memory_space<vmem>>, vector<16x1156xf32>
    %c64_100 = arith.constant 64 : index
    %c0_101 = arith.constant 0 : index
    %85 = vector.load %arg12[%c64_100, %c0_101] : memref<288x1156xf32, #tpu.memory_space<vmem>>, vector<16x1156xf32>
    tpu.vector_store %arg12[%c64_100, %c0_101], %84 {strides = array<i32>} : memref<288x1156xf32, #tpu.memory_space<vmem>>, vector<16x1156xf32>,
    %c0_102 = arith.constant 0 : index
    %c36_103 = arith.constant 36 : index
    %86 = vector.load %arg11[%c0_102, %c36_103] : memref<16x1226xf32, #tpu.memory_space<vmem>>, vector<16x1156xf32>
    %c80 = arith.constant 80 : index
    %c0_104 = arith.constant 0 : index
    %87 = vector.load %arg12[%c80, %c0_104] : memref<288x1156xf32, #tpu.memory_space<vmem>>, vector<16x1156xf32>
    tpu.vector_store %arg12[%c80, %c0_104], %86 {strides = array<i32>} : memref<288x1156xf32, #tpu.memory_space<vmem>>, vector<16x1156xf32>,
    %c0_105 = arith.constant 0 : index
    %c68_106 = arith.constant 68 : index
    %88 = vector.load %arg11[%c0_105, %c68_106] : memref<16x1226xf32, #tpu.memory_space<vmem>>, vector<16x1156xf32>
    %c96_107 = arith.constant 96 : index
    %c0_108 = arith.constant 0 : index
    %89 = vector.load %arg12[%c96_107, %c0_108] : memref<288x1156xf32, #tpu.memory_space<vmem>>, vector<16x1156xf32>
    tpu.vector_store %arg12[%c96_107, %c0_108], %88 {strides = array<i32>} : memref<288x1156xf32, #tpu.memory_space<vmem>>, vector<16x1156xf32>,
    %c0_109 = arith.constant 0 : index
    %c69_110 = arith.constant 69 : index
    %90 = vector.load %arg11[%c0_109, %c69_110] : memref<16x1226xf32, #tpu.memory_space<vmem>>, vector<16x1156xf32>
    %c112 = arith.constant 112 : index
    %c0_111 = arith.constant 0 : index
    %91 = vector.load %arg12[%c112, %c0_111] : memref<288x1156xf32, #tpu.memory_space<vmem>>, vector<16x1156xf32>
    tpu.vector_store %arg12[%c112, %c0_111], %90 {strides = array<i32>} : memref<288x1156xf32, #tpu.memory_space<vmem>>, vector<16x1156xf32>,
    %c0_112 = arith.constant 0 : index
    %c70_113 = arith.constant 70 : index
    %92 = vector.load %arg11[%c0_112, %c70_113] : memref<16x1226xf32, #tpu.memory_space<vmem>>, vector<16x1156xf32>
    %c128_114 = arith.constant 128 : index
    %c0_115 = arith.constant 0 : index
    %93 = vector.load %arg12[%c128_114, %c0_115] : memref<288x1156xf32, #tpu.memory_space<vmem>>, vector<16x1156xf32>
    tpu.vector_store %arg12[%c128_114, %c0_115], %92 {strides = array<i32>} : memref<288x1156xf32, #tpu.memory_space<vmem>>, vector<16x1156xf32>,
    %c0_116 = arith.constant 0 : index
    %c0_117 = arith.constant 0 : index
    %94 = vector.load %arg12[%c0_116, %c0_117] : memref<288x1156xf32, #tpu.memory_space<vmem>>, vector<144x1156xf32>
    %c0_118 = arith.constant 0 : index
    %c0_119 = arith.constant 0 : index
    %95 = vector.load %arg6[%c0_118, %c0_119] : memref<8x144xf32, #tpu.memory_space<vmem>>, vector<8x144xf32>
    %cst_120 = arith.constant dense<0.000000e+00> : vector<8x1156xf32>
    %96 = tpu.matmul %95, %94, %cst_120 {dimension_numbers = #tpu.dot_dimension_numbers<[1], [0], [0], [1], [0, 0, 1, 1], [], []>} : vector<8x144xf32>, vector<144x1156xf32>, vector<8x1156xf32> -> vector<8x1156xf32>
    %c0_121 = arith.constant 0 : index
    %c0_122 = arith.constant 0 : index
    %97 = vector.load %arg7[%c0_121, %c0_122] : memref<8x1xf32, #tpu.memory_space<vmem>>, vector<8x1xf32>
    %98 = vector.broadcast %97 : vector<8x1xf32> to vector<8x1156xf32>
    %99 = arith.addf %96, %98 : vector<8x1156xf32>
    %cst_123 = arith.constant 0.000000e+00 : f32
    %100 = vector.shape_cast %2 : vector<1x1156xi1> to vector<1x1156xi1>
    %101 = vector.broadcast %100 : vector<1x1156xi1> to vector<8x1156xi1>
    %102 = vector.broadcast %cst_123 : f32 to vector<8x1156xf32>
    %103 = arith.select %101, %99, %102 : vector<8x1156xi1>, vector<8x1156xf32>
    %c0_124 = arith.constant 0 : index
    %c0_125 = arith.constant 0 : index
    %c0_126 = arith.constant 0 : index
    %104 = vector.load %arg9[%c0_124, %c0_125, %c0_126] : memref<1x8x1156xf32, #tpu.memory_space<vmem>>, vector<1x8x1156xf32>
    %105 = vector.shape_cast %104 : vector<1x8x1156xf32> to vector<8x1156xf32>
    %106 = vector.shape_cast %103 : vector<8x1156xf32> to vector<1x8x1156xf32>
    tpu.vector_store %arg9[%c0_124, %c0_125, %c0_126], %106 {strides = array<i32>} : memref<1x8x1156xf32, #tpu.memory_space<vmem>>, vector<1x8x1156xf32>,
    return
  }
  func.func @transform_0(%arg0: i32) -> (i32, i32, i32) {
    %c0_i32 = arith.constant 0 : i32
    %c0_i32_0 = arith.constant 0 : i32
    %c0_i32_1 = arith.constant 0 : i32
    return %arg0, %c0_i32, %c0_i32_0 : i32, i32, i32
  }
  func.func @transform_1(%arg0: i32) -> (i32, i32) {
    %c0_i32 = arith.constant 0 : i32
    %c0_i32_0 = arith.constant 0 : i32
    %c0_i32_1 = arith.constant 0 : i32
    return %c0_i32, %c0_i32_0 : i32, i32
  }
  func.func @transform_2(%arg0: i32) -> (i32, i32) {
    %c0_i32 = arith.constant 0 : i32
    %c0_i32_0 = arith.constant 0 : i32
    %c0_i32_1 = arith.constant 0 : i32
    return %c0_i32, %c0_i32_0 : i32, i32
  }
  func.func @transform_3(%arg0: i32) -> (i32, i32) {
    %c0_i32 = arith.constant 0 : i32
    %c0_i32_0 = arith.constant 0 : i32
    %c0_i32_1 = arith.constant 0 : i32
    return %c0_i32, %c0_i32_0 : i32, i32
  }
  func.func @transform_4(%arg0: i32) -> (i32, i32) {
    %c0_i32 = arith.constant 0 : i32
    %c0_i32_0 = arith.constant 0 : i32
    %c0_i32_1 = arith.constant 0 : i32
    return %c0_i32, %c0_i32_0 : i32, i32
  }
  func.func @transform_5(%arg0: i32) -> (i32, i32) {
    %c0_i32 = arith.constant 0 : i32
    %c0_i32_0 = arith.constant 0 : i32
    %c0_i32_1 = arith.constant 0 : i32
    return %c0_i32, %c0_i32_0 : i32, i32
  }
  func.func @transform_6(%arg0: i32) -> (i32, i32) {
    %c0_i32 = arith.constant 0 : i32
    %c0_i32_0 = arith.constant 0 : i32
    %c0_i32_1 = arith.constant 0 : i32
    return %c0_i32, %c0_i32_0 : i32, i32
  }
  func.func @transform_7(%arg0: i32) -> (i32, i32) {
    %c0_i32 = arith.constant 0 : i32
    %c0_i32_0 = arith.constant 0 : i32
    %c0_i32_1 = arith.constant 0 : i32
    return %c0_i32, %c0_i32_0 : i32, i32
  }
  func.func @transform_8(%arg0: i32) -> (i32, i32, i32) {
    %c0_i32 = arith.constant 0 : i32
    %c0_i32_0 = arith.constant 0 : i32
    %c0_i32_1 = arith.constant 0 : i32
    return %arg0, %c0_i32, %c0_i32_0 : i32, i32, i32
  }
}

</mosaic_0001>

<bundles_post_ra>
// kernel: tpu_custom_call.1
= control target key start
LH: loop header
LB: loop body
LE: loop exit
PB: predicated region body
PF: predicated region fallthrough
CT: control target
= control target key end

     0   :  { %s11502_s0 = inlined_call_operand.hbm [shape: f32[2,8,1226], index: 0, kind: input, shape index: {}]   ;;  %s11503_s1 = inlined_call_operand.hbm [shape: f32[32,72], index: 1, kind: input, shape index: {}]   ;;  %s11504_s2 = inlined_call_operand.vmem [shape: f32[32,1], index: 2, kind: input, shape index: {}]   ;;  %s11505_s3 = inlined_call_operand.vmem [shape: f32[16,288], index: 3, kind: input, shape index: {}]   ;;  %s11506_s4 = inlined_call_operand.vmem [shape: f32[16,1], index: 4, kind: input, shape index: {}]   ;;  %s11507_s5 = inlined_call_operand.hbm [shape: f32[8,144], index: 5, kind: input, shape index: {}]   ;;  %s11508_s6 = inlined_call_operand.vmem [shape: f32[8,1], index: 6, kind: input, shape index: {}]   ;;  %s11509_s7 = inlined_call_operand.hbm [shape: f32[1,1156], index: 7, kind: input, shape index: {}]   ;;  %s11510_s8 = inlined_call_operand.hbm [shape: f32[2,8,1156], index: 8, kind: output, shape index: {}]  }
   0x1   :  { %11558 = sst [smem:[#allocation38_spill]] %s11503_s1 }
   0x2   :  { %11559 = sst [smem:[#allocation39_spill]] %s11507_s5 }
   0x3   :  { %11560 = sst [smem:[#allocation40_spill]] %s11509_s7 }
   0x4   :  { %13 = vsyncpa [#allocation6], 0 }
   0x5   :  { %15 = vsyncpa [#allocation6 + $0x1], 0 }
   0x6   :  { %16 = vsyncpa [#allocation9], 0 }
   0x7   :  { %17 = vsyncpa [#allocation12], 0 }
   0x8   :  { %18 = vsyncpa [#allocation7], 0 }
   0x9   :  { %20 = vsyncpa [#allocation7 + $0x1], 0  ;;  %s7612_s27 = smov 0   ;;  %s7614_s28 = smov 0  }
   0xa   :  { %s7616_s29 = smov 0   ;;  %s7618_s30 = smov 0  }
   0xb LB: > { %11561 = sst [smem:[#allocation18_spill]] %s7546_s29  ;;  %s7636_s12 = sadd.s32 4294967295, %s7550_s30   ;;  %s7550_s30 = sphi %s7618_s30, %s11922_s30   ;;  %s7546_s29 = sphi %s7616_s29, %s11919_s29   ;;  %s7542_s28 = sphi %s7614_s28, %s11921_s28   ;;  %s7538_s27 = sphi %s7612_s27, %s11920_s27  }
   0xc   : > { %s11562_s1 = sld [smem:[#allocation38_spill]]  ;;  %p7171_p0 = scmp.ge.s32.totalorder %s7550_s30, 1 }
   0xd   : > { %p47_p1 = scmp.eq.s32.totalorder %s7636_s12, 0  ;;  %p230_p2 = scmp.lt.s32.totalorder %s7550_s30, 3 }
   0xe   : > { %s7552_s14 = smov [#allocation8]   ;;  %s11564_s5 = sld [smem:[#allocation39_spill]] }
   0xf   : > { %p7641_p3 = pnand %p7171_p0, %p230_p2  ;;  %s243_s15 = sshll.u32 %s7552_s14, 4  ;;  %s244_s15 = int_to_ptr.vmem [resolvable:$true] %s243_s15 }
  0x10   : > { %s11566_s7 = sld [smem:[#allocation40_spill]]  ;;  %s7553_s23 = smov [#allocation10]  }
  0x11   : > { %p7274_p4 = pneg %p7641_p3  ;;  %s267_s24 = sshll.u32 %s7553_s23, 4  ;;  %s268_s24 = int_to_ptr.vmem [resolvable:$true] %s267_s24 }
  0x12   : > { %s241_s11 = sshll.u32 %s11562_s1, 4  ;;  %s7554_s25 = smov 128   ;;  %s242_s11 = int_to_ptr.hbm [resolvable:$true] %s241_s11 }
  0x13   : > { %p7653_p6 = pnand %p7274_p4, %p47_p1  ;;  %s7555_s26 = smov 8  }
  0x14   : > { %s265_s18 = sshll.u32 %s11564_s5, 4  ;;  %s7556_s9 = smov [#allocation11]   ;;  %s266_s18 = int_to_ptr.hbm [resolvable:$true] %s265_s18 }
  0x15   : > { %7277 = dma.hbm_to_vmem [thread:$0]  (!%p7653_p6), %s242_s11, 512, %s244_s15, [#allocation9], %s7554_s25, %s7554_s25, %s7555_s26  }
  0x16   : > { %s280_s22 = sshll.u32 %s11566_s7, 4  ;;  %s282_s10 = sshll.u32 %s7556_s9, 4  ;;  %s281_s22 = int_to_ptr.hbm [resolvable:$true] %s280_s22  ;;  %s283_s10 = int_to_ptr.vmem [resolvable:$true] %s282_s10 }
  0x17   : > { %7280 = dma.hbm_to_vmem [thread:$0]  (!%p7653_p6), %s266_s18, 256, %s268_s24, [#allocation9]  }
  0x18   : > { %7283 = dma.hbm_to_vmem [thread:$0]  (!%p7653_p6), %s281_s22, 160, %s283_s10, [#allocation12]  }
  0x19   : > { %s7170_s14 = sadd.s32 4294967294, %s7550_s30   ;;  %s7668_s16 = sadd.s32 1, %s7550_s30  }
  0x1a   : > { %s33_s17 = sadd.s32 1, %s7546_s29  ;;  %s30_s11 = ssub.s32 %s7550_s30, %s7668_s16 }
  0x1b   : > { %p40_p7 = scmp.ne.s32.totalorder %s7546_s29, %s7542_s28  ;;  %p31_p8 = scmp.eq.s32.totalorder %s30_s11, 0 }
  0x1c   : > { %p41_p9 = scmp.eq.s32.totalorder %s7550_s30, 0  ;;  %p46_p10 = scmp.ne.s32.totalorder %s7542_s28, %s7538_s27 }
  0x1d   : > { %p217_p11 = scmp.eq.s32.totalorder %s7636_s12, 1  ;;  %p223_p2 = scmp.eq.s32.totalorder %s7170_s14, 1 }
  0x1e   : > { %s7680_s15 = scalar_select %p31_p8, %s7546_s29, %s33_s17  }
  0x1f   : > { %p42_p12 = por %p41_p9, %p40_p7  ;;  %p7684_p13 = por %p47_p1, %p46_p10 }
  0x20   : > { %11567 = sst [smem:[#allocation19_spill]] %s7680_s15  ;;  %p7688_p0 = por %p217_p11, %p40_p7 }
  0x21   : > { %p7295_p4 = scmp.lt.s32.totalorder %s7550_s30, 2  ;;  %s293_s20 = sand.u32 1, %s7546_s29  }
  0x22   : > { %p7694_p6 = por %p223_p2, %p46_p10  ;;  %s7254_s22 = smul.u32 80, %s293_s20 }
  0x23   : > { %p7698_p8 = pnand %p7295_p4, %p42_p12  ;;  %s7255_s24 = smul.u32 80, %s7550_s30 }
  0x24   : > { %s297_s10 = scalar_lea.vmem [#allocation5], %s7254_s22  ;;  %s294_s11 = scalar_lea.sflag [#allocation6], %s293_s20 }
  0x25   : > { %s302_s9 = scalar_lea.hbm %s11502_s0, %s7255_s24  ;;  %s306_s17 = sshll.u32 %s297_s10, 4  ;;  %s307_s17 = int_to_ptr.vmem [resolvable:$true] %s306_s17 }
  0x26   : > { %s304_s14 = sshll.u32 %s302_s9, 4  ;;  %p7450_p9 = pneg %p7698_p8  ;;  %s305_s14 = int_to_ptr.hbm [resolvable:$true] %s304_s14 }
  0x27   : > { %s7446_s1 = sshra.s32 %s305_s14, 4  ;;  %s7453_s29 = scalar_lea.hbm %s11502_s0, 160  ;;  %s7447_s1 = int_to_ptr.hbm [resolvable:$true] %s7446_s1 }
  0x28   : > { %s7448_s5 = scalar_lea.hbm %s7447_s1, 80  ;;  %p7454_p12 = scmp.lt.s32.totalorder %s7447_s1, %s11502_s0 }
  0x29   : > { %p7449_p7 = scmp.ne.s32.totalorder %s7447_s1, %s7448_s5  ;;  %p7455_p2 = scmp.lt.s32.totalorder %s7453_s29, %s7448_s5 }
  0x2b   : > { %p7451_p10 = pnand %p7450_p9, %p7449_p7  ;;  %p7456_p4 = por %p7455_p2, %p7454_p12 }
  0x2d   : > { %p7452_p11 = pneg %p7451_p10 }
  0x2f   : > { %p7457_p5 = pnand %p7456_p4, %p7452_p11 }
  0x31   : > { %7460 = shalt.err (!%p7457_p5)
}
  0x32   : > { %7287 = dma.hbm_to_vmem [thread:$0]  (!%p7698_p8), %s305_s14, 1280, %s307_s17, %s294_s11  }
  0x33   : > { %315 = sbr.rel (%p7641_p3) target bundleno = 2705 (0xa91), region = 52 }
  0x38   : > { %s7719_s20 = sand.u32 1, %s7542_s28  }
  0x39   : > { %s7256_s7 = smul.u32 80, %s7719_s20  ;;  %s318_s15 = scalar_lea.sflag [#allocation6], %s7719_s20 }
  0x3b   : > { %s7725_s1 = scalar_lea.vmem [#allocation5], %s7256_s7 }
  0x3c   : > { %7521 = dma.done.wait (%p7684_p13), %s318_s15, 1280  }
  0x3d   : > { %7523 = vsyncadd (%p7684_p13), %s318_s15, 4294966016 }
  0x3e   : > { %7525 = dma.done.wait (%p47_p1), [#allocation9], 768  }
  0x3f   : > { %7527 = vsyncadd (%p47_p1), [#allocation9], 4294966528 }
  0x40   : > { %7529 = dma.done.wait (%p47_p1), [#allocation12], 160  }
  0x41   : > { %7531 = vsyncadd (%p47_p1), [#allocation12], 4294967136  ;;  %v7740_v0 = vld [vmem:[%s7725_s1 + $0x10] sm:$0xff]  ;;  %v7743_v1 = vld [vmem:[%s7725_s1] sm:$0xff]  ;;  %s7557_s5 = smov 127   ;;  %s7558_s29 = smov 126  }
  0x42   : > { %419 = vrot.lane.b32.xlu1 %v7740_v0, %s7557_s5  ;;  %415 = vrot.lane.b32.xlu0 %v7743_v1, %s7557_s5  ;;  %v7750_v2 = vld [vmem:[%s7725_s1 + $0x20] sm:$0xff]  ;;  %v7755_v3 = vld [vmem:[%s7725_s1 + $0x18] sm:$0xff]  ;;  %s7559_s13 = smov 94   ;;  %s7560_s18 = smov 93   ;;  %vm11557_vm0 = vcmask 31744   ;;  %vm11530_vm1 = vcmask 474112  }
  0x43   : > { %423 = vrot.lane.b32.xlu2 %v7750_v2, %s7557_s5  ;;  %v7758_v4 = vld [vmem:[%s7725_s1 + $0x8] sm:$0xff]  ;;  %v7770_v6 = vld [vmem:[%s7725_s1 + $0x38] sm:$0xff]  ;;  %v7773_v7 = vld [vmem:[%s7725_s1 + $0x30] sm:$0xff]  ;;  %s7561_s22 = smov 92   ;;  %s7562_s23 = smov 60   ;;  %vm11531_vm2 = vcmask 482304  }
  0x44   : > { %v7761_v5 = vld [vmem:[%s7725_s1 + $0x28] sm:$0xff]  ;;  %v7776_v8 = vld [vmem:[%s7725_s1 + $0x40] sm:$0xff]  ;;  %s7563_s26 = smov 59   ;;  %s7564_s9 = smov 58   ;;  %vm11532_vm3 = vcmask 490496   ;;  %vm11533_vm4 = vcmask 752640  }
  0x45   : > { %v7785_v9 = vld [vmem:[%s7725_s1 + $0x48] sm:$0xff]  ;;  %vm11534_vm5 = vcmask 760832   ;;  %vm11544_vm6 = vcmask 769024   ;;  %vm11545_vm7 = vcmask 1031168   ;;  %vm11546_vm8 = vcmask 1039360   ;;  %s7496_s25 = scalar_lea.hbm %s11510_s8, 160 }
  0x46   : > { %vm1073_vm9 = vcmask 588800  }
  0x4a   : > { %421 = vrot.lane.b32.xlu1 %v7755_v3, %s7557_s5  ;;  %417 = vrot.lane.b32.xlu0 %v7758_v4, %s7557_s5 }
  0x4b   : > { %425 = vrot.lane.b32.xlu2 %v7761_v5, %s7557_s5 }
  0x52   : > { %429 = vrot.lane.b32.xlu1 %v7770_v6, %s7557_s5  ;;  %427 = vrot.lane.b32.xlu0 %v7773_v7, %s7557_s5 }
  0x53   : > { %431 = vrot.lane.b32.xlu2 %v7776_v8, %s7557_s5 }
  0x5a   : > { %485 = vrot.lane.b32.xlu1 %v7743_v1, %s7558_s29  ;;  %433 = vrot.lane.b32.xlu0 %v7785_v9, %s7557_s5 }
  0x5b   : > { %487 = vrot.lane.b32.xlu2 %v7758_v4, %s7558_s29 }
  0x62   : > { %491 = vrot.lane.b32.xlu1 %v7755_v3, %s7558_s29  ;;  %489 = vrot.lane.b32.xlu0 %v7740_v0, %s7558_s29 }
  0x63   : > { %493 = vrot.lane.b32.xlu2 %v7750_v2, %s7558_s29 }
  0x6a   : > { %497 = vrot.lane.b32.xlu1 %v7773_v7, %s7558_s29  ;;  %495 = vrot.lane.b32.xlu0 %v7761_v5, %s7558_s29 }
  0x6b   : > { %499 = vrot.lane.b32.xlu2 %v7770_v6, %s7558_s29 }
  0x72   : > { %503 = vrot.lane.b32.xlu1 %v7785_v9, %s7558_s29  ;;  %501 = vrot.lane.b32.xlu0 %v7776_v8, %s7558_s29 }
  0x73   : > { %555 = vrot.lane.b32.xlu2 %v7743_v1, %s7559_s13 }
  0x7a   : > { %559 = vrot.lane.b32.xlu1 %v7740_v0, %s7559_s13  ;;  %557 = vrot.lane.b32.xlu0 %v7758_v4, %s7559_s13 }
  0x7b   : > { %561 = vrot.lane.b32.xlu2 %v7755_v3, %s7559_s13 }
  0x82   : > { %565 = vrot.lane.b32.xlu1 %v7761_v5, %s7559_s13  ;;  %563 = vrot.lane.b32.xlu0 %v7750_v2, %s7559_s13 }
  0x83   : > { %567 = vrot.lane.b32.xlu2 %v7773_v7, %s7559_s13 }
  0x8a   : > { %571 = vrot.lane.b32.xlu1 %v7776_v8, %s7559_s13  ;;  %569 = vrot.lane.b32.xlu0 %v7770_v6, %s7559_s13 }
  0x8b   : > { %573 = vrot.lane.b32.xlu2 %v7785_v9, %s7559_s13 }
  0x92   : > { %627 = vrot.lane.b32.xlu1 %v7758_v4, %s7560_s18  ;;  %625 = vrot.lane.b32.xlu0 %v7743_v1, %s7560_s18 }
  0x93   : > { %629 = vrot.lane.b32.xlu2 %v7740_v0, %s7560_s18 }
  0x9a   : > { %633 = vrot.lane.b32.xlu1 %v7750_v2, %s7560_s18  ;;  %631 = vrot.lane.b32.xlu0 %v7755_v3, %s7560_s18 }
  0x9b   : > { %635 = vrot.lane.b32.xlu2 %v7761_v5, %s7560_s18 }
  0x9d   : > { %v7841_v10 = vpop.permute.xlu2 %423 }
  0xa2   : > { %639 = vrot.lane.b32.xlu1 %v7770_v6, %s7560_s18  ;;  %637 = vrot.lane.b32.xlu0 %v7773_v7, %s7560_s18 }
  0xa3   : > { %641 = vrot.lane.b32.xlu2 %v7776_v8, %s7560_s18 }
  0xa5   : > { %v7849_v11 = vpop.permute.xlu2 %425 }
  0xaa   : > { %695 = vrot.lane.b32.xlu1 %v7743_v1, %s7561_s22  ;;  %643 = vrot.lane.b32.xlu0 %v7785_v9, %s7560_s18 }
  0xab   : > { %697 = vrot.lane.b32.xlu2 %v7758_v4, %s7561_s22 }
  0xad   : > { %v7857_v12 = vpop.permute.xlu2 %431 }
  0xae   : > { %11572 = vst [vmem:[#allocation20_spill] sm:$0xff] %v7857_v12 }
  0xb2   : > { %701 = vrot.lane.b32.xlu1 %v7755_v3, %s7561_s22  ;;  %699 = vrot.lane.b32.xlu0 %v7740_v0, %s7561_s22 }
  0xb3   : > { %703 = vrot.lane.b32.xlu2 %v7750_v2, %s7561_s22 }
  0xb4   : > { %v7863_v13 = vpop.permute.xlu1 %419  ;;  %v7865_v14 = vpop.permute.xlu0 %415 }
  0xb5   : > { %v7869_v15 = vpop.permute.xlu2 %487 }
  0xba   : > { %707 = vrot.lane.b32.xlu1 %v7773_v7, %s7561_s22  ;;  %705 = vrot.lane.b32.xlu0 %v7761_v5, %s7561_s22 }
  0xbb   : > { %709 = vrot.lane.b32.xlu2 %v7770_v6, %s7561_s22 }
  0xbc   : > { %v7875_v16 = vpop.permute.xlu1 %421  ;;  %v7877_v17 = vpop.permute.xlu0 %417 }
  0xbd   : > { %v7881_v18 = vpop.permute.xlu2 %493 }
  0xc2   : > { %713 = vrot.lane.b32.xlu1 %v7785_v9, %s7561_s22  ;;  %711 = vrot.lane.b32.xlu0 %v7776_v8, %s7561_s22 }
  0xc3   : > { %765 = vrot.lane.b32.xlu2 %v7743_v1, %s7562_s23 }
  0xc4   : > { %v7887_v19 = vpop.permute.xlu1 %429  ;;  %v7889_v20 = vpop.permute.xlu0 %427 }
  0xc5   : > { %11573 = vst [vmem:[#allocation21_spill] sm:$0xff] %v7887_v19  ;;  %v7893_v21 = vpop.permute.xlu2 %499 }
  0xc6   : > { %11574 = vst [vmem:[#allocation22_spill] sm:$0xff] %v7889_v20 }
  0xc7   : > { %11575 = vst [vmem:[#allocation23_spill] sm:$0xff] %v7893_v21 }
  0xca   : > { %769 = vrot.lane.b32.xlu1 %v7740_v0, %s7562_s23  ;;  %767 = vrot.lane.b32.xlu0 %v7758_v4, %s7562_s23 }
  0xcb   : > { %771 = vrot.lane.b32.xlu2 %v7755_v3, %s7562_s23 }
  0xcc   : > { %v7899_v22 = vpop.permute.xlu1 %485  ;;  %v7901_v23 = vpop.permute.xlu0 %433 }
  0xcd   : > { %11576 = vst [vmem:[#allocation24_spill] sm:$0xff] %v7901_v23  ;;  %v7907_v24 = vpop.permute.xlu2 %555 }
  0xce   : > { %464 = vst.msk [vmem:[#allocation4 + $0x98] sm:$0xff] %vm11557_vm0, %v7901_v23 }
  0xd2   : > { %775 = vrot.lane.b32.xlu1 %v7761_v5, %s7562_s23  ;;  %773 = vrot.lane.b32.xlu0 %v7750_v2, %s7562_s23 }
  0xd3   : > { %777 = vrot.lane.b32.xlu2 %v7773_v7, %s7562_s23 }
  0xd4   : > { %v7913_v25 = vpop.permute.xlu1 %491  ;;  %v7915_v26 = vpop.permute.xlu0 %489 }
  0xd5   : > { %v7919_v27 = vpop.permute.xlu2 %561 }
  0xda   : > { %781 = vrot.lane.b32.xlu1 %v7776_v8, %s7562_s23  ;;  %779 = vrot.lane.b32.xlu0 %v7770_v6, %s7562_s23 }
  0xdb   : > { %783 = vrot.lane.b32.xlu2 %v7785_v9, %s7562_s23 }
  0xdc   : > { %v7925_v28 = vpop.permute.xlu1 %497  ;;  %v7927_v29 = vpop.permute.xlu0 %495 }
  0xdd   : > { %11577 = vst [vmem:[#allocation25_spill] sm:$0xff] %v7925_v28  ;;  %v7931_v30 = vpop.permute.xlu2 %567 }
  0xde   : > { %11578 = vst [vmem:[#allocation26_spill] sm:$0xff] %v7931_v30 }
  0xe2   : > { %837 = vrot.lane.b32.xlu1 %v7758_v4, %s7563_s26  ;;  %835 = vrot.lane.b32.xlu0 %v7743_v1, %s7563_s26 }
  0xe3   : > { %839 = vrot.lane.b32.xlu2 %v7740_v0, %s7563_s26 }
  0xe4   : > { %v7937_v31 = vpop.permute.xlu1 %503  ;;  %v7939_v32 = vpop.permute.xlu0 %501 }
  0xe5   : > { %11579 = vst [vmem:[#allocation27_spill] sm:$0xff] %v7937_v31  ;;  %v7945_v33 = vpop.permute.xlu2 %573 }
  0xe6   : > { %11580 = vst [vmem:[#allocation28_spill] sm:$0xff] %v7939_v32 }
  0xe7   : > { %534 = vst.msk [vmem:[#allocation4 + $0xe8] sm:$0xff] %vm11557_vm0, %v7937_v31 }
  0xe8   : > { %11581 = vst [vmem:[#allocation29_spill] sm:$0xff] %v7945_v33 }
  0xe9   : > { %604 = vst.msk [vmem:[#allocation4 + $0x138] sm:$0xff] %vm11557_vm0, %v7945_v33 }
  0xea   : > { %843 = vrot.lane.b32.xlu1 %v7750_v2, %s7563_s26  ;;  %841 = vrot.lane.b32.xlu0 %v7755_v3, %s7563_s26 }
  0xeb   : > { %845 = vrot.lane.b32.xlu2 %v7761_v5, %s7563_s26 }
  0xec   : > { %v7953_v34 = vpop.permute.xlu1 %559  ;;  %v7955_v35 = vpop.permute.xlu0 %557 }
  0xed   : > { %v7959_v36 = vpop.permute.xlu2 %629 }
  0xf2   : > { %849 = vrot.lane.b32.xlu1 %v7770_v6, %s7563_s26  ;;  %847 = vrot.lane.b32.xlu0 %v7773_v7, %s7563_s26 }
  0xf3   : > { %851 = vrot.lane.b32.xlu2 %v7776_v8, %s7563_s26 }
  0xf4   : > { %v7965_v37 = vpop.permute.xlu1 %565  ;;  %v7967_v38 = vpop.permute.xlu0 %563 }
  0xf5   : > { %v7971_v39 = vpop.permute.xlu2 %635 }
  0xfa   : > { %905 = vrot.lane.b32.xlu1 %v7743_v1, %s7564_s9  ;;  %853 = vrot.lane.b32.xlu0 %v7785_v9, %s7563_s26 }
  0xfb   : > { %907 = vrot.lane.b32.xlu2 %v7758_v4, %s7564_s9 }
  0xfc   : > { %v7977_v40 = vpop.permute.xlu1 %571  ;;  %v7979_v41 = vpop.permute.xlu0 %569 }
  0xfd   : > { %11582 = vst [vmem:[#allocation30_spill] sm:$0xff] %v7977_v40  ;;  %v7983_v42 = vpop.permute.xlu2 %641 }
  0xfe   : > { %11583 = vst [vmem:[#allocation31_spill] sm:$0xff] %v7979_v41 }
  0xff   : > { %11584 = vst [vmem:[#allocation32_spill] sm:$0xff] %v7983_v42 }
 0x102   : > { %911 = vrot.lane.b32.xlu1 %v7755_v3, %s7564_s9  ;;  %909 = vrot.lane.b32.xlu0 %v7740_v0, %s7564_s9 }
 0x103   : > { %913 = vrot.lane.b32.xlu2 %v7750_v2, %s7564_s9 }
 0x104   : > { %v7989_v43 = vpop.permute.xlu1 %627  ;;  %v7991_v44 = vpop.permute.xlu0 %625 }
 0x105   : > { %v7995_v45 = vpop.permute.xlu2 %697 }
 0x10a   : > { %915 = vrot.lane.b32.xlu0 %v7761_v5, %s7564_s9  ;;  %917 = vrot.lane.b32.xlu1 %v7773_v7, %s7564_s9 }
 0x10b   : > { %919 = vrot.lane.b32.xlu2 %v7770_v6, %s7564_s9 }
 0x10c   : > { %v8001_v46 = vpop.permute.xlu1 %633  ;;  %v8003_v47 = vpop.permute.xlu0 %631 }
 0x10d   : > { %v8007_v48 = vpop.permute.xlu2 %703 }
 0x112   : > { %921 = vrot.lane.b32.xlu0 %v7776_v8, %s7564_s9  ;;  %923 = vrot.lane.b32.xlu1 %v7785_v9, %s7564_s9 }
 0x114   : > { %v8013_v49 = vpop.permute.xlu1 %639  ;;  %v8015_v50 = vpop.permute.xlu0 %637 }
 0x115   : > { %11585 = vst [vmem:[#allocation33_spill] sm:$0xff] %v8013_v49  ;;  %v8017_v51 = vpop.permute.xlu2 %709 }
 0x116   : > { %11586 = vst [vmem:[#allocation34_spill] sm:$0xff] %v8015_v50 }
 0x11c   : > { %v696_v52 = vpop.permute.xlu1 %695  ;;  %v8019_v53 = vpop.permute.xlu0 %643 }
 0x11d   : > { %11587 = vst [vmem:[#allocation35_spill] sm:$0xff] %v8019_v53  ;;  %v766_v54 = vpop.permute.xlu2 %765  ;;  %v716_v49 = vsel %vm11533_vm4, %v696_v52, %v7995_v45 }
 0x11e   : > { %674 = vst.msk [vmem:[#allocation4 + $0x188] sm:$0xff] %vm11557_vm0, %v8019_v53 }
 0x124   : > { %v8023_v55 = vpop.permute.xlu1 %701  ;;  %v8025_v56 = vpop.permute.xlu0 %699 }
 0x125   : > { %v8027_v57 = vpop.permute.xlu2 %771 }
 0x12c   : > { %v8029_v58 = vpop.permute.xlu1 %707  ;;  %v8031_v59 = vpop.permute.xlu0 %705 }
 0x12d   : > { %v8033_v60 = vpop.permute.xlu2 %777 }
 0x134   : > { %v8035_v61 = vpop.permute.xlu1 %713  ;;  %v8037_v62 = vpop.permute.xlu0 %711 }
 0x135   : > { %11588 = vst [vmem:[#allocation36_spill] sm:$0xff] %v8035_v61  ;;  %v8041_v63 = vpop.permute.xlu2 %783 }
 0x136   : > { %744 = vst.msk [vmem:[#allocation4 + $0x1d8] sm:$0xff] %vm11557_vm0, %v8035_v61 }
 0x137   : > { %11589 = vst [vmem:[#allocation37_spill] sm:$0xff] %v8041_v63 }
 0x138   : > { %814 = vst.msk [vmem:[#allocation4 + $0x228] sm:$0xff] %vm11557_vm0, %v8041_v63 }
 0x13c   : > { %v770_v2 = vpop.permute.xlu1 %769  ;;  %v768_v5 = vpop.permute.xlu0 %767 }
 0x13d   : > { %v840_v8 = vpop.permute.xlu2 %839  ;;  %v786_v30 = vsel %vm11532_vm3, %v766_v54, %v768_v5 }
 0x144   : > { %v8045_v6 = vpop.permute.xlu1 %775  ;;  %v8047_v7 = vpop.permute.xlu0 %773 }
 0x145   : > { %v8053_v31 = vpop.permute.xlu2 %845 }
 0x14c   : > { %v8049_v9 = vpop.permute.xlu1 %781  ;;  %v8051_v23 = vpop.permute.xlu0 %779 }
 0x14d   : > { %v8057_v19 = vpop.permute.xlu2 %851 }
 0x154   : > { %v838_v33 = vpop.permute.xlu1 %837  ;;  %v836_v53 = vpop.permute.xlu0 %835 }
 0x155   : > { %v908_v32 = vpop.permute.xlu2 %907  ;;  %v856_v41 = vsel %vm11531_vm2, %v836_v53, %v838_v33  ;;  %v857_v52 = vsel %vm11531_vm2, %v838_v33, %v840_v8  ;;  %v789_v33 = vsel %vm11532_vm3, %v8027_v57, %v8047_v7 }
 0x15c   : > { %v8055_v61 = vpop.permute.xlu1 %843  ;;  %v842_v12 = vpop.permute.xlu0 %841 }
 0x15d   : > { %v914_v42 = vpop.permute.xlu2 %913 }
 0x164   : > { %v8059_v20 = vpop.permute.xlu1 %849  ;;  %v8061_v63 = vpop.permute.xlu0 %847 }
 0x16c   : > { %v906_v28 = vpop.permute.xlu1 %905  ;;  %v8063_v21 = vpop.permute.xlu0 %853 }
 0x16d   : > { %v926_v40 = vsel %vm11530_vm1, %v906_v28, %v908_v32  ;;  %884 = vst.msk [vmem:[#allocation4 + $0x278] sm:$0xff] %vm11557_vm0, %v8063_v21 }
 0x16e   : > { %1093 = vmatpush.msra.mxu0 %v926_v40  ;;  %v646_v40 = vsel %vm11534_vm5, %v7991_v44, %v7989_v43  ;;  %v859_v44 = vsel %vm11531_vm2, %v842_v12, %v8055_v61 }
 0x170   : > { %1094 = vmatpush.msra.mxu0 %v856_v41 }
 0x172   : > { %1095 = vmatpush.msra.mxu0 %v786_v30  ;;  %v576_v30 = vsel %vm11544_vm6, %v7907_v24, %v7955_v35  ;;  %v788_v24 = vsel %vm11532_vm3, %v770_v2, %v8027_v57  ;;  %v718_v57 = vsel %vm11533_vm4, %v8025_v56, %v8023_v55 }
 0x174   : > { %v912_v50 = vpop.permute.xlu1 %911  ;;  %v910_v28 = vpop.permute.xlu0 %909  ;;  %1096 = vmatpush.msra.mxu0 %v716_v49  ;;  %v858_v49 = vsel %vm11531_vm2, %v840_v8, %v842_v12  ;;  %v436_v12 = vsel %vm11546_vm8, %v7865_v14, %v7877_v17  ;;  %v647_v14 = vsel %vm11534_vm5, %v7989_v43, %v7959_v36  ;;  %v577_v43 = vsel %vm11544_vm6, %v7955_v35, %v7953_v34 }
 0x175   : > { %v929_v53 = vsel %vm11530_vm1, %v912_v50, %v914_v42  ;;  %v927_v41 = vsel %vm11530_vm1, %v908_v32, %v910_v28  ;;  %v928_v54 = vsel %vm11530_vm1, %v910_v28, %v912_v50  ;;  %v506_v32 = vsel %vm11545_vm7, %v7899_v22, %v7869_v15 }
 0x176   : > { %1097 = vmatpush.msra.mxu0 %v646_v40  ;;  %1122 = vmatpush.msra.mxu1 %v927_v41  ;;  %v787_v50 = vsel %vm11532_vm3, %v768_v5, %v770_v2  ;;  %v717_v22 = vsel %vm11533_vm4, %v7995_v45, %v8025_v56  ;;  %v719_v2 = vsel %vm11533_vm4, %v8023_v55, %v8007_v48  ;;  %v8109_v45 = vld [vmem:[#allocation8] sm:$0xff] }
 0x177   : > { %1151 = vmatpush.msra.mxu2 %v928_v54  ;;  %1180 = vmatpush.msra.mxu3 %v929_v53  ;;  %v648_v28 = vsel %vm11534_vm5, %v7959_v36, %v8003_v47  ;;  %v649_v55 = vsel %vm11534_vm5, %v8003_v47, %v8001_v46  ;;  %v578_v40 = vsel %vm11544_vm6, %v7953_v34, %v7919_v27  ;;  %v8204_v54 = vld [vmem:[#allocation8 + $0x10] sm:$0xff] }
 0x178   : > { %1098 = vmatpush.msra.mxu0 %v576_v30  ;;  %1123 = vmatpush.msra.mxu1 %v857_v52  ;;  %v507_v36 = vsel %vm11545_vm7, %v7869_v15, %v7915_v26  ;;  %v508_v35 = vsel %vm11545_vm7, %v7915_v26, %v7913_v25  ;;  %v860_v34 = vsel %vm11531_vm2, %v8055_v61, %v8053_v31  ;;  %v920_v61 = vpop.permute.xlu2 %919 }
 0x179   : > { %1152 = vmatpush.msra.mxu2 %v858_v49  ;;  %1181 = vmatpush.msra.mxu3 %v859_v44  ;;  %v437_v15 = vsel %vm11546_vm8, %v7877_v17, %v7863_v13  ;;  %v438_v26 = vsel %vm11546_vm8, %v7863_v13, %v7875_v16  ;;  %v439_v17 = vsel %vm11546_vm8, %v7875_v16, %v7841_v10  ;;  %v11592_v49 = vld [vmem:[#allocation32_spill] sm:$0xff] }
 0x17a   : > { %1099 = vmatpush.msra.mxu0 %v506_v32  ;;  %1124 = vmatpush.msra.mxu1 %v787_v50  ;;  %v720_v13 = vsel %vm11533_vm4, %v8007_v48, %v8031_v59  ;;  %v650_v48 = vsel %vm11534_vm5, %v8001_v46, %v7971_v39  ;;  %v510_v46 = vsel %vm11545_vm7, %v7881_v18, %v7927_v29  ;;  %v11593_v32 = vld [vmem:[#allocation26_spill] sm:$0xff] }
 0x17b   : > { %1153 = vmatpush.msra.mxu2 %v788_v24  ;;  %1182 = vmatpush.msra.mxu3 %v789_v33  ;;  %v581_v50 = vsel %vm11544_vm6, %v7965_v37, %v11593_v32  ;;  %v11594_v24 = vld [vmem:[#allocation31_spill] sm:$0xff]  ;;  %v11595_v33 = vld [vmem:[#allocation30_spill] sm:$0xff] }
 0x17c   : > { %v916_v5 = vpop.permute.xlu0 %915  ;;  %1100 = vmatpush.msra.mxu0 %v436_v12  ;;  %1125 = vmatpush.msra.mxu1 %v717_v22  ;;  %v918_v8 = vpop.permute.xlu1 %917  ;;  %v583_v12 = vsel %vm11544_vm6, %v11594_v24, %v11595_v33  ;;  %v864_v22 = vsel %vm11531_vm2, %v8057_v19, %v8063_v21  ;;  %v11600_v21 = vld [vmem:[#allocation22_spill] sm:$0xff] }
 0x17d   : > { %1154 = vmatpush.msra.mxu2 %v718_v57  ;;  %1183 = vmatpush.msra.mxu3 %v719_v2  ;;  %v930_v56 = vsel %vm11530_vm1, %v914_v42, %v916_v5  ;;  %v790_v42 = vsel %vm11532_vm3, %v8047_v7, %v8045_v6  ;;  %v931_v16 = vsel %vm11530_vm1, %v916_v5, %v918_v8  ;;  %v11596_v2 = vld [vmem:[#allocation23_spill] sm:$0xff]  ;;  %v11597_v57 = vld [vmem:[#allocation25_spill] sm:$0xff] }
 0x17e   : > { %1101 = vmatpush.msra.mxu0 %v7743_v1  ;;  %1126 = vmatpush.msra.mxu1 %v647_v14  ;;  %v579_v1 = vsel %vm11544_vm6, %v7919_v27, %v7967_v38  ;;  %v509_v27 = vsel %vm11545_vm7, %v7913_v25, %v7881_v18  ;;  %v8155_v25 = vld [vmem:[#allocation8 + $0x8] sm:$0xff]  ;;  %v932_v7 = vsel %vm11530_vm1, %v918_v8, %v920_v61  ;;  %v11598_v8 = vld [vmem:[#allocation28_spill] sm:$0xff] }
 0x17f   : > { %1155 = vmatpush.msra.mxu2 %v648_v28  ;;  %1184 = vmatpush.msra.mxu3 %v649_v55  ;;  %v440_v18 = vsel %vm11546_vm8, %v7841_v10, %v7849_v11  ;;  %v723_v10 = vsel %vm11533_vm4, %v8017_v51, %v8037_v62  ;;  %v511_v5 = vsel %vm11545_vm7, %v7927_v29, %v11597_v57  ;;  %v11599_v28 = vld [vmem:[#allocation37_spill] sm:$0xff] }
 0x180   : > { %7181 = vmatmul.msk.f32.vlgmr.msra.gmra.mxu0 %vm1073_vm9, %v8109_v45  ;;  %1127 = vmatpush.msra.mxu1 %v577_v43  ;;  %v513_v14 = vsel %vm11545_vm7, %v11596_v2, %v11598_v8  ;;  %v441_v55 = vsel %vm11546_vm8, %v7849_v11, %v11600_v21  ;;  %v8264_v43 = vld [vmem:[#allocation8 + $0x18] sm:$0xff] }
 0x181   : > { %1209 = vmatpush.msrb.mxu0 %v930_v56  ;;  %1156 = vmatpush.msra.mxu2 %v578_v40  ;;  %v11601_v56 = vld [vmem:[#allocation21_spill] sm:$0xff]  ;;  %v11602_v40 = vld [vmem:[#allocation20_spill] sm:$0xff] }
 0x182   : > { %1185 = vmatpush.msra.mxu3 %v579_v1  ;;  %1128 = vmatpush.msra.mxu1 %v507_v36  ;;  %v442_v29 = vsel %vm11546_vm8, %v11600_v21, %v11601_v56  ;;  %v443_v36 = vsel %vm11546_vm8, %v11601_v56, %v11602_v40  ;;  %v11603_v1 = vld [vmem:[#allocation36_spill] sm:$0xff] }
 0x183   : > { %1210 = vmatpush.msrb.mxu0 %v860_v34  ;;  %1157 = vmatpush.msra.mxu2 %v508_v35  ;;  %v379_v11 = vld [vmem:[%s7725_s1 + $0x28] sm:$0xff] }
 0x184   : > { %1186 = vmatpush.msra.mxu3 %v509_v27  ;;  %1129 = vmatpush.msra.mxu1 %v437_v15  ;;  %v924_v47 = vpop.permute.xlu1 %923  ;;  %v922_v53 = vpop.permute.xlu0 %921  ;;  %v11604_v34 = vld [vmem:[#allocation35_spill] sm:$0xff]  ;;  %v11605_v27 = vld [vmem:[#allocation29_spill] sm:$0xff] }
 0x185   : > { %1211 = vmatpush.msrb.mxu0 %v790_v42  ;;  %1158 = vmatpush.msra.mxu2 %v438_v26  ;;  %954 = vst.msk [vmem:[#allocation4 + $0x2c8] sm:$0xff] %vm11557_vm0, %v924_v47  ;;  %v933_v41 = vsel %vm11530_vm1, %v920_v61, %v922_v53  ;;  %v934_v30 = vsel %vm11530_vm1, %v922_v53, %v924_v47  ;;  %v7565_v42 = vmov 0   ;;  %v1049_v47 = vld [vmem:[%s11504_s2] sm:$0xff] }
 0x186   : > { %1187 = vmatpush.msra.mxu3 %v439_v17  ;;  %1130 = vmatpush.msra.mxu1 %v7758_v4  ;;  %v862_v4 = vsel %vm11531_vm2, %v8061_v63, %v8059_v20  ;;  %v654_v15 = vsel %vm11534_vm5, %v11592_v49, %v11604_v34  ;;  %v584_v26 = vsel %vm11544_vm6, %v11595_v33, %v11605_v27  ;;  %v1034_v17 = vld [vmem:[#allocation4 + $0x278] sm:$0xff]  ;;  %v380_v61 = vld [vmem:[%s7725_s1 + $0x30] sm:$0xff] }
 0x187   : > { %1212 = vmatpush.msrb.mxu0 %v720_v13  ;;  %1159 = vmatpush.msra.mxu2 %v7740_v0  ;;  %v580_v0 = vsel %vm11544_vm6, %v7967_v38, %v7965_v37  ;;  %v863_v38 = vsel %vm11531_vm2, %v8059_v20, %v8057_v19  ;;  %v793_v20 = vsel %vm11532_vm3, %v8051_v23, %v8049_v9  ;;  %v11606_v13 = vld [vmem:[#allocation27_spill] sm:$0xff] }
 0x188   : > { %1188 = vmatpush.msra.mxu3 %v7755_v3  ;;  %7182 = vmatmul.msk.f32.gmra.mxu0 %vm1073_vm9, %v8155_v25  ;;  %v861_v3 = vsel %vm11531_vm2, %v8053_v31, %v8061_v63  ;;  %v791_v31 = vsel %vm11532_vm3, %v8045_v6, %v8033_v60  ;;  %v792_v63 = vsel %vm11532_vm3, %v8033_v60, %v8051_v23  ;;  %v378_v23 = vld [vmem:[%s7725_s1 + $0x20] sm:$0xff] }
 0x189   : > { %7185 = vmatmul.msk.f32.vlgmr.msra.gmra.mxu1 %vm1073_vm9, %v8109_v45  ;;  %7189 = vmatmul.msk.f32.vlgmr.msra.gmra.mxu2 %vm1073_vm9, %v8109_v45  ;;  %v722_v6 = vsel %vm11533_vm4, %v8029_v58, %v8017_v51  ;;  %v721_v60 = vsel %vm11533_vm4, %v8031_v59, %v8029_v58  ;;  %v11590_v58 = vld [vmem:[#allocation34_spill] sm:$0xff]  ;;  %v11591_v51 = vld [vmem:[#allocation33_spill] sm:$0xff]  ;;  %v512_v37 = vsel %vm11545_vm7, %v11597_v57, %v11596_v2 }
 0x18a   : > { %7193 = vmatmul.msk.f32.vlgmr.msra.gmra.mxu3 %vm1073_vm9, %v8109_v45  ;;  %1213 = vmatpush.msrb.mxu0 %v650_v48  ;;  %v651_v59 = vsel %vm11534_vm5, %v7971_v39, %v11590_v58  ;;  %v652_v52 = vsel %vm11534_vm5, %v11590_v58, %v11591_v51  ;;  %v653_v44 = vsel %vm11534_vm5, %v11591_v51, %v11592_v49  ;;  %vm1638_vm5 = vcmask 285696  }
 0x18b   : > { %1238 = vmatpush.msrb.mxu1 %v931_v16  ;;  %1267 = vmatpush.msrb.mxu2 %v932_v7  ;;  %v582_v39 = vsel %vm11544_vm6, %v11593_v32, %v11594_v24  ;;  %v794_v19 = vsel %vm11532_vm3, %v8049_v9, %v11599_v28  ;;  %v724_v9 = vsel %vm11533_vm4, %v8037_v62, %v11603_v1  ;;  %v1050_v62 = vld [vmem:[%s11504_s2 + $0x8] sm:$0xff]  ;;  %v11607_v7 = vld [vmem:[#allocation24_spill] sm:$0xff]  ;;  %vm11535_vm4 = vcmask 1047832  }
 0x18c   : > { %1296 = vmatpush.msrb.mxu3 %v933_v41  ;;  %1214 = vmatpush.msrb.mxu0 %v580_v0  ;;  %v1044_v35 = vld [vmem:[#allocation4 + $0x2c8] sm:$0xff]  ;;  %v514_v53 = vsel %vm11545_vm7, %v11598_v8, %v11606_v13  ;;  %v444_v48 = vsel %vm11546_vm8, %v11602_v40, %v11607_v7  ;;  %v1014_v41 = vld [vmem:[#allocation4 + $0x1d8] sm:$0xff] }
 0x18d   : > { %1239 = vmatpush.msrb.mxu1 %v861_v3  ;;  %1268 = vmatpush.msrb.mxu2 %v862_v4  ;;  %v1024_v16 = vld [vmem:[#allocation4 + $0x228] sm:$0xff]  ;;  %v382_v3 = vld [vmem:[%s7725_s1 + $0x40] sm:$0xff] }
 0x18e   : > { %1297 = vmatpush.msrb.mxu3 %v863_v38  ;;  %1215 = vmatpush.msrb.mxu0 %v510_v46  ;;  %v381_v0 = vld [vmem:[%s7725_s1 + $0x38] sm:$0xff]  ;;  %v383_v4 = vld [vmem:[%s7725_s1 + $0x48] sm:$0xff]  ;;  %v1051_v38 = vld [vmem:[%s11504_s2 + $0x10] sm:$0xff]  ;;  %s7566_s1 = smov 35  }
 0x18f   : > { %1240 = vmatpush.msrb.mxu1 %v791_v31  ;;  %1269 = vmatpush.msrb.mxu2 %v792_v63  ;;  %v1004_v46 = vld [vmem:[#allocation4 + $0x188] sm:$0xff]  ;;  %394 = vst.msk [vmem:[#allocation4 + $0x48] sm:$0xff] %vm11557_vm0, %v383_v4  ;;  %v1052_v31 = vld [vmem:[%s11504_s2 + $0x18] sm:$0xff] }
 0x190   : > { %1298 = vmatpush.msrb.mxu3 %v793_v20  ;;  %1216 = vmatpush.msrb.mxu0 %v440_v18  ;;  %v994_v63 = vld [vmem:[#allocation4 + $0x138] sm:$0xff]  ;;  %v984_v18 = vld [vmem:[#allocation4 + $0xe8] sm:$0xff] }
 0x191   : > { %1241 = vmatpush.msrb.mxu1 %v721_v60  ;;  %1270 = vmatpush.msrb.mxu2 %v722_v6  ;;  %v974_v20 = vld [vmem:[#allocation4 + $0x98] sm:$0xff]  ;;  %v370_v60 = vld [vmem:[#allocation11] sm:$0xff] }
 0x192   : > { %1299 = vmatpush.msrb.mxu3 %v723_v10  ;;  %7183 = vmatmul.msk.f32.gmra.mxu0 %vm1073_vm9, %v8204_v54  ;;  %vm372_vm10 = vcmp.gt.f32.partialorder %v370_v60, 0.0 }
 0x193   : > { %7186 = vmatmul.msk.f32.gmra.mxu1 %vm1073_vm9, %v8155_v25  ;;  %7190 = vmatmul.msk.f32.gmra.mxu2 %vm1073_vm9, %v8155_v25 }
 0x194   : > { %7194 = vmatmul.msk.f32.gmra.mxu3 %vm1073_vm9, %v8155_v25  ;;  %1217 = vmatpush.msrb.mxu0 %v378_v23 }
 0x195   : > { %1242 = vmatpush.msrb.mxu1 %v651_v59  ;;  %1271 = vmatpush.msrb.mxu2 %v652_v52 }
 0x196   : > { %1300 = vmatpush.msrb.mxu3 %v653_v44  ;;  %1325 = vmatpush.msra.mxu0 %v934_v30  ;;  %v964_v6 = vld [vmem:[#allocation4 + $0x48] sm:$0xff] }
 0x197   : > { %1243 = vmatpush.msrb.mxu1 %v581_v50  ;;  %1272 = vmatpush.msrb.mxu2 %v582_v39 }
 0x198   : > { %1301 = vmatpush.msrb.mxu3 %v583_v12  ;;  %1326 = vmatpush.msra.mxu0 %v864_v22 }
 0x199   : > { %1244 = vmatpush.msrb.mxu1 %v511_v5  ;;  %1273 = vmatpush.msrb.mxu2 %v512_v37 }
 0x19a   : > { %1302 = vmatpush.msrb.mxu3 %v513_v14  ;;  %1327 = vmatpush.msra.mxu0 %v794_v19 }
 0x19b   : > { %1245 = vmatpush.msrb.mxu1 %v441_v55  ;;  %1274 = vmatpush.msrb.mxu2 %v442_v29 }
 0x19c   : > { %1303 = vmatpush.msrb.mxu3 %v443_v36  ;;  %1328 = vmatpush.msra.mxu0 %v724_v9 }
 0x19d   : > { %7184 = vmatmul.msk.f32.gmra.mxu0 %vm1073_vm9, %v8264_v43  ;;  %7187 = vmatmul.msk.f32.gmra.mxu1 %vm1073_vm9, %v8204_v54 }
 0x19e   : > { %7191 = vmatmul.msk.f32.gmra.mxu2 %vm1073_vm9, %v8204_v54  ;;  %7195 = vmatmul.msk.f32.gmra.mxu3 %vm1073_vm9, %v8204_v54 }
 0x19f   : > { %1246 = vmatpush.msrb.mxu1 %v379_v11  ;;  %1329 = vmatpush.msra.mxu0 %v654_v15 }
 0x1a0   : > { %7348 = vset.pattern.permute.xlu0 %v7565_v42  ;;  %7347 = vset.pattern.permute.xlu2 %v7565_v42 }
 0x1a1   : > { %1354 = vmatpush.msra.mxu1 %v1044_v35  ;;  %1060 = vperm.xlu0 %7348, %v1050_v62  }
 0x1a2   : > { %1330 = vmatpush.msra.mxu0 %v584_v26  ;;  %1055 = vperm.xlu2 %7347, %v1049_v47  }
 0x1a3   : > { %1355 = vmatpush.msra.mxu1 %v1034_v17  ;;  %1275 = vmatpush.msrb.mxu2 %v380_v61 }
 0x1a4   : > { %1331 = vmatpush.msra.mxu0 %v514_v53  ;;  %1304 = vmatpush.msrb.mxu3 %v381_v0 }
 0x1a5   : > { %1356 = vmatpush.msra.mxu1 %v1024_v16  ;;  %7197 = vmatmul.msk.f32.vlgmr.msrb.gmra.mxu0 %vm1073_vm9, %v8109_v45 }
 0x1a6   : > { %1332 = vmatpush.msra.mxu0 %v444_v48  ;;  %7188 = vmatmul.msk.f32.gmra.mxu1 %vm1073_vm9, %v8264_v43 }
 0x1a7   : > { %1357 = vmatpush.msra.mxu1 %v1014_v41  ;;  %7192 = vmatmul.msk.f32.gmra.mxu2 %vm1073_vm9, %v8264_v43 }
 0x1a8   : > { %7196 = vmatmul.msk.f32.gmra.mxu3 %vm1073_vm9, %v8264_v43  ;;  %7349 = vset.pattern.permute.xlu1 %v7565_v42 }
 0x1a9   : > { %1358 = vmatpush.msra.mxu1 %v1004_v46  ;;  %1333 = vmatpush.msra.mxu0 %v382_v3 }
 0x1aa   : > { %1065 = vperm.xlu1 %7349, %v1051_v38   ;;  %1070 = vperm.xlu2 %7347, %v1052_v31  }
 0x1ab   : > { %1359 = vmatpush.msra.mxu1 %v994_v63 }
 0x1ad   : > { %1360 = vmatpush.msra.mxu1 %v984_v18  ;;  %7198 = vmatmul.msk.f32.gmra.mxu0 %vm1073_vm9, %v8155_v25 }
 0x1ae   : > { %7201 = vmatmul.msk.f32.vlgmr.msrb.gmra.mxu1 %vm1073_vm9, %v8109_v45 }
 0x1af   : > { %1361 = vmatpush.msra.mxu1 %v974_v20  ;;  %7205 = vmatmul.msk.f32.vlgmr.msrb.gmra.mxu2 %vm1073_vm9, %v8109_v45 }
 0x1b0   : > { %7209 = vmatmul.msk.f32.vlgmr.msrb.gmra.mxu3 %vm1073_vm9, %v8109_v45 }
 0x1b1   : > { %1362 = vmatpush.msra.mxu1 %v964_v6 }
 0x1b5   : > { %7199 = vmatmul.msk.f32.gmra.mxu0 %vm1073_vm9, %v8204_v54 }
 0x1b6   : > { %7202 = vmatmul.msk.f32.gmra.mxu1 %vm1073_vm9, %v8155_v25 }
 0x1b7   : > { %7206 = vmatmul.msk.f32.gmra.mxu2 %vm1073_vm9, %v8155_v25 }
 0x1b8   : > { %7210 = vmatmul.msk.f32.gmra.mxu3 %vm1073_vm9, %v8155_v25 }
 0x1bd   : > { %7200 = vmatmul.msk.f32.gmra.mxu0 %vm1073_vm9, %v8264_v43 }
 0x1be   : > { %7203 = vmatmul.msk.f32.gmra.mxu1 %vm1073_vm9, %v8204_v54 }
 0x1bf   : > { %7207 = vmatmul.msk.f32.gmra.mxu2 %vm1073_vm9, %v8204_v54 }
 0x1c0   : > { %7211 = vmatmul.msk.f32.gmra.mxu3 %vm1073_vm9, %v8204_v54 }
 0x1c5   : > { %7213 = vmatmul.msk.f32.vlgmr.msra.gmra.mxu0 %vm1073_vm9, %v8109_v45 }
 0x1c6   : > { %7204 = vmatmul.msk.f32.gmra.mxu1 %vm1073_vm9, %v8264_v43 }
 0x1c7   : > { %7208 = vmatmul.msk.f32.gmra.mxu2 %vm1073_vm9, %v8264_v43 }
 0x1c8   : > { %7212 = vmatmul.msk.f32.gmra.mxu3 %vm1073_vm9, %v8264_v43 }
 0x1cd   : > { %7214 = vmatmul.msk.f32.gmra.mxu0 %vm1073_vm9, %v8155_v25 }
 0x1ce   : > { %7217 = vmatmul.msk.f32.vlgmr.msra.gmra.mxu1 %vm1073_vm9, %v8109_v45  ;;  %v8368_v45 = vsel %vm372_vm10, 1, %v7565_v42 }
 0x1cf   : > { %v1458_v23 = vperm.slane %v8368_v45, 0  ;;  %v1459_v44 = vperm.slane %v8368_v45, 1  ;;  %v1460_v12 = vperm.slane %v8368_v45, 2  ;;  %v1461_v37 = vperm.slane %v8368_v45, 3 }
 0x1d1   : > { %vm8374_vm11 = vcmp.eq.s32.totalorder %v1458_v23, 1  ;;  %vm8383_vm12 = vcmp.eq.s32.totalorder %v1459_v44, 1  ;;  %vm8394_vm13 = vcmp.eq.s32.totalorder %v1460_v12, 1  ;;  %vm8398_vm14 = vcmp.eq.s32.totalorder %v1461_v37, 1 }
 0x1d5   : > { %7215 = vmatmul.msk.f32.gmra.mxu0 %vm1073_vm9, %v8204_v54 }
 0x1d6   : > { %7218 = vmatmul.msk.f32.gmra.mxu1 %vm1073_vm9, %v8155_v25 }
 0x1dd   : > { %7216 = vmatmul.msk.f32.gmra.mxu0 %vm1073_vm9, %v8264_v43 }
 0x1de   : > { %7219 = vmatmul.msk.f32.gmra.mxu1 %vm1073_vm9, %v8204_v54 }
 0x1e6   : > { %7220 = vmatmul.msk.f32.gmra.mxu1 %vm1073_vm9, %v8264_v43 }
 0x1fc   : > { %v8370_v10 = vpop.permute.xlu2 %1055 }
 0x1fd   : > { %v1103_v25 = vpop.f32.mrf.mxu0 }
 0x1fe   : > { %v1104_v30 = vadd.f32 %v1103_v25, %v8370_v10 }
 0x200   : > { %v1376_v58 = vmul.f32 0.2, %v1104_v30 }
 0x202   : > { %v1416_v59 = vmax.f32 %v1104_v30, %v1376_v58 }
 0x204   : > { %v1478_v51 = vsel %vm8374_vm11, %v1416_v59, 0.0  ;;  %v8427_v63 = vpop.permute.xlu2 %1070 }
 0x205   : > { %1558 = vrot.lane.b32.xlu1 %v1478_v51, %s7566_s1  ;;  %v1106_v52 = vpop.f32.mrf.mxu0 }
 0x206   : > { %v1132_v49 = vpop.f32.mrf.mxu1 }
 0x207   : > { %v1133_v32 = vadd.f32 %v1132_v49, %v8370_v10 }
 0x209   : > { %v1377_v50 = vmul.f32 0.2, %v1133_v32 }
 0x20b   : > { %v1417_v39 = vmax.f32 %v1133_v32, %v1377_v50 }
 0x20c   : > { %v1161_v33 = vpop.f32.mrf.mxu2 }
 0x20d   : > { %v1162_v22 = vadd.f32 %v1161_v33, %v8370_v10  ;;  %v1190_v2 = vpop.f32.mrf.mxu3  ;;  %v1479_v57 = vsel %vm8383_vm12, %v1417_v39, 0.0 }
 0x20e   : > { %v1191_v5 = vadd.f32 %v1190_v2, %v8370_v10  ;;  %1560 = vrot.lane.b32.xlu2 %v1479_v57, %s7566_s1 }
 0x20f   : > { %v1378_v8 = vmul.f32 0.2, %v1162_v22  ;;  %v1109_v28 = vpop.f32.mrf.mxu0 }
 0x210   : > { %v1379_v14 = vmul.f32 0.2, %v1191_v5  ;;  %v1135_v19 = vpop.f32.mrf.mxu1 }
 0x211   : > { %v1418_v55 = vmax.f32 %v1162_v22, %v1378_v8 }
 0x212   : > { %v1419_v29 = vmax.f32 %v1191_v5, %v1379_v14 }
 0x213   : > { %v8402_v43 = vpop.permute.xlu0 %1060  ;;  %v1480_v40 = vsel %vm8394_vm13, %v1418_v55, 0.0 }
 0x214   : > { %v1136_v36 = vadd.f32 %v1135_v19, %v8402_v43  ;;  %1562 = vrot.lane.b32.xlu0 %v1480_v40, %s7566_s1  ;;  %v1481_v1 = vsel %vm8398_vm14, %v1419_v29, 0.0  ;;  %v1107_v9 = vadd.f32 %v1106_v52, %v8402_v43 }
 0x215   : > { %1564 = vrot.lane.b32.xlu1 %v1481_v1, %s7566_s1 }
 0x216   : > { %v1387_v11 = vmul.f32 0.2, %v1136_v36  ;;  %v1164_v35 = vpop.f32.mrf.mxu2  ;;  %v1386_v34 = vmul.f32 0.2, %v1107_v9 }
 0x217   : > { %v1165_v15 = vadd.f32 %v1164_v35, %v8402_v43  ;;  %v1193_v62 = vpop.f32.mrf.mxu3 }
 0x218   : > { %v1194_v27 = vadd.f32 %v1193_v62, %v8402_v43  ;;  %v1426_v26 = vmax.f32 %v1107_v9, %v1386_v34  ;;  %v1427_v47 = vmax.f32 %v1136_v36, %v1387_v11 }
 0x219   : > { %v1388_v17 = vmul.f32 0.2, %v1165_v15 }
 0x21a   : > { %v1389_v61 = vmul.f32 0.2, %v1194_v27  ;;  %v1112_v13 = vpop.f32.mrf.mxu0  ;;  %v1138_v53 = vpop.f32.mrf.mxu1  ;;  %v1488_v16 = vsel %vm8374_vm11, %v1426_v26, 0.0  ;;  %v1489_v7 = vsel %vm8383_vm12, %v1427_v47, 0.0 }
 0x21b   : > { %1578 = vrot.lane.b32.xlu2 %v1488_v16, %s7566_s1  ;;  %v1428_v48 = vmax.f32 %v1165_v15, %v1388_v17  ;;  %v1113_v20 = vadd.f32 %v1112_v13, %v8427_v63 }
 0x21c   : > { %v8419_v41 = vpop.permute.xlu1 %1065  ;;  %1580 = vrot.lane.b32.xlu0 %v1489_v7, %s7566_s1  ;;  %v1429_v0 = vmax.f32 %v1194_v27, %v1389_v61  ;;  %v1463_v7 = vperm.slane %v8368_v45, 5 }
 0x21d   : > { %v1490_v3 = vsel %vm8394_vm13, %v1428_v48, 0.0  ;;  %v1110_v4 = vadd.f32 %v1109_v28, %v8419_v41  ;;  %v1139_v46 = vadd.f32 %v1138_v53, %v8419_v41  ;;  %v1406_v50 = vmul.f32 0.2, %v1113_v20 }
 0x21e   : > { %1582 = vrot.lane.b32.xlu1 %v1490_v3, %s7566_s1  ;;  %v1491_v18 = vsel %vm8398_vm14, %v1429_v0, 0.0  ;;  %v1462_v53 = vperm.slane %v8368_v45, 4  ;;  %vm8474_vm9 = vcmp.eq.s32.totalorder %v1463_v7, 1 }
 0x21f   : > { %v1396_v38 = vmul.f32 0.2, %v1110_v4  ;;  %v1397_v31 = vmul.f32 0.2, %v1139_v46  ;;  %v1446_v57 = vmax.f32 %v1113_v20, %v1406_v50  ;;  %v11619_v20 = vmov 0 }
 0x220   : > { %vm8470_vm15 = vcmp.eq.s32.totalorder %v1462_v53, 1  ;;  %v11620_v20 = vsel %vm8474_vm9, 4294967295, %v11619_v20 }
 0x221   : > { %v1167_v6 = vpop.f32.mrf.mxu2  ;;  %v1196_v60 = vpop.f32.mrf.mxu3  ;;  %v1436_v25 = vmax.f32 %v1110_v4, %v1396_v38  ;;  %v1437_v23 = vmax.f32 %v1139_v46, %v1397_v31  ;;  %v1508_v36 = vsel %vm8374_vm11, %v1446_v57, 0.0  ;;  %v1464_v46 = vperm.slane %v8368_v45, 6  ;;  %11621 = vst [vmem:[#allocation33_spill] sm:$0xff] %v11620_v20 }
 0x222   : > { %v1168_v30 = vadd.f32 %v1167_v6, %v8419_v41  ;;  %v1197_v58 = vadd.f32 %v1196_v60, %v8419_v41  ;;  %v1219_v32 = vpop.f32.mrf.mxu0 }
 0x223   : > { %v1141_v59 = vpop.f32.mrf.mxu1  ;;  %1584 = vrot.lane.b32.xlu2 %v1491_v18, %s7566_s1  ;;  %v1498_v51 = vsel %vm8374_vm11, %v1436_v25, 0.0  ;;  %v1499_v52 = vsel %vm8383_vm12, %v1437_v23, 0.0  ;;  %v1220_v1 = vadd.f32 %v1219_v32, %v8370_v10  ;;  %v11616_v18 = vmov 0 }
 0x224   : > { %v1398_v49 = vmul.f32 0.2, %v1168_v30  ;;  %v1399_v44 = vmul.f32 0.2, %v1197_v58  ;;  %1598 = vrot.lane.b32.xlu0 %v1498_v51, %s7566_s1  ;;  %v1142_v39 = vadd.f32 %v1141_v59, %v8427_v63  ;;  %v11617_v18 = vsel %vm8470_vm15, 4294967295, %v11616_v18 }
 0x225   : > { %v1380_v62 = vmul.f32 0.2, %v1220_v1  ;;  %11618 = vst [vmem:[#allocation34_spill] sm:$0xff] %v11617_v18  ;;  %vm8481_vm10 = vcmp.eq.s32.totalorder %v1464_v46, 1  ;;  %v11622_v59 = vmov 0 }
 0x226   : > { %1600 = vrot.lane.b32.xlu1 %v1499_v52, %s7566_s1  ;;  %v1438_v33 = vmax.f32 %v1168_v30, %v1398_v49  ;;  %v1439_v12 = vmax.f32 %v1197_v58, %v1399_v44  ;;  %v1407_v37 = vmul.f32 0.2, %v1142_v39  ;;  %v11623_v59 = vsel %vm8481_vm10, 4294967295, %v11622_v59 }
 0x227   : > { %v1420_v4 = vmax.f32 %v1220_v1, %v1380_v62  ;;  %11624 = vst [vmem:[#allocation32_spill] sm:$0xff] %v11623_v59  ;;  %v1465_v49 = vperm.slane %v8368_v45, 7 }
 0x228   : > { %v1500_v22 = vsel %vm8394_vm13, %v1438_v33, 0.0  ;;  %v1501_v19 = vsel %vm8398_vm14, %v1439_v12, 0.0  ;;  %v1447_v9 = vmax.f32 %v1142_v39, %v1407_v37 }
 0x229   : > { %v1482_v58 = vsel %vm8470_vm15, %v1420_v4, 0.0  ;;  %vm8495_vm1 = vcmp.eq.s32.totalorder %v1465_v49, 1 }
 0x22a   : > { %v1170_v2 = vpop.f32.mrf.mxu2  ;;  %v1222_v29 = vpop.f32.mrf.mxu0  ;;  %v1509_v17 = vsel %vm8383_vm12, %v1447_v9, 0.0 }
 0x22b   : > { %v1171_v5 = vadd.f32 %v1170_v2, %v8427_v63  ;;  %v1199_v8 = vpop.f32.mrf.mxu3  ;;  %v1248_v14 = vpop.f32.mrf.mxu1  ;;  %1602 = vrot.lane.b32.xlu2 %v1500_v22, %s7566_s1  ;;  %v1223_v38 = vadd.f32 %v1222_v29, %v8402_v43  ;;  %v11625_v2 = vmov 0 }
 0x22c   : > { %v1200_v28 = vadd.f32 %v1199_v8, %v8427_v63  ;;  %1604 = vrot.lane.b32.xlu0 %v1501_v19, %s7566_s1  ;;  %v1249_v11 = vadd.f32 %v1248_v14, %v8370_v10  ;;  %v11626_v2 = vsel %vm8495_vm1, 4294967295, %v11625_v2 }
 0x22d   : > { %v1408_v55 = vmul.f32 0.2, %v1171_v5  ;;  %v1390_v51 = vmul.f32 0.2, %v1223_v38  ;;  %11627 = vst [vmem:[#allocation26_spill] sm:$0xff] %v11626_v2 }
 0x22e   : > { %v1409_v40 = vmul.f32 0.2, %v1200_v28  ;;  %1618 = vrot.lane.b32.xlu1 %v1508_v36, %s7566_s1  ;;  %v1381_v61 = vmul.f32 0.2, %v1249_v11 }
 0x22f   : > { %v1448_v35 = vmax.f32 %v1171_v5, %v1408_v55  ;;  %v1430_v45 = vmax.f32 %v1223_v38, %v1390_v51 }
 0x230   : > { %v1449_v15 = vmax.f32 %v1200_v28, %v1409_v40  ;;  %v1421_v31 = vmax.f32 %v1249_v11, %v1381_v61 }
 0x231   : > { %v1510_v13 = vsel %vm8394_vm13, %v1448_v35, 0.0  ;;  %v1492_v19 = vsel %vm8470_vm15, %v1430_v45, 0.0 }
 0x232   : > { %v1277_v34 = vpop.f32.mrf.mxu2  ;;  %v1225_v16 = vpop.f32.mrf.mxu0  ;;  %v1511_v0 = vsel %vm8398_vm14, %v1449_v15, 0.0  ;;  %v1483_v52 = vsel %vm8474_vm9, %v1421_v31, 0.0 }
 0x233   : > { %v1278_v27 = vadd.f32 %v1277_v34, %v8370_v10  ;;  %v1306_v26 = vpop.f32.mrf.mxu3  ;;  %v1251_v47 = vpop.f32.mrf.mxu1  ;;  %1620 = vrot.lane.b32.xlu2 %v1509_v17, %s7566_s1  ;;  %v1226_v57 = vadd.f32 %v1225_v16, %v8419_v41 }
 0x234   : > { %1622 = vrot.lane.b32.xlu0 %v1510_v13, %s7566_s1  ;;  %v1307_v3 = vadd.f32 %v1306_v26, %v8370_v10  ;;  %v1252_v6 = vadd.f32 %v1251_v47, %v8402_v43 }
 0x235   : > { %v1382_v48 = vmul.f32 0.2, %v1278_v27  ;;  %v1400_v29 = vmul.f32 0.2, %v1226_v57 }
 0x236   : > { %1624 = vrot.lane.b32.xlu1 %v1511_v0, %s7566_s1  ;;  %v1383_v25 = vmul.f32 0.2, %v1307_v3  ;;  %v1391_v50 = vmul.f32 0.2, %v1252_v6 }
 0x237   : > { %v1422_v60 = vmax.f32 %v1278_v27, %v1382_v48  ;;  %v1440_v62 = vmax.f32 %v1226_v57, %v1400_v29 }
 0x238   : > { %v1423_v12 = vmax.f32 %v1307_v3, %v1383_v25  ;;  %v1431_v37 = vmax.f32 %v1252_v6, %v1391_v50  ;;  %v371_v25 = vld [vmem:[#allocation11 + $0x8] sm:$0x3] }
 0x239   : > { %v1484_v39 = vsel %vm8481_vm10, %v1422_v60, 0.0  ;;  %v1502_v53 = vsel %vm8470_vm15, %v1440_v62, 0.0  ;;  %vm373_vm2 = vcmp.gt.f32.partialorder %v371_v25, 0.0 }
 0x23a   : > { %v1280_v23 = vpop.f32.mrf.mxu2  ;;  %v1228_v32 = vpop.f32.mrf.mxu0  ;;  %v1485_v14 = vsel %vm8495_vm1, %v1423_v12, 0.0  ;;  %v1493_v40 = vsel %vm8474_vm9, %v1431_v37, 0.0 }
 0x23b   : > { %v1254_v30 = vpop.f32.mrf.mxu1  ;;  %1566 = vrot.lane.b32.xlu2 %v1482_v58, %s7566_s1  ;;  %v1309_v44 = vpop.f32.mrf.mxu3  ;;  %v1281_v33 = vadd.f32 %v1280_v23, %v8402_v43  ;;  %v1229_v16 = vadd.f32 %v1228_v32, %v8427_v63 }
 0x23c   : > { %1568 = vrot.lane.b32.xlu0 %v1483_v52, %s7566_s1  ;;  %v1310_v22 = vadd.f32 %v1309_v44, %v8402_v43  ;;  %v1255_v1 = vadd.f32 %v1254_v30, %v8419_v41 }
 0x23d   : > { %v1392_v5 = vmul.f32 0.2, %v1281_v33  ;;  %v1410_v31 = vmul.f32 0.2, %v1229_v16 }
 0x23e   : > { %1570 = vrot.lane.b32.xlu1 %v1484_v39, %s7566_s1  ;;  %v1393_v28 = vmul.f32 0.2, %v1310_v22  ;;  %v1401_v27 = vmul.f32 0.2, %v1255_v1  ;;  %v1457_v39 = vsel %vm373_vm2, 1, %v7565_v42 }
 0x23f   : > { %v1432_v36 = vmax.f32 %v1281_v33, %v1392_v5  ;;  %v1450_v44 = vmax.f32 %v1229_v16, %v1410_v31 }
 0x240   : > { %v1433_v34 = vmax.f32 %v1310_v22, %v1393_v28  ;;  %v1441_v7 = vmax.f32 %v1255_v1, %v1401_v27 }
 0x241   : > { %v1494_v47 = vsel %vm8481_vm10, %v1432_v36, 0.0  ;;  %v1512_v57 = vsel %vm8470_vm15, %v1450_v44, 0.0  ;;  %v11628_v36 = vmov 0 }
 0x242   : > { %v1283_v55 = vpop.f32.mrf.mxu2  ;;  %v1335_v11 = vpop.f32.mrf.mxu0  ;;  %v1495_v61 = vsel %vm8495_vm1, %v1433_v34, 0.0  ;;  %v1503_v60 = vsel %vm8474_vm9, %v1441_v7, 0.0 }
 0x243   : > { %v1257_v8 = vpop.f32.mrf.mxu1  ;;  %1572 = vrot.lane.b32.xlu2 %v1485_v14, %s7566_s1  ;;  %v1312_v9 = vpop.f32.mrf.mxu3  ;;  %v1284_v35 = vadd.f32 %v1283_v55, %v8419_v41  ;;  %v1336_v50 = vadd.f32 %v1335_v11, %v8370_v10  ;;  %v11631_v11 = vmov 0 }
 0x244   : > { %1586 = vrot.lane.b32.xlu0 %v1492_v19, %s7566_s1  ;;  %v1313_v15 = vadd.f32 %v1312_v9, %v8419_v41  ;;  %v1258_v3 = vadd.f32 %v1257_v8, %v8427_v63  ;;  %v1466_v8 = vperm.slane %v1457_v39, 0 }
 0x245   : > { %v1402_v17 = vmul.f32 0.2, %v1284_v35  ;;  %v1384_v37 = vmul.f32 0.2, %v1336_v50 }
 0x246   : > { %1588 = vrot.lane.b32.xlu1 %v1493_v40, %s7566_s1  ;;  %v1403_v13 = vmul.f32 0.2, %v1313_v15  ;;  %v1411_v23 = vmul.f32 0.2, %v1258_v3  ;;  %vm8548_vm2 = vcmp.eq.s32.totalorder %v1466_v8, 1 }
 0x247   : > { %v1442_v0 = vmax.f32 %v1284_v35, %v1402_v17  ;;  %v1424_v29 = vmax.f32 %v1336_v50, %v1384_v37  ;;  %v11629_v36 = vsel %vm8548_vm2, 4294967295, %v11628_v36 }
 0x248   : > { %v1443_v38 = vmax.f32 %v1313_v15, %v1403_v13  ;;  %v1451_v32 = vmax.f32 %v1258_v3, %v1411_v23  ;;  %11630 = vst [vmem:[#allocation31_spill] sm:$0xff] %v11629_v36 }
 0x249   : > { %v1504_v58 = vsel %vm8481_vm10, %v1442_v0, 0.0  ;;  %v1486_v62 = vsel %vm8548_vm2, %v1424_v29, 0.0 }
 0x24a   : > { %v1286_v48 = vpop.f32.mrf.mxu2  ;;  %v1338_v4 = vpop.f32.mrf.mxu0  ;;  %v1505_v52 = vsel %vm8495_vm1, %v1443_v38, 0.0  ;;  %v1513_v5 = vsel %vm8474_vm9, %v1451_v32, 0.0 }
 0x24b   : > { %v1364_v26 = vpop.f32.mrf.mxu1  ;;  %1590 = vrot.lane.b32.xlu2 %v1494_v47, %s7566_s1  ;;  %v1287_v46 = vadd.f32 %v1286_v48, %v8427_v63  ;;  %v1315_v30 = vpop.f32.mrf.mxu3  ;;  %v1339_v1 = vadd.f32 %v1338_v4, %v8402_v43 }
 0x24c   : > { %1592 = vrot.lane.b32.xlu0 %v1495_v61, %s7566_s1  ;;  %v1316_v49 = vadd.f32 %v1315_v30, %v8427_v63  ;;  %v1365_v12 = vadd.f32 %v1364_v26, %v8370_v10  ;;  %v1467_v10 = vperm.slane %v1457_v39, 1 }
 0x24d   : > { %v1412_v51 = vmul.f32 0.2, %v1287_v46  ;;  %v1394_v26 = vmul.f32 0.2, %v1339_v1 }
 0x24e   : > { %1606 = vrot.lane.b32.xlu1 %v1502_v53, %s7566_s1  ;;  %v1413_v22 = vmul.f32 0.2, %v1316_v49  ;;  %v1385_v28 = vmul.f32 0.2, %v1365_v12  ;;  %vm8553_vm3 = vcmp.eq.s32.totalorder %v1467_v10, 1 }
 0x24f   : > { %v1452_v33 = vmax.f32 %v1287_v46, %v1412_v51  ;;  %v11632_v11 = vsel %vm8553_vm3, 4294967295, %v11631_v11  ;;  %v1434_v16 = vmax.f32 %v1339_v1, %v1394_v26 }
 0x250   : > { %v1453_v19 = vmax.f32 %v1316_v49, %v1413_v22  ;;  %v1425_v9 = vmax.f32 %v1365_v12, %v1385_v28  ;;  %11633 = vst [vmem:[#allocation30_spill] sm:$0xff] %v11632_v11 }
 0x251   : > { %v1514_v42 = vsel %vm8481_vm10, %v1452_v33, 0.0  ;;  %v1496_v38 = vsel %vm8548_vm2, %v1434_v16, 0.0 }
 0x252   : > { %v1341_v45 = vpop.f32.mrf.mxu0  ;;  %v1515_v34 = vsel %vm8495_vm1, %v1453_v19, 0.0 }
 0x253   : > { %v1367_v6 = vpop.f32.mrf.mxu1  ;;  %1608 = vrot.lane.b32.xlu2 %v1503_v60, %s7566_s1  ;;  %v1342_v47 = vadd.f32 %v1341_v45, %v8419_v41 }
 0x254   : > { %1610 = vrot.lane.b32.xlu0 %v1504_v58, %s7566_s1  ;;  %v1368_v55 = vadd.f32 %v1367_v6, %v8402_v43  ;;  %v1487_v43 = vsel %vm8553_vm3, %v1425_v9, 0.0 }
 0x255   : > { %v1404_v48 = vmul.f32 0.2, %v1342_v47 }
 0x256   : > { %1612 = vrot.lane.b32.xlu1 %v1505_v52, %s7566_s1  ;;  %v1395_v35 = vmul.f32 0.2, %v1368_v55 }
 0x257   : > { %v1444_v31 = vmax.f32 %v1342_v47, %v1404_v48 }
 0x258   : > { %v1435_v17 = vmax.f32 %v1368_v55, %v1395_v35 }
 0x259   : > { %v1506_v60 = vsel %vm8548_vm2, %v1444_v31, 0.0 }
 0x25a   : > { %v1344_v27 = vpop.f32.mrf.mxu0  ;;  %v1497_v0 = vsel %vm8553_vm3, %v1435_v17, 0.0 }
 0x25b   : > { %1626 = vrot.lane.b32.xlu2 %v1512_v57, %s7566_s1  ;;  %v1370_v14 = vpop.f32.mrf.mxu1  ;;  %v1345_v13 = vadd.f32 %v1344_v27, %v8427_v63 }
 0x25c   : > { %1628 = vrot.lane.b32.xlu0 %v1513_v5, %s7566_s1  ;;  %v1371_v40 = vadd.f32 %v1370_v14, %v8419_v41 }
 0x25d   : > { %v1414_v3 = vmul.f32 0.2, %v1345_v13 }
 0x25e   : > { %1630 = vrot.lane.b32.xlu1 %v1514_v42, %s7566_s1  ;;  %v1405_v15 = vmul.f32 0.2, %v1371_v40 }
 0x260   : > { %v1445_v53 = vmax.f32 %v1371_v40, %v1405_v15 }
 0x262   : > { %v1507_v41 = vsel %vm8553_vm3, %v1445_v53, 0.0 }
 0x263   : > { %1632 = vrot.lane.b32.xlu2 %v1515_v34, %s7566_s1  ;;  %v1373_v61 = vpop.f32.mrf.mxu1 }
 0x264   : > { %1574 = vrot.lane.b32.xlu0 %v1486_v62, %s7566_s1  ;;  %v1374_v7 = vadd.f32 %v1373_v61, %v8427_v63  ;;  %v1454_v63 = vmax.f32 %v1345_v13, %v1414_v3 }
 0x266   : > { %1576 = vrot.lane.b32.xlu1 %v1487_v43, %s7566_s1  ;;  %v1415_v46 = vmul.f32 0.2, %v1374_v7  ;;  %v1516_v25 = vsel %vm8548_vm2, %v1454_v63, 0.0 }
 0x268   : > { %v1561_v4 = vpop.permute.xlu2 %1560  ;;  %v1455_v6 = vmax.f32 %v1374_v7, %v1415_v46 }
 0x26a   : > { %v1517_v30 = vsel %vm8553_vm3, %v1455_v6, 0.0 }
 0x26b   : > { %1596 = vrot.lane.b32.xlu2 %v1497_v0, %s7566_s1 }
 0x26c   : > { %1616 = vrot.lane.b32.xlu0 %v1507_v41, %s7566_s1 }
 0x26e   : > { %1594 = vrot.lane.b32.xlu1 %v1496_v38, %s7566_s1 }
 0x273   : > { %1614 = vrot.lane.b32.xlu2 %v1506_v60, %s7566_s1 }
 0x274   : > { %1634 = vrot.lane.b32.xlu0 %v1516_v25, %s7566_s1 }
 0x275   : > { %v1579_v23 = vpop.permute.xlu2 %1578 }
 0x276   : > { %1727 = vst.msk [vmem:[#allocation2 + $0x50] sm:$0xff] %vm11535_vm4, %v1579_v23  ;;  %1636 = vrot.lane.b32.xlu1 %v1517_v30, %s7566_s1 }
 0x277   : > { %v1559_v58 = vpop.permute.xlu1 %1558 }
 0x278   : > { %v8589_v51 = vsel %vm1638_vm5, %v1559_v58, %v1561_v4  ;;  %1716 = vst.msk [vmem:[#allocation2] sm:$0xff] %vm11535_vm4, %v1559_v58 }
 0x279   : > { %1717 = vst [vmem:[#allocation2 + $0x8] sm:$0xff] %v8589_v51 }
 0x27a   : > { %1798 = vst [vmem:[#allocation4 + $0x8] sm:$0xff] %v8589_v51 }
 0x27d   : > { %v1767_v52 = vld [vmem:[#allocation2 + $0x50] sm:$0xff]  ;;  %v8594_v49 = vpop.permute.xlu2 %1584 }
 0x27e   : > { %1807 = vst [vmem:[#allocation4 + $0x50] sm:$0xff] %v1767_v52  ;;  %2195 = vrot.lane.b32.xlu1 %v8589_v51, %s7558_s29 }
 0x27f   : > { %v8598_v44 = vld [vmem:[#allocation2] sm:$0xff] }
 0x280   : > { %1797 = vst [vmem:[#allocation4] sm:$0xff] %v8598_v44  ;;  %2193 = vrot.lane.b32.xlu0 %v8598_v44, %s7558_s29  ;;  %1917 = vrot.lane.b32.xlu2 %v8598_v44, %s7557_s5 }
 0x285   : > { %v1603_v32 = vpop.permute.xlu2 %1602 }
 0x286   : > { %v1563_v50 = vpop.permute.xlu0 %1562 }
 0x287   : > { %v8606_v39 = vsel %vm1638_vm5, %v1561_v4, %v1563_v50  ;;  %v1565_v33 = vpop.permute.xlu1 %1564 }
 0x288   : > { %1718 = vst [vmem:[#allocation2 + $0x10] sm:$0xff] %v8606_v39  ;;  %v8610_v12 = vsel %vm1638_vm5, %v1563_v50, %v1565_v33  ;;  %1919 = vrot.lane.b32.xlu0 %v8589_v51, %s7557_s5  ;;  %1921 = vrot.lane.b32.xlu1 %v8606_v39, %s7557_s5 }
 0x289   : > { %1799 = vst [vmem:[#allocation4 + $0x10] sm:$0xff] %v8606_v39  ;;  %1923 = vrot.lane.b32.xlu2 %v8610_v12, %s7557_s5 }
 0x28a   : > { %1719 = vst [vmem:[#allocation2 + $0x18] sm:$0xff] %v8610_v12 }
 0x28b   : > { %1800 = vst [vmem:[#allocation4 + $0x18] sm:$0xff] %v8610_v12 }
 0x28d   : > { %v1621_v22 = vpop.permute.xlu2 %1620 }
 0x28e   : > { %v1581_v45 = vpop.permute.xlu0 %1580 }
 0x28f   : > { %v8622_v57 = vsel %vm1638_vm5, %v1579_v23, %v1581_v45 }
 0x290   : > { %1728 = vst [vmem:[#allocation2 + $0x58] sm:$0xff] %v8622_v57  ;;  %v1583_v37 = vpop.permute.xlu1 %1582  ;;  %2199 = vrot.lane.b32.xlu0 %v8610_v12, %s7558_s29  ;;  %2213 = vrot.lane.b32.xlu1 %v1767_v52, %s7558_s29 }
 0x291   : > { %1808 = vst [vmem:[#allocation4 + $0x58] sm:$0xff] %v8622_v57  ;;  %v8630_v5 = vsel %vm1638_vm5, %v1581_v45, %v1583_v37  ;;  %v8634_v8 = vsel %vm1638_vm5, %v1583_v37, %v8594_v49  ;;  %2197 = vrot.lane.b32.xlu2 %v8606_v39, %s7558_s29 }
 0x292   : > { %1729 = vst [vmem:[#allocation2 + $0x60] sm:$0xff] %v8630_v5 }
 0x293   : > { %1730 = vst [vmem:[#allocation2 + $0x68] sm:$0xff] %v8634_v8 }
 0x294   : > { %1809 = vst [vmem:[#allocation4 + $0x60] sm:$0xff] %v8630_v5 }
 0x295   : > { %1810 = vst [vmem:[#allocation4 + $0x68] sm:$0xff] %v8634_v8  ;;  %v1567_v14 = vpop.permute.xlu2 %1566 }
 0x296   : > { %v8643_v28 = vsel %vm1638_vm5, %v1565_v33, %v1567_v14  ;;  %v1599_v42 = vpop.permute.xlu0 %1598 }
 0x297   : > { %1720 = vst [vmem:[#allocation2 + $0x20] sm:$0xff] %v8643_v28 }
 0x298   : > { %1801 = vst [vmem:[#allocation4 + $0x20] sm:$0xff] %v8643_v28  ;;  %v1601_v10 = vpop.permute.xlu1 %1600  ;;  %1937 = vrot.lane.b32.xlu0 %v1767_v52, %s7557_s5  ;;  %1939 = vrot.lane.b32.xlu1 %v8622_v57, %s7557_s5 }
 0x299   : > { %1737 = vst.msk [vmem:[#allocation2 + $0xa0] sm:$0xff] %vm11535_vm4, %v1599_v42  ;;  %v8652_v19 = vsel %vm1638_vm5, %v1599_v42, %v1601_v10  ;;  %v8655_v55 = vsel %vm1638_vm5, %v1601_v10, %v1603_v32  ;;  %2215 = vrot.lane.b32.xlu2 %v8622_v57, %s7558_s29 }
 0x29a   : > { %1738 = vst [vmem:[#allocation2 + $0xa8] sm:$0xff] %v8652_v19 }
 0x29b   : > { %1739 = vst [vmem:[#allocation2 + $0xb0] sm:$0xff] %v8655_v55 }
 0x29c   : > { %1818 = vst [vmem:[#allocation4 + $0xa8] sm:$0xff] %v8652_v19 }
 0x29d   : > { %1819 = vst [vmem:[#allocation4 + $0xb0] sm:$0xff] %v8655_v55  ;;  %v8663_v29 = vpop.permute.xlu2 %1572 }
 0x29e   : > { %v8665_v40 = vpop.permute.xlu0 %1604 }
 0x29f   : > { %v8669_v1 = vsel %vm1638_vm5, %v1603_v32, %v8665_v40 }
 0x2a0   : > { %v8671_v9 = vld [vmem:[#allocation2 + $0xa0] sm:$0xff]  ;;  %1740 = vst [vmem:[#allocation2 + $0xb8] sm:$0xff] %v8669_v1  ;;  %v1619_v35 = vpop.permute.xlu1 %1618  ;;  %1943 = vrot.lane.b32.xlu0 %v8634_v8, %s7557_s5  ;;  %2219 = vrot.lane.b32.xlu1 %v8634_v8, %s7558_s29 }
 0x2a1   : > { %1817 = vst [vmem:[#allocation4 + $0xa0] sm:$0xff] %v8671_v9  ;;  %v8680_v34 = vsel %vm1638_vm5, %v1619_v35, %v1621_v22  ;;  %1941 = vrot.lane.b32.xlu2 %v8630_v5, %s7557_s5 }
 0x2a2   : > { %1820 = vst [vmem:[#allocation4 + $0xb8] sm:$0xff] %v8669_v1 }
 0x2a3   : > { %1747 = vst.msk [vmem:[#allocation2 + $0xf0] sm:$0xff] %vm11535_vm4, %v1619_v35  ;;  %vm11547_vm4 = vcmask 318464  }
 0x2a4   : > { %1748 = vst [vmem:[#allocation2 + $0xf8] sm:$0xff] %v8680_v34 }
 0x2a5   : > { %1828 = vst [vmem:[#allocation4 + $0xf8] sm:$0xff] %v8680_v34  ;;  %v1591_v15 = vpop.permute.xlu2 %1590 }
 0x2a6   : > { %v1623_v62 = vpop.permute.xlu0 %1622 }
 0x2a7   : > { %v8689_v27 = vsel %vm1638_vm5, %v1621_v22, %v1623_v62 }
 0x2a8   : > { %1749 = vst [vmem:[#allocation2 + $0x100] sm:$0xff] %v8689_v27  ;;  %v1625_v26 = vpop.permute.xlu1 %1624  ;;  %2217 = vrot.lane.b32.xlu0 %v8630_v5, %s7558_s29  ;;  %1957 = vrot.lane.b32.xlu1 %v8671_v9, %s7557_s5 }
 0x2a9   : > { %1829 = vst [vmem:[#allocation4 + $0x100] sm:$0xff] %v8689_v27  ;;  %v8698_v43 = vsel %vm1638_vm5, %v1623_v62, %v1625_v26  ;;  %1959 = vrot.lane.b32.xlu2 %v8652_v19, %s7557_s5 }
 0x2aa   : > { %v8702_v47 = vld [vmem:[#allocation2 + $0xf0] sm:$0xff]  ;;  %1750 = vst [vmem:[#allocation2 + $0x108] sm:$0xff] %v8698_v43 }
 0x2ab   : > { %1827 = vst [vmem:[#allocation4 + $0xf0] sm:$0xff] %v8702_v47 }
 0x2ac   : > { %1830 = vst [vmem:[#allocation4 + $0x108] sm:$0xff] %v8698_v43 }
 0x2ad   : > { %v1609_v17 = vpop.permute.xlu2 %1608 }
 0x2ae   : > { %v1569_v61 = vpop.permute.xlu0 %1568 }
 0x2af   : > { %v8708_v13 = vsel %vm1638_vm5, %v1567_v14, %v1569_v61 }
 0x2b0   : > { %1721 = vst [vmem:[#allocation2 + $0x28] sm:$0xff] %v8708_v13  ;;  %v1571_v53 = vpop.permute.xlu1 %1570  ;;  %1961 = vrot.lane.b32.xlu0 %v8655_v55, %s7557_s5  ;;  %1963 = vrot.lane.b32.xlu1 %v8669_v1, %s7557_s5 }
 0x2b1   : > { %1802 = vst [vmem:[#allocation4 + $0x28] sm:$0xff] %v8708_v13  ;;  %v8717_v16 = vsel %vm1638_vm5, %v1569_v61, %v1571_v53  ;;  %v8721_v7 = vsel %vm1638_vm5, %v1571_v53, %v8663_v29  ;;  %1977 = vrot.lane.b32.xlu2 %v8702_v47, %s7557_s5 }
 0x2b2   : > { %1722 = vst [vmem:[#allocation2 + $0x30] sm:$0xff] %v8717_v16 }
 0x2b3   : > { %1723 = vst [vmem:[#allocation2 + $0x38] sm:$0xff] %v8721_v7 }
 0x2b4   : > { %1803 = vst [vmem:[#allocation4 + $0x30] sm:$0xff] %v8717_v16 }
 0x2b5   : > { %1804 = vst [vmem:[#allocation4 + $0x38] sm:$0xff] %v8721_v7  ;;  %v1627_v48 = vpop.permute.xlu2 %1626 }
 0x2b6   : > { %v8730_v0 = vsel %vm1638_vm5, %v1625_v26, %v1627_v48  ;;  %v1587_v3 = vpop.permute.xlu0 %1586 }
 0x2b7   : > { %1751 = vst [vmem:[#allocation2 + $0x110] sm:$0xff] %v8730_v0  ;;  %v8735_v4 = vsel %vm1638_vm5, %v8594_v49, %v1587_v3 }
 0x2b8   : > { %1831 = vst [vmem:[#allocation4 + $0x110] sm:$0xff] %v8730_v0  ;;  %v1589_v41 = vpop.permute.xlu1 %1588  ;;  %1979 = vrot.lane.b32.xlu0 %v8680_v34, %s7557_s5  ;;  %1981 = vrot.lane.b32.xlu1 %v8689_v27, %s7557_s5 }
 0x2b9   : > { %1731 = vst [vmem:[#allocation2 + $0x70] sm:$0xff] %v8735_v4  ;;  %v8744_v46 = vsel %vm1638_vm5, %v1587_v3, %v1589_v41  ;;  %v8747_v38 = vsel %vm1638_vm5, %v1589_v41, %v1591_v15  ;;  %1983 = vrot.lane.b32.xlu2 %v8698_v43, %s7557_s5 }
 0x2ba   : > { %1811 = vst [vmem:[#allocation4 + $0x70] sm:$0xff] %v8735_v4 }
 0x2bb   : > { %1732 = vst [vmem:[#allocation2 + $0x78] sm:$0xff] %v8744_v46 }
 0x2bc   : > { %1733 = vst [vmem:[#allocation2 + $0x80] sm:$0xff] %v8747_v38 }
 0x2bd   : > { %1812 = vst [vmem:[#allocation4 + $0x78] sm:$0xff] %v8744_v46  ;;  %v8755_v31 = vpop.permute.xlu2 %1632 }
 0x2be   : > { %1813 = vst [vmem:[#allocation4 + $0x80] sm:$0xff] %v8747_v38  ;;  %v8758_v63 = vpop.permute.xlu0 %1592 }
 0x2bf   : > { %v8762_v6 = vsel %vm1638_vm5, %v1591_v15, %v8758_v63 }
 0x2c0   : > { %1734 = vst [vmem:[#allocation2 + $0x88] sm:$0xff] %v8762_v6  ;;  %v1607_v60 = vpop.permute.xlu1 %1606  ;;  %1925 = vrot.lane.b32.xlu0 %v8643_v28, %s7557_s5  ;;  %1927 = vrot.lane.b32.xlu1 %v8708_v13, %s7557_s5 }
 0x2c1   : > { %1814 = vst [vmem:[#allocation4 + $0x88] sm:$0xff] %v8762_v6  ;;  %v8772_v25 = vsel %vm1638_vm5, %v8665_v40, %v1607_v60  ;;  %v8775_v23 = vsel %vm1638_vm5, %v1607_v60, %v1609_v17  ;;  %2203 = vrot.lane.b32.xlu2 %v8708_v13, %s7558_s29 }
 0x2c2   : > { %1741 = vst [vmem:[#allocation2 + $0xc0] sm:$0xff] %v8772_v25 }
 0x2c3   : > { %1742 = vst [vmem:[#allocation2 + $0xc8] sm:$0xff] %v8775_v23 }
 0x2c4   : > { %1821 = vst [vmem:[#allocation4 + $0xc0] sm:$0xff] %v8772_v25 }
 0x2c5   : > { %1822 = vst [vmem:[#allocation4 + $0xc8] sm:$0xff] %v8775_v23  ;;  %v1597_v30 = vpop.permute.xlu2 %1596 }
 0x2c6   : > { %v1611_v58 = vpop.permute.xlu0 %1610 }
 0x2c7   : > { %v8784_v52 = vsel %vm1638_vm5, %v1609_v17, %v1611_v58 }
 0x2c8   : > { %1743 = vst [vmem:[#allocation2 + $0xd0] sm:$0xff] %v8784_v52  ;;  %v1613_v49 = vpop.permute.xlu1 %1612  ;;  %1931 = vrot.lane.b32.xlu0 %v8721_v7, %s7557_s5  ;;  %2201 = vrot.lane.b32.xlu1 %v8643_v28, %s7558_s29 }
 0x2c9   : > { %1823 = vst [vmem:[#allocation4 + $0xd0] sm:$0xff] %v8784_v52  ;;  %v8793_v32 = vsel %vm1638_vm5, %v1611_v58, %v1613_v49  ;;  %1929 = vrot.lane.b32.xlu2 %v8717_v16, %s7557_s5 }
 0x2ca   : > { %1744 = vst [vmem:[#allocation2 + $0xd8] sm:$0xff] %v8793_v32 }
 0x2cb   : > { %1824 = vst [vmem:[#allocation4 + $0xd8] sm:$0xff] %v8793_v32 }
 0x2cd   : > { %v1615_v50 = vpop.permute.xlu2 %1614 }
 0x2ce   : > { %v8800_v33 = vsel %vm1638_vm5, %v1613_v49, %v1615_v50  ;;  %v1629_v22 = vpop.permute.xlu0 %1628 }
 0x2cf   : > { %1745 = vst [vmem:[#allocation2 + $0xe0] sm:$0xff] %v8800_v33  ;;  %v8804_v45 = vsel %vm1638_vm5, %v1627_v48, %v1629_v22 }
 0x2d0   : > { %1825 = vst [vmem:[#allocation4 + $0xe0] sm:$0xff] %v8800_v33  ;;  %v1631_v37 = vpop.permute.xlu1 %1630  ;;  %2205 = vrot.lane.b32.xlu0 %v8717_v16, %s7558_s29  ;;  %2207 = vrot.lane.b32.xlu1 %v8721_v7, %s7558_s29 }
 0x2d1   : > { %1752 = vst [vmem:[#allocation2 + $0x118] sm:$0xff] %v8804_v45  ;;  %v8813_v14 = vsel %vm1638_vm5, %v1629_v22, %v1631_v37  ;;  %v8817_v42 = vsel %vm1638_vm5, %v1631_v37, %v8755_v31  ;;  %1947 = vrot.lane.b32.xlu2 %v8744_v46, %s7557_s5 }
 0x2d2   : > { %1832 = vst [vmem:[#allocation4 + $0x118] sm:$0xff] %v8804_v45 }
 0x2d3   : > { %1753 = vst [vmem:[#allocation2 + $0x120] sm:$0xff] %v8813_v14 }
 0x2d4   : > { %1754 = vst [vmem:[#allocation2 + $0x128] sm:$0xff] %v8817_v42 }
 0x2d5   : > { %1833 = vst [vmem:[#allocation4 + $0x120] sm:$0xff] %v8813_v14 }
 0x2d6   : > { %1834 = vst [vmem:[#allocation4 + $0x128] sm:$0xff] %v8817_v42  ;;  %v1575_v10 = vpop.permute.xlu0 %1574 }
 0x2d7   : > { %v8828_v40 = vsel %vm1638_vm5, %v8663_v29, %v1575_v10 }
 0x2d8   : > { %1724 = vst [vmem:[#allocation2 + $0x40] sm:$0xff] %v8828_v40  ;;  %v1577_v35 = vpop.permute.xlu1 %1576  ;;  %2223 = vrot.lane.b32.xlu0 %v8744_v46, %s7558_s29  ;;  %1945 = vrot.lane.b32.xlu1 %v8735_v4, %s7557_s5 }
 0x2d9   : > { %1805 = vst [vmem:[#allocation4 + $0x40] sm:$0xff] %v8828_v40  ;;  %v1647_v15 = vsel %vm1638_vm5, %v1575_v10, %v1577_v35  ;;  %2221 = vrot.lane.b32.xlu2 %v8735_v4, %s7558_s29 }
 0x2da   : > { %1726 = vst.msk [vmem:[#allocation2 + $0x48] sm:$0xff] %vm11547_vm4, %v1647_v15  ;;  %v1918_v29 = vpop.permute.xlu2 %1917 }
 0x2de   : > { %v1617_v62 = vpop.permute.xlu0 %1616 }
 0x2df   : > { %v1665_v26 = vsel %vm1638_vm5, %v1615_v50, %v1617_v62 }
 0x2e0   : > { %1746 = vst.msk [vmem:[#allocation2 + $0xe8] sm:$0xff] %vm11547_vm4, %v1665_v26  ;;  %v1595_v17 = vpop.permute.xlu1 %1594  ;;  %1949 = vrot.lane.b32.xlu0 %v8747_v38, %s7557_s5  ;;  %1951 = vrot.lane.b32.xlu1 %v8762_v6, %s7557_s5 }
 0x2e1   : > { %v8846_v61 = vld [vmem:[#allocation2 + $0x48] sm:$0xff]  ;;  %v8850_v53 = vsel %vm1638_vm5, %v8758_v63, %v1595_v17  ;;  %v1656_v48 = vsel %vm1638_vm5, %v1595_v17, %v1597_v30  ;;  %2227 = vrot.lane.b32.xlu2 %v8762_v6, %s7558_s29 }
 0x2e2   : > { %1806 = vst.msk [vmem:[#allocation4 + $0x48] sm:$0xff] %vm11557_vm0, %v8846_v61 }
 0x2e3   : > { %1735 = vst [vmem:[#allocation2 + $0x90] sm:$0xff] %v8850_v53  ;;  %v8858_v3 = vpop.permute.xlu2 %1923 }
 0x2e4   : > { %1736 = vst.msk [vmem:[#allocation2 + $0x98] sm:$0xff] %vm11547_vm4, %v1656_v48 }
 0x2e5   : > { %1815 = vst [vmem:[#allocation4 + $0x90] sm:$0xff] %v8850_v53 }
 0x2e6   : > { %v1635_v41 = vpop.permute.xlu0 %1634 }
 0x2e7   : > { %v8862_v60 = vld [vmem:[#allocation2 + $0xe8] sm:$0xff]  ;;  %v8866_v63 = vsel %vm1638_vm5, %v8755_v31, %v1635_v41 }
 0x2e8   : > { %1826 = vst.msk [vmem:[#allocation4 + $0xe8] sm:$0xff] %vm11557_vm0, %v8862_v60  ;;  %v1637_v30 = vpop.permute.xlu1 %1636  ;;  %1967 = vrot.lane.b32.xlu0 %v8775_v23, %s7557_s5  ;;  %2225 = vrot.lane.b32.xlu1 %v8747_v38, %s7558_s29 }
 0x2e9   : > { %1755 = vst [vmem:[#allocation2 + $0x130] sm:$0xff] %v8866_v63  ;;  %v1674_v58 = vsel %vm1638_vm5, %v1635_v41, %v1637_v30  ;;  %1965 = vrot.lane.b32.xlu2 %v8772_v25, %s7557_s5 }
 0x2ea   : > { %1835 = vst [vmem:[#allocation4 + $0x130] sm:$0xff] %v8866_v63 }
 0x2eb   : > { %v8879_v31 = vld [vmem:[#allocation2 + $0x98] sm:$0xff]  ;;  %1756 = vst.msk [vmem:[#allocation2 + $0x138] sm:$0xff] %vm11547_vm4, %v1674_v58  ;;  %v2198_v49 = vpop.permute.xlu2 %2197 }
 0x2ec   : > { %1816 = vst.msk [vmem:[#allocation4 + $0x98] sm:$0xff] %vm11557_vm0, %v8879_v31 }
 0x2f0   : > { %1985 = vrot.lane.b32.xlu0 %v8730_v0, %s7557_s5  ;;  %v2196_v50 = vpop.permute.xlu1 %2195  ;;  %1969 = vrot.lane.b32.xlu1 %v8784_v52, %s7557_s5 }
 0x2f1   : > { %v2274_v22 = vsel %vm11545_vm7, %v2196_v50, %v2198_v49  ;;  %1971 = vrot.lane.b32.xlu2 %v8793_v32, %s7557_s5 }
 0x2f2   : > { %v8891_v37 = vld [vmem:[#allocation2 + $0x138] sm:$0xff]  ;;  %v2194_v10 = vpop.permute.xlu0 %2193  ;;  %2350 = vst [vmem:[#allocation4 + $0x288] sm:$0xff] %v2274_v22 }
 0x2f3   : > { %1836 = vst.msk [vmem:[#allocation4 + $0x138] sm:$0xff] %vm11557_vm0, %v8891_v37  ;;  %v2273_v35 = vsel %vm11545_vm7, %v2194_v10, %v2196_v50  ;;  %v2216_v15 = vpop.permute.xlu2 %2215 }
 0x2f4   : > { %2349 = vst [vmem:[#allocation4 + $0x280] sm:$0xff] %v2273_v35 }
 0x2f8   : > { %1991 = vrot.lane.b32.xlu0 %v8817_v42, %s7557_s5  ;;  %1987 = vrot.lane.b32.xlu1 %v8804_v45, %s7557_s5 }
 0x2f9   : > { %1989 = vrot.lane.b32.xlu2 %v8813_v14, %s7557_s5 }
 0x2fa   : > { %v1920_v62 = vpop.permute.xlu0 %1919  ;;  %v1922_v26 = vpop.permute.xlu1 %1921 }
 0x2fb   : > { %v1997_v17 = vsel %vm11546_vm8, %v1918_v29, %v1920_v62  ;;  %v1942_v48 = vpop.permute.xlu2 %1941  ;;  %v1998_v41 = vsel %vm11546_vm8, %v1920_v62, %v1922_v26  ;;  %v1999_v30 = vsel %vm11546_vm8, %v1922_v26, %v8858_v3 }
 0x2fc   : > { %2073 = vst [vmem:[#allocation4 + $0x140] sm:$0xff] %v1997_v17 }
 0x2fd   : > { %2074 = vst [vmem:[#allocation4 + $0x148] sm:$0xff] %v1998_v41 }
 0x2fe   : > { %2075 = vst [vmem:[#allocation4 + $0x150] sm:$0xff] %v1999_v30 }
 0x300   : > { %2211 = vrot.lane.b32.xlu0 %v8846_v61, %s7558_s29  ;;  %1933 = vrot.lane.b32.xlu1 %v8828_v40, %s7557_s5 }
 0x301   : > { %1935 = vrot.lane.b32.xlu2 %v8846_v61, %s7557_s5 }
 0x302   : > { %v8912_v58 = vpop.permute.xlu0 %2199  ;;  %v2214_v29 = vpop.permute.xlu1 %2213 }
 0x303   : > { %v2275_v50 = vsel %vm11545_vm7, %v2198_v49, %v8912_v58  ;;  %v1960_v22 = vpop.permute.xlu2 %1959  ;;  %v2282_v10 = vsel %vm11545_vm7, %v2214_v29, %v2216_v15 }
 0x304   : > { %2351 = vst [vmem:[#allocation4 + $0x290] sm:$0xff] %v2275_v50 }
 0x305   : > { %2359 = vst [vmem:[#allocation4 + $0x2d0] sm:$0xff] %v2282_v10 }
 0x308   : > { %1955 = vrot.lane.b32.xlu0 %v8879_v31, %s7557_s5  ;;  %2231 = vrot.lane.b32.xlu1 %v8879_v31, %s7558_s29 }
 0x309   : > { %2209 = vrot.lane.b32.xlu2 %v8828_v40, %s7558_s29 }
 0x30a   : > { %v1938_v35 = vpop.permute.xlu0 %1937  ;;  %v1940_v62 = vpop.permute.xlu1 %1939 }
 0x30b   : > { %v1978_v26 = vpop.permute.xlu2 %1977  ;;  %v2006_v17 = vsel %vm11546_vm8, %v1938_v35, %v1940_v62  ;;  %v2007_v49 = vsel %vm11546_vm8, %v1940_v62, %v1942_v48 }
 0x30c   : > { %2083 = vst [vmem:[#allocation4 + $0x190] sm:$0xff] %v2006_v17 }
 0x30d   : > { %2084 = vst [vmem:[#allocation4 + $0x198] sm:$0xff] %v2007_v49 }
 0x310   : > { %1973 = vrot.lane.b32.xlu0 %v8800_v33, %s7557_s5  ;;  %1975 = vrot.lane.b32.xlu1 %v8862_v60, %s7557_s5 }
 0x311   : > { %1953 = vrot.lane.b32.xlu2 %v8850_v53, %s7557_s5 }
 0x312   : > { %v8931_v41 = vpop.permute.xlu0 %1943  ;;  %v2220_v30 = vpop.permute.xlu1 %2219 }
 0x313   : > { %v2008_v29 = vsel %vm11546_vm8, %v1942_v48, %v8931_v41  ;;  %v8935_v50 = vpop.permute.xlu2 %1983 }
 0x314   : > { %2085 = vst [vmem:[#allocation4 + $0x1a0] sm:$0xff] %v2008_v29 }
 0x318   : > { %2229 = vrot.lane.b32.xlu0 %v8850_v53, %s7558_s29  ;;  %1993 = vrot.lane.b32.xlu1 %v8866_v63, %s7557_s5 }
 0x319   : > { %2233 = vrot.lane.b32.xlu2 %v8671_v9, %s7558_s29 }
 0x31a   : > { %v2218_v10 = vpop.permute.xlu0 %2217  ;;  %v1958_v35 = vpop.permute.xlu1 %1957 }
 0x31b   : > { %v2283_v62 = vsel %vm11545_vm7, %v2216_v15, %v2218_v10  ;;  %v2284_v17 = vsel %vm11545_vm7, %v2218_v10, %v2220_v30  ;;  %v2204_v49 = vpop.permute.xlu2 %2203  ;;  %v2015_v48 = vsel %vm11546_vm8, %v1958_v35, %v1960_v22 }
 0x31c   : > { %2360 = vst [vmem:[#allocation4 + $0x2d8] sm:$0xff] %v2283_v62 }
 0x31d   : > { %2361 = vst [vmem:[#allocation4 + $0x2e0] sm:$0xff] %v2284_v17 }
 0x31e   : > { %2093 = vst [vmem:[#allocation4 + $0x1e0] sm:$0xff] %v2015_v48 }
 0x320   : > { %2235 = vrot.lane.b32.xlu0 %v8652_v19, %s7558_s29  ;;  %2237 = vrot.lane.b32.xlu1 %v8655_v55, %s7558_s29 }
 0x321   : > { %1995 = vrot.lane.b32.xlu2 %v8891_v37, %s7557_s5 }
 0x322   : > { %v1962_v29 = vpop.permute.xlu0 %1961  ;;  %v1964_v11 = vpop.permute.xlu1 %1963 }
 0x323   : > { %v2016_v15 = vsel %vm11546_vm8, %v1960_v22, %v1962_v29  ;;  %v1930_v10 = vpop.permute.xlu2 %1929  ;;  %v2017_v36 = vsel %vm11546_vm8, %v1962_v29, %v1964_v11 }
 0x324   : > { %2094 = vst [vmem:[#allocation4 + $0x1e8] sm:$0xff] %v2016_v15 }
 0x325   : > { %2095 = vst [vmem:[#allocation4 + $0x1f0] sm:$0xff] %v2017_v36 }
 0x328   : > { %2241 = vrot.lane.b32.xlu0 %v8772_v25, %s7558_s29  ;;  %2243 = vrot.lane.b32.xlu1 %v8775_v23, %s7558_s29 }
 0x329   : > { %2239 = vrot.lane.b32.xlu2 %v8669_v1, %s7558_s29 }
 0x32a   : > { %v1980_v55 = vpop.permute.xlu0 %1979  ;;  %v1982_v35 = vpop.permute.xlu1 %1981 }
 0x32b   : > { %v2024_v62 = vsel %vm11546_vm8, %v1978_v26, %v1980_v55  ;;  %v1948_v17 = vpop.permute.xlu2 %1947  ;;  %v2025_v22 = vsel %vm11546_vm8, %v1980_v55, %v1982_v35  ;;  %v2026_v48 = vsel %vm11546_vm8, %v1982_v35, %v8935_v50 }
 0x32c   : > { %2103 = vst [vmem:[#allocation4 + $0x230] sm:$0xff] %v2024_v62 }
 0x32d   : > { %2104 = vst [vmem:[#allocation4 + $0x238] sm:$0xff] %v2025_v22 }
 0x32e   : > { %2105 = vst [vmem:[#allocation4 + $0x240] sm:$0xff] %v2026_v48 }
 0x330   : > { %2247 = vrot.lane.b32.xlu0 %v8793_v32, %s7558_s29  ;;  %2249 = vrot.lane.b32.xlu1 %v8800_v33, %s7558_s29 }
 0x331   : > { %2245 = vrot.lane.b32.xlu2 %v8784_v52, %s7558_s29 }
 0x332   : > { %v1926_v36 = vpop.permute.xlu0 %1925  ;;  %v1928_v26 = vpop.permute.xlu1 %1927 }
 0x333   : > { %v2000_v29 = vsel %vm11546_vm8, %v8858_v3, %v1926_v36  ;;  %v2222_v15 = vpop.permute.xlu2 %2221  ;;  %v2001_v55 = vsel %vm11546_vm8, %v1926_v36, %v1928_v26  ;;  %v2002_v62 = vsel %vm11546_vm8, %v1928_v26, %v1930_v10 }
 0x334   : > { %2076 = vst [vmem:[#allocation4 + $0x158] sm:$0xff] %v2000_v29  ;;  %v2285_v35 = vsel %vm11545_vm7, %v2220_v30, %v2222_v15 }
 0x335   : > { %2362 = vst [vmem:[#allocation4 + $0x2e8] sm:$0xff] %v2285_v35 }
 0x336   : > { %2077 = vst [vmem:[#allocation4 + $0x160] sm:$0xff] %v2001_v55 }
 0x337   : > { %2078 = vst [vmem:[#allocation4 + $0x168] sm:$0xff] %v2002_v62 }
 0x338   : > { %2253 = vrot.lane.b32.xlu0 %v8702_v47, %s7558_s29  ;;  %2255 = vrot.lane.b32.xlu1 %v8680_v34, %s7558_s29 }
 0x339   : > { %2251 = vrot.lane.b32.xlu2 %v8862_v60, %s7558_s29 }
 0x33a   : > { %v8981_v3 = vpop.permute.xlu0 %1931  ;;  %v2202_v22 = vpop.permute.xlu1 %2201 }
 0x33b   : > { %v2003_v30 = vsel %vm11546_vm8, %v1930_v10, %v8981_v3  ;;  %v8985_v48 = vpop.permute.xlu2 %2227  ;;  %v2276_v36 = vsel %vm11545_vm7, %v8912_v58, %v2202_v22  ;;  %v2277_v26 = vsel %vm11545_vm7, %v2202_v22, %v2204_v49 }
 0x33c   : > { %2079 = vst [vmem:[#allocation4 + $0x170] sm:$0xff] %v2003_v30 }
 0x33d   : > { %2352 = vst [vmem:[#allocation4 + $0x298] sm:$0xff] %v2276_v36 }
 0x33e   : > { %2353 = vst [vmem:[#allocation4 + $0x2a0] sm:$0xff] %v2277_v26 }
 0x340   : > { %2259 = vrot.lane.b32.xlu0 %v8698_v43, %s7558_s29  ;;  %2261 = vrot.lane.b32.xlu1 %v8730_v0, %s7558_s29 }
 0x341   : > { %2257 = vrot.lane.b32.xlu2 %v8689_v27, %s7558_s29 }
 0x342   : > { %v2206_v34 = vpop.permute.xlu0 %2205  ;;  %v2208_v47 = vpop.permute.xlu1 %2207 }
 0x343   : > { %v2278_v10 = vsel %vm11545_vm7, %v2204_v49, %v2206_v34  ;;  %v1966_v29 = vpop.permute.xlu2 %1965  ;;  %v2279_v58 = vsel %vm11545_vm7, %v2206_v34, %v2208_v47 }
 0x344   : > { %2354 = vst [vmem:[#allocation4 + $0x2a8] sm:$0xff] %v2278_v10  ;;  %v2018_v55 = vsel %vm11546_vm8, %v1964_v11, %v1966_v29 }
 0x345   : > { %2096 = vst [vmem:[#allocation4 + $0x1f8] sm:$0xff] %v2018_v55 }
 0x346   : > { %2355 = vst [vmem:[#allocation4 + $0x2b0] sm:$0xff] %v2279_v58 }
 0x348   : > { %2265 = vrot.lane.b32.xlu0 %v8813_v14, %s7558_s29  ;;  %2267 = vrot.lane.b32.xlu1 %v8817_v42, %s7558_s29 }
 0x349   : > { %2263 = vrot.lane.b32.xlu2 %v8804_v45, %s7558_s29 }
 0x34a   : > { %v2224_v27 = vpop.permute.xlu0 %2223  ;;  %v1946_v43 = vpop.permute.xlu1 %1945 }
 0x34b   : > { %v2286_v49 = vsel %vm11545_vm7, %v2222_v15, %v2224_v27  ;;  %v9006_v35 = vpop.permute.xlu2 %1971  ;;  %v2009_v11 = vsel %vm11546_vm8, %v8931_v41, %v1946_v43  ;;  %v2010_v62 = vsel %vm11546_vm8, %v1946_v43, %v1948_v17 }
 0x34c   : > { %2363 = vst [vmem:[#allocation4 + $0x2f0] sm:$0xff] %v2286_v49 }
 0x34d   : > { %2086 = vst [vmem:[#allocation4 + $0x1a8] sm:$0xff] %v2009_v11 }
 0x34e   : > { %2087 = vst [vmem:[#allocation4 + $0x1b0] sm:$0xff] %v2010_v62 }
 0x350   : > { %2271 = vrot.lane.b32.xlu0 %v8891_v37, %s7558_s29  ;;  %2469 = vrot.lane.b32.xlu1 %v8598_v44, %s7559_s13 }
 0x351   : > { %2269 = vrot.lane.b32.xlu2 %v8866_v63, %s7558_s29 }
 0x352   : > { %v1950_v15 = vpop.permute.xlu0 %1949  ;;  %v1952_v22 = vpop.permute.xlu1 %1951 }
 0x353   : > { %v2011_v30 = vsel %vm11546_vm8, %v1948_v17, %v1950_v15  ;;  %v1990_v36 = vpop.permute.xlu2 %1989  ;;  %v2012_v41 = vsel %vm11546_vm8, %v1950_v15, %v1952_v22 }
 0x354   : > { %2088 = vst [vmem:[#allocation4 + $0x1b8] sm:$0xff] %v2011_v30 }
 0x355   : > { %2089 = vst [vmem:[#allocation4 + $0x1c0] sm:$0xff] %v2012_v41 }
 0x358   : > { %2473 = vrot.lane.b32.xlu0 %v8606_v39, %s7559_s13  ;;  %2475 = vrot.lane.b32.xlu1 %v8610_v12, %s7559_s13 }
 0x359   : > { %2471 = vrot.lane.b32.xlu2 %v8589_v51, %s7559_s13 }
 0x35a   : > { %v1968_v44 = vpop.permute.xlu0 %1967  ;;  %v2226_v26 = vpop.permute.xlu1 %2225 }
 0x35b   : > { %v2019_v34 = vsel %vm11546_vm8, %v1966_v29, %v1968_v44  ;;  %v1936_v10 = vpop.permute.xlu2 %1935  ;;  %v2287_v17 = vsel %vm11545_vm7, %v2224_v27, %v2226_v26  ;;  %v2288_v58 = vsel %vm11545_vm7, %v2226_v26, %v8985_v48 }
 0x35c   : > { %2097 = vst [vmem:[#allocation4 + $0x200] sm:$0xff] %v2019_v34 }
 0x35d   : > { %2082 = vst.msk [vmem:[#allocation4 + $0x188] sm:$0xff] %vm11557_vm0, %v1936_v10 }
 0x35e   : > { %2364 = vst [vmem:[#allocation4 + $0x2f8] sm:$0xff] %v2287_v17 }
 0x35f   : > { %2365 = vst [vmem:[#allocation4 + $0x300] sm:$0xff] %v2288_v58 }
 0x360   : > { %2479 = vrot.lane.b32.xlu0 %v8708_v13, %s7559_s13  ;;  %2481 = vrot.lane.b32.xlu1 %v8717_v16, %s7559_s13 }
 0x361   : > { %2477 = vrot.lane.b32.xlu2 %v8643_v28, %s7559_s13 }
 0x362   : > { %v1986_v51 = vpop.permute.xlu0 %1985  ;;  %v1970_v39 = vpop.permute.xlu1 %1969 }
 0x363   : > { %v2027_v12 = vsel %vm11546_vm8, %v8935_v50, %v1986_v51  ;;  %v2210_v29 = vpop.permute.xlu2 %2209  ;;  %v2020_v55 = vsel %vm11546_vm8, %v1968_v44, %v1970_v39  ;;  %v2021_v13 = vsel %vm11546_vm8, %v1970_v39, %v9006_v35 }
 0x364   : > { %2106 = vst [vmem:[#allocation4 + $0x248] sm:$0xff] %v2027_v12  ;;  %v2280_v27 = vsel %vm11545_vm7, %v2208_v47, %v2210_v29 }
 0x365   : > { %2356 = vst [vmem:[#allocation4 + $0x2b8] sm:$0xff] %v2280_v27 }
 0x366   : > { %2098 = vst [vmem:[#allocation4 + $0x208] sm:$0xff] %v2020_v55 }
 0x367   : > { %2099 = vst [vmem:[#allocation4 + $0x210] sm:$0xff] %v2021_v13 }
 0x368   : > { %2485 = vrot.lane.b32.xlu0 %v8828_v40, %s7559_s13  ;;  %2487 = vrot.lane.b32.xlu1 %v8846_v61, %s7559_s13 }
 0x369   : > { %2483 = vrot.lane.b32.xlu2 %v8721_v7, %s7559_s13  ;;  %v9056_v7 = vld [vmem:[#allocation2 + $0x50] sm:$0xff] }
 0x36a   : > { %v1992_v28 = vpop.permute.xlu0 %1991  ;;  %v1988_v16 = vpop.permute.xlu1 %1987 }
 0x36b   : > { %v2030_v50 = vsel %vm11546_vm8, %v1990_v36, %v1992_v28  ;;  %v1954_v47 = vpop.permute.xlu2 %1953  ;;  %v2028_v43 = vsel %vm11546_vm8, %v1986_v51, %v1988_v16  ;;  %v2029_v11 = vsel %vm11546_vm8, %v1988_v16, %v1990_v36 }
 0x36c   : > { %2109 = vst [vmem:[#allocation4 + $0x260] sm:$0xff] %v2030_v50  ;;  %v2013_v49 = vsel %vm11546_vm8, %v1952_v22, %v1954_v47 }
 0x36d   : > { %2090 = vst [vmem:[#allocation4 + $0x1c8] sm:$0xff] %v2013_v49 }
 0x36e   : > { %2107 = vst [vmem:[#allocation4 + $0x250] sm:$0xff] %v2028_v43 }
 0x36f   : > { %2108 = vst [vmem:[#allocation4 + $0x258] sm:$0xff] %v2029_v11 }
 0x370   : > { %2491 = vrot.lane.b32.xlu0 %v8622_v57, %s7559_s13  ;;  %2493 = vrot.lane.b32.xlu1 %v8630_v5, %s7559_s13 }
 0x371   : > { %2489 = vrot.lane.b32.xlu2 %v9056_v7, %s7559_s13 }
 0x372   : > { %v2212_v62 = vpop.permute.xlu0 %2211  ;;  %v1934_v15 = vpop.permute.xlu1 %1933 }
 0x373   : > { %v2281_v22 = vsel %vm11545_vm7, %v2210_v29, %v2212_v62  ;;  %2358 = vst.msk [vmem:[#allocation4 + $0x2c8] sm:$0xff] %vm11557_vm0, %v2212_v62  ;;  %v9062_v30 = vpop.permute.xlu2 %2233  ;;  %v2004_v36 = vsel %vm11546_vm8, %v8981_v3, %v1934_v15  ;;  %v2005_v57 = vsel %vm11546_vm8, %v1934_v15, %v1936_v10 }
 0x374   : > { %2357 = vst [vmem:[#allocation4 + $0x2c0] sm:$0xff] %v2281_v22 }
 0x375   : > { %2080 = vst [vmem:[#allocation4 + $0x178] sm:$0xff] %v2004_v36 }
 0x376   : > { %2081 = vst [vmem:[#allocation4 + $0x180] sm:$0xff] %v2005_v57 }
 0x378   : > { %2497 = vrot.lane.b32.xlu0 %v8735_v4, %s7559_s13  ;;  %2499 = vrot.lane.b32.xlu1 %v8744_v46, %s7559_s13 }
 0x379   : > { %2495 = vrot.lane.b32.xlu2 %v8634_v8, %s7559_s13 }
 0x37a   : > { %v1956_v5 = vpop.permute.xlu0 %1955  ;;  %v2232_v41 = vpop.permute.xlu1 %2231 }
 0x37b   : > { %v2014_v44 = vsel %vm11546_vm8, %v1954_v47, %v1956_v5  ;;  %2092 = vst.msk [vmem:[#allocation4 + $0x1d8] sm:$0xff] %vm11557_vm0, %v1956_v5  ;;  %v1996_v3 = vpop.permute.xlu2 %1995  ;;  %v9135_v47 = vld [vmem:[#allocation2 + $0x100] sm:$0xff] }
 0x37c   : > { %2091 = vst [vmem:[#allocation4 + $0x1d0] sm:$0xff] %v2014_v44 }
 0x37d   : > { %2112 = vst.msk [vmem:[#allocation4 + $0x278] sm:$0xff] %vm11557_vm0, %v1996_v3 }
 0x37e   : > { %2368 = vst.msk [vmem:[#allocation4 + $0x318] sm:$0xff] %vm11557_vm0, %v2232_v41 }
 0x380   : > { %2503 = vrot.lane.b32.xlu0 %v8762_v6, %s7559_s13  ;;  %2505 = vrot.lane.b32.xlu1 %v8850_v53, %s7559_s13 }
 0x381   : > { %2501 = vrot.lane.b32.xlu2 %v8747_v38, %s7559_s13 }
 0x382   : > { %v1974_v8 = vpop.permute.xlu0 %1973  ;;  %v1976_v4 = vpop.permute.xlu1 %1975 }
 0x383   : > { %v2022_v46 = vsel %vm11546_vm8, %v9006_v35, %v1974_v8  ;;  %v2240_v26 = vpop.permute.xlu2 %2239  ;;  %v2023_v34 = vsel %vm11546_vm8, %v1974_v8, %v1976_v4  ;;  %2102 = vst.msk [vmem:[#allocation4 + $0x228] sm:$0xff] %vm11557_vm0, %v1976_v4  ;;  %v9172_v8 = vld [vmem:[#allocation2 + $0x8] sm:$0xff] }
 0x384   : > { %2100 = vst [vmem:[#allocation4 + $0x218] sm:$0xff] %v2022_v46 }
 0x385   : > { %2101 = vst [vmem:[#allocation4 + $0x220] sm:$0xff] %v2023_v34  ;;  %v9188_v34 = vld [vmem:[#allocation2 + $0x20] sm:$0xff] }
 0x388   : > { %2509 = vrot.lane.b32.xlu0 %v8671_v9, %s7559_s13  ;;  %2511 = vrot.lane.b32.xlu1 %v8652_v19, %s7559_s13  ;;  %v9102_v19 = vld [vmem:[#allocation2 + $0xb0] sm:$0xff] }
 0x389   : > { %2507 = vrot.lane.b32.xlu2 %v8879_v31, %s7559_s13 }
 0x38a   : > { %v2230_v38 = vpop.permute.xlu0 %2229  ;;  %v1994_v6 = vpop.permute.xlu1 %1993 }
 0x38b   : > { %v2289_v53 = vsel %vm11545_vm7, %v8985_v48, %v2230_v38  ;;  %v2290_v35 = vsel %vm11545_vm7, %v2230_v38, %v2232_v41  ;;  %v2246_v10 = vpop.permute.xlu2 %2245  ;;  %v2031_v17 = vsel %vm11546_vm8, %v1992_v28, %v1994_v6  ;;  %v2032_v58 = vsel %vm11546_vm8, %v1994_v6, %v1996_v3  ;;  %v9190_v38 = vld [vmem:[#allocation2 + $0x28] sm:$0xff]  ;;  %v9196_v6 = vld [vmem:[#allocation2 + $0x18] sm:$0xff] }
 0x38c   : > { %2366 = vst [vmem:[#allocation4 + $0x308] sm:$0xff] %v2289_v53 }
 0x38d   : > { %2367 = vst [vmem:[#allocation4 + $0x310] sm:$0xff] %v2290_v35 }
 0x38e   : > { %2110 = vst [vmem:[#allocation4 + $0x268] sm:$0xff] %v2031_v17 }
 0x38f   : > { %2111 = vst [vmem:[#allocation4 + $0x270] sm:$0xff] %v2032_v58 }
 0x390   : > { %2515 = vrot.lane.b32.xlu0 %v8669_v1, %s7559_s13  ;;  %2517 = vrot.lane.b32.xlu1 %v8772_v25, %s7559_s13 }
 0x391   : > { %2513 = vrot.lane.b32.xlu2 %v9102_v19, %s7559_s13 }
 0x392   : > { %v9106_v9 = vpop.permute.xlu0 %2235  ;;  %v9108_v48 = vpop.permute.xlu1 %2237 }
 0x393   : > { %v2252_v51 = vpop.permute.xlu2 %2251  ;;  %v2293_v39 = vsel %vm11545_vm7, %v9108_v48, %v2240_v26 }
 0x394   : > { %2378 = vst.msk [vmem:[#allocation4 + $0x368] sm:$0xff] %vm11557_vm0, %v2252_v51 }
 0x395   : > { %2371 = vst [vmem:[#allocation4 + $0x330] sm:$0xff] %v2293_v39  ;;  %v9213_v39 = vld [vmem:[#allocation2 + $0x30] sm:$0xff] }
 0x398   : > { %2521 = vrot.lane.b32.xlu0 %v8784_v52, %s7559_s13  ;;  %2523 = vrot.lane.b32.xlu1 %v8793_v32, %s7559_s13  ;;  %v9124_v52 = vld [vmem:[#allocation2 + $0xf0] sm:$0xff] }
 0x399   : > { %2519 = vrot.lane.b32.xlu2 %v8775_v23, %s7559_s13 }
 0x39a   : > { %v2242_v1 = vpop.permute.xlu0 %2241  ;;  %v2244_v25 = vpop.permute.xlu1 %2243 }
 0x39b   : > { %v2294_v12 = vsel %vm11545_vm7, %v2240_v26, %v2242_v1  ;;  %v9120_v29 = vpop.permute.xlu2 %2257  ;;  %v2295_v55 = vsel %vm11545_vm7, %v2242_v1, %v2244_v25  ;;  %v2296_v27 = vsel %vm11545_vm7, %v2244_v25, %v2246_v10 }
 0x39c   : > { %2372 = vst [vmem:[#allocation4 + $0x338] sm:$0xff] %v2294_v12 }
 0x39d   : > { %2373 = vst [vmem:[#allocation4 + $0x340] sm:$0xff] %v2295_v55 }
 0x39e   : > { %2374 = vst [vmem:[#allocation4 + $0x348] sm:$0xff] %v2296_v27 }
 0x3a0   : > { %2527 = vrot.lane.b32.xlu0 %v8862_v60, %s7559_s13  ;;  %2529 = vrot.lane.b32.xlu1 %v9124_v52, %s7559_s13  ;;  %v9137_v60 = vld [vmem:[#allocation2 + $0x108] sm:$0xff] }
 0x3a1   : > { %2525 = vrot.lane.b32.xlu2 %v8800_v33, %s7559_s13  ;;  %v9143_v33 = vld [vmem:[#allocation2 + $0xf8] sm:$0xff] }
 0x3a2   : > { %v2248_v23 = vpop.permute.xlu0 %2247  ;;  %v2250_v32 = vpop.permute.xlu1 %2249 }
 0x3a3   : > { %v2297_v13 = vsel %vm11545_vm7, %v2246_v10, %v2248_v23  ;;  %v2264_v28 = vpop.permute.xlu2 %2263  ;;  %v2298_v16 = vsel %vm11545_vm7, %v2248_v23, %v2250_v32  ;;  %v2299_v50 = vsel %vm11545_vm7, %v2250_v32, %v2252_v51  ;;  %v9207_v51 = vld [vmem:[#allocation2 + $0x38] sm:$0xff] }
 0x3a4   : > { %2375 = vst [vmem:[#allocation4 + $0x350] sm:$0xff] %v2297_v13  ;;  %v9220_v32 = vld [vmem:[#allocation2 + $0x58] sm:$0xff] }
 0x3a5   : > { %2376 = vst [vmem:[#allocation4 + $0x358] sm:$0xff] %v2298_v16 }
 0x3a6   : > { %2377 = vst [vmem:[#allocation4 + $0x360] sm:$0xff] %v2299_v50 }
 0x3a8   : > { %2533 = vrot.lane.b32.xlu0 %v9135_v47, %s7559_s13  ;;  %2535 = vrot.lane.b32.xlu1 %v9137_v60, %s7559_s13 }
 0x3a9   : > { %2531 = vrot.lane.b32.xlu2 %v9143_v33, %s7559_s13 }
 0x3aa   : > { %v9147_v43 = vpop.permute.xlu0 %2253  ;;  %v9149_v49 = vpop.permute.xlu1 %2255 }
 0x3ab   : > { %v2270_v11 = vpop.permute.xlu2 %2269  ;;  %v2300_v59 = vsel %vm11545_vm7, %v9147_v43, %v9149_v49 }
 0x3b0   : > { %2539 = vrot.lane.b32.xlu0 %v8804_v45, %s7559_s13  ;;  %2541 = vrot.lane.b32.xlu1 %v8813_v14, %s7559_s13 }
 0x3b1   : > { %2537 = vrot.lane.b32.xlu2 %v8730_v0, %s7559_s13 }
 0x3b2   : > { %v2260_v62 = vpop.permute.xlu0 %2259  ;;  %v2262_v15 = vpop.permute.xlu1 %2261 }
 0x3b3   : > { %v2302_v22 = vsel %vm11545_vm7, %v9120_v29, %v2260_v62  ;;  %v9159_v36 = vpop.permute.xlu2 %2471  ;;  %v2303_v57 = vsel %vm11545_vm7, %v2260_v62, %v2262_v15  ;;  %v2304_v5 = vsel %vm11545_vm7, %v2262_v15, %v2264_v28  ;;  %v9233_v62 = vld [vmem:[#allocation2 + $0x70] sm:$0xff] }
 0x3b4   : > { %2381 = vst [vmem:[#allocation4 + $0x380] sm:$0xff] %v2302_v22 }
 0x3b5   : > { %2382 = vst [vmem:[#allocation4 + $0x388] sm:$0xff] %v2303_v57 }
 0x3b6   : > { %2383 = vst [vmem:[#allocation4 + $0x390] sm:$0xff] %v2304_v5 }
 0x3b8   : > { %2545 = vrot.lane.b32.xlu0 %v8866_v63, %s7559_s13  ;;  %2547 = vrot.lane.b32.xlu1 %v8891_v37, %s7559_s13  ;;  %v9174_v63 = vld [vmem:[#allocation2 + $0x10] sm:$0xff] }
 0x3b9   : > { %2543 = vrot.lane.b32.xlu2 %v8817_v42, %s7559_s13  ;;  %v9180_v42 = vld [vmem:[#allocation2] sm:$0xff] }
 0x3ba   : > { %v2266_v0 = vpop.permute.xlu0 %2265  ;;  %v2268_v45 = vpop.permute.xlu1 %2267 }
 0x3bb   : > { %v2305_v14 = vsel %vm11545_vm7, %v2264_v28, %v2266_v0  ;;  %v2478_v41 = vpop.permute.xlu2 %2477  ;;  %v2306_v44 = vsel %vm11545_vm7, %v2266_v0, %v2268_v45  ;;  %v2307_v3 = vsel %vm11545_vm7, %v2268_v45, %v2270_v11  ;;  %v9250_v0 = vld [vmem:[#allocation2 + $0x80] sm:$0xff]  ;;  %v9252_v45 = vld [vmem:[#allocation2 + $0x88] sm:$0xff] }
 0x3bc   : > { %2384 = vst [vmem:[#allocation4 + $0x398] sm:$0xff] %v2305_v14  ;;  %v9258_v14 = vld [vmem:[#allocation2 + $0x78] sm:$0xff] }
 0x3bd   : > { %2385 = vst [vmem:[#allocation4 + $0x3a0] sm:$0xff] %v2306_v44 }
 0x3be   : > { %2386 = vst [vmem:[#allocation4 + $0x3a8] sm:$0xff] %v2307_v3 }
 0x3c0   : > { %2747 = vrot.lane.b32.xlu0 %v9172_v8, %s7560_s18  ;;  %2749 = vrot.lane.b32.xlu1 %v9174_v63, %s7560_s18 }
 0x3c1   : > { %2745 = vrot.lane.b32.xlu2 %v9180_v42, %s7560_s18 }
 0x3c2   : > { %v2272_v37 = vpop.permute.xlu0 %2271  ;;  %v9184_v4 = vpop.permute.xlu1 %2469 }
 0x3c3   : > { %v2308_v46 = vsel %vm11545_vm7, %v2270_v11, %v2272_v37  ;;  %2388 = vst.msk [vmem:[#allocation4 + $0x3b8] sm:$0xff] %vm11557_vm0, %v2272_v37  ;;  %v2484_v26 = vpop.permute.xlu2 %2483  ;;  %v9231_v11 = vld [vmem:[#allocation2 + $0x68] sm:$0xff] }
 0x3c4   : > { %2387 = vst [vmem:[#allocation4 + $0x3b0] sm:$0xff] %v2308_v46 }
 0x3c8   : > { %2753 = vrot.lane.b32.xlu0 %v9188_v34, %s7560_s18  ;;  %2755 = vrot.lane.b32.xlu1 %v9190_v38, %s7560_s18 }
 0x3c9   : > { %2751 = vrot.lane.b32.xlu2 %v9196_v6, %s7560_s18 }
 0x3ca   : > { %v9200_v53 = vpop.permute.xlu0 %2473  ;;  %v2476_v35 = vpop.permute.xlu1 %2475 }
 0x3cb   : > { %v9202_v10 = vpop.permute.xlu2 %2489  ;;  %v2551_v17 = vsel %vm11544_vm6, %v9200_v53, %v2476_v35  ;;  %v2552_v58 = vsel %vm11544_vm6, %v2476_v35, %v2478_v41  ;;  %v9267_v35 = vld [vmem:[#allocation2 + $0xa0] sm:$0xff] }
 0x3cc   : > { %2627 = vst [vmem:[#allocation4 + $0x3d0] sm:$0xff] %v2551_v17  ;;  %v9273_v17 = vld [vmem:[#allocation2 + $0x90] sm:$0xff] }
 0x3cd   : > { %2628 = vst [vmem:[#allocation4 + $0x3d8] sm:$0xff] %v2552_v58 }
 0x3d0   : > { %2759 = vrot.lane.b32.xlu0 %v9207_v51, %s7560_s18  ;;  %2761 = vrot.lane.b32.xlu1 %v8828_v40, %s7560_s18 }
 0x3d1   : > { %2757 = vrot.lane.b32.xlu2 %v9213_v39, %s7560_s18 }
 0x3d2   : > { %v2480_v1 = vpop.permute.xlu0 %2479  ;;  %v2482_v25 = vpop.permute.xlu1 %2481 }
 0x3d3   : > { %v2553_v12 = vsel %vm11544_vm6, %v2478_v41, %v2480_v1  ;;  %v2496_v55 = vpop.permute.xlu2 %2495  ;;  %v2554_v27 = vsel %vm11544_vm6, %v2480_v1, %v2482_v25  ;;  %v2555_v23 = vsel %vm11544_vm6, %v2482_v25, %v2484_v26 }
 0x3d4   : > { %2629 = vst [vmem:[#allocation4 + $0x3e0] sm:$0xff] %v2553_v12 }
 0x3d5   : > { %2630 = vst [vmem:[#allocation4 + $0x3e8] sm:$0xff] %v2554_v27 }
 0x3d6   : > { %2631 = vst [vmem:[#allocation4 + $0x3f0] sm:$0xff] %v2555_v23  ;;  %v9286_v23 = vld [vmem:[#allocation2 + $0xa8] sm:$0xff] }
 0x3d8   : > { %2765 = vrot.lane.b32.xlu0 %v9056_v7, %s7560_s18  ;;  %2767 = vrot.lane.b32.xlu1 %v9220_v32, %s7560_s18 }
 0x3d9   : > { %2763 = vrot.lane.b32.xlu2 %v8846_v61, %s7560_s18  ;;  %v9239_v61 = vld [vmem:[#allocation2 + $0x60] sm:$0xff] }
 0x3da   : > { %v2486_v40 = vpop.permute.xlu0 %2485  ;;  %v2488_v13 = vpop.permute.xlu1 %2487 }
 0x3db   : > { %v2556_v28 = vsel %vm11544_vm6, %v2484_v26, %v2486_v40  ;;  %v2502_v16 = vpop.permute.xlu2 %2501  ;;  %v2557_v50 = vsel %vm11544_vm6, %v2486_v40, %v2488_v13  ;;  %2634 = vst.msk [vmem:[#allocation4 + $0x408] sm:$0xff] %vm11557_vm0, %v2488_v13 }
 0x3dc   : > { %2632 = vst [vmem:[#allocation4 + $0x3f8] sm:$0xff] %v2556_v28 }
 0x3dd   : > { %2633 = vst [vmem:[#allocation4 + $0x400] sm:$0xff] %v2557_v50  ;;  %v9294_v50 = vld [vmem:[#allocation2 + $0xd0] sm:$0xff] }
 0x3e0   : > { %2771 = vrot.lane.b32.xlu0 %v9231_v11, %s7560_s18  ;;  %2773 = vrot.lane.b32.xlu1 %v9233_v62, %s7560_s18 }
 0x3e1   : > { %2769 = vrot.lane.b32.xlu2 %v9239_v61, %s7560_s18 }
 0x3e2   : > { %v9243_v15 = vpop.permute.xlu0 %2491  ;;  %v9245_v22 = vpop.permute.xlu1 %2493 }
 0x3e3   : > { %v2508_v57 = vpop.permute.xlu2 %2507  ;;  %v2560_v5 = vsel %vm11544_vm6, %v9245_v22, %v2496_v55  ;;  %v2559_v43 = vsel %vm11544_vm6, %v9243_v15, %v9245_v22 }
 0x3e4   : > { %2644 = vst.msk [vmem:[#allocation4 + $0x458] sm:$0xff] %vm11557_vm0, %v2508_v57 }
 0x3e5   : > { %2637 = vst [vmem:[#allocation4 + $0x420] sm:$0xff] %v2560_v5 }
 0x3e8   : > { %2777 = vrot.lane.b32.xlu0 %v9250_v0, %s7560_s18  ;;  %2779 = vrot.lane.b32.xlu1 %v9252_v45, %s7560_s18 }
 0x3e9   : > { %2775 = vrot.lane.b32.xlu2 %v9258_v14, %s7560_s18 }
 0x3ea   : > { %v2498_v41 = vpop.permute.xlu0 %2497  ;;  %v2500_v44 = vpop.permute.xlu1 %2499 }
 0x3eb   : > { %v2561_v3 = vsel %vm11544_vm6, %v2496_v55, %v2498_v41  ;;  %v9263_v37 = vpop.permute.xlu2 %2513  ;;  %v2562_v46 = vsel %vm11544_vm6, %v2498_v41, %v2500_v44  ;;  %v2563_v26 = vsel %vm11544_vm6, %v2500_v44, %v2502_v16 }
 0x3ec   : > { %2638 = vst [vmem:[#allocation4 + $0x428] sm:$0xff] %v2561_v3 }
 0x3ed   : > { %2639 = vst [vmem:[#allocation4 + $0x430] sm:$0xff] %v2562_v46 }
 0x3ee   : > { %2640 = vst [vmem:[#allocation4 + $0x438] sm:$0xff] %v2563_v26 }
 0x3f0   : > { %2783 = vrot.lane.b32.xlu0 %v8879_v31, %s7560_s18  ;;  %2785 = vrot.lane.b32.xlu1 %v9267_v35, %s7560_s18  ;;  %v9280_v31 = vld [vmem:[#allocation2 + $0xb8] sm:$0xff] }
 0x3f1   : > { %2781 = vrot.lane.b32.xlu2 %v9273_v17, %s7560_s18 }
 0x3f2   : > { %v2504_v58 = vpop.permute.xlu0 %2503  ;;  %v2506_v1 = vpop.permute.xlu1 %2505 }
 0x3f3   : > { %v2564_v25 = vsel %vm11544_vm6, %v2502_v16, %v2504_v58  ;;  %v2520_v12 = vpop.permute.xlu2 %2519  ;;  %v2565_v55 = vsel %vm11544_vm6, %v2504_v58, %v2506_v1  ;;  %v2566_v27 = vsel %vm11544_vm6, %v2506_v1, %v2508_v57  ;;  %v9292_v16 = vld [vmem:[#allocation2 + $0xc8] sm:$0xff]  ;;  %v9300_v57 = vld [vmem:[#allocation2 + $0xc0] sm:$0xff] }
 0x3f4   : > { %2641 = vst [vmem:[#allocation4 + $0x440] sm:$0xff] %v2564_v25  ;;  %v9308_v58 = vld [vmem:[#allocation2 + $0xe0] sm:$0xff]  ;;  %v9310_v1 = vld [vmem:[#allocation2 + $0xe8] sm:$0xff]  ;;  %v9314_v25 = vld [vmem:[#allocation2 + $0xd8] sm:$0xff] }
 0x3f5   : > { %2642 = vst [vmem:[#allocation4 + $0x448] sm:$0xff] %v2565_v55 }
 0x3f6   : > { %2643 = vst [vmem:[#allocation4 + $0x450] sm:$0xff] %v2566_v27 }
 0x3f8   : > { %2789 = vrot.lane.b32.xlu0 %v9102_v19, %s7560_s18  ;;  %2791 = vrot.lane.b32.xlu1 %v9280_v31, %s7560_s18 }
 0x3f9   : > { %2787 = vrot.lane.b32.xlu2 %v9286_v23, %s7560_s18 }
 0x3fa   : > { %v2510_v40 = vpop.permute.xlu0 %2509  ;;  %v9290_v13 = vpop.permute.xlu1 %2511 }
 0x3fb   : > { %v2526_v28 = vpop.permute.xlu2 %2525 }
 0x400   : > { %2795 = vrot.lane.b32.xlu0 %v9292_v16, %s7560_s18  ;;  %2797 = vrot.lane.b32.xlu1 %v9294_v50, %s7560_s18 }
 0x401   : > { %2793 = vrot.lane.b32.xlu2 %v9300_v57, %s7560_s18 }
 0x402   : > { %v2516_v5 = vpop.permute.xlu0 %2515  ;;  %v2518_v41 = vpop.permute.xlu1 %2517 }
 0x403   : > { %v2569_v44 = vsel %vm11544_vm6, %v9263_v37, %v2516_v5  ;;  %v2532_v3 = vpop.permute.xlu2 %2531  ;;  %v2570_v46 = vsel %vm11544_vm6, %v2516_v5, %v2518_v41  ;;  %v2571_v26 = vsel %vm11544_vm6, %v2518_v41, %v2520_v12 }
 0x404   : > { %2647 = vst [vmem:[#allocation4 + $0x470] sm:$0xff] %v2569_v44 }
 0x405   : > { %2648 = vst [vmem:[#allocation4 + $0x478] sm:$0xff] %v2570_v46 }
 0x406   : > { %2649 = vst [vmem:[#allocation4 + $0x480] sm:$0xff] %v2571_v26 }
 0x408   : > { %2801 = vrot.lane.b32.xlu0 %v9308_v58, %s7560_s18  ;;  %2803 = vrot.lane.b32.xlu1 %v9310_v1, %s7560_s18 }
 0x409   : > { %2799 = vrot.lane.b32.xlu2 %v9314_v25, %s7560_s18 }
 0x40a   : > { %v2522_v55 = vpop.permute.xlu0 %2521  ;;  %v2524_v27 = vpop.permute.xlu1 %2523 }
 0x40b   : > { %v2572_v5 = vsel %vm11544_vm6, %v2520_v12, %v2522_v55  ;;  %v2538_v41 = vpop.permute.xlu2 %2537  ;;  %v2573_v44 = vsel %vm11544_vm6, %v2522_v55, %v2524_v27  ;;  %v2574_v46 = vsel %vm11544_vm6, %v2524_v27, %v2526_v28 }
 0x40c   : > { %2650 = vst [vmem:[#allocation4 + $0x488] sm:$0xff] %v2572_v5  ;;  %v2567_v5 = vsel %vm11544_vm6, %v2510_v40, %v9290_v13 }
 0x40d   : > { %2651 = vst [vmem:[#allocation4 + $0x490] sm:$0xff] %v2573_v44  ;;  %v9336_v44 = vld [vmem:[#allocation2 + $0x110] sm:$0xff] }
 0x40e   : > { %2652 = vst [vmem:[#allocation4 + $0x498] sm:$0xff] %v2574_v46  ;;  %v9338_v46 = vld [vmem:[#allocation2 + $0x118] sm:$0xff] }
 0x410   : > { %2807 = vrot.lane.b32.xlu0 %v9143_v33, %s7560_s18  ;;  %2809 = vrot.lane.b32.xlu1 %v9135_v47, %s7560_s18 }
 0x411   : > { %2805 = vrot.lane.b32.xlu2 %v9124_v52, %s7560_s18 }
 0x412   : > { %v2528_v26 = vpop.permute.xlu0 %2527  ;;  %v2530_v2 = vpop.permute.xlu1 %2529 }
 0x413   : > { %v2575_v12 = vsel %vm11544_vm6, %v2526_v28, %v2528_v26  ;;  %2654 = vst.msk [vmem:[#allocation4 + $0x4a8] sm:$0xff] %vm11557_vm0, %v2528_v26  ;;  %v9331_v55 = vpop.permute.xlu2 %2543  ;;  %v2576_v27 = vsel %vm11544_vm6, %v2530_v2, %v2532_v3  ;;  %v2558_v28 = vsel %vm11544_vm6, %v9202_v10, %v9243_v15  ;;  %v2549_v2 = vsel %vm11544_vm6, %v9184_v4, %v9159_v36 }
 0x414   : > { %2653 = vst [vmem:[#allocation4 + $0x4a0] sm:$0xff] %v2575_v12  ;;  %4430 = vmatpush.msra.mxu2 %v2576_v27  ;;  %v2568_v4 = vsel %vm11544_vm6, %v9290_v13, %v9263_v37  ;;  %v9375_v37 = vld [vmem:[#allocation2 + $0x120] sm:$0xff] }
 0x416   : > { %4431 = vmatpush.msra.mxu2 %v2567_v5 }
 0x418   : > { %2813 = vrot.lane.b32.xlu0 %v9336_v44, %s7560_s18  ;;  %2815 = vrot.lane.b32.xlu1 %v9338_v46, %s7560_s18 }
 0x419   : > { %2811 = vrot.lane.b32.xlu2 %v9137_v60, %s7560_s18  ;;  %4432 = vmatpush.msra.mxu2 %v2558_v28  ;;  %v9366_v28 = vld [vmem:[#allocation2 + $0x128] sm:$0xff] }
 0x41a   : > { %v2534_v40 = vpop.permute.xlu0 %2533  ;;  %v2536_v26 = vpop.permute.xlu1 %2535 }
 0x41b   : > { %v2577_v12 = vsel %vm11544_vm6, %v2532_v3, %v2534_v40  ;;  %v9353_v27 = vpop.permute.xlu2 %2745  ;;  %v2578_v10 = vsel %vm11544_vm6, %v2534_v40, %v2536_v26  ;;  %v2579_v5 = vsel %vm11544_vm6, %v2536_v26, %v2538_v41  ;;  %4433 = vmatpush.msra.mxu2 %v2549_v2  ;;  %v2291_v3 = vsel %vm11545_vm7, %v9062_v30, %v9106_v9  ;;  %v9368_v2 = vld [vmem:[#allocation2 + $0x130] sm:$0xff] }
 0x41c   : > { %2657 = vst [vmem:[#allocation4 + $0x4c0] sm:$0xff] %v2578_v10  ;;  %4499 = vmatpush.msrb.mxu0 %v2577_v12  ;;  %v2550_v30 = vsel %vm11544_vm6, %v9159_v36, %v9200_v53  ;;  %v4125_v10 = vld [vmem:[#allocation4 + $0x280] sm:$0xff]  ;;  %v4115_v36 = vld [vmem:[#allocation4 + $0x230] sm:$0xff]  ;;  %v2292_v53 = vsel %vm11545_vm7, %v9106_v9, %v9108_v48  ;;  %v4126_v9 = vld [vmem:[#allocation4 + $0x288] sm:$0xff] }
 0x41d   : > { %2658 = vst [vmem:[#allocation4 + $0x4c8] sm:$0xff] %v2579_v5  ;;  %4434 = vmatpush.msra.mxu2 %v2300_v59  ;;  %v4135_v59 = vld [vmem:[#allocation4 + $0x2d0] sm:$0xff]  ;;  %v2301_v5 = vsel %vm11545_vm7, %v9149_v49, %v9120_v29  ;;  %v4136_v29 = vld [vmem:[#allocation4 + $0x2d8] sm:$0xff]  ;;  %v4105_v49 = vld [vmem:[#allocation4 + $0x1e0] sm:$0xff] }
 0x41e   : > { %4500 = vmatpush.msrb.mxu0 %v2568_v4 }
 0x41f   : > { %4435 = vmatpush.msra.mxu2 %v2291_v3 }
 0x420   : > { %2819 = vrot.lane.b32.xlu0 %v9366_v28, %s7560_s18  ;;  %2821 = vrot.lane.b32.xlu1 %v9368_v2, %s7560_s18 }
 0x421   : > { %2817 = vrot.lane.b32.xlu2 %v9375_v37, %s7560_s18  ;;  %4501 = vmatpush.msrb.mxu0 %v2559_v43 }
 0x422   : > { %v2540_v13 = vpop.permute.xlu0 %2539  ;;  %v2542_v40 = vpop.permute.xlu1 %2541  ;;  %4436 = vmatpush.msra.mxu2 %v4135_v59 }
 0x423   : > { %v2580_v15 = vsel %vm11544_vm6, %v2538_v41, %v2540_v13  ;;  %v9385_v22 = vpop.permute.xlu2 %2751  ;;  %v2581_v26 = vsel %vm11544_vm6, %v2540_v13, %v2542_v40  ;;  %v2582_v12 = vsel %vm11544_vm6, %v2542_v40, %v9331_v55  ;;  %4502 = vmatpush.msrb.mxu0 %v2550_v30  ;;  %v9398_v41 = vld [vmem:[#allocation2 + $0x138] sm:$0xff]  ;;  %v4095_v30 = vld [vmem:[#allocation4 + $0x190] sm:$0xff]  ;;  %v4085_v40 = vld [vmem:[#allocation4 + $0x140] sm:$0xff] }
 0x424   : > { %2659 = vst [vmem:[#allocation4 + $0x4d0] sm:$0xff] %v2580_v15  ;;  %4437 = vmatpush.msra.mxu2 %v4125_v10  ;;  %v4116_v13 = vld [vmem:[#allocation4 + $0x238] sm:$0xff]  ;;  %v4106_v15 = vld [vmem:[#allocation4 + $0x1e8] sm:$0xff] }
 0x425   : > { %2660 = vst [vmem:[#allocation4 + $0x4d8] sm:$0xff] %v2581_v26  ;;  %4503 = vmatpush.msrb.mxu0 %v2301_v5  ;;  %v4075_v26 = vld [vmem:[#allocation4 + $0xf0] sm:$0xff]  ;;  %v4086_v5 = vld [vmem:[#allocation4 + $0x148] sm:$0xff] }
 0x426   : > { %2661 = vst [vmem:[#allocation4 + $0x4e0] sm:$0xff] %v2582_v12  ;;  %4438 = vmatpush.msra.mxu2 %v4115_v36 }
 0x427   : > { %4504 = vmatpush.msrb.mxu0 %v2292_v53 }
 0x428   : > { %3021 = vrot.lane.b32.xlu0 %v9180_v42, %s7561_s22  ;;  %3023 = vrot.lane.b32.xlu1 %v9172_v8, %s7561_s22 }
 0x429   : > { %2823 = vrot.lane.b32.xlu2 %v9398_v41, %s7560_s18  ;;  %4505 = vmatpush.msrb.mxu0 %v4136_v29 }
 0x42a   : > { %v2546_v4 = vpop.permute.xlu0 %2545  ;;  %v2548_v3 = vpop.permute.xlu1 %2547  ;;  %4439 = vmatpush.msra.mxu2 %v4105_v49  ;;  %v4065_v49 = vld [vmem:[#allocation4 + $0xa0] sm:$0xff] }
 0x42b   : > { %v2583_v48 = vsel %vm11544_vm6, %v9331_v55, %v2546_v4  ;;  %v9406_v43 = vpop.permute.xlu2 %2757  ;;  %v2584_v59 = vsel %vm11544_vm6, %v2546_v4, %v2548_v3  ;;  %2664 = vst.msk [vmem:[#allocation4 + $0x4f8] sm:$0xff] %vm11557_vm0, %v2548_v3  ;;  %4506 = vmatpush.msrb.mxu0 %v4126_v9  ;;  %v4096_v55 = vld [vmem:[#allocation4 + $0x198] sm:$0xff]  ;;  %vm11634_vm6 = vcmask 760832   ;;  %v4055_v9 = vld [vmem:[#allocation4 + $0x50] sm:$0xff] }
 0x42c   : > { %2662 = vst [vmem:[#allocation4 + $0x4e8] sm:$0xff] %v2583_v48  ;;  %4440 = vmatpush.msra.mxu2 %v4095_v30  ;;  %vm11635_vm7 = vmmov %vm11634_vm6  ;;  %v4076_v3 = vld [vmem:[#allocation4 + $0xf8] sm:$0xff]  ;;  %v4066_v48 = vld [vmem:[#allocation4 + $0xa8] sm:$0xff] }
 0x42d   : > { %2663 = vst [vmem:[#allocation4 + $0x4f0] sm:$0xff] %v2584_v59  ;;  %4507 = vmatpush.msrb.mxu0 %v4116_v13  ;;  %vm11636_vm8 = vmmov %vm11634_vm6  ;;  %v4045_v59 = vld [vmem:[#allocation4] sm:$0xff] }
 0x42e   : > { %4441 = vmatpush.msra.mxu2 %v4085_v40  ;;  %v4046_v40 = vld [vmem:[#allocation4 + $0x8] sm:$0xff]  ;;  %vm11643_vm4 = vmmov %vm11634_vm6 }
 0x42f   : > { %4508 = vmatpush.msrb.mxu0 %v4106_v15 }
 0x430   : > { %3027 = vrot.lane.b32.xlu0 %v9196_v6, %s7561_s22  ;;  %3029 = vrot.lane.b32.xlu1 %v9188_v34, %s7561_s22 }
 0x431   : > { %3025 = vrot.lane.b32.xlu2 %v9174_v63, %s7561_s22  ;;  %4509 = vmatpush.msrb.mxu0 %v4096_v55 }
 0x432   : > { %v2748_v12 = vpop.permute.xlu0 %2747  ;;  %v2750_v10 = vpop.permute.xlu1 %2749  ;;  %4442 = vmatpush.msra.mxu2 %v4075_v26 }
 0x433   : > { %v2825_v36 = vsel %vm11634_vm6, %v9353_v27, %v2748_v12  ;;  %v2764_v53 = vpop.permute.xlu2 %2763  ;;  %v2826_v29 = vsel %vm11635_vm7, %v2748_v12, %v2750_v10  ;;  %4510 = vmatpush.msrb.mxu0 %v4086_v5  ;;  %v2827_v4 = vsel %vm11636_vm8, %v2750_v10, %v9385_v22  ;;  %v4056_v27 = vld [vmem:[#allocation4 + $0x58] sm:$0xff]  ;;  %vm11637_vm7 = vmmov %vm11634_vm6  ;;  %v9433_v10 = vld [vmem:[#allocation2 + $0x48] sm:$0xff] }
 0x434   : > { %2901 = vst [vmem:[#allocation4 + $0x500] sm:$0xff] %v2825_v36  ;;  %4443 = vmatpush.msra.mxu2 %v4065_v49  ;;  %vm11638_vm8 = vmmov %vm11634_vm6  ;;  %v9437_v5 = vld [vmem:[#allocation2 + $0x40] sm:$0xff] }
 0x435   : > { %2910 = vst.msk [vmem:[#allocation4 + $0x548] sm:$0xff] %vm11557_vm0, %v2764_v53  ;;  %4511 = vmatpush.msrb.mxu0 %v4076_v3 }
 0x436   : > { %2902 = vst [vmem:[#allocation4 + $0x508] sm:$0xff] %v2826_v29  ;;  %4444 = vmatpush.msra.mxu2 %v4055_v9 }
 0x437   : > { %2903 = vst [vmem:[#allocation4 + $0x510] sm:$0xff] %v2827_v4  ;;  %4512 = vmatpush.msrb.mxu0 %v4066_v48 }
 0x438   : > { %3033 = vrot.lane.b32.xlu0 %v9213_v39, %s7561_s22  ;;  %3035 = vrot.lane.b32.xlu1 %v9207_v51, %s7561_s22 }
 0x439   : > { %3031 = vrot.lane.b32.xlu2 %v9190_v38, %s7561_s22  ;;  %4513 = vmatpush.msrb.mxu0 %v4056_v27 }
 0x43a   : > { %v2754_v30 = vpop.permute.xlu0 %2753  ;;  %4445 = vmatpush.msra.mxu2 %v4045_v59  ;;  %v2756_v13 = vpop.permute.xlu1 %2755 }
 0x43b   : > { %v2828_v15 = vsel %vm11634_vm6, %v9385_v22, %v2754_v30  ;;  %v2770_v55 = vpop.permute.xlu2 %2769  ;;  %v2829_v26 = vsel %vm11637_vm7, %v2754_v30, %v2756_v13  ;;  %v2830_v12 = vsel %vm11638_vm8, %v2756_v13, %v9406_v43  ;;  %4514 = vmatpush.msrb.mxu0 %v4046_v40  ;;  %vm11639_vm7 = vmmov %vm11634_vm6 }
 0x43c   : > { %2904 = vst [vmem:[#allocation4 + $0x518] sm:$0xff] %v2828_v15  ;;  %vm11640_vm8 = vmmov %vm11634_vm6 }
 0x43d   : > { %2905 = vst [vmem:[#allocation4 + $0x520] sm:$0xff] %v2829_v26  ;;  %v9464_v26 = vld [vmem:[#allocation2 + $0x98] sm:$0xff] }
 0x43e   : > { %2906 = vst [vmem:[#allocation4 + $0x528] sm:$0xff] %v2830_v12 }
 0x440   : > { %3039 = vrot.lane.b32.xlu0 %v9433_v10, %s7561_s22  ;;  %3041 = vrot.lane.b32.xlu1 %v9056_v7, %s7561_s22 }
 0x441   : > { %3037 = vrot.lane.b32.xlu2 %v9437_v5, %s7561_s22 }
 0x442   : > { %v2760_v22 = vpop.permute.xlu0 %2759  ;;  %v2762_v36 = vpop.permute.xlu1 %2761 }
 0x443   : > { %v2831_v29 = vsel %vm11634_vm6, %v9406_v43, %v2760_v22  ;;  %v2776_v49 = vpop.permute.xlu2 %2775  ;;  %v2832_v4 = vsel %vm11639_vm7, %v2760_v22, %v2762_v36  ;;  %v2833_v3 = vsel %vm11640_vm8, %v2762_v36, %v2764_v53  ;;  %vm11641_vm7 = vmmov %vm11634_vm6 }
 0x444   : > { %2907 = vst [vmem:[#allocation4 + $0x530] sm:$0xff] %v2831_v29  ;;  %vm11642_vm8 = vmmov %vm11634_vm6 }
 0x445   : > { %2908 = vst [vmem:[#allocation4 + $0x538] sm:$0xff] %v2832_v4 }
 0x446   : > { %2909 = vst [vmem:[#allocation4 + $0x540] sm:$0xff] %v2833_v3 }
 0x448   : > { %3045 = vrot.lane.b32.xlu0 %v9239_v61, %s7561_s22  ;;  %3047 = vrot.lane.b32.xlu1 %v9231_v11, %s7561_s22 }
 0x449   : > { %3043 = vrot.lane.b32.xlu2 %v9220_v32, %s7561_s22 }
 0x44a   : > { %v2766_v7 = vpop.permute.xlu0 %2765  ;;  %v2768_v9 = vpop.permute.xlu1 %2767 }
 0x44b   : > { %v2782_v43 = vpop.permute.xlu2 %2781  ;;  %v2834_v48 = vsel %vm11634_vm6, %v2766_v7, %v2768_v9  ;;  %v2835_v27 = vsel %vm11641_vm7, %v2768_v9, %v2770_v55  ;;  %vm11644_vm6 = vmmov %vm11643_vm4 }
 0x44c   : > { %2911 = vst [vmem:[#allocation4 + $0x550] sm:$0xff] %v2834_v48  ;;  %vm11645_vm7 = vmmov %vm11643_vm4 }
 0x44d   : > { %2912 = vst [vmem:[#allocation4 + $0x558] sm:$0xff] %v2835_v27 }
 0x450   : > { %3051 = vrot.lane.b32.xlu0 %v9258_v14, %s7561_s22  ;;  %3053 = vrot.lane.b32.xlu1 %v9250_v0, %s7561_s22 }
 0x451   : > { %3049 = vrot.lane.b32.xlu2 %v9233_v62, %s7561_s22 }
 0x452   : > { %v2772_v53 = vpop.permute.xlu0 %2771  ;;  %v2774_v59 = vpop.permute.xlu1 %2773 }
 0x453   : > { %v2836_v30 = vsel %vm11642_vm8, %v2770_v55, %v2772_v53  ;;  %v2788_v13 = vpop.permute.xlu2 %2787  ;;  %v2837_v40 = vsel %vm11643_vm4, %v2772_v53, %v2774_v59  ;;  %v2838_v15 = vsel %vm11644_vm6, %v2774_v59, %v2776_v49  ;;  %vm11646_vm8 = vmmov %vm11643_vm4 }
 0x454   : > { %2913 = vst [vmem:[#allocation4 + $0x560] sm:$0xff] %v2836_v30  ;;  %vm11647_vm6 = vmmov %vm11643_vm4 }
 0x455   : > { %2914 = vst [vmem:[#allocation4 + $0x568] sm:$0xff] %v2837_v40 }
 0x456   : > { %2915 = vst [vmem:[#allocation4 + $0x570] sm:$0xff] %v2838_v15 }
 0x458   : > { %3057 = vrot.lane.b32.xlu0 %v9273_v17, %s7561_s22  ;;  %3059 = vrot.lane.b32.xlu1 %v9464_v26, %s7561_s22 }
 0x459   : > { %3055 = vrot.lane.b32.xlu2 %v9252_v45, %s7561_s22 }
 0x45a   : > { %v2778_v55 = vpop.permute.xlu0 %2777  ;;  %v2780_v12 = vpop.permute.xlu1 %2779 }
 0x45b   : > { %v2839_v22 = vsel %vm11645_vm7, %v2776_v49, %v2778_v55  ;;  %v2794_v36 = vpop.permute.xlu2 %2793  ;;  %v2840_v29 = vsel %vm11643_vm4, %v2778_v55, %v2780_v12  ;;  %v2841_v4 = vsel %vm11646_vm8, %v2780_v12, %v2782_v43  ;;  %vm11648_vm7 = vmmov %vm11643_vm4 }
 0x45c   : > { %2916 = vst [vmem:[#allocation4 + $0x578] sm:$0xff] %v2839_v22  ;;  %vm11649_vm8 = vmmov %vm11643_vm4 }
 0x45d   : > { %2917 = vst [vmem:[#allocation4 + $0x580] sm:$0xff] %v2840_v29 }
 0x45e   : > { %2918 = vst [vmem:[#allocation4 + $0x588] sm:$0xff] %v2841_v4 }
 0x460   : > { %3063 = vrot.lane.b32.xlu0 %v9286_v23, %s7561_s22  ;;  %3065 = vrot.lane.b32.xlu1 %v9102_v19, %s7561_s22 }
 0x461   : > { %3061 = vrot.lane.b32.xlu2 %v9267_v35, %s7561_s22 }
 0x462   : > { %v2784_v3 = vpop.permute.xlu0 %2783  ;;  %v2786_v7 = vpop.permute.xlu1 %2785 }
 0x463   : > { %v2842_v49 = vsel %vm11647_vm6, %v2782_v43, %v2784_v3  ;;  %2920 = vst.msk [vmem:[#allocation4 + $0x598] sm:$0xff] %vm11557_vm0, %v2784_v3  ;;  %v2800_v9 = vpop.permute.xlu2 %2799  ;;  %v2843_v48 = vsel %vm11648_vm7, %v2786_v7, %v2788_v13  ;;  %vm11650_vm6 = vmmov %vm11643_vm4 }
 0x464   : > { %2919 = vst [vmem:[#allocation4 + $0x590] sm:$0xff] %v2842_v49  ;;  %vm11651_vm7 = vmmov %vm11643_vm4 }
 0x465   : > { %2921 = vst [vmem:[#allocation4 + $0x5a0] sm:$0xff] %v2843_v48 }
 0x468   : > { %3069 = vrot.lane.b32.xlu0 %v9300_v57, %s7561_s22  ;;  %3071 = vrot.lane.b32.xlu1 %v9292_v16, %s7561_s22 }
 0x469   : > { %3067 = vrot.lane.b32.xlu2 %v9280_v31, %s7561_s22 }
 0x46a   : > { %v2790_v19 = vpop.permute.xlu0 %2789  ;;  %v2792_v27 = vpop.permute.xlu1 %2791 }
 0x46b   : > { %v2844_v43 = vsel %vm11643_vm4, %v2788_v13, %v2790_v19  ;;  %v2806_v53 = vpop.permute.xlu2 %2805  ;;  %v2845_v59 = vsel %vm11649_vm8, %v2790_v19, %v2792_v27  ;;  %v2846_v30 = vsel %vm11650_vm6, %v2792_v27, %v2794_v36  ;;  %vm11652_vm8 = vmmov %vm11643_vm4 }
 0x46c   : > { %2922 = vst [vmem:[#allocation4 + $0x5a8] sm:$0xff] %v2844_v43  ;;  %vm11653_vm6 = vmmov %vm11643_vm4 }
 0x46d   : > { %2923 = vst [vmem:[#allocation4 + $0x5b0] sm:$0xff] %v2845_v59 }
 0x46e   : > { %2924 = vst [vmem:[#allocation4 + $0x5b8] sm:$0xff] %v2846_v30 }
 0x470   : > { %3075 = vrot.lane.b32.xlu0 %v9314_v25, %s7561_s22  ;;  %3077 = vrot.lane.b32.xlu1 %v9308_v58, %s7561_s22 }
 0x471   : > { %3073 = vrot.lane.b32.xlu2 %v9294_v50, %s7561_s22 }
 0x472   : > { %v2796_v40 = vpop.permute.xlu0 %2795  ;;  %v2798_v15 = vpop.permute.xlu1 %2797 }
 0x473   : > { %v2847_v13 = vsel %vm11651_vm7, %v2794_v36, %v2796_v40  ;;  %v2812_v55 = vpop.permute.xlu2 %2811  ;;  %v2848_v12 = vsel %vm11643_vm4, %v2796_v40, %v2798_v15  ;;  %v2849_v22 = vsel %vm11652_vm8, %v2798_v15, %v2800_v9  ;;  %vm11654_vm7 = vmmov %vm11643_vm4 }
 0x474   : > { %2925 = vst [vmem:[#allocation4 + $0x5c0] sm:$0xff] %v2847_v13  ;;  %vm11655_vm8 = vmmov %vm11643_vm4 }
 0x475   : > { %2926 = vst [vmem:[#allocation4 + $0x5c8] sm:$0xff] %v2848_v12 }
 0x476   : > { %2927 = vst [vmem:[#allocation4 + $0x5d0] sm:$0xff] %v2849_v22 }
 0x478   : > { %3081 = vrot.lane.b32.xlu0 %v9124_v52, %s7561_s22  ;;  %3083 = vrot.lane.b32.xlu1 %v9143_v33, %s7561_s22 }
 0x479   : > { %3079 = vrot.lane.b32.xlu2 %v9310_v1, %s7561_s22 }
 0x47a   : > { %v2802_v29 = vpop.permute.xlu0 %2801  ;;  %v2804_v4 = vpop.permute.xlu1 %2803 }
 0x47b   : > { %v2850_v36 = vsel %vm11653_vm6, %v2800_v9, %v2802_v29  ;;  %v2818_v3 = vpop.permute.xlu2 %2817  ;;  %v2851_v7 = vsel %vm11654_vm7, %v2802_v29, %v2804_v4  ;;  %2930 = vst.msk [vmem:[#allocation4 + $0x5e8] sm:$0xff] %vm11557_vm0, %v2804_v4  ;;  %vm11656_vm6 = vmmov %vm11643_vm4 }
 0x47c   : > { %2928 = vst [vmem:[#allocation4 + $0x5d8] sm:$0xff] %v2850_v36  ;;  %vm11657_vm7 = vmmov %vm11643_vm4 }
 0x47d   : > { %2929 = vst [vmem:[#allocation4 + $0x5e0] sm:$0xff] %v2851_v7 }
 0x480   : > { %3087 = vrot.lane.b32.xlu0 %v9137_v60, %s7561_s22  ;;  %3089 = vrot.lane.b32.xlu1 %v9336_v44, %s7561_s22 }
 0x481   : > { %3085 = vrot.lane.b32.xlu2 %v9135_v47, %s7561_s22 }
 0x482   : > { %v2808_v52 = vpop.permute.xlu0 %2807  ;;  %v2810_v33 = vpop.permute.xlu1 %2809 }
 0x483   : > { %v2852_v49 = vsel %vm11643_vm4, %v2806_v53, %v2808_v52  ;;  %v2824_v9 = vpop.permute.xlu2 %2823  ;;  %v2853_v48 = vsel %vm11655_vm8, %v2808_v52, %v2810_v33  ;;  %v2854_v19 = vsel %vm11656_vm6, %v2810_v33, %v2812_v55  ;;  %vm11658_vm8 = vmmov %vm11643_vm4 }
 0x484   : > { %2931 = vst [vmem:[#allocation4 + $0x5f0] sm:$0xff] %v2852_v49  ;;  %vm11659_vm6 = vmmov %vm11643_vm4 }
 0x485   : > { %2940 = vst.msk [vmem:[#allocation4 + $0x638] sm:$0xff] %vm11557_vm0, %v2824_v9 }
 0x486   : > { %2932 = vst [vmem:[#allocation4 + $0x5f8] sm:$0xff] %v2853_v48  ;;  %v9567_v48 = vld [vmem:[#allocation2 + $0x50] sm:$0xff] }
 0x487   : > { %2933 = vst [vmem:[#allocation4 + $0x600] sm:$0xff] %v2854_v19 }
 0x488   : > { %3093 = vrot.lane.b32.xlu0 %v9375_v37, %s7561_s22  ;;  %3095 = vrot.lane.b32.xlu1 %v9366_v28, %s7561_s22 }
 0x489   : > { %3091 = vrot.lane.b32.xlu2 %v9338_v46, %s7561_s22 }
 0x48a   : > { %v2814_v47 = vpop.permute.xlu0 %2813  ;;  %v2816_v60 = vpop.permute.xlu1 %2815 }
 0x48b   : > { %v2855_v27 = vsel %vm11657_vm7, %v2812_v55, %v2814_v47  ;;  %v3026_v43 = vpop.permute.xlu2 %3025  ;;  %v2856_v53 = vsel %vm11643_vm4, %v2814_v47, %v2816_v60  ;;  %v2857_v59 = vsel %vm11658_vm8, %v2816_v60, %v2818_v3  ;;  %vm11660_vm7 = vmmov %vm11643_vm4  ;;  %vm11661_vm8 = vcmask 752640  }
 0x48c   : > { %2934 = vst [vmem:[#allocation4 + $0x608] sm:$0xff] %v2855_v27 }
 0x48d   : > { %2935 = vst [vmem:[#allocation4 + $0x610] sm:$0xff] %v2856_v53 }
 0x48e   : > { %2936 = vst [vmem:[#allocation4 + $0x618] sm:$0xff] %v2857_v59 }
 0x490   : > { %3099 = vrot.lane.b32.xlu0 %v9398_v41, %s7561_s22  ;;  %3297 = vrot.lane.b32.xlu1 %v9180_v42, %s7562_s23 }
 0x491   : > { %3097 = vrot.lane.b32.xlu2 %v9368_v2, %s7561_s22 }
 0x492   : > { %v2820_v30 = vpop.permute.xlu0 %2819  ;;  %v2822_v40 = vpop.permute.xlu1 %2821 }
 0x493   : > { %v2858_v15 = vsel %vm11659_vm6, %v2818_v3, %v2820_v30  ;;  %v3032_v13 = vpop.permute.xlu2 %3031  ;;  %v2859_v55 = vsel %vm11660_vm7, %v2820_v30, %v2822_v40  ;;  %v2860_v12 = vsel %vm11643_vm4, %v2822_v40, %v2824_v9  ;;  %vm11662_vm6 = vmmov %vm11661_vm8 }
 0x494   : > { %2937 = vst [vmem:[#allocation4 + $0x620] sm:$0xff] %v2858_v15  ;;  %vm11663_vm7 = vmmov %vm11662_vm6 }
 0x495   : > { %2938 = vst [vmem:[#allocation4 + $0x628] sm:$0xff] %v2859_v55  ;;  %vm11664_vm4 = vmmov %vm11662_vm6 }
 0x496   : > { %2939 = vst [vmem:[#allocation4 + $0x630] sm:$0xff] %v2860_v12 }
 0x498   : > { %3301 = vrot.lane.b32.xlu0 %v9174_v63, %s7562_s23  ;;  %3303 = vrot.lane.b32.xlu1 %v9196_v6, %s7562_s23 }
 0x499   : > { %3299 = vrot.lane.b32.xlu2 %v9172_v8, %s7562_s23 }
 0x49a   : > { %v3022_v42 = vpop.permute.xlu0 %3021  ;;  %v3024_v22 = vpop.permute.xlu1 %3023 }
 0x49b   : > { %v3038_v29 = vpop.permute.xlu2 %3037  ;;  %v3101_v4 = vsel %vm11661_vm8, %v3022_v42, %v3024_v22  ;;  %v3102_v36 = vsel %vm11662_vm6, %v3024_v22, %v3026_v43  ;;  %vm11665_vm8 = vmmov %vm11664_vm4 }
 0x49c   : > { %3177 = vst [vmem:[#allocation4 + $0x640] sm:$0xff] %v3101_v4  ;;  %vm11666_vm6 = vmmov %vm11664_vm4 }
 0x49d   : > { %3178 = vst [vmem:[#allocation4 + $0x648] sm:$0xff] %v3102_v36 }
 0x4a0   : > { %3307 = vrot.lane.b32.xlu0 %v9190_v38, %s7562_s23  ;;  %3309 = vrot.lane.b32.xlu1 %v9213_v39, %s7562_s23 }
 0x4a1   : > { %3305 = vrot.lane.b32.xlu2 %v9188_v34, %s7562_s23 }
 0x4a2   : > { %v3028_v63 = vpop.permute.xlu0 %3027  ;;  %v3030_v8 = vpop.permute.xlu1 %3029 }
 0x4a3   : > { %v3103_v6 = vsel %vm11663_vm7, %v3026_v43, %v3028_v63  ;;  %v3044_v3 = vpop.permute.xlu2 %3043  ;;  %v3104_v7 = vsel %vm11664_vm4, %v3028_v63, %v3030_v8  ;;  %v3105_v52 = vsel %vm11665_vm8, %v3030_v8, %v3032_v13  ;;  %vm11667_vm7 = vmmov %vm11664_vm4 }
 0x4a4   : > { %3179 = vst [vmem:[#allocation4 + $0x650] sm:$0xff] %v3103_v6  ;;  %vm11668_vm8 = vmmov %vm11664_vm4 }
 0x4a5   : > { %3180 = vst [vmem:[#allocation4 + $0x658] sm:$0xff] %v3104_v7  ;;  %v9624_v7 = vld [vmem:[#allocation2 + $0xf0] sm:$0xff] }
 0x4a6   : > { %3181 = vst [vmem:[#allocation4 + $0x660] sm:$0xff] %v3105_v52 }
 0x4a8   : > { %3313 = vrot.lane.b32.xlu0 %v9437_v5, %s7562_s23  ;;  %3315 = vrot.lane.b32.xlu1 %v9433_v10, %s7562_s23 }
 0x4a9   : > { %3311 = vrot.lane.b32.xlu2 %v9207_v51, %s7562_s23 }
 0x4aa   : > { %v3034_v34 = vpop.permute.xlu0 %3033  ;;  %v3036_v38 = vpop.permute.xlu1 %3035 }
 0x4ab   : > { %v3106_v39 = vsel %vm11666_vm6, %v3032_v13, %v3034_v34  ;;  %v3050_v33 = vpop.permute.xlu2 %3049  ;;  %v3107_v49 = vsel %vm11667_vm7, %v3034_v34, %v3036_v38  ;;  %v3108_v9 = vsel %vm11664_vm4, %v3036_v38, %v3038_v29  ;;  %vm11669_vm6 = vmmov %vm11664_vm4 }
 0x4ac   : > { %3182 = vst [vmem:[#allocation4 + $0x668] sm:$0xff] %v3106_v39  ;;  %vm11670_vm7 = vmmov %vm11664_vm4  ;;  %v9635_v39 = vld [vmem:[#allocation2 + $0x100] sm:$0xff] }
 0x4ad   : > { %3183 = vst [vmem:[#allocation4 + $0x670] sm:$0xff] %v3107_v49 }
 0x4ae   : > { %3184 = vst [vmem:[#allocation4 + $0x678] sm:$0xff] %v3108_v9 }
 0x4b0   : > { %3319 = vrot.lane.b32.xlu0 %v9220_v32, %s7562_s23  ;;  %3321 = vrot.lane.b32.xlu1 %v9239_v61, %s7562_s23 }
 0x4b1   : > { %3317 = vrot.lane.b32.xlu2 %v9567_v48, %s7562_s23 }
 0x4b2   : > { %v3040_v51 = vpop.permute.xlu0 %3039  ;;  %v3042_v19 = vpop.permute.xlu1 %3041 }
 0x4b3   : > { %v3109_v47 = vsel %vm11668_vm8, %v3038_v29, %v3040_v51  ;;  %3186 = vst.msk [vmem:[#allocation4 + $0x688] sm:$0xff] %vm11557_vm0, %v3040_v51  ;;  %v3056_v60 = vpop.permute.xlu2 %3055  ;;  %v3110_v27 = vsel %vm11669_vm6, %v3042_v19, %v3044_v3  ;;  %vm11671_vm8 = vmmov %vm11664_vm4 }
 0x4b4   : > { %3185 = vst [vmem:[#allocation4 + $0x680] sm:$0xff] %v3109_v47  ;;  %vm11672_vm6 = vmmov %vm11664_vm4 }
 0x4b5   : > { %3187 = vst [vmem:[#allocation4 + $0x690] sm:$0xff] %v3110_v27 }
 0x4b8   : > { %3325 = vrot.lane.b32.xlu0 %v9233_v62, %s7562_s23  ;;  %3327 = vrot.lane.b32.xlu1 %v9258_v14, %s7562_s23 }
 0x4b9   : > { %3323 = vrot.lane.b32.xlu2 %v9231_v11, %s7562_s23 }
 0x4ba   : > { %v3046_v32 = vpop.permute.xlu0 %3045  ;;  %v3048_v61 = vpop.permute.xlu1 %3047 }
 0x4bb   : > { %v3111_v43 = vsel %vm11670_vm7, %v3044_v3, %v3046_v32  ;;  %v3062_v53 = vpop.permute.xlu2 %3061  ;;  %v3112_v59 = vsel %vm11664_vm4, %v3046_v32, %v3048_v61  ;;  %v3113_v30 = vsel %vm11671_vm8, %v3048_v61, %v3050_v33  ;;  %vm11673_vm7 = vmmov %vm11664_vm4 }
 0x4bc   : > { %3188 = vst [vmem:[#allocation4 + $0x698] sm:$0xff] %v3111_v43  ;;  %vm11674_vm8 = vmmov %vm11664_vm4 }
 0x4bd   : > { %3189 = vst [vmem:[#allocation4 + $0x6a0] sm:$0xff] %v3112_v59 }
 0x4be   : > { %3190 = vst [vmem:[#allocation4 + $0x6a8] sm:$0xff] %v3113_v30 }
 0x4c0   : > { %3331 = vrot.lane.b32.xlu0 %v9252_v45, %s7562_s23  ;;  %3333 = vrot.lane.b32.xlu1 %v9273_v17, %s7562_s23 }
 0x4c1   : > { %3329 = vrot.lane.b32.xlu2 %v9250_v0, %s7562_s23 }
 0x4c2   : > { %v3052_v11 = vpop.permute.xlu0 %3051  ;;  %v3054_v62 = vpop.permute.xlu1 %3053 }
 0x4c3   : > { %v3114_v14 = vsel %vm11672_vm6, %v3050_v33, %v3052_v11  ;;  %v3068_v40 = vpop.permute.xlu2 %3067  ;;  %v3115_v15 = vsel %vm11673_vm7, %v3052_v11, %v3054_v62  ;;  %v3116_v13 = vsel %vm11664_vm4, %v3054_v62, %v3056_v60  ;;  %vm11675_vm6 = vmmov %vm11664_vm4  ;;  %v9671_v11 = vld [vmem:[#allocation2 + $0x8] sm:$0xff] }
 0x4c4   : > { %3191 = vst [vmem:[#allocation4 + $0x6b0] sm:$0xff] %v3114_v14  ;;  %vm11676_vm7 = vmmov %vm11664_vm4 }
 0x4c5   : > { %3192 = vst [vmem:[#allocation4 + $0x6b8] sm:$0xff] %v3115_v15 }
 0x4c6   : > { %3193 = vst [vmem:[#allocation4 + $0x6c0] sm:$0xff] %v3116_v13  ;;  %v9688_v13 = vld [vmem:[#allocation2 + $0x20] sm:$0xff] }
 0x4c8   : > { %3337 = vrot.lane.b32.xlu0 %v9267_v35, %s7562_s23  ;;  %3339 = vrot.lane.b32.xlu1 %v9286_v23, %s7562_s23  ;;  %v9605_v35 = vld [vmem:[#allocation2 + $0xb0] sm:$0xff] }
 0x4c9   : > { %3335 = vrot.lane.b32.xlu2 %v9464_v26, %s7562_s23 }
 0x4ca   : > { %v3058_v0 = vpop.permute.xlu0 %3057  ;;  %v3060_v45 = vpop.permute.xlu1 %3059 }
 0x4cb   : > { %v3117_v17 = vsel %vm11674_vm8, %v3056_v60, %v3058_v0  ;;  %v3074_v55 = vpop.permute.xlu2 %3073  ;;  %v3118_v12 = vsel %vm11675_vm6, %v3058_v0, %v3060_v45  ;;  %3196 = vst.msk [vmem:[#allocation4 + $0x6d8] sm:$0xff] %vm11557_vm0, %v3060_v45  ;;  %vm11677_vm8 = vmmov %vm11664_vm4  ;;  %v9690_v0 = vld [vmem:[#allocation2 + $0x28] sm:$0xff]  ;;  %v9694_v45 = vld [vmem:[#allocation2 + $0x18] sm:$0xff] }
 0x4cc   : > { %3194 = vst [vmem:[#allocation4 + $0x6c8] sm:$0xff] %v3117_v17  ;;  %vm11678_vm6 = vmmov %vm11664_vm4 }
 0x4cd   : > { %3195 = vst [vmem:[#allocation4 + $0x6d0] sm:$0xff] %v3118_v12 }
 0x4d0   : > { %3343 = vrot.lane.b32.xlu0 %v9280_v31, %s7562_s23  ;;  %3345 = vrot.lane.b32.xlu1 %v9300_v57, %s7562_s23 }
 0x4d1   : > { %3341 = vrot.lane.b32.xlu2 %v9605_v35, %s7562_s23 }
 0x4d2   : > { %v3064_v23 = vpop.permute.xlu0 %3063  ;;  %v3066_v42 = vpop.permute.xlu1 %3065 }
 0x4d3   : > { %v3119_v22 = vsel %vm11676_vm7, %v3062_v53, %v3064_v23  ;;  %v3080_v29 = vpop.permute.xlu2 %3079  ;;  %v3120_v4 = vsel %vm11664_vm4, %v3064_v23, %v3066_v42  ;;  %v3121_v36 = vsel %vm11677_vm8, %v3066_v42, %v3068_v40  ;;  %vm11679_vm7 = vmmov %vm11664_vm4 }
 0x4d4   : > { %3197 = vst [vmem:[#allocation4 + $0x6e0] sm:$0xff] %v3119_v22  ;;  %vm11680_vm8 = vmmov %vm11664_vm4 }
 0x4d5   : > { %3206 = vst.msk [vmem:[#allocation4 + $0x728] sm:$0xff] %vm11557_vm0, %v3080_v29 }
 0x4d6   : > { %3198 = vst [vmem:[#allocation4 + $0x6e8] sm:$0xff] %v3120_v4  ;;  %v9709_v4 = vld [vmem:[#allocation2 + $0x30] sm:$0xff] }
 0x4d7   : > { %3199 = vst [vmem:[#allocation4 + $0x6f0] sm:$0xff] %v3121_v36 }
 0x4d8   : > { %3349 = vrot.lane.b32.xlu0 %v9294_v50, %s7562_s23  ;;  %3351 = vrot.lane.b32.xlu1 %v9314_v25, %s7562_s23 }
 0x4d9   : > { %3347 = vrot.lane.b32.xlu2 %v9292_v16, %s7562_s23 }
 0x4da   : > { %v3070_v31 = vpop.permute.xlu0 %3069  ;;  %v3072_v57 = vpop.permute.xlu1 %3071 }
 0x4db   : > { %v3122_v63 = vsel %vm11678_vm6, %v3068_v40, %v3070_v31  ;;  %v3086_v8 = vpop.permute.xlu2 %3085  ;;  %v3123_v6 = vsel %vm11679_vm7, %v3070_v31, %v3072_v57  ;;  %v3124_v3 = vsel %vm11664_vm4, %v3072_v57, %v3074_v55  ;;  %vm11681_vm6 = vmmov %vm11664_vm4 }
 0x4dc   : > { %3200 = vst [vmem:[#allocation4 + $0x6f8] sm:$0xff] %v3122_v63  ;;  %vm11682_vm7 = vmmov %vm11664_vm4 }
 0x4dd   : > { %3201 = vst [vmem:[#allocation4 + $0x700] sm:$0xff] %v3123_v6 }
 0x4de   : > { %3202 = vst [vmem:[#allocation4 + $0x708] sm:$0xff] %v3124_v3  ;;  %v9718_v3 = vld [vmem:[#allocation2 + $0x58] sm:$0xff] }
 0x4e0   : > { %3355 = vrot.lane.b32.xlu0 %v9310_v1, %s7562_s23  ;;  %3357 = vrot.lane.b32.xlu1 %v9624_v7, %s7562_s23  ;;  %v9637_v1 = vld [vmem:[#allocation2 + $0x108] sm:$0xff] }
 0x4e1   : > { %3353 = vrot.lane.b32.xlu2 %v9308_v58, %s7562_s23  ;;  %v9641_v58 = vld [vmem:[#allocation2 + $0xf8] sm:$0xff] }
 0x4e2   : > { %v3076_v16 = vpop.permute.xlu0 %3075  ;;  %v3078_v50 = vpop.permute.xlu1 %3077 }
 0x4e3   : > { %v3125_v25 = vsel %vm11680_vm8, %v3074_v55, %v3076_v16  ;;  %v3092_v52 = vpop.permute.xlu2 %3091  ;;  %v3126_v34 = vsel %vm11681_vm6, %v3076_v16, %v3078_v50  ;;  %v3127_v38 = vsel %vm11682_vm7, %v3078_v50, %v3080_v29  ;;  %vm11683_vm8 = vmmov %vm11664_vm4  ;;  %v9705_v29 = vld [vmem:[#allocation2 + $0x38] sm:$0xff] }
 0x4e4   : > { %3203 = vst [vmem:[#allocation4 + $0x710] sm:$0xff] %v3125_v25  ;;  %vm11684_vm6 = vmmov %vm11664_vm4 }
 0x4e5   : > { %3204 = vst [vmem:[#allocation4 + $0x718] sm:$0xff] %v3126_v34  ;;  %vm11685_vm7 = vmmov %vm11664_vm4  ;;  %v9729_v34 = vld [vmem:[#allocation2 + $0x68] sm:$0xff] }
 0x4e6   : > { %3205 = vst [vmem:[#allocation4 + $0x720] sm:$0xff] %v3127_v38  ;;  %v9731_v38 = vld [vmem:[#allocation2 + $0x70] sm:$0xff] }
 0x4e8   : > { %3361 = vrot.lane.b32.xlu0 %v9635_v39, %s7562_s23  ;;  %3363 = vrot.lane.b32.xlu1 %v9637_v1, %s7562_s23 }
 0x4e9   : > { %3359 = vrot.lane.b32.xlu2 %v9641_v58, %s7562_s23 }
 0x4ea   : > { %v3082_v33 = vpop.permute.xlu0 %3081  ;;  %v3084_v49 = vpop.permute.xlu1 %3083 }
 0x4eb   : > { %v3098_v9 = vpop.permute.xlu2 %3097  ;;  %v9648_v51 = vsel %vm11664_vm4, %v3082_v33, %v3084_v49  ;;  %v9651_v19 = vsel %vm11683_vm8, %v3084_v49, %v3086_v8  ;;  %vm11686_vm8 = vmmov %vm11664_vm4  ;;  %v9735_v33 = vld [vmem:[#allocation2 + $0x60] sm:$0xff] }
 0x4f0   : > { %3367 = vrot.lane.b32.xlu0 %v9338_v46, %s7562_s23  ;;  %3369 = vrot.lane.b32.xlu1 %v9375_v37, %s7562_s23 }
 0x4f1   : > { %3365 = vrot.lane.b32.xlu2 %v9336_v44, %s7562_s23 }
 0x4f2   : > { %v3088_v47 = vpop.permute.xlu0 %3087  ;;  %v3090_v60 = vpop.permute.xlu1 %3089 }
 0x4f3   : > { %v3130_v27 = vsel %vm11684_vm6, %v3086_v8, %v3088_v47  ;;  %v3300_v32 = vpop.permute.xlu2 %3299  ;;  %v3131_v61 = vsel %vm11685_vm7, %v3088_v47, %v3090_v60  ;;  %v3132_v43 = vsel %vm11664_vm4, %v3090_v60, %v3092_v52  ;;  %vm11687_vm6 = vmmov %vm11664_vm4 }
 0x4f4   : > { %3209 = vst [vmem:[#allocation4 + $0x740] sm:$0xff] %v3130_v27  ;;  %vm11688_vm7 = vmmov %vm11664_vm4 }
 0x4f5   : > { %3210 = vst [vmem:[#allocation4 + $0x748] sm:$0xff] %v3131_v61  ;;  %v9751_v61 = vld [vmem:[#allocation2 + $0x88] sm:$0xff] }
 0x4f6   : > { %3211 = vst [vmem:[#allocation4 + $0x750] sm:$0xff] %v3132_v43  ;;  %v9755_v43 = vld [vmem:[#allocation2 + $0x78] sm:$0xff] }
 0x4f8   : > { %3373 = vrot.lane.b32.xlu0 %v9368_v2, %s7562_s23  ;;  %3375 = vrot.lane.b32.xlu1 %v9398_v41, %s7562_s23  ;;  %v9673_v2 = vld [vmem:[#allocation2 + $0x10] sm:$0xff] }
 0x4f9   : > { %3371 = vrot.lane.b32.xlu2 %v9366_v28, %s7562_s23  ;;  %v9677_v28 = vld [vmem:[#allocation2] sm:$0xff] }
 0x4fa   : > { %v3094_v44 = vpop.permute.xlu0 %3093  ;;  %v3096_v46 = vpop.permute.xlu1 %3095 }
 0x4fb   : > { %v3133_v37 = vsel %vm11686_vm8, %v3092_v52, %v3094_v44  ;;  %v3306_v53 = vpop.permute.xlu2 %3305  ;;  %v3134_v59 = vsel %vm11687_vm6, %v3094_v44, %v3096_v46  ;;  %v3135_v30 = vsel %vm11688_vm7, %v3096_v46, %v3098_v9  ;;  %vm11689_vm8 = vcmask 490496  }
 0x4fc   : > { %3212 = vst [vmem:[#allocation4 + $0x758] sm:$0xff] %v3133_v37  ;;  %vm11690_vm6 = vmmov %vm11689_vm8 }
 0x4fd   : > { %3213 = vst [vmem:[#allocation4 + $0x760] sm:$0xff] %v3134_v59  ;;  %vm11691_vm7 = vmmov %vm11690_vm6 }
 0x4fe   : > { %3214 = vst [vmem:[#allocation4 + $0x768] sm:$0xff] %v3135_v30 }
 0x500   : > { %3575 = vrot.lane.b32.xlu0 %v9671_v11, %s7563_s26  ;;  %3577 = vrot.lane.b32.xlu1 %v9673_v2, %s7563_s26 }
 0x501   : > { %3573 = vrot.lane.b32.xlu2 %v9677_v28, %s7563_s26 }
 0x502   : > { %v3100_v41 = vpop.permute.xlu0 %3099  ;;  %v3298_v62 = vpop.permute.xlu1 %3297 }
 0x503   : > { %v3136_v14 = vsel %vm11664_vm4, %v3098_v9, %v3100_v41  ;;  %3216 = vst.msk [vmem:[#allocation4 + $0x778] sm:$0xff] %vm11557_vm0, %v3100_v41  ;;  %v3312_v40 = vpop.permute.xlu2 %3311  ;;  %v9686_v15 = vsel %vm11689_vm8, %v3298_v62, %v3300_v32  ;;  %vm11692_vm4 = vmmov %vm11690_vm6  ;;  %v9766_v41 = vld [vmem:[#allocation2 + $0xa0] sm:$0xff]  ;;  %v9770_v62 = vld [vmem:[#allocation2 + $0x90] sm:$0xff] }
 0x504   : > { %3215 = vst [vmem:[#allocation4 + $0x770] sm:$0xff] %v3136_v14  ;;  %vm11693_vm8 = vmmov %vm11692_vm4 }
 0x508   : > { %3581 = vrot.lane.b32.xlu0 %v9688_v13, %s7563_s26  ;;  %3583 = vrot.lane.b32.xlu1 %v9690_v0, %s7563_s26 }
 0x509   : > { %3579 = vrot.lane.b32.xlu2 %v9694_v45, %s7563_s26 }
 0x50a   : > { %v3302_v17 = vpop.permute.xlu0 %3301  ;;  %v3304_v55 = vpop.permute.xlu1 %3303 }
 0x50b   : > { %v9701_v12 = vsel %vm11690_vm6, %v3300_v32, %v3302_v17  ;;  %v3318_v23 = vpop.permute.xlu2 %3317  ;;  %v3379_v42 = vsel %vm11691_vm7, %v3302_v17, %v3304_v55  ;;  %v3380_v22 = vsel %vm11692_vm4, %v3304_v55, %v3306_v53  ;;  %vm11694_vm6 = vmmov %vm11692_vm4  ;;  %v9749_v32 = vld [vmem:[#allocation2 + $0x80] sm:$0xff] }
 0x50c   : > { %3455 = vst [vmem:[#allocation4 + $0x790] sm:$0xff] %v3379_v42  ;;  %vm11695_vm7 = vmmov %vm11692_vm4 }
 0x50d   : > { %3456 = vst [vmem:[#allocation4 + $0x798] sm:$0xff] %v3380_v22  ;;  %v9783_v22 = vld [vmem:[#allocation2 + $0xa8] sm:$0xff] }
 0x510   : > { %3587 = vrot.lane.b32.xlu0 %v9705_v29, %s7563_s26  ;;  %3589 = vrot.lane.b32.xlu1 %v9437_v5, %s7563_s26 }
 0x511   : > { %3585 = vrot.lane.b32.xlu2 %v9709_v4, %s7563_s26 }
 0x512   : > { %v3308_v36 = vpop.permute.xlu0 %3307  ;;  %v3310_v31 = vpop.permute.xlu1 %3309 }
 0x513   : > { %v3381_v57 = vsel %vm11693_vm8, %v3306_v53, %v3308_v36  ;;  %v3324_v63 = vpop.permute.xlu2 %3323  ;;  %v3382_v8 = vsel %vm11694_vm6, %v3308_v36, %v3310_v31  ;;  %v3383_v6 = vsel %vm11695_vm7, %v3310_v31, %v3312_v40  ;;  %vm11696_vm8 = vmmov %vm11692_vm4 }
 0x514   : > { %3457 = vst [vmem:[#allocation4 + $0x7a0] sm:$0xff] %v3381_v57  ;;  %vm11697_vm6 = vmmov %vm11692_vm4 }
 0x515   : > { %3458 = vst [vmem:[#allocation4 + $0x7a8] sm:$0xff] %v3382_v8  ;;  %vm11698_vm7 = vmmov %vm11692_vm4 }
 0x516   : > { %3459 = vst [vmem:[#allocation4 + $0x7b0] sm:$0xff] %v3383_v6  ;;  %v9795_v6 = vld [vmem:[#allocation2 + $0xc8] sm:$0xff] }
 0x518   : > { %3593 = vrot.lane.b32.xlu0 %v9567_v48, %s7563_s26  ;;  %3595 = vrot.lane.b32.xlu1 %v9718_v3, %s7563_s26 }
 0x519   : > { %3591 = vrot.lane.b32.xlu2 %v9433_v10, %s7563_s26 }
 0x51a   : > { %v3314_v5 = vpop.permute.xlu0 %3313  ;;  %v3316_v16 = vpop.permute.xlu1 %3315 }
 0x51b   : > { %v3384_v50 = vsel %vm11692_vm4, %v3312_v40, %v3314_v5  ;;  %v3330_v25 = vpop.permute.xlu2 %3329  ;;  %v3385_v52 = vsel %vm11696_vm8, %v3314_v5, %v3316_v16  ;;  %3462 = vst.msk [vmem:[#allocation4 + $0x7c8] sm:$0xff] %vm11557_vm0, %v3316_v16  ;;  %vm11699_vm8 = vmmov %vm11692_vm4  ;;  %v9797_v5 = vld [vmem:[#allocation2 + $0xd0] sm:$0xff]  ;;  %v9801_v16 = vld [vmem:[#allocation2 + $0xc0] sm:$0xff] }
 0x51c   : > { %3460 = vst [vmem:[#allocation4 + $0x7b8] sm:$0xff] %v3384_v50 }
 0x51d   : > { %3461 = vst [vmem:[#allocation4 + $0x7c0] sm:$0xff] %v3385_v52 }
 0x520   : > { %3599 = vrot.lane.b32.xlu0 %v9729_v34, %s7563_s26  ;;  %3601 = vrot.lane.b32.xlu1 %v9731_v38, %s7563_s26 }
 0x521   : > { %3597 = vrot.lane.b32.xlu2 %v9735_v33, %s7563_s26 }
 0x522   : > { %v3320_v10 = vpop.permute.xlu0 %3319  ;;  %v3322_v49 = vpop.permute.xlu1 %3321 }
 0x523   : > { %v9742_v9 = vsel %vm11697_vm6, %v3318_v23, %v3320_v10  ;;  %v3336_v47 = vpop.permute.xlu2 %3335  ;;  %v9745_v60 = vsel %vm11698_vm7, %v3320_v10, %v3322_v49  ;;  %v3388_v27 = vsel %vm11692_vm4, %v3322_v49, %v3324_v63  ;;  %vm11700_vm6 = vmmov %vm11692_vm4 }
 0x524   : > { %3472 = vst.msk [vmem:[#allocation4 + $0x818] sm:$0xff] %vm11557_vm0, %v3336_v47  ;;  %vm11701_vm7 = vmmov %vm11692_vm4 }
 0x525   : > { %3465 = vst [vmem:[#allocation4 + $0x7e0] sm:$0xff] %v3388_v27  ;;  %v9812_v27 = vld [vmem:[#allocation2 + $0xe0] sm:$0xff] }
 0x528   : > { %3605 = vrot.lane.b32.xlu0 %v9749_v32, %s7563_s26  ;;  %3607 = vrot.lane.b32.xlu1 %v9751_v61, %s7563_s26 }
 0x529   : > { %3603 = vrot.lane.b32.xlu2 %v9755_v43, %s7563_s26 }
 0x52a   : > { %v3326_v44 = vpop.permute.xlu0 %3325  ;;  %v3328_v46 = vpop.permute.xlu1 %3327 }
 0x52b   : > { %v3389_v37 = vsel %vm11699_vm8, %v3324_v63, %v3326_v44  ;;  %v3342_v53 = vpop.permute.xlu2 %3341  ;;  %v9763_v59 = vsel %vm11700_vm6, %v3326_v44, %v3328_v46  ;;  %v3391_v30 = vsel %vm11701_vm7, %v3328_v46, %v3330_v25  ;;  %vm11702_vm8 = vmmov %vm11692_vm4  ;;  %v9814_v44 = vld [vmem:[#allocation2 + $0xe8] sm:$0xff]  ;;  %v9818_v46 = vld [vmem:[#allocation2 + $0xd8] sm:$0xff] }
 0x52c   : > { %3466 = vst [vmem:[#allocation4 + $0x7e8] sm:$0xff] %v3389_v37  ;;  %vm11703_vm6 = vmmov %vm11692_vm4 }
 0x52d   : > { %3468 = vst [vmem:[#allocation4 + $0x7f8] sm:$0xff] %v3391_v30  ;;  %vm11704_vm7 = vmmov %vm11692_vm4 }
 0x530   : > { %3611 = vrot.lane.b32.xlu0 %v9464_v26, %s7563_s26  ;;  %3613 = vrot.lane.b32.xlu1 %v9766_v41, %s7563_s26  ;;  %v9779_v26 = vld [vmem:[#allocation2 + $0xb8] sm:$0xff] }
 0x531   : > { %3609 = vrot.lane.b32.xlu2 %v9770_v62, %s7563_s26 }
 0x532   : > { %v3332_v14 = vpop.permute.xlu0 %3331  ;;  %v3334_v40 = vpop.permute.xlu1 %3333 }
 0x533   : > { %v3392_v17 = vsel %vm11692_vm4, %v3330_v25, %v3332_v14  ;;  %v3348_v55 = vpop.permute.xlu2 %3347  ;;  %v3393_v23 = vsel %vm11702_vm8, %v3332_v14, %v3334_v40  ;;  %v3394_v42 = vsel %vm11703_vm6, %v3334_v40, %v3336_v47  ;;  %vm11705_vm8 = vmmov %vm11692_vm4 }
 0x534   : > { %3469 = vst [vmem:[#allocation4 + $0x800] sm:$0xff] %v3392_v17  ;;  %vm11706_vm6 = vmmov %vm11692_vm4 }
 0x535   : > { %3470 = vst [vmem:[#allocation4 + $0x808] sm:$0xff] %v3393_v23 }
 0x536   : > { %3471 = vst [vmem:[#allocation4 + $0x810] sm:$0xff] %v3394_v42 }
 0x538   : > { %3617 = vrot.lane.b32.xlu0 %v9605_v35, %s7563_s26  ;;  %3619 = vrot.lane.b32.xlu1 %v9779_v26, %s7563_s26 }
 0x539   : > { %3615 = vrot.lane.b32.xlu2 %v9783_v22, %s7563_s26 }
 0x53a   : > { %v3338_v36 = vpop.permute.xlu0 %3337  ;;  %v3340_v31 = vpop.permute.xlu1 %3339 }
 0x53b   : > { %v3354_v57 = vpop.permute.xlu2 %3353  ;;  %v9790_v63 = vsel %vm11704_vm7, %v3338_v36, %v3340_v31  ;;  %v9793_v8 = vsel %vm11692_vm4, %v3340_v31, %v3342_v53  ;;  %vm11707_vm7 = vmmov %vm11692_vm4 }
 0x540   : > { %3623 = vrot.lane.b32.xlu0 %v9795_v6, %s7563_s26  ;;  %3625 = vrot.lane.b32.xlu1 %v9797_v5, %s7563_s26 }
 0x541   : > { %3621 = vrot.lane.b32.xlu2 %v9801_v16, %s7563_s26 }
 0x542   : > { %v3344_v50 = vpop.permute.xlu0 %3343  ;;  %v3346_v25 = vpop.permute.xlu1 %3345 }
 0x543   : > { %v3397_v52 = vsel %vm11705_vm8, %v3342_v53, %v3344_v50  ;;  %v3360_v10 = vpop.permute.xlu2 %3359  ;;  %v3398_v49 = vsel %vm11706_vm6, %v3344_v50, %v3346_v25  ;;  %v9810_v47 = vsel %vm11707_vm7, %v3346_v25, %v3348_v55  ;;  %vm11708_vm8 = vmmov %vm11692_vm4  ;;  %v9838_v50 = vld [vmem:[#allocation2 + $0x110] sm:$0xff]  ;;  %v9840_v25 = vld [vmem:[#allocation2 + $0x118] sm:$0xff] }
 0x544   : > { %3475 = vst [vmem:[#allocation4 + $0x830] sm:$0xff] %v3397_v52  ;;  %vm11709_vm6 = vmmov %vm11692_vm4 }
 0x545   : > { %3476 = vst [vmem:[#allocation4 + $0x838] sm:$0xff] %v3398_v49  ;;  %vm11710_vm7 = vmmov %vm11692_vm4 }
 0x548   : > { %3629 = vrot.lane.b32.xlu0 %v9812_v27, %s7563_s26  ;;  %3631 = vrot.lane.b32.xlu1 %v9814_v44, %s7563_s26 }
 0x549   : > { %3627 = vrot.lane.b32.xlu2 %v9818_v46, %s7563_s26 }
 0x54a   : > { %v3350_v37 = vpop.permute.xlu0 %3349  ;;  %v3352_v53 = vpop.permute.xlu1 %3351 }
 0x54b   : > { %v3400_v30 = vsel %vm11692_vm4, %v3348_v55, %v3350_v37  ;;  %v3366_v14 = vpop.permute.xlu2 %3365  ;;  %v3401_v40 = vsel %vm11708_vm8, %v3350_v37, %v3352_v53  ;;  %v3402_v17 = vsel %vm11709_vm6, %v3352_v53, %v3354_v57  ;;  %vm11711_vm8 = vmmov %vm11692_vm4 }
 0x54c   : > { %3478 = vst [vmem:[#allocation4 + $0x848] sm:$0xff] %v3400_v30  ;;  %vm11712_vm6 = vmmov %vm11692_vm4 }
 0x54d   : > { %3479 = vst [vmem:[#allocation4 + $0x850] sm:$0xff] %v3401_v40  ;;  %v9853_v40 = vld [vmem:[#allocation2 + $0x128] sm:$0xff] }
 0x54e   : > { %3480 = vst [vmem:[#allocation4 + $0x858] sm:$0xff] %v3402_v17  ;;  %v9855_v17 = vld [vmem:[#allocation2 + $0x130] sm:$0xff] }
 0x550   : > { %3635 = vrot.lane.b32.xlu0 %v9641_v58, %s7563_s26  ;;  %3637 = vrot.lane.b32.xlu1 %v9635_v39, %s7563_s26 }
 0x551   : > { %3633 = vrot.lane.b32.xlu2 %v9624_v7, %s7563_s26 }
 0x552   : > { %v3356_v23 = vpop.permute.xlu0 %3355  ;;  %v3358_v42 = vpop.permute.xlu1 %3357 }
 0x553   : > { %v3403_v55 = vsel %vm11710_vm7, %v3354_v57, %v3356_v23  ;;  %3482 = vst.msk [vmem:[#allocation4 + $0x868] sm:$0xff] %vm11557_vm0, %v3356_v23  ;;  %v3372_v36 = vpop.permute.xlu2 %3371  ;;  %v9836_v31 = vsel %vm11692_vm4, %v3358_v42, %v3360_v10  ;;  %vm11713_vm7 = vmmov %vm11692_vm4  ;;  %v9859_v23 = vld [vmem:[#allocation2 + $0x120] sm:$0xff] }
 0x554   : > { %3481 = vst [vmem:[#allocation4 + $0x860] sm:$0xff] %v3403_v55 }
 0x558   : > { %3641 = vrot.lane.b32.xlu0 %v9838_v50, %s7563_s26  ;;  %3643 = vrot.lane.b32.xlu1 %v9840_v25, %s7563_s26 }
 0x559   : > { %3639 = vrot.lane.b32.xlu2 %v9637_v1, %s7563_s26 }
 0x55a   : > { %v3362_v57 = vpop.permute.xlu0 %3361  ;;  %v3364_v52 = vpop.permute.xlu1 %3363 }
 0x55b   : > { %v9849_v49 = vsel %vm11711_vm8, %v3360_v10, %v3362_v57  ;;  %v3574_v37 = vpop.permute.xlu2 %3573  ;;  %v3406_v53 = vsel %vm11712_vm6, %v3362_v57, %v3364_v52  ;;  %v3407_v30 = vsel %vm11713_vm7, %v3364_v52, %v3366_v14  ;;  %vm11714_vm8 = vmmov %vm11692_vm4 }
 0x55c   : > { %3485 = vst [vmem:[#allocation4 + $0x880] sm:$0xff] %v3406_v53  ;;  %vm11715_vm6 = vmmov %vm11692_vm4 }
 0x55d   : > { %3486 = vst [vmem:[#allocation4 + $0x888] sm:$0xff] %v3407_v30  ;;  %v9872_v30 = vld [vmem:[#allocation2 + $0x138] sm:$0xff]  ;;  %vm11716_vm7 = vmmov %vm11692_vm4 }
 0x560   : > { %3647 = vrot.lane.b32.xlu0 %v9853_v40, %s7563_s26  ;;  %3649 = vrot.lane.b32.xlu1 %v9855_v17, %s7563_s26 }
 0x561   : > { %3645 = vrot.lane.b32.xlu2 %v9859_v23, %s7563_s26 }
 0x562   : > { %v3368_v10 = vpop.permute.xlu0 %3367  ;;  %v3370_v42 = vpop.permute.xlu1 %3369 }
 0x563   : > { %v9866_v55 = vsel %vm11692_vm4, %v3366_v14, %v3368_v10  ;;  %v3580_v57 = vpop.permute.xlu2 %3579  ;;  %v3409_v52 = vsel %vm11714_vm8, %v3368_v10, %v3370_v42  ;;  %v3410_v53 = vsel %vm11715_vm6, %v3370_v42, %v3372_v36  ;;  %vm11717_vm8 = vcmask 482304  }
 0x564   : > { %3488 = vst [vmem:[#allocation4 + $0x898] sm:$0xff] %v3409_v52  ;;  %vm11718_vm6 = vmmov %vm11717_vm8 }
 0x565   : > { %3489 = vst [vmem:[#allocation4 + $0x8a0] sm:$0xff] %v3410_v53 }
 0x568   : > { %3849 = vrot.lane.b32.xlu0 %v9677_v28, %s7564_s9  ;;  %3851 = vrot.lane.b32.xlu1 %v9671_v11, %s7564_s9 }
 0x569   : > { %3651 = vrot.lane.b32.xlu2 %v9872_v30, %s7563_s26 }
 0x56a   : > { %v3374_v14 = vpop.permute.xlu0 %3373  ;;  %v3376_v20 = vpop.permute.xlu1 %3375 }
 0x56b   : > { %v3411_v18 = vsel %vm11716_vm7, %v3372_v36, %v3374_v14  ;;  %v3586_v10 = vpop.permute.xlu2 %3585  ;;  %v3412_v42 = vsel %vm11692_vm4, %v3374_v14, %v3376_v20  ;;  %3492 = vst.msk [vmem:[#allocation4 + $0x8b8] sm:$0xff] %vm11557_vm0, %v3376_v20  ;;  %vm11719_vm7 = vmmov %vm11718_vm6 }
 0x56c   : > { %3490 = vst [vmem:[#allocation4 + $0x8a8] sm:$0xff] %v3411_v18  ;;  %vm11720_vm4 = vmmov %vm11718_vm6 }
 0x56d   : > { %3491 = vst [vmem:[#allocation4 + $0x8b0] sm:$0xff] %v3412_v42  ;;  %v3778_v42 = vld [vmem:[#allocation2 + $0x48] sm:$0xff] }
 0x570   : > { %3855 = vrot.lane.b32.xlu0 %v9694_v45, %s7564_s9  ;;  %3857 = vrot.lane.b32.xlu1 %v9688_v13, %s7564_s9 }
 0x571   : > { %3853 = vrot.lane.b32.xlu2 %v9673_v2, %s7564_s9 }
 0x572   : > { %v3576_v11 = vpop.permute.xlu0 %3575  ;;  %v3578_v28 = vpop.permute.xlu1 %3577 }
 0x573   : > { %v9888_v36 = vsel %vm11717_vm8, %v3574_v37, %v3576_v11  ;;  %v3592_v52 = vpop.permute.xlu2 %3591  ;;  %v9891_v53 = vsel %vm11718_vm6, %v3576_v11, %v3578_v28  ;;  %v3655_v18 = vsel %vm11719_vm7, %v3578_v28, %v3580_v57  ;;  %vm11721_vm8 = vmmov %vm11720_vm4 }
 0x574   : > { %3738 = vst.msk [vmem:[#allocation4 + $0x908] sm:$0xff] %vm11557_vm0, %v3592_v52  ;;  %vm11722_vm6 = vmmov %vm11720_vm4 }
 0x575   : > { %3731 = vst [vmem:[#allocation4 + $0x8d0] sm:$0xff] %v3655_v18  ;;  %vm11723_vm7 = vmmov %vm11720_vm4 }
 0x578   : > { %3861 = vrot.lane.b32.xlu0 %v9709_v4, %s7564_s9  ;;  %3863 = vrot.lane.b32.xlu1 %v9705_v29, %s7564_s9  ;;  %v3777_v4 = vld [vmem:[#allocation2 + $0x40] sm:$0xff] }
 0x579   : > { %3859 = vrot.lane.b32.xlu2 %v9690_v0, %s7564_s9 }
 0x57a   : > { %v3582_v20 = vpop.permute.xlu0 %3581  ;;  %v3584_v2 = vpop.permute.xlu1 %3583 }
 0x57b   : > { %v3656_v13 = vsel %vm11720_vm4, %v3580_v57, %v3582_v20  ;;  %v3598_v45 = vpop.permute.xlu2 %3597  ;;  %v9903_v37 = vsel %vm11721_vm8, %v3582_v20, %v3584_v2  ;;  %v3658_v14 = vsel %vm11722_vm6, %v3584_v2, %v3586_v10  ;;  %vm11724_vm8 = vmmov %vm11720_vm4 }
 0x57c   : > { %3732 = vst [vmem:[#allocation4 + $0x8d8] sm:$0xff] %v3656_v13  ;;  %vm11725_vm6 = vmmov %vm11720_vm4  ;;  %v9928_v13 = vld [vmem:[%s11505_s3] sm:$0xff] }
 0x57d   : > { %3734 = vst [vmem:[#allocation4 + $0x8e8] sm:$0xff] %v3658_v14  ;;  %4446 = vmatmul.f32.vlgmr.msra.gmra.mxu2 %v9928_v13  ;;  %4515 = vmatmul.f32.vlgmr.msrb.gmra.mxu0 %v9928_v13 }
 0x580   : > { %3867 = vrot.lane.b32.xlu0 %v3778_v42, %s7564_s9  ;;  %3869 = vrot.lane.b32.xlu1 %v9567_v48, %s7564_s9 }
 0x581   : > { %3865 = vrot.lane.b32.xlu2 %v3777_v4, %s7564_s9 }
 0x582   : > { %v3588_v0 = vpop.permute.xlu0 %3587  ;;  %v3590_v29 = vpop.permute.xlu1 %3589 }
 0x583   : > { %v3659_v57 = vsel %vm11723_vm7, %v3586_v10, %v3588_v0  ;;  %v3604_v11 = vpop.permute.xlu2 %3603  ;;  %v3660_v28 = vsel %vm11720_vm4, %v3588_v0, %v3590_v29  ;;  %v3661_v18 = vsel %vm11724_vm8, %v3590_v29, %v3592_v52  ;;  %vm11726_vm7 = vmmov %vm11720_vm4 }
 0x584   : > { %3735 = vst [vmem:[#allocation4 + $0x8f0] sm:$0xff] %v3659_v57  ;;  %vm11727_vm8 = vmmov %vm11720_vm4 }
 0x585   : > { %3736 = vst [vmem:[#allocation4 + $0x8f8] sm:$0xff] %v3660_v28 }
 0x586   : > { %3737 = vst [vmem:[#allocation4 + $0x900] sm:$0xff] %v3661_v18 }
 0x588   : > { %3873 = vrot.lane.b32.xlu0 %v9735_v33, %s7564_s9  ;;  %3875 = vrot.lane.b32.xlu1 %v9729_v34, %s7564_s9 }
 0x589   : > { %3871 = vrot.lane.b32.xlu2 %v9718_v3, %s7564_s9 }
 0x58a   : > { %v3594_v48 = vpop.permute.xlu0 %3593  ;;  %v3596_v20 = vpop.permute.xlu1 %3595 }
 0x58b   : > { %v3610_v10 = vpop.permute.xlu2 %3609  ;;  %v9920_v2 = vsel %vm11725_vm6, %v3594_v48, %v3596_v20  ;;  %v9923_v52 = vsel %vm11726_vm7, %v3596_v20, %v3598_v45  ;;  %vm11728_vm6 = vmmov %vm11720_vm4 }
 0x58c   : > { %vm11729_vm7 = vmmov %vm11720_vm4 }
 0x590   : > { %3879 = vrot.lane.b32.xlu0 %v9755_v43, %s7564_s9  ;;  %3881 = vrot.lane.b32.xlu1 %v9749_v32, %s7564_s9  ;;  %v9950_v43 = vld [vmem:[%s11505_s3 + $0x18] sm:$0xff] }
 0x591   : > { %3877 = vrot.lane.b32.xlu2 %v9731_v38, %s7564_s9  ;;  %4449 = vmatmul.f32.gmra.mxu2 %v9950_v43  ;;  %v3788_v38 = vld [vmem:[#allocation2 + $0x98] sm:$0xff] }
 0x592   : > { %v3600_v3 = vpop.permute.xlu0 %3599  ;;  %v3602_v34 = vpop.permute.xlu1 %3601  ;;  %4518 = vmatmul.f32.gmra.mxu0 %v9950_v43 }
 0x593   : > { %v9939_v33 = vsel %vm11720_vm4, %v3598_v45, %v3600_v3  ;;  %v3616_v14 = vpop.permute.xlu2 %3615  ;;  %v9942_v42 = vsel %vm11727_vm8, %v3600_v3, %v3602_v34  ;;  %v9945_v4 = vsel %vm11728_vm6, %v3602_v34, %v3604_v11  ;;  %vm11730_vm8 = vmmov %vm11720_vm4 }
 0x594   : > { %vm11731_vm6 = vmmov %vm11720_vm4 }
 0x598   : > { %3885 = vrot.lane.b32.xlu0 %v9770_v62, %s7564_s9  ;;  %3887 = vrot.lane.b32.xlu1 %v3788_v38, %s7564_s9 }
 0x599   : > { %3883 = vrot.lane.b32.xlu2 %v9751_v61, %s7564_s9 }
 0x59a   : > { %v3606_v32 = vpop.permute.xlu0 %3605  ;;  %v3608_v45 = vpop.permute.xlu1 %3607 }
 0x59b   : > { %v3667_v0 = vsel %vm11729_vm7, %v3604_v11, %v3606_v32  ;;  %v3622_v29 = vpop.permute.xlu2 %3621  ;;  %v3668_v57 = vsel %vm11720_vm4, %v3606_v32, %v3608_v45  ;;  %v3669_v28 = vsel %vm11730_vm8, %v3608_v45, %v3610_v10  ;;  %vm11732_vm7 = vmmov %vm11720_vm4 }
 0x59c   : > { %3744 = vst [vmem:[#allocation4 + $0x938] sm:$0xff] %v3667_v0  ;;  %vm11733_vm8 = vmmov %vm11720_vm4 }
 0x59d   : > { %3745 = vst [vmem:[#allocation4 + $0x940] sm:$0xff] %v3668_v57 }
 0x59e   : > { %3746 = vst [vmem:[#allocation4 + $0x948] sm:$0xff] %v3669_v28 }
 0x5a0   : > { %3891 = vrot.lane.b32.xlu0 %v9783_v22, %s7564_s9  ;;  %3893 = vrot.lane.b32.xlu1 %v9605_v35, %s7564_s9 }
 0x5a1   : > { %3889 = vrot.lane.b32.xlu2 %v9766_v41, %s7564_s9 }
 0x5a2   : > { %v3612_v61 = vpop.permute.xlu0 %3611  ;;  %v3614_v62 = vpop.permute.xlu1 %3613 }
 0x5a3   : > { %v3670_v11 = vsel %vm11731_vm6, %v3610_v10, %v3612_v61  ;;  %3748 = vst.msk [vmem:[#allocation4 + $0x958] sm:$0xff] %vm11557_vm0, %v3612_v61  ;;  %v3628_v18 = vpop.permute.xlu2 %3627  ;;  %v3671_v48 = vsel %vm11732_vm7, %v3614_v62, %v3616_v14  ;;  %vm11734_vm6 = vmmov %vm11720_vm4 }
 0x5a4   : > { %3747 = vst [vmem:[#allocation4 + $0x950] sm:$0xff] %v3670_v11  ;;  %vm11735_vm7 = vmmov %vm11720_vm4  ;;  %v4235_v11 = vld [vmem:[#allocation4 + $0x5f0] sm:$0xff] }
 0x5a8   : > { %3897 = vrot.lane.b32.xlu0 %v9801_v16, %s7564_s9  ;;  %3899 = vrot.lane.b32.xlu1 %v9795_v6, %s7564_s9 }
 0x5a9   : > { %3895 = vrot.lane.b32.xlu2 %v9779_v26, %s7564_s9 }
 0x5aa   : > { %v3618_v35 = vpop.permute.xlu0 %3617  ;;  %v3620_v41 = vpop.permute.xlu1 %3619 }
 0x5ab   : > { %v3672_v22 = vsel %vm11720_vm4, %v3616_v14, %v3618_v35  ;;  %v3634_v20 = vpop.permute.xlu2 %3633  ;;  %v9979_v10 = vsel %vm11733_vm8, %v3618_v35, %v3620_v41  ;;  %v9982_v3 = vsel %vm11734_vm6, %v3620_v41, %v3622_v29  ;;  %vm11736_vm8 = vmmov %vm11720_vm4  ;;  %v4215_v35 = vld [vmem:[#allocation4 + $0x550] sm:$0xff]  ;;  %v10069_v41 = vld [vmem:[%s11505_s3 + $0x8] sm:$0xff] }
 0x5ac   : > { %vm11737_vm6 = vmmov %vm11720_vm4 }
 0x5b0   : > { %3903 = vrot.lane.b32.xlu0 %v9818_v46, %s7564_s9  ;;  %3905 = vrot.lane.b32.xlu1 %v9812_v27, %s7564_s9 }
 0x5b1   : > { %3901 = vrot.lane.b32.xlu2 %v9797_v5, %s7564_s9 }
 0x5b2   : > { %v3624_v26 = vpop.permute.xlu0 %3623  ;;  %v3626_v6 = vpop.permute.xlu1 %3625 }
 0x5b3   : > { %v9991_v16 = vsel %vm11735_vm7, %v3622_v29, %v3624_v26  ;;  %v3640_v34 = vpop.permute.xlu2 %3639  ;;  %v3676_v14 = vsel %vm11720_vm4, %v3624_v26, %v3626_v6  ;;  %v3677_v38 = vsel %vm11736_vm8, %v3626_v6, %v3628_v18  ;;  %vm11738_vm7 = vmmov %vm11720_vm4  ;;  %v4205_v6 = vld [vmem:[#allocation4 + $0x500] sm:$0xff] }
 0x5b4   : > { %3754 = vst [vmem:[#allocation4 + $0x988] sm:$0xff] %v3676_v14  ;;  %vm11739_vm8 = vmmov %vm11720_vm4 }
 0x5b5   : > { %3755 = vst [vmem:[#allocation4 + $0x990] sm:$0xff] %v3677_v38 }
 0x5b8   : > { %3909 = vrot.lane.b32.xlu0 %v9624_v7, %s7564_s9  ;;  %3911 = vrot.lane.b32.xlu1 %v9641_v58, %s7564_s9 }
 0x5b9   : > { %3907 = vrot.lane.b32.xlu2 %v9814_v44, %s7564_s9 }
 0x5ba   : > { %v3630_v5 = vpop.permute.xlu0 %3629  ;;  %v3632_v27 = vpop.permute.xlu1 %3631 }
 0x5bb   : > { %v3678_v46 = vsel %vm11737_vm6, %v3628_v18, %v3630_v5  ;;  %v3646_v32 = vpop.permute.xlu2 %3645  ;;  %v10003_v45 = vsel %vm11738_vm7, %v3630_v5, %v3632_v27  ;;  %3758 = vst.msk [vmem:[#allocation4 + $0x9a8] sm:$0xff] %vm11557_vm0, %v3632_v27  ;;  %vm11740_vm6 = vmmov %vm11720_vm4  ;;  %v4225_v18 = vld [vmem:[#allocation4 + $0x5a0] sm:$0xff]  ;;  %v4216_v27 = vld [vmem:[#allocation4 + $0x558] sm:$0xff] }
 0x5bc   : > { %3756 = vst [vmem:[#allocation4 + $0x998] sm:$0xff] %v3678_v46  ;;  %vm11741_vm7 = vmmov %vm11720_vm4  ;;  %v4206_v46 = vld [vmem:[#allocation4 + $0x508] sm:$0xff] }
 0x5c0   : > { %3915 = vrot.lane.b32.xlu0 %v9637_v1, %s7564_s9  ;;  %3917 = vrot.lane.b32.xlu1 %v9838_v50, %s7564_s9 }
 0x5c1   : > { %3913 = vrot.lane.b32.xlu2 %v9635_v39, %s7564_s9 }
 0x5c2   : > { %v3636_v7 = vpop.permute.xlu0 %3635  ;;  %v3638_v58 = vpop.permute.xlu1 %3637 }
 0x5c3   : > { %v3680_v44 = vsel %vm11720_vm4, %v3634_v20, %v3636_v7  ;;  %v3652_v0 = vpop.permute.xlu2 %3651  ;;  %v3681_v29 = vsel %vm11739_vm8, %v3636_v7, %v3638_v58  ;;  %v10015_v57 = vsel %vm11740_vm6, %v3638_v58, %v3640_v34  ;;  %vm11742_vm8 = vmmov %vm11720_vm4  ;;  %v10085_v7 = vld [vmem:[%s11505_s3 + $0x20] sm:$0xff]  ;;  %v4188_v58 = vld [vmem:[#allocation4 + $0x478] sm:$0xff] }
 0x5c4   : > { %4453 = vmatpush.msra.mxu3 %v3680_v44  ;;  %4522 = vmatpush.msrb.mxu1 %v3681_v29  ;;  %3768 = vst.msk [vmem:[#allocation4 + $0x9f8] sm:$0xff] %vm11557_vm0, %v3652_v0  ;;  %vm11743_vm6 = vmmov %vm11720_vm4 }
 0x5c6   : > { %4454 = vmatpush.msra.mxu3 %v3671_v48  ;;  %4523 = vmatpush.msrb.mxu1 %v3672_v22  ;;  %v4236_v48 = vld [vmem:[#allocation4 + $0x5f8] sm:$0xff]  ;;  %v4226_v22 = vld [vmem:[#allocation4 + $0x5a8] sm:$0xff] }
 0x5c8   : > { %3921 = vrot.lane.b32.xlu0 %v9859_v23, %s7564_s9  ;;  %3923 = vrot.lane.b32.xlu1 %v9853_v40, %s7564_s9 }
 0x5c9   : > { %3919 = vrot.lane.b32.xlu2 %v9840_v25, %s7564_s9  ;;  %4455 = vmatpush.msra.mxu3 %v9920_v2  ;;  %v4411_v25 = vld [vmem:[%s11506_s4] sm:$0xff] }
 0x5ca   : > { %v3642_v39 = vpop.permute.xlu0 %3641  ;;  %v3644_v1 = vpop.permute.xlu1 %3643  ;;  %4524 = vmatpush.msrb.mxu1 %v9923_v52 }
 0x5cb   : > { %v10027_v50 = vsel %vm11741_vm7, %v3640_v34, %v3642_v39  ;;  %v3854_v28 = vpop.permute.xlu2 %3853  ;;  %v10030_v61 = vsel %vm11720_vm4, %v3642_v39, %v3644_v1  ;;  %v3685_v23 = vsel %vm11742_vm8, %v3644_v1, %v3646_v32  ;;  %4456 = vmatpush.msra.mxu3 %v9888_v36  ;;  %vm11744_vm7 = vmmov %vm11720_vm4  ;;  %vm11745_vm8 = vcmask 474112  }
 0x5cc   : > { %4525 = vmatpush.msrb.mxu1 %v9891_v53  ;;  %3764 = vst [vmem:[#allocation4 + $0x9d8] sm:$0xff] %v3685_v23  ;;  %v4178_v23 = vld [vmem:[#allocation4 + $0x428] sm:$0xff] }
 0x5cd   : > { %4457 = vmatpush.msra.mxu3 %v9836_v31 }
 0x5ce   : > { %4526 = vmatpush.msrb.mxu1 %v9849_v49 }
 0x5cf   : > { %4458 = vmatpush.msra.mxu3 %v9790_v63 }
 0x5d0   : > { %3927 = vrot.lane.b32.xlu0 %v9872_v30, %s7564_s9  ;;  %4415 = vperm.xlu1 %7349, %v4411_v25   ;;  %v4168_v25 = vld [vmem:[#allocation4 + $0x3d8] sm:$0xff] }
 0x5d1   : > { %3925 = vrot.lane.b32.xlu2 %v9855_v17, %s7564_s9  ;;  %4459 = vmatpush.msra.mxu3 %v9742_v9  ;;  %v4265_v9 = vld [vmem:[#allocation4 + $0x6e0] sm:$0xff]  ;;  %v4255_v17 = vld [vmem:[#allocation4 + $0x690] sm:$0xff] }
 0x5d2   : > { %v3648_v40 = vpop.permute.xlu0 %3647  ;;  %v3650_v31 = vpop.permute.xlu1 %3649  ;;  %4527 = vmatpush.msrb.mxu1 %v9793_v8  ;;  %v4412_v8 = vld [vmem:[%s11506_s4 + $0x8] sm:$0xff] }
 0x5d3   : > { %v3686_v36 = vsel %vm11743_vm6, %v3646_v32, %v3648_v40  ;;  %v3860_v53 = vpop.permute.xlu2 %3859  ;;  %v3687_v49 = vsel %vm11744_vm7, %v3648_v40, %v3650_v31  ;;  %v10050_v63 = vsel %vm11720_vm4, %v3650_v31, %v3652_v0  ;;  %4460 = vmatpush.msra.mxu3 %v9686_v15  ;;  %v4266_v15 = vld [vmem:[#allocation4 + $0x6e8] sm:$0xff]  ;;  %vm11746_vm6 = vmmov %vm11745_vm8  ;;  %v4148_v31 = vld [vmem:[#allocation4 + $0x338] sm:$0xff] }
 0x5d4   : > { %3765 = vst [vmem:[#allocation4 + $0x9e0] sm:$0xff] %v3686_v36  ;;  %4528 = vmatpush.msrb.mxu1 %v9745_v60  ;;  %v4245_v60 = vld [vmem:[#allocation4 + $0x640] sm:$0xff]  ;;  %vm11747_vm7 = vmmov %vm11746_vm6  ;;  %v4198_v32 = vld [vmem:[#allocation4 + $0x4c8] sm:$0xff] }
 0x5d5   : > { %3766 = vst [vmem:[#allocation4 + $0x9e8] sm:$0xff] %v3687_v49  ;;  %4461 = vmatpush.msra.mxu3 %v9648_v51  ;;  %vm11748_vm4 = vmmov %vm11746_vm6  ;;  %v4158_v40 = vld [vmem:[#allocation4 + $0x388] sm:$0xff] }
 0x5d6   : > { %4529 = vmatpush.msrb.mxu1 %v9701_v12  ;;  %v4256_v12 = vld [vmem:[#allocation4 + $0x698] sm:$0xff] }
 0x5d7   : > { %4462 = vmatpush.msra.mxu3 %v4265_v9 }
 0x5d8   : > { %4530 = vmatpush.msrb.mxu1 %v9651_v19  ;;  %v4246_v19 = vld [vmem:[#allocation4 + $0x648] sm:$0xff] }
 0x5d9   : > { %4420 = vperm.xlu2 %7347, %v4412_v8   ;;  %4463 = vmatpush.msra.mxu3 %v4255_v17  ;;  %v4138_v17 = vld [vmem:[#allocation4 + $0x2e8] sm:$0xff] }
 0x5da   : > { %v3850_v30 = vpop.permute.xlu0 %3849  ;;  %v3852_v2 = vpop.permute.xlu1 %3851  ;;  %4531 = vmatpush.msrb.mxu1 %v4266_v15  ;;  %v4128_v15 = vld [vmem:[#allocation4 + $0x298] sm:$0xff] }
 0x5db   : > { %v3866_v52 = vpop.permute.xlu2 %3865  ;;  %v10061_v51 = vsel %vm11745_vm8, %v3850_v30, %v3852_v2  ;;  %v10064_v62 = vsel %vm11746_vm6, %v3852_v2, %v3854_v28  ;;  %4464 = vmatpush.msra.mxu3 %v4245_v60  ;;  %vm11749_vm8 = vmmov %vm11748_vm4  ;;  %v4118_v30 = vld [vmem:[#allocation4 + $0x248] sm:$0xff]  ;;  %v4108_v2 = vld [vmem:[#allocation4 + $0x1f8] sm:$0xff] }
 0x5dc   : > { %4532 = vmatpush.msrb.mxu1 %v4256_v12  ;;  %vm11750_vm6 = vmmov %vm11748_vm4 }
 0x5dd   : > { %4465 = vmatpush.msra.mxu3 %v4235_v11 }
 0x5de   : > { %4533 = vmatpush.msrb.mxu1 %v4246_v19 }
 0x5df   : > { %4466 = vmatpush.msra.mxu3 %v4225_v18 }
 0x5e0   : > { %4534 = vmatpush.msrb.mxu1 %v4236_v48  ;;  %v4098_v48 = vld [vmem:[#allocation4 + $0x1a8] sm:$0xff] }
 0x5e1   : > { %4467 = vmatpush.msra.mxu3 %v4215_v35  ;;  %v4088_v35 = vld [vmem:[#allocation4 + $0x158] sm:$0xff] }
 0x5e2   : > { %v3856_v20 = vpop.permute.xlu0 %3855  ;;  %v3858_v26 = vpop.permute.xlu1 %3857  ;;  %4535 = vmatpush.msrb.mxu1 %v4226_v22  ;;  %v4078_v22 = vld [vmem:[#allocation4 + $0x108] sm:$0xff] }
 0x5e3   : > { %v10072_v34 = vsel %vm11747_vm7, %v3854_v28, %v3856_v20  ;;  %v3872_v14 = vpop.permute.xlu2 %3871  ;;  %v10075_v38 = vsel %vm11748_vm4, %v3856_v20, %v3858_v26  ;;  %v10078_v5 = vsel %vm11749_vm8, %v3858_v26, %v3860_v53  ;;  %4468 = vmatpush.msra.mxu3 %v4205_v6  ;;  %vm11751_vm7 = vmmov %vm11748_vm4  ;;  %v4068_v20 = vld [vmem:[#allocation4 + $0xb8] sm:$0xff] }
 0x5e4   : > { %4469 = vmatmul.f32.vlgmr.msra.gmra.mxu3 %v10069_v41  ;;  %4536 = vmatpush.msrb.mxu1 %v4216_v27  ;;  %vm11752_vm8 = vmmov %vm11748_vm4 }
 0x5e6   : > { %4537 = vmatpush.msrb.mxu1 %v4206_v46 }
 0x5e7   : > { %4538 = vmatmul.f32.vlgmr.msrb.gmra.mxu1 %v10069_v41 }
 0x5e8   : > { %4637 = vmatpush.msra.mxu1 %v4198_v32 }
 0x5ea   : > { %v3862_v44 = vpop.permute.xlu0 %3861  ;;  %v3864_v0 = vpop.permute.xlu1 %3863  ;;  %4638 = vmatpush.msra.mxu1 %v4188_v58  ;;  %v4058_v58 = vld [vmem:[#allocation4 + $0x68] sm:$0xff] }
 0x5eb   : > { %v3934_v29 = vsel %vm11750_vm6, %v3860_v53, %v3862_v44  ;;  %v3878_v39 = vpop.permute.xlu2 %3877  ;;  %v3935_v1 = vsel %vm11751_vm7, %v3862_v44, %v3864_v0  ;;  %v10090_v28 = vsel %vm11748_vm4, %v3864_v0, %v3866_v52  ;;  %vm11753_vm6 = vmmov %vm11748_vm4  ;;  %v4048_v44 = vld [vmem:[#allocation4 + $0x18] sm:$0xff] }
 0x5ec   : > { %4010 = vst [vmem:[#allocation4 + $0xa28] sm:$0xff] %v3934_v29  ;;  %4472 = vmatmul.f32.gmra.mxu3 %v10085_v7  ;;  %4639 = vmatpush.msra.mxu1 %v4178_v23  ;;  %vm11754_vm7 = vmmov %vm11748_vm4 }
 0x5ed   : > { %4011 = vst [vmem:[#allocation4 + $0xa30] sm:$0xff] %v3935_v1 }
 0x5ee   : > { %4640 = vmatpush.msra.mxu1 %v4168_v25 }
 0x5ef   : > { %4541 = vmatmul.f32.gmra.mxu1 %v10085_v7 }
 0x5f0   : > { %4641 = vmatpush.msra.mxu1 %v4158_v40 }
 0x5f2   : > { %v3868_v36 = vpop.permute.xlu0 %3867  ;;  %v3870_v53 = vpop.permute.xlu1 %3869  ;;  %4642 = vmatpush.msra.mxu1 %v4148_v31 }
 0x5f3   : > { %v3937_v49 = vsel %vm11752_vm8, %v3866_v52, %v3868_v36  ;;  %4014 = vst.msk [vmem:[#allocation4 + $0xa48] sm:$0xff] %vm11557_vm0, %v3868_v36  ;;  %v3884_v9 = vpop.permute.xlu2 %3883  ;;  %v10097_v8 = vsel %vm11753_vm6, %v3870_v53, %v3872_v14  ;;  %vm11755_vm8 = vmmov %vm11748_vm4 }
 0x5f4   : > { %4013 = vst [vmem:[#allocation4 + $0xa40] sm:$0xff] %v3937_v49  ;;  %4643 = vmatpush.msra.mxu1 %v4138_v17  ;;  %vm11756_vm6 = vmmov %vm11748_vm4 }
 0x5f6   : > { %4644 = vmatpush.msra.mxu1 %v4128_v15  ;;  %v4249_v15 = vld [vmem:[#allocation4 + $0x660] sm:$0xff] }
 0x5f8   : > { %4645 = vmatpush.msra.mxu1 %v4118_v30  ;;  %v4239_v30 = vld [vmem:[#allocation4 + $0x610] sm:$0xff] }
 0x5fa   : > { %v3874_v60 = vpop.permute.xlu0 %3873  ;;  %v3876_v12 = vpop.permute.xlu1 %3875  ;;  %4646 = vmatpush.msra.mxu1 %v4108_v2  ;;  %v4229_v2 = vld [vmem:[#allocation4 + $0x5c0] sm:$0xff] }
 0x5fb   : > { %v10100_v11 = vsel %vm11754_vm7, %v3872_v14, %v3874_v60  ;;  %v3890_v52 = vpop.permute.xlu2 %3889  ;;  %v10103_v19 = vsel %vm11748_vm4, %v3874_v60, %v3876_v12  ;;  %v10106_v18 = vsel %vm11755_vm8, %v3876_v12, %v3878_v39  ;;  %vm11757_vm7 = vmmov %vm11748_vm4 }
 0x5fc   : > { %4647 = vmatpush.msra.mxu1 %v4098_v48  ;;  %vm11758_vm8 = vmmov %vm11748_vm4 }
 0x5fe   : > { %4648 = vmatpush.msra.mxu1 %v4088_v35 }
 0x600   : > { %4649 = vmatpush.msra.mxu1 %v4078_v22  ;;  %v4219_v22 = vld [vmem:[#allocation4 + $0x570] sm:$0xff] }
 0x602   : > { %v3880_v26 = vpop.permute.xlu0 %3879  ;;  %v3882_v6 = vpop.permute.xlu1 %3881  ;;  %4650 = vmatpush.msra.mxu1 %v4068_v20 }
 0x603   : > { %v10109_v14 = vsel %vm11756_vm6, %v3878_v39, %v3880_v26  ;;  %v3896_v27 = vpop.permute.xlu2 %3895  ;;  %v10112_v46 = vsel %vm11757_vm7, %v3880_v26, %v3882_v6  ;;  %v10115_v32 = vsel %vm11748_vm4, %v3882_v6, %v3884_v9  ;;  %vm11759_vm6 = vmmov %vm11748_vm4  ;;  %v4209_v26 = vld [vmem:[#allocation4 + $0x520] sm:$0xff] }
 0x604   : > { %4651 = vmatpush.msra.mxu1 %v4058_v58  ;;  %vm11760_vm7 = vmmov %vm11748_vm4  ;;  %v4201_v6 = vld [vmem:[#allocation4 + $0x4e0] sm:$0xff] }
 0x606   : > { %4652 = vmatpush.msra.mxu1 %v4048_v44 }
 0x607   : > { %4653 = vmatmul.f32.vlgmr.msra.gmra.mxu1 %v9928_v13 }
 0x608   : > { %4729 = vmatpush.msrb.mxu1 %v10030_v61 }
 0x60a   : > { %v3886_v0 = vpop.permute.xlu0 %3885  ;;  %v3888_v29 = vpop.permute.xlu1 %3887  ;;  %4730 = vmatpush.msrb.mxu1 %v9991_v16 }
 0x60b   : > { %v10121_v39 = vsel %vm11758_vm8, %v3884_v9, %v3886_v0  ;;  %v3902_v1 = vpop.permute.xlu2 %3901  ;;  %v3946_v23 = vsel %vm11759_vm6, %v3886_v0, %v3888_v29  ;;  %4024 = vst.msk [vmem:[#allocation4 + $0xa98] sm:$0xff] %vm11557_vm0, %v3888_v29  ;;  %vm11761_vm8 = vmmov %vm11748_vm4  ;;  %v4181_v0 = vld [vmem:[#allocation4 + $0x440] sm:$0xff] }
 0x60c   : > { %4731 = vmatpush.msrb.mxu1 %v9945_v4  ;;  %4023 = vst [vmem:[#allocation4 + $0xa90] sm:$0xff] %v3946_v23  ;;  %v4279_v4 = vld [vmem:[#allocation4 + $0x750] sm:$0xff]  ;;  %vm11762_vm6 = vmmov %vm11748_vm4 }
 0x60d   : > { %v4171_v23 = vld [vmem:[#allocation4 + $0x3f0] sm:$0xff] }
 0x60e   : > { %4732 = vmatpush.msrb.mxu1 %v9903_v37  ;;  %v4289_v37 = vld [vmem:[#allocation4 + $0x7a0] sm:$0xff] }
 0x60f   : > { %4656 = vmatmul.f32.gmra.mxu1 %v9950_v43 }
 0x610   : > { %4733 = vmatpush.msrb.mxu1 %v9866_v55  ;;  %v4269_v55 = vld [vmem:[#allocation4 + $0x700] sm:$0xff] }
 0x612   : > { %v3892_v61 = vpop.permute.xlu0 %3891  ;;  %v3894_v25 = vpop.permute.xlu1 %3893  ;;  %4734 = vmatpush.msrb.mxu1 %v9810_v47 }
 0x613   : > { %v3947_v16 = vsel %vm11760_vm7, %v3890_v52, %v3892_v61  ;;  %v3908_v40 = vpop.permute.xlu2 %3907  ;;  %v3948_v31 = vsel %vm11748_vm4, %v3892_v61, %v3894_v25  ;;  %v10133_v36 = vsel %vm11761_vm8, %v3894_v25, %v3896_v27  ;;  %vm11763_vm7 = vmmov %vm11748_vm4  ;;  %v4161_v61 = vld [vmem:[#allocation4 + $0x3a0] sm:$0xff] }
 0x614   : > { %4735 = vmatpush.msrb.mxu1 %v9763_v59  ;;  %4034 = vst.msk [vmem:[#allocation4 + $0xae8] sm:$0xff] %vm11557_vm0, %v3908_v40  ;;  %v4259_v59 = vld [vmem:[#allocation4 + $0x6b0] sm:$0xff]  ;;  %vm11764_vm8 = vmmov %vm11748_vm4 }
 0x616   : > { %4736 = vmatpush.msrb.mxu1 %v4289_v37  ;;  %v10161_v37 = vld [vmem:[%s11505_s3 + $0x10] sm:$0xff] }
 0x618   : > { %4737 = vmatpush.msrb.mxu1 %v4279_v4 }
 0x61a   : > { %v3898_v53 = vpop.permute.xlu0 %3897  ;;  %v3900_v49 = vpop.permute.xlu1 %3899  ;;  %4738 = vmatpush.msrb.mxu1 %v4269_v55 }
 0x61b   : > { %v10138_v47 = vsel %vm11762_vm6, %v3896_v27, %v3898_v53  ;;  %v10141_v9 = vsel %vm11763_vm7, %v3898_v53, %v3900_v49  ;;  %v10144_v17 = vsel %vm11748_vm4, %v3900_v49, %v3902_v1  ;;  %vm11765_vm6 = vmmov %vm11748_vm4  ;;  %v3914_v20 = vpop.permute.xlu2 %3913  ;;  %v4191_v27 = vld [vmem:[#allocation4 + $0x490] sm:$0xff]  ;;  %v4141_v53 = vld [vmem:[#allocation4 + $0x300] sm:$0xff] }
 0x61c   : > { %4739 = vmatpush.msrb.mxu1 %v4259_v59  ;;  %vm11766_vm7 = vmmov %vm11748_vm4  ;;  %v4187_v49 = vld [vmem:[#allocation4 + $0x470] sm:$0xff] }
 0x61d   : > { %v4111_v59 = vld [vmem:[#allocation4 + $0x210] sm:$0xff] }
 0x61e   : > { %4740 = vmatpush.msrb.mxu1 %v4249_v15  ;;  %v4177_v15 = vld [vmem:[#allocation4 + $0x420] sm:$0xff] }
 0x620   : > { %4741 = vmatpush.msrb.mxu1 %v4239_v30 }
 0x622   : > { %v3904_v60 = vpop.permute.xlu0 %3903  ;;  %v3906_v12 = vpop.permute.xlu1 %3905  ;;  %4742 = vmatpush.msrb.mxu1 %v4229_v2 }
 0x623   : > { %v10147_v52 = vsel %vm11764_vm8, %v3902_v1, %v3904_v60  ;;  %v10150_v48 = vsel %vm11765_vm6, %v3904_v60, %v3906_v12  ;;  %v3955_v35 = vsel %vm11766_vm7, %v3906_v12, %v3908_v40  ;;  %vm11767_vm8 = vmmov %vm11748_vm4  ;;  %v3920_v25 = vpop.permute.xlu2 %3919  ;;  %v4151_v40 = vld [vmem:[#allocation4 + $0x350] sm:$0xff]  ;;  %vm4423_vm6 = vcmask 261120  }
 0x624   : > { %4743 = vmatpush.msrb.mxu1 %v4219_v22  ;;  %4033 = vst [vmem:[#allocation4 + $0xae0] sm:$0xff] %v3955_v35  ;;  %vm11768_vm7 = vmmov %vm11748_vm4  ;;  %v10193_v35 = vld [vmem:[%s11505_s3 + $0x28] sm:$0xff]  ;;  %v4081_v22 = vld [vmem:[#allocation4 + $0x120] sm:$0xff] }
 0x626   : > { %4744 = vmatpush.msrb.mxu1 %v4209_v26  ;;  %v4317_v26 = vld [vmem:[#allocation4 + $0x880] sm:$0xff] }
 0x627   : > { %4745 = vmatmul.f32.vlgmr.msrb.gmra.mxu1 %v10069_v41 }
 0x628   : > { %4844 = vmatpush.msra.mxu1 %v4201_v6  ;;  %v4147_v6 = vld [vmem:[#allocation4 + $0x330] sm:$0xff] }
 0x62a   : > { %4845 = vmatpush.msra.mxu1 %v4191_v27  ;;  %v3910_v58 = vpop.permute.xlu0 %3909  ;;  %v3912_v44 = vpop.permute.xlu1 %3911 }
 0x62b   : > { %v3956_v29 = vsel %vm11748_vm4, %v3910_v58, %v3912_v44  ;;  %v3957_v1 = vsel %vm11767_vm8, %v3912_v44, %v3914_v20  ;;  %vm11769_vm8 = vmmov %vm11748_vm4  ;;  %v3926_v30 = vpop.permute.xlu2 %3925  ;;  %v4318_v58 = vld [vmem:[#allocation4 + $0x888] sm:$0xff]  ;;  %v4307_v44 = vld [vmem:[#allocation4 + $0x830] sm:$0xff] }
 0x62c   : > { %4846 = vmatpush.msra.mxu1 %v4181_v0  ;;  %4488 = vmatpush.msrb.mxu2 %v3956_v29  ;;  %v4137_v29 = vld [vmem:[#allocation4 + $0x2e0] sm:$0xff] }
 0x62d   : > { %4557 = vmatpush.msrb.mxu3 %v3957_v1  ;;  %v4308_v1 = vld [vmem:[#allocation4 + $0x838] sm:$0xff] }
 0x62e   : > { %4847 = vmatpush.msra.mxu1 %v4171_v23  ;;  %4489 = vmatpush.msrb.mxu2 %v3947_v16  ;;  %v4297_v23 = vld [vmem:[#allocation4 + $0x7e0] sm:$0xff] }
 0x62f   : > { %4558 = vmatpush.msrb.mxu3 %v3948_v31  ;;  %v4131_v31 = vld [vmem:[#allocation4 + $0x2b0] sm:$0xff]  ;;  %4748 = vmatmul.f32.gmra.mxu1 %v10085_v7 }
 0x630   : > { %4848 = vmatpush.msra.mxu1 %v4161_v61  ;;  %4490 = vmatpush.msrb.mxu2 %v10097_v8  ;;  %v4051_v61 = vld [vmem:[#allocation4 + $0x30] sm:$0xff] }
 0x631   : > { %4559 = vmatpush.msrb.mxu3 %v10100_v11 }
 0x632   : > { %4849 = vmatpush.msra.mxu1 %v4151_v40  ;;  %v3916_v4 = vpop.permute.xlu0 %3915  ;;  %v3918_v55 = vpop.permute.xlu1 %3917  ;;  %4491 = vmatpush.msrb.mxu2 %v10061_v51  ;;  %v4197_v51 = vld [vmem:[#allocation4 + $0x4c0] sm:$0xff]  ;;  %v4298_v40 = vld [vmem:[#allocation4 + $0x7e8] sm:$0xff] }
 0x633   : > { %4560 = vmatpush.msrb.mxu3 %v10064_v62  ;;  %v3958_v16 = vsel %vm11768_vm7, %v3914_v20, %v3916_v4  ;;  %v10167_v8 = vsel %vm11748_vm4, %v3916_v4, %v3918_v55  ;;  %v10170_v11 = vsel %vm11769_vm8, %v3918_v55, %v3920_v25  ;;  %7221 = vmatmul.msk.f32.vlgmr.msrb.gmra.mxu2 %vm4423_vm6, %v10161_v37  ;;  %v4121_v62 = vld [vmem:[#allocation4 + $0x260] sm:$0xff]  ;;  %vm11770_vm7 = vmmov %vm11748_vm4  ;;  %v4328_v20 = vld [vmem:[#allocation4 + $0x8d8] sm:$0xff] }
 0x634   : > { %4850 = vmatpush.msra.mxu1 %v4141_v53  ;;  %4626 = vmatpush.msra.mxu0 %v3958_v16  ;;  %vm11771_vm8 = vmmov %vm11748_vm4  ;;  %v4287_v4 = vld [vmem:[#allocation4 + $0x790] sm:$0xff]  ;;  %v4288_v55 = vld [vmem:[#allocation4 + $0x798] sm:$0xff] }
 0x635   : > { %7223 = vmatmul.msk.f32.vlgmr.msrb.gmra.mxu3 %vm4423_vm6, %v10161_v37  ;;  %4568 = vmatpush.msra.mxu2 %v4197_v51  ;;  %v4117_v53 = vld [vmem:[#allocation4 + $0x240] sm:$0xff]  ;;  %v4278_v51 = vld [vmem:[#allocation4 + $0x748] sm:$0xff] }
 0x636   : > { %4851 = vmatpush.msra.mxu1 %v4131_v31  ;;  %4627 = vmatpush.msra.mxu0 %v10133_v36  ;;  %v4101_v36 = vld [vmem:[#allocation4 + $0x1c0] sm:$0xff]  ;;  %v4107_v31 = vld [vmem:[#allocation4 + $0x1f0] sm:$0xff] }
 0x637   : > { %4591 = vmatpush.msra.mxu3 %v10015_v57  ;;  %4569 = vmatpush.msra.mxu2 %v4187_v49  ;;  %v4277_v16 = vld [vmem:[#allocation4 + $0x740] sm:$0xff] }
 0x638   : > { %4852 = vmatpush.msra.mxu1 %v4121_v62  ;;  %4628 = vmatpush.msra.mxu0 %v10103_v19  ;;  %v4267_v62 = vld [vmem:[#allocation4 + $0x6f0] sm:$0xff]  ;;  %v4097_v49 = vld [vmem:[#allocation4 + $0x1a0] sm:$0xff] }
 0x639   : > { %4592 = vmatpush.msra.mxu3 %v9979_v10  ;;  %4570 = vmatpush.msra.mxu2 %v4177_v15  ;;  %v4167_v10 = vld [vmem:[#allocation4 + $0x3d0] sm:$0xff]  ;;  %v4257_v15 = vld [vmem:[#allocation4 + $0x6a0] sm:$0xff] }
 0x63a   : > { %4853 = vmatpush.msra.mxu1 %v4111_v59  ;;  %v3922_v2 = vpop.permute.xlu0 %3921  ;;  %v3924_v60 = vpop.permute.xlu1 %3923  ;;  %4629 = vmatpush.msra.mxu0 %v10072_v34  ;;  %v4091_v34 = vld [vmem:[#allocation4 + $0x170] sm:$0xff]  ;;  %v4268_v59 = vld [vmem:[#allocation4 + $0x6f8] sm:$0xff] }
 0x63b   : > { %4593 = vmatpush.msra.mxu3 %v9939_v33  ;;  %v10183_v57 = vsel %vm11770_vm7, %v3920_v25, %v3922_v2  ;;  %v10186_v12 = vsel %vm11748_vm4, %v3922_v2, %v3924_v60  ;;  %v3963_v19 = vsel %vm11771_vm8, %v3924_v60, %v3926_v30  ;;  %4571 = vmatpush.msra.mxu2 %v4167_v10  ;;  %v4327_v33 = vld [vmem:[#allocation4 + $0x8d0] sm:$0xff]  ;;  %vm11772_vm7 = vmmov %vm11748_vm4  ;;  %v4077_v60 = vld [vmem:[#allocation4 + $0x100] sm:$0xff]  ;;  %vm11781_vm8 = vcmask 318464  }
 0x63c   : > { %4660 = vmatpush.msrb.mxu0 %v10027_v50  ;;  %4854 = vmatpush.msra.mxu1 %v4101_v36  ;;  %v4157_v50 = vld [vmem:[#allocation4 + $0x380] sm:$0xff]  ;;  %v4127_v25 = vld [vmem:[#allocation4 + $0x290] sm:$0xff] }
 0x63d   : > { %4594 = vmatpush.msra.mxu3 %v4327_v33  ;;  %7222 = vmatmul.msk.f32.gmra.mxu2 %vm4423_vm6, %v10193_v35  ;;  %v4247_v2 = vld [vmem:[#allocation4 + $0x650] sm:$0xff]  ;;  %v4237_v36 = vld [vmem:[#allocation4 + $0x600] sm:$0xff] }
 0x63e   : > { %4661 = vmatpush.msrb.mxu0 %v9982_v3  ;;  %4855 = vmatpush.msra.mxu1 %v4091_v34  ;;  %v4071_v3 = vld [vmem:[#allocation4 + $0xd0] sm:$0xff]  ;;  %v4333_v10 = vld [vmem:[#allocation4 + $0x900] sm:$0xff]  ;;  %v4228_v34 = vld [vmem:[#allocation4 + $0x5b8] sm:$0xff] }
 0x63f   : > { %7224 = vmatmul.msk.f32.gmra.mxu3 %vm4423_vm6, %v10193_v35  ;;  %4572 = vmatpush.msra.mxu2 %v4157_v50  ;;  %v4217_v33 = vld [vmem:[#allocation4 + $0x560] sm:$0xff]  ;;  %v4218_v50 = vld [vmem:[#allocation4 + $0x568] sm:$0xff] }
 0x640   : > { %4662 = vmatpush.msrb.mxu0 %v9942_v42  ;;  %4856 = vmatpush.msra.mxu1 %v4081_v22  ;;  %v4061_v42 = vld [vmem:[#allocation4 + $0x80] sm:$0xff]  ;;  %v4323_v22 = vld [vmem:[#allocation4 + $0x8b0] sm:$0xff] }
 0x641   : > { %4595 = vmatpush.msra.mxu3 %v4317_v26  ;;  %4573 = vmatpush.msra.mxu2 %v4147_v6  ;;  %v4207_v26 = vld [vmem:[#allocation4 + $0x510] sm:$0xff]  ;;  %v4208_v6 = vld [vmem:[#allocation4 + $0x518] sm:$0xff] }
 0x642   : > { %4663 = vmatpush.msrb.mxu0 %v4328_v20  ;;  %v3928_v27 = vpop.permute.xlu0 %3927  ;;  %4857 = vmatpush.msra.mxu1 %v4071_v3  ;;  %v4047_v20 = vld [vmem:[#allocation4 + $0x10] sm:$0xff]  ;;  %v4313_v3 = vld [vmem:[#allocation4 + $0x860] sm:$0xff] }
 0x643   : > { %v10203_v0 = vsel %vm11772_vm7, %v3926_v30, %v3928_v27  ;;  %4044 = vst.msk [vmem:[#allocation4 + $0xb38] sm:$0xff] %vm11557_vm0, %v3928_v27  ;;  %4596 = vmatpush.msra.mxu3 %v4307_v44  ;;  %4574 = vmatpush.msra.mxu2 %v4137_v29  ;;  %v4087_v30 = vld [vmem:[#allocation4 + $0x150] sm:$0xff]  ;;  %v4200_v44 = vld [vmem:[#allocation4 + $0x4d8] sm:$0xff]  ;;  %v4190_v29 = vld [vmem:[#allocation4 + $0x488] sm:$0xff]  ;;  %vm11782_vm7 = vcmask 1039360  }
 0x644   : > { %4664 = vmatpush.msrb.mxu0 %v4318_v58  ;;  %4858 = vmatpush.msra.mxu1 %v4061_v42  ;;  %v4199_v27 = vld [vmem:[#allocation4 + $0x4d0] sm:$0xff]  ;;  %v4189_v42 = vld [vmem:[#allocation4 + $0x480] sm:$0xff] }
 0x645   : > { %4597 = vmatpush.msra.mxu3 %v4297_v23  ;;  %4575 = vmatpush.msra.mxu2 %v4127_v25  ;;  %v4303_v58 = vld [vmem:[#allocation4 + $0x810] sm:$0xff]  ;;  %v4170_v25 = vld [vmem:[#allocation4 + $0x3e8] sm:$0xff] }
 0x646   : > { %4665 = vmatpush.msrb.mxu0 %v4308_v1  ;;  %4859 = vmatpush.msra.mxu1 %v4051_v61  ;;  %v4293_v1 = vld [vmem:[#allocation4 + $0x7c0] sm:$0xff]  ;;  %v4283_v23 = vld [vmem:[#allocation4 + $0x770] sm:$0xff] }
 0x647   : > { %4860 = vmatmul.f32.vlgmr.msra.gmra.mxu1 %v9928_v13  ;;  %4598 = vmatpush.msra.mxu3 %v4287_v4  ;;  %v4169_v61 = vld [vmem:[#allocation4 + $0x3e0] sm:$0xff]  ;;  %v4160_v4 = vld [vmem:[#allocation4 + $0x398] sm:$0xff] }
 0x648   : > { %4666 = vmatpush.msrb.mxu0 %v4298_v40  ;;  %4971 = vmatpush.msrb.mxu1 %v3963_v19  ;;  %v4067_v19 = vld [vmem:[#allocation4 + $0xb0] sm:$0xff]  ;;  %v10228_v40 = vld [vmem:[%s11505_s3 + $0x18] sm:$0xff] }
 0x649   : > { %4576 = vmatpush.msra.mxu2 %v4117_v53  ;;  %4599 = vmatpush.msra.mxu3 %v4277_v16  ;;  %v4253_v53 = vld [vmem:[#allocation4 + $0x680] sm:$0xff]  ;;  %v4139_v16 = vld [vmem:[#allocation4 + $0x2f0] sm:$0xff] }
 0x64a   : > { %4667 = vmatpush.msrb.mxu0 %v4288_v55  ;;  %4972 = vmatpush.msrb.mxu1 %v10150_v48  ;;  %v4258_v48 = vld [vmem:[#allocation4 + $0x6a8] sm:$0xff] }
 0x64b   : > { %7225 = vmatmul.msk.f32.vlgmr.msra.gmra.mxu0 %vm4423_vm6, %v10161_v37  ;;  %4577 = vmatpush.msra.mxu2 %v4107_v31  ;;  %v4150_v55 = vld [vmem:[#allocation4 + $0x348] sm:$0xff]  ;;  %v4140_v31 = vld [vmem:[#allocation4 + $0x2f8] sm:$0xff] }
 0x64c   : > { %4668 = vmatpush.msrb.mxu0 %v4278_v51  ;;  %4973 = vmatpush.msrb.mxu1 %v10121_v39  ;;  %v4248_v39 = vld [vmem:[#allocation4 + $0x658] sm:$0xff]  ;;  %v4243_v51 = vld [vmem:[#allocation4 + $0x630] sm:$0xff] }
 0x64d   : > { %4600 = vmatpush.msra.mxu3 %v4267_v62  ;;  %4578 = vmatpush.msra.mxu2 %v4097_v49  ;;  %v4130_v62 = vld [vmem:[#allocation4 + $0x2a8] sm:$0xff]  ;;  %v4233_v49 = vld [vmem:[#allocation4 + $0x5e0] sm:$0xff] }
 0x64e   : > { %4669 = vmatpush.msrb.mxu0 %v4268_v59  ;;  %4974 = vmatpush.msrb.mxu1 %v10090_v28  ;;  %v4343_v28 = vld [vmem:[#allocation4 + $0x950] sm:$0xff]  ;;  %v4360_v59 = vld [vmem:[#allocation4 + $0x9d8] sm:$0xff] }
 0x64f   : > { %4601 = vmatpush.msra.mxu3 %v4257_v15  ;;  %4863 = vmatmul.f32.gmra.mxu1 %v9950_v43  ;;  %v4227_v43 = vld [vmem:[#allocation4 + $0x5b0] sm:$0xff]  ;;  %v4120_v15 = vld [vmem:[#allocation4 + $0x258] sm:$0xff] }
 0x650   : > { %5005 = vmatpush.msra.mxu1 %v10050_v63  ;;  %4670 = vmatpush.msrb.mxu0 %v4258_v48  ;;  %v4238_v63 = vld [vmem:[#allocation4 + $0x608] sm:$0xff]  ;;  %v4223_v48 = vld [vmem:[#allocation4 + $0x590] sm:$0xff] }
 0x651   : > { %4579 = vmatpush.msra.mxu2 %v4087_v30  ;;  %4602 = vmatpush.msra.mxu3 %v4247_v2  ;;  %v4350_v30 = vld [vmem:[#allocation4 + $0x988] sm:$0xff] }
 0x652   : > { %5006 = vmatpush.msra.mxu1 %v10003_v45  ;;  %4671 = vmatpush.msrb.mxu0 %v4248_v39  ;;  %v4057_v45 = vld [vmem:[#allocation4 + $0x60] sm:$0xff]  ;;  %v4110_v2 = vld [vmem:[#allocation4 + $0x208] sm:$0xff] }
 0x653   : > { %4580 = vmatpush.msra.mxu2 %v4077_v60  ;;  %4603 = vmatpush.msra.mxu3 %v4237_v36  ;;  %v4213_v39 = vld [vmem:[#allocation4 + $0x540] sm:$0xff]  ;;  %v4099_v60 = vld [vmem:[#allocation4 + $0x1b0] sm:$0xff]  ;;  %v4340_v36 = vld [vmem:[#allocation4 + $0x938] sm:$0xff] }
 0x654   : > { %7226 = vmatmul.msk.f32.gmra.mxu0 %vm4423_vm6, %v10193_v35  ;;  %5007 = vmatpush.msra.mxu1 %v4343_v28  ;;  %v4100_v28 = vld [vmem:[#allocation4 + $0x1b8] sm:$0xff] }
 0x655   : > { %4672 = vmatpush.msrb.mxu0 %v4238_v63  ;;  %4581 = vmatpush.msra.mxu2 %v4067_v19  ;;  %v4089_v63 = vld [vmem:[#allocation4 + $0x160] sm:$0xff]  ;;  %v4330_v19 = vld [vmem:[#allocation4 + $0x8e8] sm:$0xff] }
 0x656   : > { %4604 = vmatpush.msra.mxu3 %v4227_v43  ;;  %5008 = vmatpush.msra.mxu1 %v4333_v10  ;;  %v4090_v43 = vld [vmem:[#allocation4 + $0x168] sm:$0xff]  ;;  %v4079_v10 = vld [vmem:[#allocation4 + $0x110] sm:$0xff] }
 0x657   : > { %4673 = vmatpush.msrb.mxu0 %v4228_v34  ;;  %4582 = vmatpush.msra.mxu2 %v4057_v45  ;;  %v4320_v34 = vld [vmem:[#allocation4 + $0x898] sm:$0xff] }
 0x658   : > { %4605 = vmatpush.msra.mxu3 %v4217_v33  ;;  %5009 = vmatpush.msra.mxu1 %v4323_v22  ;;  %v4080_v45 = vld [vmem:[#allocation4 + $0x118] sm:$0xff]  ;;  %v4069_v33 = vld [vmem:[#allocation4 + $0xc0] sm:$0xff]  ;;  %v4310_v22 = vld [vmem:[#allocation4 + $0x848] sm:$0xff] }
 0x659   : > { %4674 = vmatpush.msrb.mxu0 %v4218_v50  ;;  %4583 = vmatpush.msra.mxu2 %v4047_v20  ;;  %v4070_v50 = vld [vmem:[#allocation4 + $0xc8] sm:$0xff]  ;;  %v4059_v20 = vld [vmem:[#allocation4 + $0x70] sm:$0xff] }
 0x65a   : > { %4606 = vmatpush.msra.mxu3 %v4207_v26  ;;  %5010 = vmatpush.msra.mxu1 %v4313_v3  ;;  %v4300_v26 = vld [vmem:[#allocation4 + $0x7f8] sm:$0xff] }
 0x65b   : > { %4584 = vmatmul.f32.vlgmr.msra.gmra.mxu2 %v9928_v13  ;;  %4675 = vmatpush.msrb.mxu0 %v4208_v6  ;;  %v4179_v13 = vld [vmem:[#allocation4 + $0x430] sm:$0xff]  ;;  %v4060_v3 = vld [vmem:[#allocation4 + $0x78] sm:$0xff]  ;;  %v4049_v6 = vld [vmem:[#allocation4 + $0x20] sm:$0xff] }
 0x65c   : > { %4695 = vmatpush.msrb.mxu2 %v10167_v8  ;;  %4706 = vmatpush.msrb.mxu3 %v4199_v27  ;;  %v4180_v8 = vld [vmem:[#allocation4 + $0x438] sm:$0xff]  ;;  %v4290_v27 = vld [vmem:[#allocation4 + $0x7a8] sm:$0xff] }
 0x65d   : > { %4676 = vmatmul.f32.vlgmr.msrb.gmra.mxu0 %v10069_v41  ;;  %5011 = vmatpush.msra.mxu1 %v4303_v58  ;;  %v4050_v58 = vld [vmem:[#allocation4 + $0x28] sm:$0xff] }
 0x65e   : > { %4775 = vmatpush.msra.mxu0 %v4200_v44  ;;  %4607 = vmatmul.f32.vlgmr.msra.gmra.mxu3 %v10069_v41  ;;  %v10247_v44 = vld [vmem:[%s11505_s3] sm:$0xff] }
 0x65f   : > { %4696 = vmatpush.msrb.mxu2 %v10138_v47  ;;  %4707 = vmatpush.msrb.mxu3 %v4189_v42  ;;  %v4273_v47 = vld [vmem:[#allocation4 + $0x720] sm:$0xff]  ;;  %v4280_v42 = vld [vmem:[#allocation4 + $0x758] sm:$0xff] }
 0x660   : > { %4776 = vmatpush.msra.mxu0 %v4190_v29  ;;  %5012 = vmatpush.msra.mxu1 %v4293_v1  ;;  %v4270_v29 = vld [vmem:[#allocation4 + $0x708] sm:$0xff]  ;;  %v4260_v1 = vld [vmem:[#allocation4 + $0x6b8] sm:$0xff] }
 0x661   : > { %4697 = vmatpush.msrb.mxu2 %v10106_v18  ;;  %4708 = vmatpush.msrb.mxu3 %v4179_v13  ;;  %v4159_v18 = vld [vmem:[#allocation4 + $0x390] sm:$0xff]  ;;  %v4250_v13 = vld [vmem:[#allocation4 + $0x668] sm:$0xff] }
 0x662   : > { %4777 = vmatpush.msra.mxu0 %v4180_v8  ;;  %5013 = vmatpush.msra.mxu1 %v4283_v23  ;;  %v4361_v8 = vld [vmem:[#allocation4 + $0x9e0] sm:$0xff] }
 0x663   : > { %4698 = vmatpush.msrb.mxu2 %v10075_v38  ;;  %4709 = vmatpush.msrb.mxu3 %v4169_v61  ;;  %v4263_v38 = vld [vmem:[#allocation4 + $0x6d0] sm:$0xff]  ;;  %v4341_v23 = vld [vmem:[#allocation4 + $0x940] sm:$0xff]  ;;  %v4342_v61 = vld [vmem:[#allocation4 + $0x948] sm:$0xff] }
 0x664   : > { %4778 = vmatpush.msra.mxu0 %v4170_v25  ;;  %5014 = vmatpush.msra.mxu1 %v4273_v47  ;;  %v4220_v25 = vld [vmem:[#allocation4 + $0x578] sm:$0xff]  ;;  %v4331_v47 = vld [vmem:[#allocation4 + $0x8f0] sm:$0xff] }
 0x665   : > { %4764 = vmatpush.msra.mxu2 %v10170_v11  ;;  %4710 = vmatpush.msrb.mxu3 %v4159_v18  ;;  %v4149_v11 = vld [vmem:[#allocation4 + $0x340] sm:$0xff]  ;;  %v4332_v18 = vld [vmem:[#allocation4 + $0x8f8] sm:$0xff] }
 0x666   : > { %4587 = vmatmul.f32.gmra.mxu2 %v10228_v40  ;;  %4679 = vmatmul.f32.gmra.mxu0 %v10085_v7 }
 0x667   : > { %4765 = vmatpush.msra.mxu2 %v10141_v9  ;;  %4779 = vmatpush.msra.mxu0 %v4160_v4  ;;  %v4129_v9 = vld [vmem:[#allocation4 + $0x2a0] sm:$0xff]  ;;  %v4210_v4 = vld [vmem:[#allocation4 + $0x528] sm:$0xff] }
 0x668   : > { %5015 = vmatpush.msra.mxu1 %v4263_v38  ;;  %4610 = vmatmul.f32.gmra.mxu3 %v10085_v7  ;;  %v4321_v38 = vld [vmem:[#allocation4 + $0x8a0] sm:$0xff] }
 0x669   : > { %4711 = vmatpush.msrb.mxu3 %v4149_v11  ;;  %4766 = vmatpush.msra.mxu2 %v10109_v14  ;;  %v4119_v14 = vld [vmem:[#allocation4 + $0x250] sm:$0xff]  ;;  %v4202_v11 = vld [vmem:[#allocation4 + $0x4e8] sm:$0xff] }
 0x66a   : > { %4780 = vmatpush.msra.mxu0 %v4150_v55  ;;  %5016 = vmatpush.msra.mxu1 %v4253_v53  ;;  %v4322_v55 = vld [vmem:[#allocation4 + $0x8a8] sm:$0xff] }
 0x66b   : > { %4712 = vmatpush.msrb.mxu3 %v4139_v16  ;;  %4767 = vmatpush.msra.mxu2 %v10078_v5  ;;  %v4109_v5 = vld [vmem:[#allocation4 + $0x200] sm:$0xff]  ;;  %v10270_v53 = vld [vmem:[%s11505_s3 + $0x8] sm:$0xff]  ;;  %v4192_v16 = vld [vmem:[#allocation4 + $0x498] sm:$0xff] }
 0x66c   : > { %4781 = vmatpush.msra.mxu0 %v4140_v31  ;;  %5017 = vmatpush.msra.mxu1 %v4243_v51  ;;  %v4312_v31 = vld [vmem:[#allocation4 + $0x858] sm:$0xff]  ;;  %v4301_v51 = vld [vmem:[#allocation4 + $0x800] sm:$0xff] }
 0x66d   : > { %4713 = vmatpush.msrb.mxu3 %v4129_v9  ;;  %7235 = vmatmul.msk.f32.vlgmr.msrb.gmra.mxu1 %vm4423_vm6, %v10161_v37  ;;  %v4182_v9 = vld [vmem:[#allocation4 + $0x448] sm:$0xff] }
 0x66e   : > { %7227 = vmatmul.msk.f32.vlgmr.msrb.gmra.mxu2 %vm4423_vm6, %v10161_v37  ;;  %4782 = vmatpush.msra.mxu0 %v4130_v62  ;;  %v4302_v62 = vld [vmem:[#allocation4 + $0x808] sm:$0xff] }
 0x66f   : > { %5018 = vmatpush.msra.mxu1 %v4233_v49  ;;  %4714 = vmatpush.msrb.mxu3 %v4119_v14  ;;  %v4291_v49 = vld [vmem:[#allocation4 + $0x7b0] sm:$0xff]  ;;  %v4172_v14 = vld [vmem:[#allocation4 + $0x3f8] sm:$0xff] }
 0x670   : > { %4798 = vmatpush.msrb.mxu2 %v4360_v59  ;;  %4783 = vmatpush.msra.mxu0 %v4120_v15  ;;  %v4292_v59 = vld [vmem:[#allocation4 + $0x7b8] sm:$0xff]  ;;  %v4281_v15 = vld [vmem:[#allocation4 + $0x760] sm:$0xff] }
 0x671   : > { %5019 = vmatpush.msra.mxu1 %v4223_v48  ;;  %4715 = vmatpush.msrb.mxu3 %v4109_v5  ;;  %v4162_v48 = vld [vmem:[#allocation4 + $0x3a8] sm:$0xff] }
 0x672   : > { %4799 = vmatpush.msrb.mxu2 %v4350_v30  ;;  %4784 = vmatpush.msra.mxu0 %v4110_v2  ;;  %v4282_v5 = vld [vmem:[#allocation4 + $0x768] sm:$0xff]  ;;  %v10278_v30 = vld [vmem:[%s11505_s3 + $0x20] sm:$0xff]  ;;  %v4271_v2 = vld [vmem:[#allocation4 + $0x710] sm:$0xff] }
 0x673   : > { %5020 = vmatpush.msra.mxu1 %v4213_v39  ;;  %4716 = vmatpush.msrb.mxu3 %v4099_v60  ;;  %v4152_v39 = vld [vmem:[#allocation4 + $0x358] sm:$0xff] }
 0x674   : > { %4800 = vmatpush.msrb.mxu2 %v4340_v36  ;;  %4785 = vmatpush.msra.mxu0 %v4100_v28  ;;  %v4272_v60 = vld [vmem:[#allocation4 + $0x718] sm:$0xff]  ;;  %v4261_v36 = vld [vmem:[#allocation4 + $0x6c0] sm:$0xff]  ;;  %v4142_v28 = vld [vmem:[#allocation4 + $0x308] sm:$0xff] }
 0x675   : > { %4717 = vmatpush.msrb.mxu3 %v4089_v63  ;;  %7236 = vmatmul.msk.f32.gmra.mxu1 %vm4423_vm6, %v10193_v35  ;;  %v4262_v63 = vld [vmem:[#allocation4 + $0x6c8] sm:$0xff] }
 0x676   : > { %4801 = vmatpush.msrb.mxu2 %v4330_v19  ;;  %4786 = vmatpush.msra.mxu0 %v4090_v43  ;;  %v4251_v19 = vld [vmem:[#allocation4 + $0x670] sm:$0xff]  ;;  %v4132_v43 = vld [vmem:[#allocation4 + $0x2b8] sm:$0xff] }
 0x677   : > { %7228 = vmatmul.msk.f32.gmra.mxu2 %vm4423_vm6, %v10193_v35  ;;  %4718 = vmatpush.msrb.mxu3 %v4079_v10  ;;  %v4252_v10 = vld [vmem:[#allocation4 + $0x678] sm:$0xff] }
 0x678   : > { %4802 = vmatpush.msrb.mxu2 %v4320_v34  ;;  %4787 = vmatpush.msra.mxu0 %v4080_v45  ;;  %v4241_v34 = vld [vmem:[#allocation4 + $0x620] sm:$0xff]  ;;  %v4122_v45 = vld [vmem:[#allocation4 + $0x268] sm:$0xff] }
 0x679   : > { %4719 = vmatpush.msrb.mxu3 %v4069_v33  ;;  %v4242_v33 = vld [vmem:[#allocation4 + $0x628] sm:$0xff] }
 0x67a   : > { %4803 = vmatpush.msrb.mxu2 %v4310_v22  ;;  %4788 = vmatpush.msra.mxu0 %v4070_v50  ;;  %v4231_v22 = vld [vmem:[#allocation4 + $0x5d0] sm:$0xff]  ;;  %v4112_v50 = vld [vmem:[#allocation4 + $0x218] sm:$0xff] }
 0x67b   : > { %4720 = vmatpush.msrb.mxu3 %v4059_v20  ;;  %v4232_v20 = vld [vmem:[#allocation4 + $0x5d8] sm:$0xff] }
 0x67c   : > { %4804 = vmatpush.msrb.mxu2 %v4300_v26  ;;  %4789 = vmatpush.msra.mxu0 %v4060_v3  ;;  %v4221_v26 = vld [vmem:[#allocation4 + $0x580] sm:$0xff]  ;;  %v4102_v3 = vld [vmem:[#allocation4 + $0x1c8] sm:$0xff] }
 0x67d   : > { %4721 = vmatpush.msrb.mxu3 %v4049_v6  ;;  %5021 = vmatmul.f32.vlgmr.msra.gmra.mxu1 %v10069_v41  ;;  %v4351_v41 = vld [vmem:[#allocation4 + $0x990] sm:$0xff]  ;;  %v4447_v6 = vpop.f32.mrf.mxu2 }
 0x67e   : > { %4805 = vmatpush.msrb.mxu2 %v4290_v27  ;;  %4722 = vmatmul.f32.vlgmr.msrb.gmra.mxu3 %v10247_v44  ;;  %v4222_v27 = vld [vmem:[#allocation4 + $0x588] sm:$0xff] }
 0x67f   : > { %4790 = vmatpush.msra.mxu0 %v4050_v58  ;;  %4833 = vmatpush.msra.mxu3 %v10183_v57  ;;  %v4370_v57 = vld [vmem:[#allocation4 + $0xa28] sm:$0xff]  ;;  %v4470_v58 = vpop.f32.mrf.mxu3 }
 0x680   : > { %7229 = vmatmul.msk.f32.vlgmr.msra.gmra.mxu2 %vm4423_vm6, %v10161_v37  ;;  %4791 = vmatmul.f32.vlgmr.msra.gmra.mxu0 %v10247_v44 }
 0x681   : > { %4806 = vmatpush.msrb.mxu2 %v4280_v42  ;;  %4902 = vmatpush.msrb.mxu0 %v10186_v12  ;;  %v4371_v12 = vld [vmem:[#allocation4 + $0xa30] sm:$0xff] }
 0x682   : > { %4834 = vmatpush.msra.mxu3 %v10144_v17  ;;  %v4362_v17 = vld [vmem:[#allocation4 + $0x9e8] sm:$0xff]  ;;  %v4211_v42 = vld [vmem:[#allocation4 + $0x530] sm:$0xff] }
 0x683   : > { %4807 = vmatpush.msrb.mxu2 %v4270_v29  ;;  %4903 = vmatpush.msrb.mxu0 %v10147_v52  ;;  %v4230_v52 = vld [vmem:[#allocation4 + $0x5c8] sm:$0xff]  ;;  %v4092_v29 = vld [vmem:[#allocation4 + $0x178] sm:$0xff] }
 0x684   : > { %4835 = vmatpush.msra.mxu3 %v10112_v46  ;;  %v4240_v46 = vld [vmem:[#allocation4 + $0x618] sm:$0xff] }
 0x685   : > { %4808 = vmatpush.msrb.mxu2 %v4260_v1  ;;  %4904 = vmatpush.msrb.mxu0 %v10115_v32  ;;  %v4352_v32 = vld [vmem:[#allocation4 + $0x998] sm:$0xff] }
 0x686   : > { %4836 = vmatpush.msra.mxu3 %v4370_v57  ;;  %5024 = vmatmul.f32.gmra.mxu1 %v10085_v7  ;;  %v4311_v7 = vld [vmem:[#allocation4 + $0x850] sm:$0xff]  ;;  %v4212_v1 = vld [vmem:[#allocation4 + $0x538] sm:$0xff] }
 0x687   : > { %4809 = vmatpush.msrb.mxu2 %v4250_v13  ;;  %4905 = vmatpush.msrb.mxu0 %v4371_v12  ;;  %v4203_v57 = vld [vmem:[#allocation4 + $0x4f0] sm:$0xff]  ;;  %v4204_v13 = vld [vmem:[#allocation4 + $0x4f8] sm:$0xff]  ;;  %v4193_v12 = vld [vmem:[#allocation4 + $0x4a0] sm:$0xff] }
 0x688   : > { %4867 = vmatpush.msrb.mxu3 %v4361_v8  ;;  %7230 = vmatmul.msk.f32.gmra.mxu2 %vm4423_vm6, %v10193_v35  ;;  %v4082_v8 = vld [vmem:[#allocation4 + $0x128] sm:$0xff] }
 0x689   : > { %4725 = vmatmul.f32.gmra.mxu3 %v10228_v40  ;;  %4936 = vmatpush.msra.mxu0 %v4362_v17  ;;  %v4194_v17 = vld [vmem:[#allocation4 + $0x4a8] sm:$0xff] }
 0x68a   : > { %4794 = vmatmul.f32.gmra.mxu0 %v10228_v40  ;;  %4810 = vmatpush.msrb.mxu2 %v4240_v46  ;;  %v4072_v46 = vld [vmem:[#allocation4 + $0xd8] sm:$0xff] }
 0x68b   : > { %4868 = vmatpush.msrb.mxu3 %v4351_v41  ;;  %4937 = vmatpush.msra.mxu0 %v4352_v32  ;;  %v4183_v41 = vld [vmem:[#allocation4 + $0x450] sm:$0xff]  ;;  %v4062_v32 = vld [vmem:[#allocation4 + $0x88] sm:$0xff] }
 0x68c   : > { %4811 = vmatpush.msrb.mxu2 %v4230_v52  ;;  %v4173_v52 = vld [vmem:[#allocation4 + $0x400] sm:$0xff] }
 0x68d   : > { %4869 = vmatpush.msrb.mxu3 %v4341_v23  ;;  %4938 = vmatpush.msra.mxu0 %v4342_v61  ;;  %v10284_v23 = vpop.f32.mrf.mxu2  ;;  %v4174_v61 = vld [vmem:[#allocation4 + $0x408] sm:$0xff] }
 0x68e   : > { %4812 = vmatpush.msrb.mxu2 %v4220_v25  ;;  %v10288_v25 = vpop.f32.mrf.mxu3 }
 0x68f   : > { %4870 = vmatpush.msrb.mxu3 %v4331_v47  ;;  %4939 = vmatpush.msra.mxu0 %v4332_v18  ;;  %v4052_v47 = vld [vmem:[#allocation4 + $0x38] sm:$0xff]  ;;  %v4163_v18 = vld [vmem:[#allocation4 + $0x3b0] sm:$0xff] }
 0x690   : > { %4813 = vmatpush.msrb.mxu2 %v4210_v4  ;;  %v10291_v4 = vpop.permute.xlu1 %4415 }
 0x691   : > { %7231 = vmatmul.msk.f32.vlgmr.msra.gmra.mxu3 %vm4423_vm6, %v10161_v37  ;;  %4940 = vmatpush.msra.mxu0 %v4322_v55  ;;  %v4154_v55 = vld [vmem:[#allocation4 + $0x368] sm:$0xff] }
 0x692   : > { %4871 = vmatpush.msrb.mxu3 %v4321_v38  ;;  %4913 = vmatpush.msra.mxu2 %v4202_v11  ;;  %v4164_v38 = vld [vmem:[#allocation4 + $0x3b8] sm:$0xff]  ;;  %v4153_v11 = vld [vmem:[#allocation4 + $0x360] sm:$0xff] }
 0x693   : > { %4814 = vmatmul.f32.vlgmr.msrb.gmra.mxu2 %v10270_v53  ;;  %4941 = vmatpush.msra.mxu0 %v4312_v31  ;;  %v4539_v31 = vpop.f32.mrf.mxu1 }
 0x694   : > { %4872 = vmatpush.msrb.mxu3 %v4311_v7  ;;  %4914 = vmatpush.msra.mxu2 %v4192_v16  ;;  %v4516_v7 = vpop.f32.mrf.mxu0  ;;  %v4448_v16 = vadd.f32 %v4447_v6, %v10291_v4 }
 0x695   : > { %4942 = vmatpush.msra.mxu0 %v4302_v62  ;;  %v4517_v62 = vadd.f32 %v4516_v7, %v10291_v4  ;;  %v4053_v7 = vld [vmem:[#allocation4 + $0x40] sm:$0xff] }
 0x696   : > { %4873 = vmatpush.msrb.mxu3 %v4301_v51  ;;  %4915 = vmatpush.msra.mxu2 %v4182_v9  ;;  %v4393_v51 = vld [vmem:[#allocation4 + $0xae0] sm:$0xff]  ;;  %v4143_v9 = vld [vmem:[#allocation4 + $0x310] sm:$0xff] }
 0x697   : > { %4943 = vmatpush.msra.mxu0 %v4292_v59  ;;  %v4383_v59 = vld [vmem:[#allocation4 + $0xa90] sm:$0xff] }
 0x698   : > { %4874 = vmatpush.msrb.mxu3 %v4291_v49  ;;  %4916 = vmatpush.msra.mxu2 %v4172_v14  ;;  %v4144_v49 = vld [vmem:[#allocation4 + $0x318] sm:$0xff]  ;;  %v4471_v14 = vadd.f32 %v4470_v58, %v4448_v16  ;;  %v4294_v16 = vld [vmem:[#allocation4 + $0x7c8] sm:$0xff] }
 0x699   : > { %7232 = vmatmul.msk.f32.gmra.mxu3 %vm4423_vm6, %v10193_v35  ;;  %4944 = vmatpush.msra.mxu0 %v4282_v5 }
 0x69a   : > { %4875 = vmatpush.msrb.mxu3 %v4281_v15  ;;  %4917 = vmatpush.msra.mxu2 %v4162_v48  ;;  %v4133_v15 = vld [vmem:[#allocation4 + $0x2c0] sm:$0xff]  ;;  %v4540_v48 = vadd.f32 %v4539_v31, %v4517_v62  ;;  %v4054_v31 = vld [vmem:[#allocation4 + $0x48] sm:$0xff] }
 0x69b   : > { %4817 = vmatmul.f32.gmra.mxu2 %v10278_v30  ;;  %4945 = vmatpush.msra.mxu0 %v4272_v60  ;;  %v4394_v62 = vld [vmem:[#allocation4 + $0xae8] sm:$0xff] }
 0x69c   : > { %4876 = vmatpush.msrb.mxu3 %v4271_v2  ;;  %4918 = vmatpush.msra.mxu2 %v4152_v39  ;;  %v4373_v2 = vld [vmem:[#allocation4 + $0xa40] sm:$0xff]  ;;  %v4519_v6 = vpop.f32.mrf.mxu0 }
 0x69d   : > { %4946 = vmatpush.msra.mxu0 %v4262_v63 }
 0x69e   : > { %4877 = vmatpush.msrb.mxu3 %v4261_v36  ;;  %4919 = vmatpush.msra.mxu2 %v4142_v28  ;;  %v4123_v36 = vld [vmem:[#allocation4 + $0x270] sm:$0xff]  ;;  %v4364_v28 = vld [vmem:[#allocation4 + $0x9f8] sm:$0xff] }
 0x69f   : > { %4947 = vmatpush.msra.mxu0 %v4252_v10  ;;  %v4113_v10 = vld [vmem:[#allocation4 + $0x220] sm:$0xff] }
 0x6a0   : > { %4878 = vmatpush.msrb.mxu3 %v4251_v19  ;;  %4920 = vmatpush.msra.mxu2 %v4132_v43  ;;  %v4124_v19 = vld [vmem:[#allocation4 + $0x278] sm:$0xff] }
 0x6a1   : > { %4948 = vmatpush.msra.mxu0 %v4242_v33  ;;  %v4114_v33 = vld [vmem:[#allocation4 + $0x228] sm:$0xff] }
 0x6a2   : > { %4879 = vmatpush.msrb.mxu3 %v4241_v34  ;;  %4921 = vmatpush.msra.mxu2 %v4122_v45  ;;  %v4354_v34 = vld [vmem:[#allocation4 + $0x9a8] sm:$0xff] }
 0x6a3   : > { %4949 = vmatpush.msra.mxu0 %v4232_v20  ;;  %v4344_v20 = vld [vmem:[#allocation4 + $0x958] sm:$0xff] }
 0x6a4   : > { %4880 = vmatpush.msrb.mxu3 %v4231_v22  ;;  %4922 = vmatpush.msra.mxu2 %v4112_v50  ;;  %v4103_v50 = vld [vmem:[#allocation4 + $0x1d0] sm:$0xff] }
 0x6a5   : > { %4950 = vmatpush.msra.mxu0 %v4222_v27  ;;  %v4104_v27 = vld [vmem:[#allocation4 + $0x1d8] sm:$0xff] }
 0x6a6   : > { %4881 = vmatpush.msrb.mxu3 %v4221_v26  ;;  %4923 = vmatpush.msra.mxu2 %v4102_v3  ;;  %v10299_v3 = vpop.permute.xlu2 %4420 }
 0x6a7   : > { %7233 = vmatmul.msk.f32.vlgmr.msrb.gmra.mxu0 %vm4423_vm6, %v10161_v37  ;;  %v4184_v37 = vld [vmem:[#allocation4 + $0x458] sm:$0xff] }
 0x6a8   : > { %4882 = vmatpush.msrb.mxu3 %v4211_v42  ;;  %4924 = vmatpush.msra.mxu2 %v4092_v29  ;;  %v4093_v42 = vld [vmem:[#allocation4 + $0x180] sm:$0xff]  ;;  %v4334_v29 = vld [vmem:[#allocation4 + $0x908] sm:$0xff] }
 0x6a9   : > { %4883 = vmatmul.f32.vlgmr.msrb.gmra.mxu3 %v10270_v53  ;;  %4951 = vmatpush.msra.mxu0 %v4212_v1 }
 0x6aa   : > { %4982 = vmatpush.msra.mxu3 %v4203_v57  ;;  %4925 = vmatpush.msra.mxu2 %v4082_v8  ;;  %v4542_v57 = vpop.f32.mrf.mxu1  ;;  %v4520_v8 = vadd.f32 %v4519_v6, %v10299_v3 }
 0x6ab   : > { %5051 = vmatpush.msrb.mxu0 %v4204_v13  ;;  %v4094_v13 = vld [vmem:[#allocation4 + $0x188] sm:$0xff] }
 0x6ac   : > { %4983 = vmatpush.msra.mxu3 %v4193_v12  ;;  %4926 = vmatpush.msra.mxu2 %v4072_v46  ;;  %v4083_v12 = vld [vmem:[#allocation4 + $0x130] sm:$0xff]  ;;  %v4084_v46 = vld [vmem:[#allocation4 + $0x138] sm:$0xff] }
 0x6ad   : > { %5052 = vmatpush.msrb.mxu0 %v4194_v17  ;;  %v4324_v17 = vld [vmem:[#allocation4 + $0x8b8] sm:$0xff] }
 0x6ae   : > { %4984 = vmatpush.msra.mxu3 %v4183_v41  ;;  %4927 = vmatpush.msra.mxu2 %v4062_v32  ;;  %v4543_v41 = vadd.f32 %v4542_v57, %v4520_v8  ;;  %v4314_v32 = vld [vmem:[#allocation4 + $0x868] sm:$0xff] }
 0x6af   : > { %5053 = vmatpush.msrb.mxu0 %v4184_v37  ;;  %v4073_v37 = vld [vmem:[#allocation4 + $0xe0] sm:$0xff] }
 0x6b0   : > { %4985 = vmatpush.msra.mxu3 %v4173_v52  ;;  %7234 = vmatmul.msk.f32.gmra.mxu0 %vm4423_vm6, %v10193_v35  ;;  %v4074_v52 = vld [vmem:[#allocation4 + $0xe8] sm:$0xff] }
 0x6b1   : > { %5054 = vmatpush.msrb.mxu0 %v4174_v61  ;;  %4886 = vmatmul.f32.gmra.mxu3 %v10278_v30  ;;  %v7354_v61 = vld [vmem:[%s11505_s3 + $0x10] sm:$0xff] }
 0x6b2   : > { %4928 = vmatpush.msra.mxu2 %v4052_v47  ;;  %4986 = vmatpush.msra.mxu3 %v4163_v18  ;;  %v4063_v18 = vld [vmem:[#allocation4 + $0x90] sm:$0xff] }
 0x6b3   : > { %4929 = vmatmul.f32.vlgmr.msra.gmra.mxu2 %v10247_v44  ;;  %5055 = vmatpush.msrb.mxu0 %v4164_v38 }
 0x6b4   : > { %5040 = vmatpush.msrb.mxu2 %v10203_v0  ;;  %4987 = vmatpush.msra.mxu3 %v4153_v11  ;;  %v4134_v0 = vld [vmem:[#allocation4 + $0x2c8] sm:$0xff]  ;;  %v4304_v11 = vld [vmem:[#allocation4 + $0x818] sm:$0xff] }
 0x6b5   : > { %5056 = vmatpush.msrb.mxu0 %v4154_v55  ;;  %v4064_v55 = vld [vmem:[#allocation4 + $0x98] sm:$0xff] }
 0x6b6   : > { %5041 = vmatpush.msrb.mxu2 %v4393_v51  ;;  %4988 = vmatpush.msra.mxu3 %v4143_v9  ;;  %v4493_v5 = vpop.f32.mrf.mxu2  ;;  %v4404_v51 = vld [vmem:[#allocation4 + $0xb38] sm:$0xff] }
 0x6b7   : > { %5057 = vmatpush.msrb.mxu0 %v4144_v49  ;;  %v4494_v39 = vadd.f32 %v4493_v5, %v4471_v14  ;;  %v4284_v9 = vld [vmem:[#allocation4 + $0x778] sm:$0xff]  ;;  %v4274_v49 = vld [vmem:[#allocation4 + $0x728] sm:$0xff] }
 0x6b8   : > { %5042 = vmatpush.msrb.mxu2 %v4383_v59  ;;  %4989 = vmatpush.msra.mxu3 %v4133_v15  ;;  %v4562_v60 = vpop.f32.mrf.mxu3  ;;  %v4384_v14 = vld [vmem:[#allocation4 + $0xa98] sm:$0xff]  ;;  %v4374_v15 = vld [vmem:[#allocation4 + $0xa48] sm:$0xff] }
 0x6b9   : > { %5058 = vmatpush.msrb.mxu0 %v4134_v0  ;;  %v4563_v63 = vadd.f32 %v4562_v60, %v4540_v48  ;;  %v5120_v43 = vmul.f32 0.2, %v4494_v39  ;;  %v4264_v59 = vld [vmem:[#allocation4 + $0x6d8] sm:$0xff]  ;;  %v4254_v48 = vld [vmem:[#allocation4 + $0x688] sm:$0xff] }
 0x6ba   : > { %5043 = vmatpush.msrb.mxu2 %v4373_v2  ;;  %4952 = vmatmul.f32.vlgmr.msra.gmra.mxu0 %v10270_v53  ;;  %v4244_v0 = vld [vmem:[#allocation4 + $0x638] sm:$0xff] }
 0x6bb   : > { %4990 = vmatpush.msra.mxu3 %v4123_v36  ;;  %4932 = vmatmul.f32.gmra.mxu2 %v10228_v40  ;;  %v5121_v45 = vmul.f32 0.2, %v4563_v63  ;;  %v5140_v22 = vmax.f32 %v4494_v39, %v5120_v43  ;;  %v4224_v5 = vld [vmem:[#allocation4 + $0x598] sm:$0xff]  ;;  %v4214_v39 = vld [vmem:[#allocation4 + $0x548] sm:$0xff] }
 0x6bc   : > { %5074 = vmatpush.msra.mxu2 %v4364_v28  ;;  %5059 = vmatpush.msrb.mxu0 %v4124_v19 }
 0x6bd   : > { %4991 = vmatpush.msra.mxu3 %v4113_v10  ;;  %v5141_v26 = vmax.f32 %v4563_v63, %v5121_v45  ;;  %v5160_v58 = vsel %vm8374_vm11, %v5140_v22, 0.0 }
 0x6be   : > { %5075 = vmatpush.msra.mxu2 %v4354_v34  ;;  %5060 = vmatpush.msrb.mxu0 %v4114_v33  ;;  %v4654_v33 = vpop.f32.mrf.mxu1 }
 0x6bf   : > { %4992 = vmatpush.msra.mxu3 %v4103_v50  ;;  %v5161_v1 = vsel %vm8383_vm12, %v5141_v26, 0.0  ;;  %5200 = vrot.lane.b32.xlu0 %v5160_v58, %s7566_s1  ;;  %v4655_v6 = vadd.f32 %v4654_v33, %v10291_v4 }
 0x6c0   : > { %5076 = vmatpush.msra.mxu2 %v4344_v20  ;;  %5061 = vmatpush.msrb.mxu0 %v4104_v27  ;;  %v10321_v2 = vpop.f32.mrf.mxu2 }
 0x6c1   : > { %4993 = vmatpush.msra.mxu3 %v4093_v42  ;;  %5202 = vrot.lane.b32.xlu1 %v5161_v1, %s7566_s1 }
 0x6c2   : > { %5077 = vmatpush.msra.mxu2 %v4334_v29  ;;  %5062 = vmatpush.msrb.mxu0 %v4094_v13  ;;  %v4565_v47 = vpop.f32.mrf.mxu3 }
 0x6c3   : > { %4955 = vmatmul.f32.gmra.mxu0 %v10278_v30  ;;  %4994 = vmatpush.msra.mxu3 %v4083_v12  ;;  %v10313_v38 = vadd.f32 %v4565_v47, %v4543_v41 }
 0x6c4   : > { %5078 = vmatpush.msra.mxu2 %v4324_v17  ;;  %5063 = vmatpush.msrb.mxu0 %v4084_v46 }
 0x6c5   : > { %4995 = vmatpush.msra.mxu3 %v4073_v37  ;;  %7237 = vmatmul.msk.f32.vlgmr.msrb.gmra.mxu2 %vm4423_vm6, %v7354_v61 }
 0x6c6   : > { %5079 = vmatpush.msra.mxu2 %v4314_v32  ;;  %5064 = vmatpush.msrb.mxu0 %v4074_v52  ;;  %v4657_v29 = vpop.f32.mrf.mxu1 }
 0x6c7   : > { %4996 = vmatpush.msra.mxu3 %v4063_v18  ;;  %v4658_v8 = vadd.f32 %v4657_v29, %v10299_v3 }
 0x6c8   : > { %5080 = vmatpush.msra.mxu2 %v4304_v11  ;;  %5065 = vmatpush.msrb.mxu0 %v4064_v55 }
 0x6c9   : > { %4997 = vmatpush.msra.mxu3 %v4053_v7 }
 0x6ca   : > { %5081 = vmatpush.msra.mxu2 %v4294_v16  ;;  %4998 = vmatmul.f32.vlgmr.msra.gmra.mxu3 %v10247_v44 }
 0x6cb   : > { %5066 = vmatpush.msrb.mxu0 %v4054_v31  ;;  %5109 = vmatpush.msrb.mxu3 %v4404_v51 }
 0x6cc   : > { %5067 = vmatmul.f32.vlgmr.msrb.gmra.mxu0 %v10247_v44  ;;  %5082 = vmatpush.msra.mxu2 %v4284_v9  ;;  %v4234_v44 = vld [vmem:[#allocation4 + $0x5e8] sm:$0xff] }
 0x6cd   : > { %5110 = vmatpush.msrb.mxu3 %v4394_v62  ;;  %7238 = vmatmul.msk.f32.gmra.mxu2 %vm4423_vm6, %v10193_v35  ;;  %v4631_v35 = vpop.f32.mrf.mxu0 }
 0x6ce   : > { %5083 = vmatpush.msra.mxu2 %v4274_v49  ;;  %v4746_v32 = vpop.f32.mrf.mxu1 }
 0x6cf   : > { %5111 = vmatpush.msrb.mxu3 %v4384_v14 }
 0x6d0   : > { %5084 = vmatpush.msra.mxu2 %v4264_v59 }
 0x6d1   : > { %5112 = vmatpush.msrb.mxu3 %v4374_v15 }
 0x6d2   : > { %5085 = vmatpush.msra.mxu2 %v4254_v48  ;;  %5001 = vmatmul.f32.gmra.mxu3 %v10228_v40 }
 0x6d4   : > { %5070 = vmatmul.f32.gmra.mxu0 %v10228_v40  ;;  %5086 = vmatpush.msra.mxu2 %v4244_v0  ;;  %v7355_v40 = vld [vmem:[%s11505_s3 + $0x28] sm:$0xff] }
 0x6d5   : > { %v4634_v28 = vpop.f32.mrf.mxu0 }
 0x6d6   : > { %5087 = vmatpush.msra.mxu2 %v4234_v44  ;;  %v4749_v51 = vpop.f32.mrf.mxu1 }
 0x6d8   : > { %5088 = vmatpush.msra.mxu2 %v4224_v5 }
 0x6da   : > { %5089 = vmatpush.msra.mxu2 %v4214_v39  ;;  %7239 = vmatmul.msk.f32.vlgmr.msrb.gmra.mxu3 %vm4423_vm6, %v7354_v61 }
 0x6db   : > { %5090 = vmatmul.f32.vlgmr.msra.gmra.mxu2 %v10270_v53 }
 0x6dd   : > { %v4677_v50 = vpop.f32.mrf.mxu0 }
 0x6de   : > { %v4585_v60 = vpop.f32.mrf.mxu2  ;;  %v4678_v27 = vadd.f32 %v4677_v50, %v4655_v6 }
 0x6df   : > { %v4586_v36 = vadd.f32 %v4585_v60, %v10291_v4 }
 0x6e1   : > { %v4608_v63 = vpop.f32.mrf.mxu3 }
 0x6e2   : > { %7240 = vmatmul.msk.f32.gmra.mxu3 %vm4423_vm6, %v7355_v40  ;;  %v4609_v19 = vadd.f32 %v4608_v63, %v4586_v36  ;;  %vm11775_vm6 = vcmask 1047832  }
 0x6e3   : > { %5093 = vmatmul.f32.gmra.mxu2 %v10278_v30  ;;  %vm11780_vm4 = vmmov %vm11775_vm6 }
 0x6e4   : > { %v4632_v43 = vadd.f32 %v4631_v35, %v4609_v19 }
 0x6e5   : > { %v4680_v57 = vpop.f32.mrf.mxu0 }
 0x6e6   : > { %v5122_v10 = vmul.f32 0.2, %v4632_v43  ;;  %v4681_v17 = vadd.f32 %v4680_v57, %v4658_v8 }
 0x6e8   : > { %v5142_v34 = vmax.f32 %v4632_v43, %v5122_v10 }
 0x6e9   : > { %v4588_v45 = vpop.f32.mrf.mxu2 }
 0x6ea   : > { %v4589_v53 = vadd.f32 %v4588_v45, %v10299_v3  ;;  %v5162_v22 = vsel %vm8394_vm13, %v5142_v34, 0.0  ;;  %v4861_v45 = vpop.f32.mrf.mxu1 }
 0x6eb   : > { %v4611_v20 = vpop.f32.mrf.mxu3  ;;  %5204 = vrot.lane.b32.xlu2 %v5162_v22, %s7566_s1  ;;  %v4862_v33 = vadd.f32 %v4861_v45, %v10291_v4 }
 0x6ec   : > { %v4612_v26 = vadd.f32 %v4611_v20, %v4589_v53 }
 0x6ee   : > { %v10336_v30 = vadd.f32 %v4634_v28, %v4612_v26 }
 0x6f1   : > { %v4700_v58 = vpop.f32.mrf.mxu2 }
 0x6f2   : > { %v4701_v42 = vadd.f32 %v4700_v58, %v4678_v27  ;;  %v4864_v26 = vpop.f32.mrf.mxu1 }
 0x6f4   : > { %v5123_v1 = vmul.f32 0.2, %v4701_v42 }
 0x6f6   : > { %v5143_v13 = vmax.f32 %v4701_v42, %v5123_v1 }
 0x6f8   : > { %v5163_v12 = vsel %vm8398_vm14, %v5143_v13, 0.0 }
 0x6f9   : > { %5206 = vrot.lane.b32.xlu0 %v5163_v12, %s7566_s1 }
 0x6fa   : > { %v4703_v46 = vpop.f32.mrf.mxu2 }
 0x6fb   : > { %v10342_v41 = vadd.f32 %v4703_v46, %v4681_v17  ;;  %v4976_v17 = vpop.f32.mrf.mxu1  ;;  %v4451_v46 = vadd.f32 %v10284_v23, %v10299_v3 }
 0x6fd   : > { %v4792_v14 = vpop.f32.mrf.mxu0 }
 0x6fe   : > { %v4793_v48 = vadd.f32 %v4792_v14, %v10291_v4 }
 0x701   : > { %v4723_v37 = vpop.f32.mrf.mxu3 }
 0x702   : > { %v4724_v52 = vadd.f32 %v4723_v37, %v10291_v4 }
 0x703   : > { %v4769_v61 = vpop.f32.mrf.mxu2 }
 0x704   : > { %v4747_v47 = vadd.f32 %v4746_v32, %v4724_v52  ;;  %v4474_v52 = vadd.f32 %v10288_v25, %v4451_v46 }
 0x706   : > { %v4770_v18 = vadd.f32 %v4769_v61, %v4747_v47  ;;  %v4497_v47 = vadd.f32 %v10321_v2, %v4474_v52  ;;  %v5133_v2 = vmul.f32 0.2, %v10342_v41 }
 0x707   : > { %v4795_v35 = vpop.f32.mrf.mxu0 }
 0x708   : > { %v5124_v11 = vmul.f32 0.2, %v4770_v18  ;;  %v4796_v60 = vadd.f32 %v4795_v35, %v10299_v3 }
 0x70a   : > { %v5144_v55 = vmax.f32 %v4770_v18, %v5124_v11 }
 0x70b   : > { %v4772_v31 = vpop.f32.mrf.mxu2 }
 0x70c   : > { %v4726_v7 = vpop.f32.mrf.mxu3  ;;  %v5164_v62 = vsel %vm8470_vm15, %v5144_v55, 0.0  ;;  %v5130_v55 = vmul.f32 0.2, %v4497_v47 }
 0x70d   : > { %v4727_v16 = vadd.f32 %v4726_v7, %v10299_v3  ;;  %5208 = vrot.lane.b32.xlu1 %v5164_v62, %s7566_s1  ;;  %v4979_v62 = vpop.f32.mrf.mxu1 }
 0x70e   : > { %v5150_v23 = vmax.f32 %v4497_v47, %v5130_v55 }
 0x70f   : > { %v4750_v49 = vadd.f32 %v4749_v51, %v4727_v16 }
 0x711   : > { %v10349_v59 = vadd.f32 %v4772_v31, %v4750_v49  ;;  %v4865_v49 = vadd.f32 %v4864_v26, %v10299_v3 }
 0x714   : > { %v4838_v15 = vpop.f32.mrf.mxu3 }
 0x716   : > { %v4815_v0 = vpop.f32.mrf.mxu2 }
 0x717   : > { %v4816_v44 = vadd.f32 %v4815_v0, %v4793_v48  ;;  %v5170_v48 = vsel %vm8374_vm11, %v5150_v23, 0.0 }
 0x719   : > { %v4839_v5 = vadd.f32 %v4838_v15, %v4816_v44  ;;  %v5153_v44 = vmax.f32 %v10342_v41, %v5133_v2  ;;  %v5131_v41 = vmul.f32 0.2, %v10313_v38 }
 0x71b   : > { %v5125_v39 = vmul.f32 0.2, %v4839_v5 }
 0x71c   : > { %v4841_v28 = vpop.f32.mrf.mxu3 }
 0x71d   : > { %v5145_v36 = vmax.f32 %v4839_v5, %v5125_v39  ;;  %v5022_v39 = vpop.f32.mrf.mxu1 }
 0x71e   : > { %v4818_v40 = vpop.f32.mrf.mxu2 }
 0x71f   : > { %v4819_v63 = vadd.f32 %v4818_v40, %v4796_v60  ;;  %v5165_v43 = vsel %vm8474_vm9, %v5145_v36, 0.0 }
 0x720   : > { %5210 = vrot.lane.b32.xlu2 %v5165_v43, %s7566_s1 }
 0x721   : > { %v10356_v10 = vadd.f32 %v4841_v28, %v4819_v63  ;;  %v5173_v63 = vsel %vm8398_vm14, %v5153_v44, 0.0 }
 0x724   : > { %v4907_v34 = vpop.f32.mrf.mxu0 }
 0x725   : > { %v5025_v44 = vpop.f32.mrf.mxu1 }
 0x72c   : > { %v4884_v53 = vpop.f32.mrf.mxu3 }
 0x72d   : > { %v4885_v22 = vadd.f32 %v4884_v53, %v4862_v33  ;;  %v4910_v50 = vpop.f32.mrf.mxu0 }
 0x72f   : > { %v4908_v20 = vadd.f32 %v4907_v34, %v4885_v22 }
 0x731   : > { %v5126_v6 = vmul.f32 0.2, %v4908_v20  ;;  %v5201_v27 = vpop.permute.xlu0 %5200 }
 0x732   : > { %5278 = vst.msk [vmem:[#allocation3] sm:$0xff] %vm11775_vm6, %v5201_v27  ;;  %vm11783_vm6 = vmmov %vm11781_vm8 }
 0x733   : > { %v5146_v58 = vmax.f32 %v4908_v20, %v5126_v6  ;;  %v5203_v42 = vpop.permute.xlu1 %5202 }
 0x734   : > { %v10363_v57 = vsel %vm1638_vm5, %v5201_v27, %v5203_v42  ;;  %v4887_v51 = vpop.f32.mrf.mxu3  ;;  %v5151_v27 = vmax.f32 %v10313_v38, %v5131_v41 }
 0x735   : > { %v5166_v1 = vsel %vm8481_vm10, %v5146_v58, 0.0  ;;  %5319 = vst [vmem:[#allocation4 + $0x8] sm:$0xff] %v10363_v57  ;;  %v4888_v15 = vadd.f32 %v4887_v51, %v4865_v49 }
 0x736   : > { %v4930_v13 = vpop.f32.mrf.mxu2  ;;  %5212 = vrot.lane.b32.xlu0 %v5166_v1, %s7566_s1  ;;  %v5171_v46 = vsel %vm8383_vm12, %v5151_v27, 0.0 }
 0x737   : > { %v4931_v8 = vadd.f32 %v4930_v13, %v10291_v4  ;;  %v4953_v12 = vpop.f32.mrf.mxu0  ;;  %v4911_v5 = vadd.f32 %v4910_v50, %v4888_v15 }
 0x739   : > { %v4954_v37 = vadd.f32 %v4953_v12, %v4931_v8  ;;  %v10370_v32 = vld [vmem:[#allocation3] sm:$0xff]  ;;  %v5136_v28 = vmul.f32 0.2, %v4911_v5  ;;  %v5134_v12 = vmul.f32 0.2, %v10349_v59 }
 0x73a   : > { %5318 = vst [vmem:[#allocation4] sm:$0xff] %v10370_v32 }
 0x73b   : > { %v4977_v61 = vadd.f32 %v4976_v17, %v4954_v37  ;;  %v5156_v33 = vmax.f32 %v4911_v5, %v5136_v28  ;;  %v5154_v38 = vmax.f32 %v10349_v59, %v5134_v12 }
 0x73d   : > { %v5127_v18 = vmul.f32 0.2, %v4977_v61  ;;  %v5176_v6 = vsel %vm8481_vm10, %v5156_v33, 0.0  ;;  %v5174_v2 = vsel %vm8470_vm15, %v5154_v38, 0.0 }
 0x73e   : > { %v4933_v31 = vpop.f32.mrf.mxu2 }
 0x73f   : > { %v5147_v11 = vmax.f32 %v4977_v61, %v5127_v18  ;;  %v4934_v58 = vadd.f32 %v4933_v31, %v10299_v3 }
 0x740   : > { %v4956_v36 = vpop.f32.mrf.mxu0 }
 0x741   : > { %v5167_v16 = vsel %vm8495_vm1, %v5147_v11, 0.0  ;;  %v4957_v17 = vadd.f32 %v4956_v36, %v4934_v58 }
 0x742   : > { %5214 = vrot.lane.b32.xlu1 %v5167_v16, %s7566_s1  ;;  %v5132_v16 = vmul.f32 0.2, %v10336_v30 }
 0x743   : > { %v4980_v47 = vadd.f32 %v4979_v62, %v4957_v17 }
 0x744   : > { %v5152_v59 = vmax.f32 %v10336_v30, %v5132_v16 }
 0x745   : > { %v10379_v25 = vpop.permute.xlu2 %5204  ;;  %v5137_v49 = vmul.f32 0.2, %v4980_v47 }
 0x746   : > { %v10383_v14 = vsel %vm1638_vm5, %v5203_v42, %v10379_v25 }
 0x747   : > { %5320 = vst [vmem:[#allocation4 + $0x10] sm:$0xff] %v10383_v14 }
 0x748   : > { %v5045_v0 = vpop.f32.mrf.mxu2 }
 0x749   : > { %v5068_v50 = vpop.f32.mrf.mxu0 }
 0x74a   : > { %5220 = vrot.lane.b32.xlu1 %v5170_v48, %s7566_s1  ;;  %v5069_v42 = vadd.f32 %v5068_v50, %v10291_v4 }
 0x74d   : > { %v4999_v35 = vpop.f32.mrf.mxu3 }
 0x74e   : > { %v5000_v60 = vadd.f32 %v4999_v35, %v10291_v4 }
 0x750   : > { %v5023_v40 = vadd.f32 %v5022_v39, %v5000_v60  ;;  %v5048_v45 = vpop.f32.mrf.mxu2  ;;  %v5135_v60 = vmul.f32 0.2, %v10356_v10 }
 0x751   : > { %v5071_v52 = vpop.f32.mrf.mxu0 }
 0x752   : > { %v5046_v43 = vadd.f32 %v5045_v0, %v5023_v40  ;;  %5226 = vrot.lane.b32.xlu1 %v5173_v63, %s7566_s1  ;;  %v5072_v18 = vadd.f32 %v5071_v52, %v10299_v3  ;;  %v5157_v0 = vmax.f32 %v4980_v47, %v5137_v49 }
 0x754   : > { %v5128_v34 = vmul.f32 0.2, %v5046_v43  ;;  %v5177_v30 = vsel %vm8495_vm1, %v5157_v0, 0.0 }
 0x755   : > { %v5002_v53 = vpop.f32.mrf.mxu3 }
 0x756   : > { %v5148_v22 = vmax.f32 %v5046_v43, %v5128_v34  ;;  %v5003_v62 = vadd.f32 %v5002_v53, %v10299_v3  ;;  %v5172_v3 = vsel %vm8394_vm13, %v5152_v59, 0.0 }
 0x758   : > { %v5168_v26 = vsel %vm8548_vm2, %v5148_v22, 0.0  ;;  %v5026_v36 = vadd.f32 %v5025_v44, %v5003_v62 }
 0x759   : > { %5216 = vrot.lane.b32.xlu2 %v5168_v26, %s7566_s1 }
 0x75a   : > { %5232 = vrot.lane.b32.xlu1 %v5176_v6, %s7566_s1  ;;  %v5049_v28 = vadd.f32 %v5048_v45, %v5026_v36 }
 0x75c   : > { %v5138_v63 = vmul.f32 0.2, %v5049_v28 }
 0x75d   : > { %v5114_v1 = vpop.f32.mrf.mxu3 }
 0x75e   : > { %v5091_v13 = vpop.f32.mrf.mxu2  ;;  %v5158_v34 = vmax.f32 %v5049_v28, %v5138_v63 }
 0x75f   : > { %v5092_v8 = vadd.f32 %v5091_v13, %v5069_v42 }
 0x760   : > { %v5178_v33 = vsel %vm8548_vm2, %v5158_v34, 0.0 }
 0x761   : > { %v5115_v37 = vadd.f32 %v5114_v1, %v5092_v8  ;;  %5222 = vrot.lane.b32.xlu2 %v5171_v46, %s7566_s1 }
 0x763   : > { %v5129_v61 = vmul.f32 0.2, %v5115_v37 }
 0x765   : > { %v5149_v4 = vmax.f32 %v5115_v37, %v5129_v61  ;;  %v5117_v55 = vpop.f32.mrf.mxu3 }
 0x766   : > { %v5094_v11 = vpop.f32.mrf.mxu2 }
 0x767   : > { %v5095_v31 = vadd.f32 %v5094_v11, %v5072_v18  ;;  %v5169_v51 = vsel %vm8553_vm3, %v5149_v4, 0.0 }
 0x768   : > { %5218 = vrot.lane.b32.xlu0 %v5169_v51, %s7566_s1 }
 0x769   : > { %v5118_v15 = vadd.f32 %v5117_v55, %v5095_v31  ;;  %5228 = vrot.lane.b32.xlu2 %v5174_v2, %s7566_s1 }
 0x76b   : > { %v5139_v48 = vmul.f32 0.2, %v5118_v15  ;;  %v5207_v5 = vpop.permute.xlu0 %5206 }
 0x76c   : > { %v10422_v39 = vsel %vm1638_vm5, %v10379_v25, %v5207_v5  ;;  %v5155_v25 = vmax.f32 %v10356_v10, %v5135_v60 }
 0x76d   : > { %v5159_v35 = vmax.f32 %v5118_v15, %v5139_v48  ;;  %5281 = vst [vmem:[#allocation3 + $0x18] sm:$0xff] %v10422_v39 }
 0x76e   : > { %5321 = vst [vmem:[#allocation4 + $0x18] sm:$0xff] %v10422_v39  ;;  %v5175_v43 = vsel %vm8474_vm9, %v5155_v25, 0.0 }
 0x76f   : > { %v5179_v40 = vsel %vm8553_vm3, %v5159_v35, 0.0 }
 0x770   : > { %5238 = vrot.lane.b32.xlu1 %v5179_v40, %s7566_s1  ;;  %5224 = vrot.lane.b32.xlu0 %v5172_v3, %s7566_s1 }
 0x771   : > { %5234 = vrot.lane.b32.xlu2 %v5177_v30, %s7566_s1 }
 0x778   : > { %5382 = vrot.lane.b32.xlu1 %v10383_v14, %s7557_s5  ;;  %5230 = vrot.lane.b32.xlu0 %v5175_v43, %s7566_s1 }
 0x779   : > { %5378 = vrot.lane.b32.xlu2 %v10370_v32, %s7557_s5 }
 0x77a   : > { %v5211_v10 = vpop.permute.xlu2 %5210 }
 0x77f   : > { %v5209_v45 = vpop.permute.xlu1 %5208 }
 0x780   : > { %5236 = vrot.lane.b32.xlu0 %v5178_v33, %s7566_s1  ;;  %v10450_v53 = vsel %vm1638_vm5, %v5207_v5, %v5209_v45  ;;  %v10453_v22 = vsel %vm1638_vm5, %v5209_v45, %v5211_v10 }
 0x781   : > { %5384 = vrot.lane.b32.xlu2 %v10422_v39, %s7557_s5  ;;  %5282 = vst [vmem:[#allocation3 + $0x20] sm:$0xff] %v10450_v53  ;;  %5388 = vrot.lane.b32.xlu1 %v10453_v22, %s7557_s5 }
 0x782   : > { %5283 = vst [vmem:[#allocation3 + $0x28] sm:$0xff] %v10453_v22 }
 0x783   : > { %5322 = vst [vmem:[#allocation4 + $0x20] sm:$0xff] %v10450_v53 }
 0x784   : > { %5323 = vst [vmem:[#allocation4 + $0x28] sm:$0xff] %v10453_v22 }
 0x788   : > { %5380 = vrot.lane.b32.xlu0 %v10363_v57, %s7557_s5 }
 0x790   : > { %5386 = vrot.lane.b32.xlu0 %v10450_v53, %s7557_s5 }
 0x7a8   : > { %v5213_v41 = vpop.permute.xlu0 %5212 }
 0x7a9   : > { %v10466_v50 = vsel %vm1638_vm5, %v5211_v10, %v5213_v41 }
 0x7aa   : > { %5284 = vst [vmem:[#allocation3 + $0x30] sm:$0xff] %v10466_v50  ;;  %5390 = vrot.lane.b32.xlu2 %v10466_v50, %s7557_s5 }
 0x7ab   : > { %5324 = vst [vmem:[#allocation4 + $0x30] sm:$0xff] %v10466_v50 }
 0x7b3   : > { %v5217_v26 = vpop.permute.xlu2 %5216 }
 0x7b4   : > { %v5215_v6 = vpop.permute.xlu1 %5214 }
 0x7b5   : > { %v10473_v27 = vsel %vm1638_vm5, %v5213_v41, %v5215_v6  ;;  %v10476_v58 = vsel %vm1638_vm5, %v5215_v6, %v5217_v26 }
 0x7b6   : > { %5285 = vst [vmem:[#allocation3 + $0x38] sm:$0xff] %v10473_v27  ;;  %5394 = vrot.lane.b32.xlu1 %v10476_v58, %s7557_s5  ;;  %5392 = vrot.lane.b32.xlu0 %v10473_v27, %s7557_s5 }
 0x7b7   : > { %5286 = vst [vmem:[#allocation3 + $0x40] sm:$0xff] %v10476_v58 }
 0x7b8   : > { %5325 = vst [vmem:[#allocation4 + $0x38] sm:$0xff] %v10473_v27 }
 0x7b9   : > { %5326 = vst [vmem:[#allocation4 + $0x40] sm:$0xff] %v10476_v58 }
 0x7bb   : > { %v5223_v42 = vpop.permute.xlu2 %5222 }
 0x7bc   : > { %v5221_v1 = vpop.permute.xlu1 %5220 }
 0x7bd   : > { %v10487_v13 = vsel %vm1638_vm5, %v5221_v1, %v5223_v42  ;;  %5288 = vst.msk [vmem:[#allocation3 + $0x50] sm:$0xff] %vm11780_vm4, %v5221_v1  ;;  %vm11784_vm4 = vmmov %vm11782_vm7 }
 0x7be   : > { %5400 = vrot.lane.b32.xlu1 %v10487_v13, %s7557_s5  ;;  %5329 = vst [vmem:[#allocation4 + $0x58] sm:$0xff] %v10487_v13 }
 0x7c3   : > { %v5229_v8 = vpop.permute.xlu2 %5228 }
 0x7c4   : > { %v10493_v12 = vld [vmem:[#allocation3 + $0x50] sm:$0xff]  ;;  %v5227_v17 = vpop.permute.xlu1 %5226 }
 0x7c5   : > { %5328 = vst [vmem:[#allocation4 + $0x50] sm:$0xff] %v10493_v12  ;;  %v10497_v46 = vsel %vm1638_vm5, %v5227_v17, %v5229_v8  ;;  %5398 = vrot.lane.b32.xlu0 %v10493_v12, %s7557_s5 }
 0x7c6   : > { %5406 = vrot.lane.b32.xlu1 %v10497_v46, %s7557_s5  ;;  %5332 = vst [vmem:[#allocation4 + $0x70] sm:$0xff] %v10497_v46 }
 0x7cb   : > { %v5235_v37 = vpop.permute.xlu2 %5234 }
 0x7cc   : > { %v5233_v52 = vpop.permute.xlu1 %5232 }
 0x7cd   : > { %v10505_v61 = vsel %vm1638_vm5, %v5233_v52, %v5235_v37 }
 0x7ce   : > { %5295 = vst [vmem:[#allocation3 + $0x88] sm:$0xff] %v10505_v61  ;;  %5412 = vrot.lane.b32.xlu1 %v10505_v61, %s7557_s5 }
 0x7cf   : > { %5335 = vst [vmem:[#allocation4 + $0x88] sm:$0xff] %v10505_v61 }
 0x7d3   : > { %v5379_v18 = vpop.permute.xlu2 %5378 }
 0x7d6   : > { %5516 = vrot.lane.b32.xlu1 %v10370_v32, %s7558_s29 }
 0x7da   : > { %v5219_v38 = vpop.permute.xlu0 %5218 }
 0x7db   : > { %v5248_v47 = vsel %vm1638_vm5, %v5217_v26, %v5219_v38  ;;  %v5385_v51 = vpop.permute.xlu2 %5384 }
 0x7dc   : > { %5287 = vst.msk [vmem:[#allocation3 + $0x48] sm:$0xff] %vm11781_vm8, %v5248_v47  ;;  %vm11785_vm8 = vmmov %vm11784_vm4 }
 0x7de   : > { %5522 = vrot.lane.b32.xlu1 %v10422_v39, %s7558_s29 }
 0x7e2   : > { %v5239_v4 = vpop.permute.xlu1 %5238  ;;  %v5225_v11 = vpop.permute.xlu0 %5224 }
 0x7e3   : > { %v10517_v55 = vld [vmem:[#allocation3 + $0x48] sm:$0xff]  ;;  %v10520_v16 = vsel %vm1638_vm5, %v5223_v42, %v5225_v11  ;;  %v10523_v31 = vsel %vm1638_vm5, %v5225_v11, %v5227_v17 }
 0x7e4   : > { %5327 = vst.msk [vmem:[#allocation4 + $0x48] sm:$0xff] %vm11557_vm0, %v10517_v55  ;;  %5396 = vrot.lane.b32.xlu2 %v10517_v55, %s7557_s5  ;;  %5404 = vrot.lane.b32.xlu0 %v10523_v31, %s7557_s5 }
 0x7e5   : > { %5330 = vst [vmem:[#allocation4 + $0x60] sm:$0xff] %v10520_v16 }
 0x7e6   : > { %5528 = vrot.lane.b32.xlu1 %v10466_v50, %s7558_s29  ;;  %5331 = vst [vmem:[#allocation4 + $0x68] sm:$0xff] %v10523_v31 }
 0x7ea   : > { %v5383_v49 = vpop.permute.xlu1 %5382  ;;  %v5231_v2 = vpop.permute.xlu0 %5230 }
 0x7eb   : > { %v5420_v15 = vsel %vm11782_vm7, %v5383_v49, %v5385_v51  ;;  %v10537_v59 = vsel %vm1638_vm5, %v5229_v8, %v5231_v2  ;;  %v10540_v62 = vsel %vm1638_vm5, %v5231_v2, %v5233_v52  ;;  %vm11787_vm7 = vmmov %vm11784_vm4 }
 0x7ec   : > { %5458 = vst [vmem:[#allocation4 + $0xb0] sm:$0xff] %v5420_v15  ;;  %5402 = vrot.lane.b32.xlu2 %v10520_v16, %s7557_s5  ;;  %5410 = vrot.lane.b32.xlu0 %v10540_v62, %s7557_s5 }
 0x7ed   : > { %5294 = vst [vmem:[#allocation3 + $0x80] sm:$0xff] %v10540_v62 }
 0x7ee   : > { %5534 = vrot.lane.b32.xlu1 %v10517_v55, %s7558_s29  ;;  %5333 = vst [vmem:[#allocation4 + $0x78] sm:$0xff] %v10537_v59 }
 0x7ef   : > { %5334 = vst [vmem:[#allocation4 + $0x80] sm:$0xff] %v10540_v62 }
 0x7f2   : > { %v5237_v48 = vpop.permute.xlu0 %5236 }
 0x7f3   : > { %v10552_v0 = vsel %vm1638_vm5, %v5235_v37, %v5237_v48  ;;  %v5257_v44 = vsel %vm1638_vm5, %v5237_v48, %v5239_v4  ;;  %v5389_v40 = vpop.permute.xlu1 %5388  ;;  %vm11786_vm5 = vmmov %vm11784_vm4 }
 0x7f4   : > { %5296 = vst [vmem:[#allocation3 + $0x90] sm:$0xff] %v10552_v0  ;;  %5408 = vrot.lane.b32.xlu2 %v10537_v59, %s7557_s5 }
 0x7f5   : > { %5297 = vst.msk [vmem:[#allocation3 + $0x98] sm:$0xff] %vm11783_vm6, %v5257_v44  ;;  %vm11788_vm6 = vmmov %vm11784_vm4 }
 0x7f6   : > { %5336 = vst [vmem:[#allocation4 + $0x90] sm:$0xff] %v10552_v0  ;;  %5540 = vrot.lane.b32.xlu1 %v10520_v16, %s7558_s29 }
 0x7fa   : > { %v5381_v5 = vpop.permute.xlu0 %5380 }
 0x7fb   : > { %v5418_v35 = vsel %vm11784_vm4, %v5379_v18, %v5381_v5  ;;  %v5419_v60 = vsel %vm11785_vm8, %v5381_v5, %v5383_v49  ;;  %vm11789_vm8 = vmmov %vm11784_vm4 }
 0x7fc   : > { %v10564_v36 = vld [vmem:[#allocation3 + $0x98] sm:$0xff]  ;;  %5456 = vst [vmem:[#allocation4 + $0xa0] sm:$0xff] %v5418_v35  ;;  %5414 = vrot.lane.b32.xlu2 %v10552_v0, %s7557_s5 }
 0x7fd   : > { %5337 = vst.msk [vmem:[#allocation4 + $0x98] sm:$0xff] %vm11557_vm0, %v10564_v36  ;;  %5416 = vrot.lane.b32.xlu0 %v10564_v36, %s7557_s5 }
 0x7fe   : > { %5457 = vst [vmem:[#allocation4 + $0xa8] sm:$0xff] %v5419_v60  ;;  %5546 = vrot.lane.b32.xlu1 %v10537_v59, %s7558_s29 }
 0x802   : > { %v5387_v3 = vpop.permute.xlu0 %5386 }
 0x803   : > { %v5421_v30 = vsel %vm11786_vm5, %v5385_v51, %v5387_v3  ;;  %v5422_v25 = vsel %vm11787_vm7, %v5387_v3, %v5389_v40  ;;  %vm11790_vm5 = vmmov %vm11784_vm4 }
 0x804   : > { %5459 = vst [vmem:[#allocation4 + $0xb8] sm:$0xff] %v5421_v30  ;;  %5518 = vrot.lane.b32.xlu2 %v10363_v57, %s7558_s29  ;;  %v5391_v28 = vpop.permute.xlu2 %5390  ;;  %vm11791_vm7 = vmmov %vm11784_vm4 }
 0x805   : > { %5460 = vst [vmem:[#allocation4 + $0xc0] sm:$0xff] %v5422_v25  ;;  %5520 = vrot.lane.b32.xlu0 %v10383_v14, %s7558_s29  ;;  %v5423_v63 = vsel %vm11788_vm6, %v5389_v40, %v5391_v28  ;;  %vm11792_vm6 = vmmov %vm11784_vm4 }
 0x806   : > { %5461 = vst [vmem:[#allocation4 + $0xc8] sm:$0xff] %v5423_v63  ;;  %5552 = vrot.lane.b32.xlu1 %v10552_v0, %s7558_s29 }
 0x80c   : > { %5524 = vrot.lane.b32.xlu2 %v10450_v53, %s7558_s29 }
 0x80d   : > { %5526 = vrot.lane.b32.xlu0 %v10453_v22, %s7558_s29 }
 0x80e   : > { %5656 = vrot.lane.b32.xlu1 %v10363_v57, %s7559_s13 }
 0x814   : > { %5530 = vrot.lane.b32.xlu2 %v10473_v27, %s7558_s29 }
 0x815   : > { %5532 = vrot.lane.b32.xlu0 %v10476_v58, %s7558_s29 }
 0x816   : > { %5662 = vrot.lane.b32.xlu1 %v10450_v53, %s7559_s13 }
 0x81c   : > { %5536 = vrot.lane.b32.xlu2 %v10493_v12, %s7558_s29 }
 0x81d   : > { %5538 = vrot.lane.b32.xlu0 %v10487_v13, %s7558_s29 }
 0x81e   : > { %5668 = vrot.lane.b32.xlu1 %v10473_v27, %s7559_s13 }
 0x824   : > { %5542 = vrot.lane.b32.xlu2 %v10523_v31, %s7558_s29 }
 0x825   : > { %5544 = vrot.lane.b32.xlu0 %v10497_v46, %s7558_s29 }
 0x826   : > { %5674 = vrot.lane.b32.xlu1 %v10493_v12, %s7559_s13 }
 0x828   : > { %v5395_v43 = vpop.permute.xlu1 %5394  ;;  %v5393_v34 = vpop.permute.xlu0 %5392 }
 0x829   : > { %v5424_v33 = vsel %vm11784_vm4, %v5391_v28, %v5393_v34  ;;  %v5425_v10 = vsel %vm11789_vm8, %v5393_v34, %v5395_v43  ;;  %vm11793_vm8 = vmmov %vm11784_vm4 }
 0x82a   : > { %5462 = vst [vmem:[#allocation4 + $0xd0] sm:$0xff] %v5424_v33 }
 0x82b   : > { %5463 = vst [vmem:[#allocation4 + $0xd8] sm:$0xff] %v5425_v10 }
 0x82c   : > { %5548 = vrot.lane.b32.xlu2 %v10540_v62, %s7558_s29 }
 0x82d   : > { %5550 = vrot.lane.b32.xlu0 %v10505_v61, %s7558_s29 }
 0x82e   : > { %5680 = vrot.lane.b32.xlu1 %v10523_v31, %s7559_s13 }
 0x830   : > { %v5401_v45 = vpop.permute.xlu1 %5400 }
 0x834   : > { %5554 = vrot.lane.b32.xlu2 %v10564_v36, %s7558_s29 }
 0x835   : > { %5654 = vrot.lane.b32.xlu0 %v10370_v32, %s7559_s13 }
 0x836   : > { %5686 = vrot.lane.b32.xlu1 %v10540_v62, %s7559_s13 }
 0x837   : > { %v5399_v41 = vpop.permute.xlu0 %5398 }
 0x838   : > { %v5427_v26 = vsel %vm11790_vm5, %v5399_v41, %v5401_v45  ;;  %v5407_v6 = vpop.permute.xlu1 %5406  ;;  %vm11794_vm5 = vmmov %vm11784_vm4 }
 0x839   : > { %5466 = vst [vmem:[#allocation4 + $0xf0] sm:$0xff] %v5427_v26 }
 0x83c   : > { %5658 = vrot.lane.b32.xlu2 %v10383_v14, %s7559_s13 }
 0x83d   : > { %5660 = vrot.lane.b32.xlu0 %v10422_v39, %s7559_s13 }
 0x83e   : > { %v5397_v42 = vpop.permute.xlu2 %5396  ;;  %5692 = vrot.lane.b32.xlu1 %v10564_v36, %s7559_s13 }
 0x83f   : > { %v5426_v1 = vsel %vm11791_vm7, %v5395_v43, %v5397_v42  ;;  %5465 = vst.msk [vmem:[#allocation4 + $0xe8] sm:$0xff] %vm11557_vm0, %v5397_v42  ;;  %vm11795_vm7 = vmmov %vm11784_vm4 }
 0x840   : > { %5464 = vst [vmem:[#allocation4 + $0xe0] sm:$0xff] %v5426_v1  ;;  %v5413_v8 = vpop.permute.xlu1 %5412 }
 0x844   : > { %5664 = vrot.lane.b32.xlu2 %v10453_v22, %s7559_s13 }
 0x845   : > { %5666 = vrot.lane.b32.xlu0 %v10466_v50, %s7559_s13 }
 0x846   : > { %v5403_v17 = vpop.permute.xlu2 %5402  ;;  %5796 = vrot.lane.b32.xlu1 %v10383_v14, %s7560_s18 }
 0x847   : > { %v10637_v37 = vsel %vm11792_vm6, %v5401_v45, %v5403_v17  ;;  %vm11796_vm6 = vcmask 1031168  }
 0x848   : > { %5467 = vst [vmem:[#allocation4 + $0xf8] sm:$0xff] %v10637_v37  ;;  %v5517_v52 = vpop.permute.xlu1 %5516 }
 0x84c   : > { %5670 = vrot.lane.b32.xlu2 %v10476_v58, %s7559_s13 }
 0x84d   : > { %5672 = vrot.lane.b32.xlu0 %v10517_v55, %s7559_s13 }
 0x84e   : > { %v5409_v38 = vpop.permute.xlu2 %5408  ;;  %5802 = vrot.lane.b32.xlu1 %v10453_v22, %s7560_s18 }
 0x84f   : > { %v5431_v47 = vsel %vm11784_vm4, %v5407_v6, %v5409_v38 }
 0x850   : > { %5470 = vst [vmem:[#allocation4 + $0x110] sm:$0xff] %v5431_v47  ;;  %v5523_v18 = vpop.permute.xlu1 %5522 }
 0x854   : > { %5676 = vrot.lane.b32.xlu2 %v10487_v13, %s7559_s13 }
 0x855   : > { %5678 = vrot.lane.b32.xlu0 %v10520_v16, %s7559_s13 }
 0x856   : > { %v5415_v4 = vpop.permute.xlu2 %5414  ;;  %v5405_v11 = vpop.permute.xlu0 %5404  ;;  %5808 = vrot.lane.b32.xlu1 %v10476_v58, %s7560_s18 }
 0x857   : > { %v5434_v51 = vsel %vm11793_vm8, %v5413_v8, %v5415_v4  ;;  %v5429_v49 = vsel %vm11794_vm5, %v5403_v17, %v5405_v11  ;;  %v5430_v2 = vsel %vm11795_vm7, %v5405_v11, %v5407_v6  ;;  %vm11797_vm8 = vmmov %vm11784_vm4 }
 0x858   : > { %5473 = vst [vmem:[#allocation4 + $0x128] sm:$0xff] %v5434_v51  ;;  %v5529_v15 = vpop.permute.xlu1 %5528  ;;  %vm11798_vm5 = vmmov %vm11796_vm6 }
 0x859   : > { %5468 = vst [vmem:[#allocation4 + $0x100] sm:$0xff] %v5429_v49  ;;  %vm11799_vm7 = vmmov %vm11798_vm5 }
 0x85a   : > { %5469 = vst [vmem:[#allocation4 + $0x108] sm:$0xff] %v5430_v2 }
 0x85c   : > { %5682 = vrot.lane.b32.xlu2 %v10497_v46, %s7559_s13 }
 0x85d   : > { %5684 = vrot.lane.b32.xlu0 %v10537_v59, %s7559_s13 }
 0x85e   : > { %v5519_v48 = vpop.permute.xlu2 %5518  ;;  %v5411_v44 = vpop.permute.xlu0 %5410  ;;  %5814 = vrot.lane.b32.xlu1 %v10487_v13, %s7560_s18 }
 0x85f   : > { %v5556_v58 = vsel %vm11796_vm6, %v5517_v52, %v5519_v48  ;;  %v5432_v5 = vsel %vm11784_vm4, %v5409_v38, %v5411_v44  ;;  %v5433_v35 = vsel %vm11797_vm8, %v5411_v44, %v5413_v8  ;;  %vm11800_vm6 = vmmov %vm11784_vm4 }
 0x860   : > { %5594 = vst [vmem:[#allocation4 + $0x140] sm:$0xff] %v5556_v58  ;;  %v5535_v60 = vpop.permute.xlu1 %5534  ;;  %vm11801_vm4 = vmmov %vm11798_vm5 }
 0x861   : > { %5471 = vst [vmem:[#allocation4 + $0x118] sm:$0xff] %v5432_v5  ;;  %vm11802_vm8 = vmmov %vm11801_vm4 }
 0x862   : > { %5472 = vst [vmem:[#allocation4 + $0x120] sm:$0xff] %v5433_v35 }
 0x863   : > { %5603 = vst.msk [vmem:[#allocation4 + $0x188] sm:$0xff] %vm11557_vm0, %v5535_v60 }
 0x864   : > { %5688 = vrot.lane.b32.xlu2 %v10505_v61, %s7559_s13 }
 0x865   : > { %5690 = vrot.lane.b32.xlu0 %v10552_v0, %s7559_s13  ;;  %s11421_s13 = scalar_lea.vmem [#allocation13], %s7256_s7  ;;  %s7257_s7 = smul.u32 80, %s7636_s12 }
 0x866   : > { %v5525_v40 = vpop.permute.xlu2 %5524  ;;  %6366 = vrot.lane.b32.xlu1 %v10487_v13, %s7564_s9  ;;  %s7055_s12 = scalar_lea.sflag [#allocation7], %s7719_s20 }
 0x867   : > { %v5559_v3 = vsel %vm11798_vm5, %v5523_v18, %v5525_v40  ;;  %vm11803_vm5 = vmmov %vm11801_vm4 }
 0x868   : > { %5597 = vst [vmem:[#allocation4 + $0x158] sm:$0xff] %v5559_v3  ;;  %v5541_v30 = vpop.permute.xlu1 %5540 }
 0x86c   : > { %5792 = vrot.lane.b32.xlu2 %v10370_v32, %s7560_s18 }
 0x86d   : > { %5794 = vrot.lane.b32.xlu0 %v10363_v57, %s7560_s18 }
 0x86e   : > { %v5531_v25 = vpop.permute.xlu2 %5530  ;;  %6228 = vrot.lane.b32.xlu1 %v10487_v13, %s7563_s26 }
 0x86f   : > { %v5562_v61 = vsel %vm11799_vm7, %v5529_v15, %v5531_v25  ;;  %v5417_v28 = vpop.permute.xlu0 %5416  ;;  %vm11804_vm7 = vmmov %vm11801_vm4 }
 0x870   : > { %5600 = vst [vmem:[#allocation4 + $0x170] sm:$0xff] %v5562_v61  ;;  %v5435_v63 = vsel %vm11800_vm6, %v5415_v4, %v5417_v28  ;;  %v5547_v43 = vpop.permute.xlu1 %5546  ;;  %vm11805_vm6 = vmmov %vm11801_vm4 }
 0x871   : > { %5474 = vst [vmem:[#allocation4 + $0x130] sm:$0xff] %v5435_v63 }
 0x872   : > { %5475 = vst.msk [vmem:[#allocation4 + $0x138] sm:$0xff] %vm11557_vm0, %v5417_v28 }
 0x874   : > { %5798 = vrot.lane.b32.xlu2 %v10422_v39, %s7560_s18 }
 0x875   : > { %5800 = vrot.lane.b32.xlu0 %v10450_v53, %s7560_s18 }
 0x876   : > { %v5537_v34 = vpop.permute.xlu2 %5536  ;;  %6210 = vrot.lane.b32.xlu1 %v10383_v14, %s7563_s26 }
 0x877   : > { %v5521_v33 = vpop.permute.xlu0 %5520 }
 0x878   : > { %v10689_v10 = vsel %vm11801_vm4, %v5519_v48, %v5521_v33  ;;  %v5558_v45 = vsel %vm11802_vm8, %v5521_v33, %v5523_v18  ;;  %v5553_v41 = vpop.permute.xlu1 %5552  ;;  %vm11806_vm8 = vmmov %vm11801_vm4 }
 0x879   : > { %5595 = vst [vmem:[#allocation4 + $0x148] sm:$0xff] %v10689_v10 }
 0x87a   : > { %5596 = vst [vmem:[#allocation4 + $0x150] sm:$0xff] %v5558_v45 }
 0x87c   : > { %5804 = vrot.lane.b32.xlu2 %v10466_v50, %s7560_s18 }
 0x87d   : > { %5806 = vrot.lane.b32.xlu0 %v10473_v27, %s7560_s18 }
 0x87e   : > { %v5543_v26 = vpop.permute.xlu2 %5542  ;;  %6368 = vrot.lane.b32.xlu1 %v10520_v16, %s7564_s9 }
 0x87f   : > { %v5567_v6 = vsel %vm11803_vm5, %v5541_v30, %v5543_v26  ;;  %v5527_v42 = vpop.permute.xlu0 %5526  ;;  %vm11807_vm5 = vmmov %vm11801_vm4 }
 0x880   : > { %5606 = vst [vmem:[#allocation4 + $0x1a0] sm:$0xff] %v5567_v6  ;;  %v5560_v1 = vsel %vm11804_vm7, %v5525_v40, %v5527_v42  ;;  %v5561_v8 = vsel %vm11805_vm6, %v5527_v42, %v5529_v15  ;;  %v5657_v17 = vpop.permute.xlu1 %5656  ;;  %vm11808_vm7 = vmmov %vm11801_vm4 }
 0x881   : > { %5598 = vst [vmem:[#allocation4 + $0x160] sm:$0xff] %v5560_v1  ;;  %vm11809_vm6 = vmmov %vm11801_vm4 }
 0x882   : > { %5599 = vst [vmem:[#allocation4 + $0x168] sm:$0xff] %v5561_v8 }
 0x884   : > { %5810 = vrot.lane.b32.xlu2 %v10517_v55, %s7560_s18 }
 0x885   : > { %5812 = vrot.lane.b32.xlu0 %v10493_v12, %s7560_s18 }
 0x886   : > { %v5549_v50 = vpop.permute.xlu2 %5548  ;;  %6072 = vrot.lane.b32.xlu1 %v10383_v14, %s7562_s23 }
 0x887   : > { %v5570_v27 = vsel %vm11801_vm4, %v5547_v43, %v5549_v50  ;;  %v5533_v52 = vpop.permute.xlu0 %5532 }
 0x888   : > { %5609 = vst [vmem:[#allocation4 + $0x1b8] sm:$0xff] %v5570_v27  ;;  %v5563_v38 = vsel %vm11806_vm8, %v5531_v25, %v5533_v52  ;;  %v5564_v47 = vsel %vm11807_vm5, %v5533_v52, %v5535_v60  ;;  %v5663_v18 = vpop.permute.xlu1 %5662  ;;  %vm11810_vm8 = vcmask 769024   ;;  %vm11811_vm5 = vmmov %vm11801_vm4 }
 0x889   : > { %5601 = vst [vmem:[#allocation4 + $0x178] sm:$0xff] %v5563_v38 }
 0x88a   : > { %5602 = vst [vmem:[#allocation4 + $0x180] sm:$0xff] %v5564_v47 }
 0x88c   : > { %5816 = vrot.lane.b32.xlu2 %v10520_v16, %s7560_s18 }
 0x88d   : > { %6364 = vrot.lane.b32.xlu0 %v10493_v12, %s7564_s9 }
 0x88e   : > { %v5555_v55 = vpop.permute.xlu2 %5554  ;;  %5952 = vrot.lane.b32.xlu1 %v10487_v13, %s7561_s22 }
 0x88f   : > { %v5573_v4 = vsel %vm11808_vm7, %v5553_v41, %v5555_v55  ;;  %5613 = vst.msk [vmem:[#allocation4 + $0x1d8] sm:$0xff] %vm11557_vm0, %v5555_v55  ;;  %v5539_v11 = vpop.permute.xlu0 %5538  ;;  %vm11812_vm7 = vmmov %vm11801_vm4 }
 0x890   : > { %5612 = vst [vmem:[#allocation4 + $0x1d0] sm:$0xff] %v5573_v4  ;;  %v10720_v51 = vsel %vm11809_vm6, %v5537_v34, %v5539_v11  ;;  %v10723_v49 = vsel %vm11801_vm4, %v5539_v11, %v5541_v30  ;;  %v5669_v2 = vpop.permute.xlu1 %5668  ;;  %vm11813_vm6 = vmmov %vm11810_vm8 }
 0x891   : > { %5604 = vst [vmem:[#allocation4 + $0x190] sm:$0xff] %v10720_v51 }
 0x892   : > { %5605 = vst [vmem:[#allocation4 + $0x198] sm:$0xff] %v10723_v49 }
 0x894   : > { %6344 = vrot.lane.b32.xlu2 %v10370_v32, %s7564_s9 }
 0x895   : > { %6346 = vrot.lane.b32.xlu0 %v10363_v57, %s7564_s9 }
 0x896   : > { %v5659_v15 = vpop.permute.xlu2 %5658  ;;  %6236 = vrot.lane.b32.xlu1 %v10537_v59, %s7563_s26 }
 0x897   : > { %v10734_v48 = vsel %vm11810_vm8, %v5657_v17, %v5659_v15  ;;  %v5545_v44 = vpop.permute.xlu0 %5544  ;;  %vm11814_vm8 = vmmov %vm11801_vm4 }
 0x898   : > { %5733 = vst [vmem:[#allocation4 + $0x1e8] sm:$0xff] %v10734_v48  ;;  %v5568_v58 = vsel %vm11811_vm5, %v5543_v26, %v5545_v44  ;;  %v5569_v5 = vsel %vm11812_vm7, %v5545_v44, %v5547_v43  ;;  %v5675_v35 = vpop.permute.xlu1 %5674  ;;  %vm11815_vm5 = vmmov %vm11813_vm6 }
 0x899   : > { %5607 = vst [vmem:[#allocation4 + $0x1a8] sm:$0xff] %v5568_v58  ;;  %vm11816_vm7 = vmmov %vm11815_vm5 }
 0x89a   : > { %5608 = vst [vmem:[#allocation4 + $0x1b0] sm:$0xff] %v5569_v5 }
 0x89c   : > { %6230 = vrot.lane.b32.xlu2 %v10520_v16, %s7563_s26 }
 0x89d   : > { %6208 = vrot.lane.b32.xlu0 %v10363_v57, %s7563_s26 }
 0x89e   : > { %v5665_v32 = vpop.permute.xlu2 %5664  ;;  %6214 = vrot.lane.b32.xlu1 %v10450_v53, %s7563_s26 }
 0x89f   : > { %v5698_v60 = vsel %vm11813_vm6, %v5663_v18, %v5665_v32  ;;  %v5551_v40 = vpop.permute.xlu0 %5550  ;;  %vm11817_vm6 = vmmov %vm11815_vm5 }
 0x8a0   : > { %5736 = vst [vmem:[#allocation4 + $0x200] sm:$0xff] %v5698_v60  ;;  %v5571_v3 = vsel %vm11801_vm4, %v5549_v50, %v5551_v40  ;;  %v5572_v30 = vsel %vm11814_vm8, %v5551_v40, %v5553_v41  ;;  %v5681_v25 = vpop.permute.xlu1 %5680  ;;  %vm11818_vm4 = vmmov %vm11815_vm5 }
 0x8a1   : > { %5610 = vst [vmem:[#allocation4 + $0x1c0] sm:$0xff] %v5571_v3  ;;  %vm11819_vm8 = vmmov %vm11818_vm4 }
 0x8a2   : > { %5611 = vst [vmem:[#allocation4 + $0x1c8] sm:$0xff] %v5572_v30 }
 0x8a4   : > { %6090 = vrot.lane.b32.xlu2 %v10487_v13, %s7562_s23 }
 0x8a5   : > { %6092 = vrot.lane.b32.xlu0 %v10520_v16, %s7562_s23 }
 0x8a6   : > { %v5671_v61 = vpop.permute.xlu2 %5670  ;;  %6098 = vrot.lane.b32.xlu1 %v10537_v59, %s7562_s23 }
 0x8a7   : > { %v5701_v28 = vsel %vm11815_vm5, %v5669_v2, %v5671_v61  ;;  %v5655_v63 = vpop.permute.xlu0 %5654  ;;  %vm11820_vm5 = vmmov %vm11818_vm4 }
 0x8a8   : > { %5739 = vst [vmem:[#allocation4 + $0x218] sm:$0xff] %v5701_v28  ;;  %v10756_v43 = vsel %vm11816_vm7, %v5655_v63, %v5657_v17  ;;  %v5687_v34 = vpop.permute.xlu1 %5686  ;;  %vm11821_vm7 = vmmov %vm11818_vm4 }
 0x8a9   : > { %5732 = vst [vmem:[#allocation4 + $0x1e0] sm:$0xff] %v10756_v43 }
 0x8ac   : > { %6370 = vrot.lane.b32.xlu2 %v10523_v31, %s7564_s9 }
 0x8ad   : > { %6070 = vrot.lane.b32.xlu0 %v10363_v57, %s7562_s23 }
 0x8ae   : > { %v5677_v13 = vpop.permute.xlu2 %5676  ;;  %6226 = vrot.lane.b32.xlu1 %v10493_v12, %s7563_s26 }
 0x8af   : > { %v10766_v33 = vsel %vm11817_vm6, %v5675_v35, %v5677_v13  ;;  %v5661_v45 = vpop.permute.xlu0 %5660  ;;  %vm11822_vm6 = vmmov %vm11818_vm4 }
 0x8b0   : > { %5742 = vst [vmem:[#allocation4 + $0x230] sm:$0xff] %v10766_v33  ;;  %v10770_v41 = vsel %vm11818_vm4, %v5659_v15, %v5661_v45  ;;  %v5697_v26 = vsel %vm11819_vm8, %v5661_v45, %v5663_v18  ;;  %v5693_v6 = vpop.permute.xlu1 %5692  ;;  %vm11823_vm8 = vmmov %vm11818_vm4 }
 0x8b1   : > { %5734 = vst [vmem:[#allocation4 + $0x1f0] sm:$0xff] %v10770_v41 }
 0x8b2   : > { %5735 = vst [vmem:[#allocation4 + $0x1f8] sm:$0xff] %v5697_v26 }
 0x8b3   : > { %5751 = vst.msk [vmem:[#allocation4 + $0x278] sm:$0xff] %vm11557_vm0, %v5693_v6 }
 0x8b4   : > { %6348 = vrot.lane.b32.xlu2 %v10383_v14, %s7564_s9 }
 0x8b5   : > { %6350 = vrot.lane.b32.xlu0 %v10422_v39, %s7564_s9 }
 0x8b6   : > { %v5683_v42 = vpop.permute.xlu2 %5682  ;;  %5960 = vrot.lane.b32.xlu1 %v10537_v59, %s7561_s22 }
 0x8b7   : > { %v5706_v1 = vsel %vm11820_vm5, %v5681_v25, %v5683_v42  ;;  %v5667_v8 = vpop.permute.xlu0 %5666  ;;  %vm11824_vm5 = vmmov %vm11818_vm4 }
 0x8b8   : > { %5745 = vst [vmem:[#allocation4 + $0x248] sm:$0xff] %v5706_v1  ;;  %v5699_v17 = vsel %vm11821_vm7, %v5665_v32, %v5667_v8  ;;  %v5700_v50 = vsel %vm11822_vm6, %v5667_v8, %v5669_v2  ;;  %v5797_v27 = vpop.permute.xlu1 %5796  ;;  %vm11825_vm7 = vmmov %vm11818_vm4  ;;  %vm11826_vm6 = vcmask 760832  }
 0x8b9   : > { %5737 = vst [vmem:[#allocation4 + $0x208] sm:$0xff] %v5699_v17 }
 0x8ba   : > { %5738 = vst [vmem:[#allocation4 + $0x210] sm:$0xff] %v5700_v50 }
 0x8bc   : > { %5954 = vrot.lane.b32.xlu2 %v10520_v16, %s7561_s22 }
 0x8bd   : > { %6234 = vrot.lane.b32.xlu0 %v10497_v46, %s7563_s26 }
 0x8be   : > { %v5689_v52 = vpop.permute.xlu2 %5688  ;;  %5938 = vrot.lane.b32.xlu1 %v10450_v53, %s7561_s22 }
 0x8bf   : > { %v5709_v38 = vsel %vm11818_vm4, %v5687_v34, %v5689_v52  ;;  %v5673_v47 = vpop.permute.xlu0 %5672 }
 0x8c0   : > { %5748 = vst [vmem:[#allocation4 + $0x260] sm:$0xff] %v5709_v38  ;;  %v5702_v18 = vsel %vm11823_vm8, %v5671_v61, %v5673_v47  ;;  %v5803_v55 = vpop.permute.xlu1 %5802  ;;  %vm11827_vm8 = vmmov %vm11818_vm4 }
 0x8c1   : > { %5740 = vst [vmem:[#allocation4 + $0x220] sm:$0xff] %v5702_v18 }
 0x8c2   : > { %5741 = vst.msk [vmem:[#allocation4 + $0x228] sm:$0xff] %vm11557_vm0, %v5673_v47 }
 0x8c4   : > { %5932 = vrot.lane.b32.xlu2 %v10363_v57, %s7561_s22  ;;  %v10811_v57 = vld [vmem:[#allocation3] sm:$0xff] }
 0x8c5   : > { %5934 = vrot.lane.b32.xlu0 %v10383_v14, %s7561_s22 }
 0x8c6   : > { %v5793_v16 = vpop.permute.xlu2 %5792  ;;  %6094 = vrot.lane.b32.xlu1 %v10523_v31, %s7562_s23 }
 0x8c7   : > { %v5679_v4 = vpop.permute.xlu0 %5678 }
 0x8c8   : > { %v10800_v11 = vsel %vm11824_vm5, %v5677_v13, %v5679_v4  ;;  %v10803_v2 = vsel %vm11825_vm7, %v5679_v4, %v5681_v25  ;;  %v5809_v15 = vpop.permute.xlu1 %5808  ;;  %vm11828_vm5 = vmmov %vm11826_vm6 }
 0x8c9   : > { %5743 = vst [vmem:[#allocation4 + $0x238] sm:$0xff] %v10800_v11  ;;  %vm11829_vm7 = vmmov %vm11818_vm4 }
 0x8ca   : > { %5744 = vst [vmem:[#allocation4 + $0x240] sm:$0xff] %v10803_v2 }
 0x8cc   : > { %6216 = vrot.lane.b32.xlu2 %v10453_v22, %s7563_s26 }
 0x8cd   : > { %6096 = vrot.lane.b32.xlu0 %v10497_v46, %s7562_s23 }
 0x8ce   : > { %v5799_v14 = vpop.permute.xlu2 %5798  ;;  %6068 = vrot.lane.b32.xlu1 %v10811_v57, %s7562_s23 }
 0x8cf   : > { %v10816_v44 = vsel %vm11826_vm6, %v5797_v27, %v5799_v14  ;;  %v5685_v58 = vpop.permute.xlu0 %5684  ;;  %vm11830_vm6 = vmmov %vm11818_vm4 }
 0x8d0   : > { %5872 = vst [vmem:[#allocation4 + $0x290] sm:$0xff] %v10816_v44  ;;  %v10820_v5 = vsel %vm11818_vm4, %v5683_v42, %v5685_v58  ;;  %v5708_v35 = vsel %vm11827_vm8, %v5685_v58, %v5687_v34  ;;  %v5815_v32 = vpop.permute.xlu1 %5814  ;;  %vm11831_vm4 = vmmov %vm11828_vm5 }
 0x8d1   : > { %5746 = vst [vmem:[#allocation4 + $0x250] sm:$0xff] %v10820_v5  ;;  %vm11832_vm8 = vmmov %vm11831_vm4 }
 0x8d2   : > { %5747 = vst [vmem:[#allocation4 + $0x258] sm:$0xff] %v5708_v35 }
 0x8d4   : > { %6076 = vrot.lane.b32.xlu2 %v10450_v53, %s7562_s23 }
 0x8d5   : > { %6078 = vrot.lane.b32.xlu0 %v10453_v22, %s7562_s23 }
 0x8d6   : > { %v5805_v60 = vpop.permute.xlu2 %5804  ;;  %5956 = vrot.lane.b32.xlu1 %v10523_v31, %s7561_s22 }
 0x8d7   : > { %v5837_v40 = vsel %vm11828_vm5, %v5803_v55, %v5805_v60  ;;  %v5691_v3 = vpop.permute.xlu0 %5690  ;;  %vm11833_vm5 = vmmov %vm11831_vm4 }
 0x8d8   : > { %5875 = vst [vmem:[#allocation4 + $0x2a8] sm:$0xff] %v5837_v40  ;;  %v5710_v30 = vsel %vm11829_vm7, %v5689_v52, %v5691_v3  ;;  %v5711_v25 = vsel %vm11830_vm6, %v5691_v3, %v5693_v6  ;;  %v6367_v61 = vpop.permute.xlu1 %6366  ;;  %vm11834_vm7 = vmmov %vm11831_vm4 }
 0x8d9   : > { %5749 = vst [vmem:[#allocation4 + $0x268] sm:$0xff] %v5710_v30  ;;  %vm11835_vm6 = vmmov %vm11831_vm4 }
 0x8da   : > { %5750 = vst [vmem:[#allocation4 + $0x270] sm:$0xff] %v5711_v25  ;;  %v10932_v25 = vld [vmem:[#allocation3 + $0x38] sm:$0xff] }
 0x8dc   : > { %6232 = vrot.lane.b32.xlu2 %v10523_v31, %s7563_s26 }
 0x8dd   : > { %5958 = vrot.lane.b32.xlu0 %v10497_v46, %s7561_s22 }
 0x8de   : > { %v5811_v53 = vpop.permute.xlu2 %5810  ;;  %5818 = vrot.lane.b32.xlu1 %v10523_v31, %s7560_s18 }
 0x8df   : > { %v5840_v28 = vsel %vm11831_vm4, %v5809_v15, %v5811_v53  ;;  %5879 = vst.msk [vmem:[#allocation4 + $0x2c8] sm:$0xff] %vm11557_vm0, %v5811_v53  ;;  %v5795_v63 = vpop.permute.xlu0 %5794 }
 0x8e0   : > { %5878 = vst [vmem:[#allocation4 + $0x2c0] sm:$0xff] %v5840_v28  ;;  %v10842_v34 = vsel %vm11832_vm8, %v5793_v16, %v5795_v63  ;;  %v10845_v13 = vsel %vm11833_vm5, %v5795_v63, %v5797_v27  ;;  %v10847_v45 = vpop.permute.xlu1 %6228  ;;  %vm11836_vm8 = vmmov %vm11831_vm4 }
 0x8e1   : > { %5870 = vst [vmem:[#allocation4 + $0x280] sm:$0xff] %v10842_v34  ;;  %vm11837_vm5 = vmmov %vm11831_vm4 }
 0x8e2   : > { %5871 = vst [vmem:[#allocation4 + $0x288] sm:$0xff] %v10845_v13 }
 0x8e4   : > { %6206 = vrot.lane.b32.xlu2 %v10811_v57, %s7563_s26 }
 0x8e5   : > { %6212 = vrot.lane.b32.xlu0 %v10422_v39, %s7563_s26 }
 0x8e6   : > { %v10855_v31 = vpop.permute.xlu2 %5816  ;;  %6238 = vrot.lane.b32.xlu1 %v10540_v62, %s7563_s26 }
 0x8e7   : > { %v10861_v26 = vsel %vm11834_vm7, %v5815_v32, %v10855_v31  ;;  %v5801_v6 = vpop.permute.xlu0 %5800  ;;  %vm11838_vm7 = vcmask 474112  }
 0x8e8   : > { %5881 = vst [vmem:[#allocation4 + $0x2d8] sm:$0xff] %v10861_v26  ;;  %v10865_v42 = vsel %vm11835_vm6, %v5799_v14, %v5801_v6  ;;  %v10868_v1 = vsel %vm11831_vm4, %v5801_v6, %v5803_v55  ;;  %v10870_v8 = vpop.permute.xlu1 %6210  ;;  %vm11839_vm6 = vcmask 482304  }
 0x8e9   : > { %5873 = vst [vmem:[#allocation4 + $0x298] sm:$0xff] %v10865_v42 }
 0x8ea   : > { %5874 = vst [vmem:[#allocation4 + $0x2a0] sm:$0xff] %v10868_v1 }
 0x8ec   : > { %5940 = vrot.lane.b32.xlu2 %v10453_v22, %s7561_s22  ;;  %v10890_v22 = vld [vmem:[#allocation3 + $0x30] sm:$0xff] }
 0x8ed   : > { %6088 = vrot.lane.b32.xlu0 %v10493_v12, %s7562_s23 }
 0x8ee   : > { %v6345_v39 = vpop.permute.xlu2 %6344  ;;  %6374 = vrot.lane.b32.xlu1 %v10537_v59, %s7564_s9 }
 0x8ef   : > { %v5807_v17 = vpop.permute.xlu0 %5806 }
 0x8f0   : > { %v5838_v50 = vsel %vm11836_vm8, %v5805_v60, %v5807_v17  ;;  %v5839_v27 = vsel %vm11837_vm5, %v5807_v17, %v5809_v15  ;;  %v6369_v52 = vpop.permute.xlu1 %6368  ;;  %v10908_v15 = vld [vmem:[#allocation3 + $0x40] sm:$0xff]  ;;  %vm11840_vm8 = vmmov %vm11838_vm7 }
 0x8f1   : > { %5876 = vst [vmem:[#allocation4 + $0x2b0] sm:$0xff] %v5838_v50  ;;  %v10883_v38 = vsel %vm11838_vm7, %v6367_v61, %v6369_v52  ;;  %vm11841_vm5 = vmmov %vm11838_vm7 }
 0x8f2   : > { %5877 = vst [vmem:[#allocation4 + $0x2b8] sm:$0xff] %v5839_v27  ;;  %vm11842_vm7 = vmmov %vm11841_vm5 }
 0x8f3   : > { %6433 = vst [vmem:[#allocation4 + $0x558] sm:$0xff] %v10883_v38 }
 0x8f4   : > { %5820 = vrot.lane.b32.xlu2 %v10497_v46, %s7560_s18 }
 0x8f5   : > { %5822 = vrot.lane.b32.xlu0 %v10537_v59, %s7560_s18  ;;  %v6031_v59 = vld [vmem:[#allocation3 + $0x18] sm:$0xff] }
 0x8f6   : > { %v10892_v47 = vpop.permute.xlu2 %6230  ;;  %6080 = vrot.lane.b32.xlu1 %v10890_v22, %s7562_s23 }
 0x8f7   : > { %v6256_v18 = vsel %vm11839_vm6, %v10847_v45, %v10892_v47  ;;  %v5813_v55 = vpop.permute.xlu0 %5812  ;;  %vm11843_vm6 = vmmov %vm11841_vm5 }
 0x8f8   : > { %v10900_v16 = vsel %vm11831_vm4, %v5813_v55, %v5815_v32  ;;  %6674 = vmatpush.msra.mxu0 %v6256_v18  ;;  %v10902_v4 = vpop.permute.xlu1 %6072  ;;  %vm11844_vm4 = vcmask 482304  }
 0x8f9   : > { %5880 = vst [vmem:[#allocation4 + $0x2d0] sm:$0xff] %v10900_v16 }
 0x8fc   : > { %6074 = vrot.lane.b32.xlu2 %v6031_v59, %s7562_s23 }
 0x8fd   : > { %5950 = vrot.lane.b32.xlu0 %v10493_v12, %s7561_s22 }
 0x8fe   : > { %v10910_v14 = vpop.permute.xlu2 %6090  ;;  %6360 = vrot.lane.b32.xlu1 %v10908_v15, %s7564_s9 }
 0x8ff   : > { %v6365_v58 = vpop.permute.xlu0 %6364 }
 0x900   : > { %v6393_v35 = vsel %vm11840_vm8, %v6365_v58, %v6367_v61  ;;  %v10915_v32 = vpop.permute.xlu1 %5952  ;;  %vm11845_vm8 = vcmask 752640  }
 0x901   : > { %6432 = vst [vmem:[#allocation4 + $0x550] sm:$0xff] %v6393_v35  ;;  %6668 = vmatpush.msra.mxu3 %v6393_v35  ;;  %v6309_v35 = vld [vmem:[#allocation3 + $0x28] sm:$0xff] }
 0x904   : > { %5930 = vrot.lane.b32.xlu2 %v10811_v57, %s7561_s22  ;;  %v6308_v57 = vld [vmem:[#allocation3 + $0x20] sm:$0xff] }
 0x905   : > { %5936 = vrot.lane.b32.xlu0 %v6031_v59, %s7561_s22 }
 0x906   : > { %v10920_v12 = vpop.permute.xlu2 %6370  ;;  %6242 = vrot.lane.b32.xlu1 %v10552_v0, %s7563_s26 }
 0x907   : > { %v6395_v60 = vsel %vm11841_vm5, %v6369_v52, %v10920_v12  ;;  %v6347_v40 = vpop.permute.xlu0 %6346  ;;  %vm11846_vm5 = vcmask 490496   ;;  %v10962_v52 = vld [vmem:[#allocation3 + $0x88] sm:$0xff] }
 0x908   : > { %6434 = vst [vmem:[#allocation4 + $0x560] sm:$0xff] %v6395_v60  ;;  %v6384_v3 = vsel %vm11842_vm7, %v6345_v39, %v6347_v40  ;;  %v10927_v30 = vpop.permute.xlu1 %6236  ;;  %vm11847_vm7 = vmmov %vm11846_vm5 }
 0x909   : > { %6422 = vst [vmem:[#allocation4 + $0x500] sm:$0xff] %v6384_v3  ;;  %6669 = vmatpush.msra.mxu3 %v6384_v3 }
 0x90b   : > { %6748 = vmatpush.msrb.mxu3 %v6395_v60 }
 0x90c   : > { %6372 = vrot.lane.b32.xlu2 %v10497_v46, %s7564_s9 }
 0x90d   : > { %6352 = vrot.lane.b32.xlu0 %v6308_v57, %s7564_s9  ;;  %v10997_v57 = vld [vmem:[#allocation3 + $0x80] sm:$0xff] }
 0x90e   : > { %v6349_v61 = vpop.permute.xlu2 %6348  ;;  %6220 = vrot.lane.b32.xlu1 %v10932_v25, %s7563_s26 }
 0x90f   : > { %v10937_v53 = vsel %vm11843_vm6, %v6347_v40, %v6349_v61  ;;  %v10939_v28 = vpop.permute.xlu0 %6208  ;;  %vm11848_vm6 = vmmov %vm11844_vm4 }
 0x910   : > { %6423 = vst [vmem:[#allocation4 + $0x508] sm:$0xff] %v10937_v53  ;;  %v6247_v63 = vsel %vm11844_vm4, %v10939_v28, %v10870_v8  ;;  %v10945_v46 = vpop.permute.xlu1 %6214 }
 0x911   : > { %6675 = vmatpush.msra.mxu0 %v6247_v63  ;;  %v11003_v63 = vld [vmem:[#allocation3 + $0x98] sm:$0xff] }
 0x914   : > { %6218 = vrot.lane.b32.xlu2 %v10890_v22, %s7563_s26 }
 0x915   : > { %6100 = vrot.lane.b32.xlu0 %v10540_v62, %s7562_s23 }
 0x916   : > { %v10951_v6 = vpop.permute.xlu2 %5954  ;;  %5824 = vrot.lane.b32.xlu1 %v10540_v62, %s7560_s18 }
 0x917   : > { %v5980_v39 = vsel %vm11845_vm8, %v10915_v32, %v10951_v6  ;;  %v6093_v17 = vpop.permute.xlu0 %6092  ;;  %vm11849_vm8 = vcmask 474112  }
 0x918   : > { %v6118_v50 = vsel %vm11846_vm5, %v10910_v14, %v6093_v17  ;;  %v10960_v27 = vpop.permute.xlu1 %6098  ;;  %vm11850_vm5 = vmmov %vm11844_vm4 }
 0x919   : > { %6676 = vmatpush.msra.mxu0 %v6118_v50 }
 0x91c   : > { %6378 = vrot.lane.b32.xlu2 %v10962_v52, %s7564_s9 }
 0x91d   : > { %6380 = vrot.lane.b32.xlu0 %v10552_v0, %s7564_s9  ;;  %v10979_v0 = vld [vmem:[#allocation3 + $0x48] sm:$0xff] }
 0x91e   : > { %v10968_v62 = vpop.permute.xlu2 %5932  ;;  %6106 = vrot.lane.b32.xlu1 %v10564_v36, %s7562_s23 }
 0x91f   : > { %v6071_v18 = vpop.permute.xlu0 %6070 }
 0x920   : > { %v6109_v55 = vsel %vm11847_vm7, %v6071_v18, %v10902_v4  ;;  %v6227_v59 = vpop.permute.xlu1 %6226  ;;  %vm11851_vm7 = vmmov %vm11844_vm4 }
 0x921   : > { %6677 = vmatpush.msra.mxu0 %v6109_v55  ;;  %v6255_v58 = vsel %vm11848_vm6, %v6227_v59, %v10847_v45  ;;  %vm11852_vm6 = vmmov %vm11844_vm4 }
 0x922   : > { %6634 = vmatpush.msrb.mxu1 %v6255_v58 }
 0x923   : > { %6678 = vmatpush.msra.mxu0 %v5980_v39 }
 0x924   : > { %6354 = vrot.lane.b32.xlu2 %v6309_v35, %s7564_s9 }
 0x925   : > { %6358 = vrot.lane.b32.xlu0 %v10932_v25, %s7564_s9 }
 0x926   : > { %v10981_v36 = vpop.permute.xlu2 %6216  ;;  %6086 = vrot.lane.b32.xlu1 %v10979_v0, %s7562_s23 }
 0x927   : > { %v10988_v60 = vsel %vm11844_vm4, %v10945_v46, %v10981_v36  ;;  %v10990_v45 = vpop.permute.xlu0 %6350  ;;  %vm11853_vm4 = vcmask 752640  }
 0x928   : > { %6288 = vst [vmem:[#allocation4 + $0x480] sm:$0xff] %v10988_v60  ;;  %v6386_v40 = vsel %vm11849_vm8, %v6349_v61, %v10990_v45  ;;  %v10995_v3 = vpop.permute.xlu1 %5960  ;;  %vm11854_vm8 = vcmask 490496  }
 0x929   : > { %6424 = vst [vmem:[#allocation4 + $0x510] sm:$0xff] %v6386_v40  ;;  %6749 = vmatpush.msrb.mxu3 %v6386_v40 }
 0x92c   : > { %5962 = vrot.lane.b32.xlu2 %v10997_v57, %s7561_s22 }
 0x92d   : > { %6240 = vrot.lane.b32.xlu0 %v10962_v52, %s7563_s26 }
 0x92e   : > { %v11005_v39 = vpop.permute.xlu2 %6076  ;;  %5968 = vrot.lane.b32.xlu1 %v11003_v63, %s7561_s22 }
 0x92f   : > { %v6235_v61 = vpop.permute.xlu0 %6234 }
 0x930   : > { %v11011_v50 = vsel %vm11850_vm5, %v6235_v61, %v10927_v30  ;;  %v11013_v55 = vpop.permute.xlu1 %5938 }
 0x931   : > { %6298 = vst [vmem:[#allocation4 + $0x4d0] sm:$0xff] %v11011_v50 }
 0x934   : > { %6244 = vrot.lane.b32.xlu2 %v11003_v63, %s7563_s26 }
 0x935   : > { %5942 = vrot.lane.b32.xlu0 %v10890_v22, %s7561_s22 }
 0x936   : > { %v6233_v59 = vpop.permute.xlu2 %6232  ;;  %5948 = vrot.lane.b32.xlu1 %v10979_v0, %s7561_s22 }
 0x937   : > { %v6257_v58 = vsel %vm11851_vm7, %v10892_v47, %v6233_v59  ;;  %v11025_v35 = vsel %vm11852_vm6, %v6233_v59, %v6235_v61  ;;  %v11027_v40 = vpop.permute.xlu0 %5934  ;;  %vm11855_vm7 = vmmov %vm11854_vm8 }
 0x938   : > { %6296 = vst [vmem:[#allocation4 + $0x4c0] sm:$0xff] %v6257_v58  ;;  %v5971_v23 = vsel %vm11853_vm4, %v10968_v62, %v11027_v40  ;;  %6714 = vmatpush.msrb.mxu2 %v6257_v58  ;;  %v6095_v20 = vpop.permute.xlu1 %6094  ;;  %vm11856_vm6 = vmmov %vm11855_vm7  ;;  %v6453_v58 = vld [vmem:[#allocation4 + $0x58] sm:$0xff] }
 0x939   : > { %6297 = vst [vmem:[#allocation4 + $0x4c8] sm:$0xff] %v11025_v35  ;;  %6679 = vmatpush.msra.mxu0 %v5971_v23  ;;  %v11034_v7 = vsel %vm11854_vm8, %v6093_v17, %v6095_v20  ;;  %vm11857_vm4 = vmmov %vm11856_vm6  ;;  %vm11858_vm8 = vcmask 752640  }
 0x93a   : > { %6158 = vst [vmem:[#allocation4 + $0x420] sm:$0xff] %v11034_v7 }
 0x93b   : > { %6680 = vmatpush.msra.mxu0 %v10861_v26 }
 0x93c   : > { %6222 = vrot.lane.b32.xlu2 %v10908_v15, %s7563_s26 }
 0x93d   : > { %6224 = vrot.lane.b32.xlu0 %v10979_v0, %s7563_s26  ;;  %6681 = vmatpush.msra.mxu0 %v10845_v13  ;;  %s7068_s26 = sshll.u32 %s11421_s13, 4  ;;  %s7069_s26 = int_to_ptr.vmem [resolvable:$true] %s7068_s26 }
 0x93e   : > { %v6207_v47 = vpop.permute.xlu2 %6206  ;;  %5830 = vrot.lane.b32.xlu1 %v11003_v63, %s7560_s18 }
 0x93f   : > { %v6246_v23 = vsel %vm11850_vm5, %v6207_v47, %v10939_v28  ;;  %v6097_v17 = vpop.permute.xlu0 %6096  ;;  %6682 = vmatpush.msra.mxu0 %v10800_v11  ;;  %v11062_v11 = vld [vmem:[#allocation3 + $0x90] sm:$0xff]  ;;  %vm11859_vm5 = vmmov %vm11857_vm4  ;;  %v6463_v28 = vld [vmem:[#allocation4 + $0xa8] sm:$0xff] }
 0x940   : > { %v11050_v26 = vsel %vm11855_vm7, %v6097_v17, %v10960_v27  ;;  %v11053_v61 = vsel %vm11856_vm6, %v6095_v20, %v6097_v17  ;;  %6635 = vmatpush.msrb.mxu1 %v6246_v23  ;;  %v6069_v59 = vpop.permute.xlu1 %6068  ;;  %vm11860_vm7 = vmmov %vm11858_vm8  ;;  %v11090_v47 = vld [vmem:[#allocation10 + $0x8] sm:$0xff]  ;;  %vm6630_vm6 = vcmask 130048   ;;  %v11096_v23 = vld [vmem:[#allocation10] sm:$0xff] }
 0x941   : > { %6160 = vst [vmem:[#allocation4 + $0x430] sm:$0xff] %v11050_v26  ;;  %6683 = vmatpush.msra.mxu0 %v10734_v48  ;;  %v11058_v13 = vsel %vm11857_vm4, %v6069_v59, %v6071_v18  ;;  %7241 = vmatmul.msk.f32.vlgmr.msra.gmra.mxu3 %vm6630_vm6, %v11090_v47  ;;  %vm11861_vm4 = vmmov %vm11860_vm7 }
 0x942   : > { %6159 = vst [vmem:[#allocation4 + $0x428] sm:$0xff] %v11053_v61 }
 0x943   : > { %6684 = vmatpush.msra.mxu0 %v10723_v49 }
 0x944   : > { %6102 = vrot.lane.b32.xlu2 %v10962_v52, %s7562_s23 }
 0x945   : > { %6104 = vrot.lane.b32.xlu0 %v11062_v11, %s7562_s23  ;;  %6685 = vmatpush.msra.mxu0 %v10689_v10 }
 0x946   : > { %v11069_v20 = vpop.permute.xlu2 %5940  ;;  %6356 = vrot.lane.b32.xlu1 %v10890_v22, %s7564_s9 }
 0x947   : > { %v11076_v48 = vsel %vm11858_vm8, %v11013_v55, %v11069_v20  ;;  %v11078_v49 = vpop.permute.xlu0 %6078  ;;  %6686 = vmatpush.msra.mxu0 %v10637_v37  ;;  %v6443_v37 = vld [vmem:[#allocation4 + $0x8] sm:$0xff]  ;;  %vm11862_vm8 = vmmov %vm11861_vm4 }
 0x948   : > { %6012 = vst [vmem:[#allocation4 + $0x340] sm:$0xff] %v11076_v48  ;;  %v11085_v10 = vsel %vm11859_vm5, %v11005_v39, %v11078_v49  ;;  %v5957_v18 = vpop.permute.xlu1 %5956  ;;  %vm11863_vm5 = vcmask 760832  }
 0x949   : > { %6150 = vst [vmem:[#allocation4 + $0x3e0] sm:$0xff] %v11085_v10  ;;  %6687 = vmatpush.msra.mxu0 %v6463_v28  ;;  %v5981_v22 = vsel %vm11860_vm7, %v10951_v6, %v5957_v18  ;;  %vm11864_vm7 = vmmov %vm11863_vm5  ;;  %7243 = vmatmul.msk.f32.vlgmr.msrb.gmra.mxu3 %vm6630_vm6, %v11090_v47 }
 0x94a   : > { %6020 = vst [vmem:[#allocation4 + $0x380] sm:$0xff] %v5981_v22 }
 0x94b   : > { %6688 = vmatpush.msra.mxu0 %v6453_v58 }
 0x94c   : > { %6082 = vrot.lane.b32.xlu2 %v10932_v25, %s7562_s23 }
 0x94d   : > { %6084 = vrot.lane.b32.xlu0 %v10908_v15, %s7562_s23  ;;  %6689 = vmatpush.msra.mxu0 %v6443_v37  ;;  %s7066_s23 = scalar_lea.hbm %s11510_s8, %s7257_s7 }
 0x94e   : > { %v5821_v6 = vpop.permute.xlu2 %5820  ;;  %6690 = vmatmul.f32.vlgmr.msra.gmra.mxu0 %v11096_v23 }
 0x94f   : > { %6708 = vmatpush.msrb.mxu0 %v10883_v38  ;;  %v5959_v17 = vpop.permute.xlu0 %5958 }
 0x950   : > { %v11104_v59 = vsel %vm11861_vm4, %v5959_v17, %v10995_v3  ;;  %v11107_v28 = vsel %vm11862_vm8, %v5957_v18, %v5959_v17  ;;  %v5819_v58 = vpop.permute.xlu1 %5818  ;;  %vm11865_vm4 = vcmask 490496  }
 0x951   : > { %6709 = vmatpush.msrb.mxu0 %v10937_v53  ;;  %6022 = vst [vmem:[#allocation4 + $0x390] sm:$0xff] %v11104_v59  ;;  %v11113_v37 = vsel %vm11863_vm5, %v10855_v31, %v5819_v58  ;;  %v11116_v38 = vsel %vm11864_vm7, %v5819_v58, %v5821_v6  ;;  %vm11866_vm8 = vmmov %vm11865_vm4  ;;  %vm11867_vm5 = vcmask 482304  }
 0x952   : > { %6021 = vst [vmem:[#allocation4 + $0x388] sm:$0xff] %v11107_v28  ;;  %vm11868_vm7 = vmmov %vm11867_vm5 }
 0x953   : > { %5882 = vst [vmem:[#allocation4 + $0x2e0] sm:$0xff] %v11113_v37 }
 0x954   : > { %5964 = vrot.lane.b32.xlu2 %v10962_v52, %s7561_s22  ;;  %5883 = vst [vmem:[#allocation4 + $0x2e8] sm:$0xff] %v11116_v38 }
 0x955   : > { %5966 = vrot.lane.b32.xlu0 %v11062_v11, %s7561_s22 }
 0x956   : > { %v6075_v31 = vpop.permute.xlu2 %6074  ;;  %7242 = vmatmul.msk.f32.vlgmr.msrb.gmra.mxu0 %vm6630_vm6, %v11090_v47 }
 0x957   : > { %v6110_v53 = vsel %vm11865_vm4, %v10902_v4, %v6075_v31  ;;  %v11131_v18 = vsel %vm11866_vm8, %v6075_v31, %v11005_v39  ;;  %v6213_v17 = vpop.permute.xlu0 %6212  ;;  %vm11869_vm4 = vmmov %vm11867_vm5  ;;  %vm11870_vm8 = vcmask 752640  }
 0x958   : > { %6148 = vst [vmem:[#allocation4 + $0x3d0] sm:$0xff] %v6110_v53  ;;  %v6248_v58 = vsel %vm11867_vm5, %v10870_v8, %v6213_v17  ;;  %v11139_v29 = vsel %vm11868_vm7, %v6213_v17, %v10945_v46  ;;  %v11141_v19 = vpop.permute.xlu1 %6238  ;;  %vm11871_vm5 = vcmask 490496   ;;  %vm11872_vm7 = vcmask 474112  }
 0x959   : > { %6149 = vst [vmem:[#allocation4 + $0x3d8] sm:$0xff] %v11131_v18  ;;  %6715 = vmatpush.msrb.mxu2 %v6248_v58  ;;  %v11147_v4 = vsel %vm11869_vm4, %v10927_v30, %v11141_v19  ;;  %vm11873_vm4 = vmmov %vm11872_vm7 }
 0x95a   : > { %6286 = vst [vmem:[#allocation4 + $0x470] sm:$0xff] %v6248_v58  ;;  %v6442_v58 = vld [vmem:[#allocation4] sm:$0xff] }
 0x95b   : > { %6287 = vst [vmem:[#allocation4 + $0x478] sm:$0xff] %v11139_v29  ;;  %6716 = vmatpush.msrb.mxu2 %v11034_v7 }
 0x95c   : > { %5944 = vrot.lane.b32.xlu2 %v10932_v25, %s7561_s22  ;;  %6299 = vst [vmem:[#allocation4 + $0x4d8] sm:$0xff] %v11147_v4 }
 0x95d   : > { %5946 = vrot.lane.b32.xlu0 %v10908_v15, %s7561_s22  ;;  %6717 = vmatpush.msrb.mxu2 %v6110_v53 }
 0x95e   : > { %v5931_v8 = vpop.permute.xlu2 %5930 }
 0x95f   : > { %v5970_v46 = vsel %vm11870_vm8, %v5931_v8, %v10968_v62  ;;  %v6089_v30 = vpop.permute.xlu0 %6088  ;;  %6718 = vmatpush.msrb.mxu2 %v5981_v22  ;;  %vm11874_vm8 = vcmask 760832  }
 0x960   : > { %v6117_v39 = vsel %vm11871_vm5, %v6089_v30, %v10910_v14  ;;  %v11160_v31 = vpop.permute.xlu1 %6374 }
 0x961   : > { %6636 = vmatpush.msrb.mxu1 %v6117_v39 }
 0x963   : > { %6637 = vmatpush.msrb.mxu1 %v11058_v13 }
 0x964   : > { %5826 = vrot.lane.b32.xlu2 %v10962_v52, %s7560_s18 }
 0x965   : > { %5828 = vrot.lane.b32.xlu0 %v11062_v11, %s7560_s18 }
 0x966   : > { %v6373_v7 = vpop.permute.xlu2 %6372 }
 0x967   : > { %v6396_v15 = vsel %vm11872_vm7, %v10920_v12, %v6373_v7  ;;  %v11169_v25 = vpop.permute.xlu0 %5822  ;;  %v6397_v14 = vsel %vm11873_vm4, %v6373_v7, %v11160_v31  ;;  %vm11875_vm7 = vcmask 482304   ;;  %vm11876_vm4 = vcmask 752640  }
 0x968   : > { %6435 = vst [vmem:[#allocation4 + $0x568] sm:$0xff] %v6396_v15  ;;  %v11175_v62 = vsel %vm11874_vm8, %v5821_v6, %v11169_v25  ;;  %6788 = vmatpush.msra.mxu3 %v6396_v15  ;;  %v11177_v13 = vpop.permute.xlu1 %6080  ;;  %6828 = vmatpush.msra.mxu0 %v6397_v14  ;;  %vm11877_vm8 = vmmov %vm11876_vm4  ;;  %v6486_v15 = vld [vmem:[#allocation4 + $0x160] sm:$0xff] }
 0x969   : > { %5884 = vst [vmem:[#allocation4 + $0x2f0] sm:$0xff] %v11175_v62  ;;  %v11183_v12 = vsel %vm11871_vm5, %v11078_v49, %v11177_v13  ;;  %vm11878_vm5 = vmmov %vm11876_vm4 }
 0x96a   : > { %6436 = vst [vmem:[#allocation4 + $0x570] sm:$0xff] %v6397_v14  ;;  %v6495_v14 = vld [vmem:[#allocation4 + $0x1a8] sm:$0xff] }
 0x96b   : > { %6151 = vst [vmem:[#allocation4 + $0x3e8] sm:$0xff] %v11183_v12 }
 0x96c   : > { %6376 = vrot.lane.b32.xlu2 %v10997_v57, %s7564_s9  ;;  %v6624_v57 = vld [vmem:[%s11508_s6] sm:$0xff] }
 0x96d   : > { %6382 = vrot.lane.b32.xlu0 %v11003_v63, %s7564_s9 }
 0x96e   : > { %v6219_v52 = vpop.permute.xlu2 %6218 }
 0x96f   : > { %v11192_v11 = vsel %vm11875_vm7, %v10981_v36, %v6219_v52  ;;  %v5951_v22 = vpop.permute.xlu0 %5950  ;;  %vm11879_vm7 = vcmask 474112  }
 0x970   : > { %6289 = vst [vmem:[#allocation4 + $0x488] sm:$0xff] %v11192_v11  ;;  %v5979_v49 = vsel %vm11876_vm4, %v5951_v22, %v10915_v32  ;;  %v11197_v6 = vpop.permute.xlu1 %6360  ;;  %vm11880_vm4 = vmmov %vm11879_vm7 }
 0x971   : > { %6638 = vmatpush.msrb.mxu1 %v5979_v49  ;;  %v6456_v49 = vld [vmem:[#allocation4 + $0x70] sm:$0xff] }
 0x973   : > { %6639 = vmatpush.msrb.mxu1 %v5970_v46  ;;  %v6474_v46 = vld [vmem:[#allocation4 + $0x100] sm:$0xff] }
 0x974   : > { %6362 = vrot.lane.b32.xlu2 %v10979_v0, %s7564_s9  ;;  %s7070_s9 = sshll.u32 %s7066_s23, 4  ;;  %s7071_s9 = int_to_ptr.hbm [resolvable:$true] %s7070_s9 }
 0x975   : > { %6627 = vperm.xlu0 %7348, %v6624_v57   ;;  %6640 = vmatpush.msrb.mxu1 %v10900_v16  ;;  %v6482_v16 = vld [vmem:[#allocation4 + $0x140] sm:$0xff]  ;;  %s7490_s1 = sshra.s32 %s7071_s9, 4  ;;  %s7491_s1 = int_to_ptr.hbm [resolvable:$true] %s7490_s1 }
 0x976   : > { %v11205_v36 = vpop.permute.xlu2 %6378  ;;  %s7492_s17 = scalar_lea.hbm %s7491_s1, 80  ;;  %p7497_p13 = scmp.lt.s32.totalorder %s7491_s1, %s11510_s8 }
 0x977   : > { %v5937_v63 = vpop.permute.xlu0 %5936  ;;  %6641 = vmatpush.msrb.mxu1 %v10842_v34  ;;  %p7493_p1 = scmp.ne.s32.totalorder %s7491_s1, %s7492_s17  ;;  %p7498_p8 = scmp.lt.s32.totalorder %s7496_s25, %s7492_s17 }
 0x978   : > { %v5972_v32 = vsel %vm11877_vm8, %v11027_v40, %v5937_v63  ;;  %v11212_v53 = vsel %vm11878_vm5, %v5937_v63, %v11013_v55  ;;  %v11214_v17 = vpop.permute.xlu1 %6242  ;;  %vm11881_vm8 = vcmask 482304  }
 0x979   : > { %6010 = vst [vmem:[#allocation4 + $0x330] sm:$0xff] %v5972_v32  ;;  %6642 = vmatpush.msrb.mxu1 %v10766_v33  ;;  %6719 = vmatpush.msrb.mxu2 %v5972_v32  ;;  %v6475_v32 = vld [vmem:[#allocation4 + $0x108] sm:$0xff]  ;;  %p7494_p3 = pnand %p7493_p1, %p7688_p0  ;;  %p7499_p7 = por %p7498_p8, %p7497_p13 }
 0x97a   : > { %6011 = vst [vmem:[#allocation4 + $0x338] sm:$0xff] %v11212_v53 }
 0x97b   : > { %6643 = vmatpush.msrb.mxu1 %v10756_v43  ;;  %6720 = vmatpush.msrb.mxu2 %v11113_v37  ;;  %v6472_v43 = vld [vmem:[#allocation4 + $0xf0] sm:$0xff]  ;;  %p7495_p5 = pneg %p7494_p3 }
 0x97d   : > { %6644 = vmatpush.msrb.mxu1 %v10720_v51  ;;  %6721 = vmatpush.msrb.mxu2 %v10816_v44  ;;  %v6494_v44 = vld [vmem:[#allocation4 + $0x1a0] sm:$0xff]  ;;  %p7500_p9 = pnand %p7499_p7, %p7495_p5 }
 0x97e   : > { %v11222_v34 = vpop.permute.xlu2 %6354 }
 0x97f   : > { %v6353_v0 = vpop.permute.xlu0 %6352  ;;  %6645 = vmatpush.msrb.mxu1 %v6482_v16  ;;  %6722 = vmatpush.msrb.mxu2 %v10803_v2  ;;  %v6462_v2 = vld [vmem:[#allocation4 + $0xa0] sm:$0xff] }
 0x980   : > { %v6387_v33 = vsel %vm11879_vm7, %v10990_v45, %v6353_v0  ;;  %v6388_v55 = vsel %vm11880_vm4, %v6353_v0, %v11222_v34  ;;  %v11229_v40 = vpop.permute.xlu1 %6220  ;;  %v6452_v45 = vld [vmem:[#allocation4 + $0x50] sm:$0xff]  ;;  %vm11882_vm7 = vcmask 490496   ;;  %vm11883_vm4 = vcmask 760832   ;;  %v6446_v16 = vld [vmem:[#allocation4 + $0x20] sm:$0xff]  ;;  %v6465_v0 = vld [vmem:[#allocation4 + $0xb8] sm:$0xff] }
 0x981   : > { %6425 = vst [vmem:[#allocation4 + $0x518] sm:$0xff] %v6387_v33  ;;  %6646 = vmatpush.msrb.mxu1 %v6472_v43  ;;  %6723 = vmatpush.msrb.mxu2 %v10770_v41  ;;  %v11234_v51 = vsel %vm11881_vm8, %v6219_v52, %v11229_v40  ;;  %v6484_v41 = vld [vmem:[#allocation4 + $0x150] sm:$0xff]  ;;  %v6485_v52 = vld [vmem:[#allocation4 + $0x158] sm:$0xff] }
 0x982   : > { %6426 = vst [vmem:[#allocation4 + $0x520] sm:$0xff] %v6388_v55  ;;  %6789 = vmatpush.msra.mxu3 %v6387_v33  ;;  %6829 = vmatpush.msra.mxu0 %v6388_v55  ;;  %v6445_v33 = vld [vmem:[#allocation4 + $0x18] sm:$0xff] }
 0x983   : > { %6290 = vst [vmem:[#allocation4 + $0x490] sm:$0xff] %v11234_v51  ;;  %6647 = vmatpush.msrb.mxu1 %v6462_v2  ;;  %6724 = vmatpush.msrb.mxu2 %v6494_v44 }
 0x984   : > { %6794 = vmatpush.msrb.mxu3 %v11011_v50  ;;  %7245 = vmatmul.msk.f32.vlgmr.msra.gmra.mxu0 %vm6630_vm6, %v11090_v47 }
 0x985   : > { %7244 = vmatmul.msk.f32.vlgmr.msra.gmra.mxu3 %vm6630_vm6, %v11090_v47  ;;  %6648 = vmatpush.msrb.mxu1 %v6452_v45  ;;  %v6517_v45 = vld [vmem:[#allocation4 + $0x258] sm:$0xff] }
 0x986   : > { %6795 = vmatpush.msrb.mxu3 %v10988_v60  ;;  %v11241_v37 = vpop.permute.xlu2 %5962  ;;  %6725 = vmatpush.msrb.mxu2 %v6484_v41 }
 0x987   : > { %v5984_v50 = vsel %vm11878_vm5, %v10995_v3, %v11241_v37  ;;  %v11248_v8 = vpop.permute.xlu0 %6100  ;;  %6649 = vmatpush.msrb.mxu1 %v6442_v58  ;;  %v6464_v3 = vld [vmem:[#allocation4 + $0xb0] sm:$0xff]  ;;  %vm11884_vm5 = vcmask 474112  }
 0x988   : > { %6796 = vmatpush.msrb.mxu3 %v11050_v26  ;;  %6023 = vst [vmem:[#allocation4 + $0x398] sm:$0xff] %v5984_v50  ;;  %v6122_v60 = vsel %vm11882_vm7, %v10960_v27, %v11248_v8  ;;  %6726 = vmatpush.msrb.mxu2 %v6474_v46  ;;  %v11255_v30 = vpop.permute.xlu1 %5824  ;;  %v6454_v27 = vld [vmem:[#allocation4 + $0x60] sm:$0xff]  ;;  %vm11885_vm7 = vmmov %vm11881_vm8  ;;  %v6497_v46 = vld [vmem:[#allocation4 + $0x1b8] sm:$0xff] }
 0x989   : > { %6650 = vmatmul.f32.vlgmr.msrb.gmra.mxu1 %v11096_v23  ;;  %6161 = vst [vmem:[#allocation4 + $0x438] sm:$0xff] %v6122_v60  ;;  %v11262_v26 = vsel %vm11883_vm4, %v11169_v25, %v11255_v30  ;;  %vm11886_vm4 = vmmov %vm11884_vm5  ;;  %v6505_v25 = vld [vmem:[#allocation4 + $0x1f8] sm:$0xff] }
 0x98a   : > { %6754 = vmatpush.msra.mxu1 %v11025_v35  ;;  %6797 = vmatpush.msrb.mxu3 %v11085_v10  ;;  %5885 = vst [vmem:[#allocation4 + $0x2f8] sm:$0xff] %v11262_v26  ;;  %v6444_v35 = vld [vmem:[#allocation4 + $0x10] sm:$0xff] }
 0x98b   : > { %6727 = vmatpush.msrb.mxu2 %v6464_v3  ;;  %v6477_v3 = vld [vmem:[#allocation4 + $0x118] sm:$0xff] }
 0x98c   : > { %6755 = vmatpush.msra.mxu1 %v11139_v29  ;;  %6798 = vmatpush.msrb.mxu3 %v11104_v59 }
 0x98d   : > { %6728 = vmatpush.msrb.mxu2 %v6454_v27 }
 0x98e   : > { %6756 = vmatpush.msra.mxu1 %v11053_v61  ;;  %6799 = vmatpush.msrb.mxu3 %v11076_v48  ;;  %v6245_v10 = vpop.permute.xlu2 %6244  ;;  %v6506_v48 = vld [vmem:[#allocation4 + $0x200] sm:$0xff] }
 0x98f   : > { %6729 = vmatpush.msrb.mxu2 %v6444_v35  ;;  %v11271_v39 = vsel %vm11881_vm8, %v11214_v17, %v6245_v10  ;;  %6303 = vst.msk [vmem:[#allocation4 + $0x4f8] sm:$0xff] %vm11557_vm0, %v6245_v10  ;;  %v11274_v7 = vpop.permute.xlu0 %6380  ;;  %vm11887_vm8 = vcmask 490496  }
 0x990   : > { %6730 = vmatmul.f32.vlgmr.msrb.gmra.mxu2 %v11096_v23  ;;  %6757 = vmatpush.msra.mxu1 %v11131_v18  ;;  %6302 = vst [vmem:[#allocation4 + $0x4f0] sm:$0xff] %v11271_v39  ;;  %v6400_v29 = vsel %vm11884_vm5, %v11205_v36, %v11274_v7  ;;  %v11284_v61 = vpop.permute.xlu1 %6106  ;;  %v6496_v18 = vld [vmem:[#allocation4 + $0x1b0] sm:$0xff]  ;;  %vm11888_vm5 = vmmov %vm11885_vm7 }
 0x991   : > { %6800 = vmatpush.msrb.mxu3 %v11175_v62  ;;  %6834 = vmatpush.msra.mxu2 %v11147_v4  ;;  %6439 = vst [vmem:[#allocation4 + $0x588] sm:$0xff] %v6400_v29  ;;  %v6466_v62 = vld [vmem:[#allocation4 + $0xc0] sm:$0xff] }
 0x992   : > { %6758 = vmatpush.msra.mxu1 %v11107_v28  ;;  %6165 = vst.msk [vmem:[#allocation4 + $0x458] sm:$0xff] %vm11557_vm0, %v11284_v61 }
 0x993   : > { %6801 = vmatpush.msrb.mxu3 %v10868_v1  ;;  %6835 = vmatpush.msra.mxu2 %v11192_v11 }
 0x994   : > { %6759 = vmatpush.msra.mxu1 %v11212_v53 }
 0x995   : > { %6802 = vmatpush.msrb.mxu3 %v10820_v5  ;;  %6836 = vmatpush.msra.mxu2 %v6122_v60 }
 0x996   : > { %6760 = vmatpush.msra.mxu1 %v11116_v38  ;;  %v11294_v59 = vpop.permute.xlu2 %6222  ;;  %v6515_v38 = vld [vmem:[#allocation4 + $0x248] sm:$0xff] }
 0x997   : > { %6803 = vmatpush.msrb.mxu3 %v6506_v48  ;;  %6837 = vmatpush.msra.mxu2 %v11183_v12  ;;  %v11300_v1 = vsel %vm11885_vm7, %v11229_v40, %v11294_v59  ;;  %v11302_v28 = vpop.permute.xlu0 %6358  ;;  %vm11889_vm7 = vmmov %vm11888_vm5 }
 0x998   : > { %6761 = vmatpush.msra.mxu1 %v10865_v42  ;;  %6291 = vst [vmem:[#allocation4 + $0x498] sm:$0xff] %v11300_v1  ;;  %v6391_v5 = vsel %vm11886_vm4, %v11302_v28, %v11197_v6  ;;  %v11309_v4 = vpop.permute.xlu1 %6086  ;;  %v6476_v42 = vld [vmem:[#allocation4 + $0x110] sm:$0xff]  ;;  %vm11890_vm4 = vmmov %vm11887_vm8 }
 0x999   : > { %6804 = vmatpush.msrb.mxu3 %v6496_v18  ;;  %6838 = vmatpush.msra.mxu2 %v5984_v50  ;;  %6429 = vst [vmem:[#allocation4 + $0x538] sm:$0xff] %v6391_v5  ;;  %v6507_v50 = vld [vmem:[#allocation4 + $0x208] sm:$0xff] }
 0x99a   : > { %6762 = vmatpush.msra.mxu1 %v6515_v38  ;;  %6155 = vst.msk [vmem:[#allocation4 + $0x408] sm:$0xff] %vm11557_vm0, %v11309_v4  ;;  %v6447_v38 = vld [vmem:[#allocation4 + $0x28] sm:$0xff] }
 0x99b   : > { %6805 = vmatpush.msrb.mxu3 %v6486_v15 }
 0x99c   : > { %6763 = vmatpush.msra.mxu1 %v6505_v25 }
 0x99d   : > { %6806 = vmatpush.msrb.mxu3 %v6476_v42 }
 0x99e   : > { %6764 = vmatpush.msra.mxu1 %v6495_v14  ;;  %v11313_v12 = vpop.permute.xlu2 %6102 }
 0x99f   : > { %6807 = vmatpush.msrb.mxu3 %v6466_v62  ;;  %v11318_v11 = vsel %vm11887_vm8, %v11248_v8, %v11313_v12  ;;  %v6241_v22 = vpop.permute.xlu0 %6240  ;;  %vm11891_vm8 = vcmask 752640  }
 0x9a0   : > { %6765 = vmatpush.msra.mxu1 %v6485_v52  ;;  %6162 = vst [vmem:[#allocation4 + $0x440] sm:$0xff] %v11318_v11  ;;  %v11323_v57 = vsel %vm11888_vm5, %v11141_v19, %v6241_v22  ;;  %v11327_v63 = vsel %vm11889_vm7, %v6241_v22, %v11214_v17  ;;  %v11329_v53 = vpop.permute.xlu1 %5968  ;;  %v6455_v19 = vld [vmem:[#allocation4 + $0x68] sm:$0xff]  ;;  %vm11892_vm5 = vmmov %vm11891_vm8 }
 0x9a1   : > { %6808 = vmatpush.msrb.mxu3 %v6456_v49  ;;  %6300 = vst [vmem:[#allocation4 + $0x4e0] sm:$0xff] %v11323_v57  ;;  %v6529_v49 = vld [vmem:[#allocation4 + $0x2b8] sm:$0xff] }
 0x9a2   : > { %6766 = vmatpush.msra.mxu1 %v6475_v32  ;;  %6301 = vst [vmem:[#allocation4 + $0x4e8] sm:$0xff] %v11327_v63  ;;  %v6519_v32 = vld [vmem:[#allocation4 + $0x268] sm:$0xff] }
 0x9a3   : > { %6809 = vmatpush.msrb.mxu3 %v6446_v16  ;;  %6027 = vst.msk [vmem:[#allocation4 + $0x3b8] sm:$0xff] %vm11557_vm0, %v11329_v53 }
 0x9a4   : > { %6810 = vmatmul.f32.vlgmr.msrb.gmra.mxu3 %v11096_v23  ;;  %6767 = vmatpush.msra.mxu1 %v6465_v0  ;;  %v6508_v0 = vld [vmem:[#allocation4 + $0x210] sm:$0xff] }
 0x9a5   : > { %6948 = vmatpush.msra.mxu3 %v6400_v29  ;;  %v6467_v29 = vld [vmem:[#allocation4 + $0xc8] sm:$0xff] }
 0x9a6   : > { %6768 = vmatpush.msra.mxu1 %v6455_v19  ;;  %v6083_v17 = vpop.permute.xlu2 %6082  ;;  %v6509_v19 = vld [vmem:[#allocation4 + $0x218] sm:$0xff] }
 0x9a7   : > { %6949 = vmatpush.msra.mxu3 %v6391_v5  ;;  %v11338_v55 = vsel %vm11890_vm4, %v11177_v13, %v6083_v17  ;;  %v5943_v43 = vpop.permute.xlu0 %5942  ;;  %v6527_v13 = vld [vmem:[#allocation4 + $0x2a8] sm:$0xff]  ;;  %vm11893_vm4 = vmmov %vm11892_vm5  ;;  %v6457_v5 = vld [vmem:[#allocation4 + $0x78] sm:$0xff] }
 0x9a8   : > { %6769 = vmatpush.msra.mxu1 %v6445_v33  ;;  %6152 = vst [vmem:[#allocation4 + $0x3f0] sm:$0xff] %v11338_v55  ;;  %v5975_v40 = vsel %vm11891_vm8, %v11069_v20, %v5943_v43  ;;  %v11344_v2 = vpop.permute.xlu1 %5948  ;;  %vm11894_vm8 = vcmask 490496  }
 0x9a9   : > { %6770 = vmatmul.f32.vlgmr.msra.gmra.mxu1 %v11096_v23  ;;  %6013 = vst [vmem:[#allocation4 + $0x348] sm:$0xff] %v5975_v40  ;;  %6839 = vmatpush.msra.mxu2 %v5975_v40  ;;  %v6499_v40 = vld [vmem:[#allocation4 + $0x1c8] sm:$0xff] }
 0x9aa   : > { %6017 = vst.msk [vmem:[#allocation4 + $0x368] sm:$0xff] %vm11557_vm0, %v11344_v2 }
 0x9ab   : > { %6840 = vmatpush.msra.mxu2 %v11262_v26 }
 0x9ac   : > { %7248 = vmatmul.msk.f32.vlgmr.msra.gmra.mxu3 %vm6630_vm6, %v11090_v47 }
 0x9ad   : > { %6841 = vmatpush.msra.mxu2 %v6527_v13  ;;  %v6488_v13 = vld [vmem:[#allocation4 + $0x170] sm:$0xff] }
 0x9ae   : > { %v5965_v44 = vpop.permute.xlu2 %5964 }
 0x9af   : > { %v11353_v20 = vsel %vm11892_vm5, %v11241_v37, %v5965_v44  ;;  %v6225_v41 = vpop.permute.xlu0 %6224  ;;  %6842 = vmatpush.msra.mxu2 %v6517_v45  ;;  %v6487_v37 = vld [vmem:[#allocation4 + $0x168] sm:$0xff]  ;;  %vm11895_vm5 = vmmov %vm11894_vm8  ;;  %v6490_v45 = vld [vmem:[#allocation4 + $0x180] sm:$0xff] }
 0x9b0   : > { %6024 = vst [vmem:[#allocation4 + $0x3a0] sm:$0xff] %v11353_v20  ;;  %v6254_v58 = vsel %vm11889_vm7, %v11294_v59, %v6225_v41  ;;  %v11358_v8 = vpop.permute.xlu1 %5830  ;;  %vm11896_vm7 = vcmask 474112  }
 0x9b1   : > { %6292 = vst [vmem:[#allocation4 + $0x4a0] sm:$0xff] %v6254_v58  ;;  %6843 = vmatpush.msra.mxu2 %v6507_v50  ;;  %v6468_v50 = vld [vmem:[#allocation4 + $0xd0] sm:$0xff]  ;;  %v6551_v24 = vld [vmem:[#allocation4 + $0x368] sm:$0xff] }
 0x9b2   : > { %6293 = vst.msk [vmem:[#allocation4 + $0x4a8] sm:$0xff] %vm11557_vm0, %v6225_v41  ;;  %v6601_v41 = vld [vmem:[#allocation4 + $0x4f8] sm:$0xff] }
 0x9b3   : > { %5889 = vst.msk [vmem:[#allocation4 + $0x318] sm:$0xff] %vm11557_vm0, %v11358_v8  ;;  %6844 = vmatpush.msra.mxu2 %v6497_v46  ;;  %vm11901_vm0 = vcmask 752640   ;;  %v6469_v46 = vld [vmem:[#allocation4 + $0xd8] sm:$0xff] }
 0x9b5   : > { %6845 = vmatpush.msra.mxu2 %v6487_v37 }
 0x9b6   : > { %v5945_v60 = vpop.permute.xlu2 %5944 }
 0x9b7   : > { %v11364_v26 = vsel %vm11893_vm4, %v5943_v43, %v5945_v60  ;;  %v6105_v27 = vpop.permute.xlu0 %6104  ;;  %6846 = vmatpush.msra.mxu2 %v6477_v3  ;;  %vm11897_vm4 = vmmov %vm11896_vm7  ;;  %v6470_v3 = vld [vmem:[#allocation4 + $0xe0] sm:$0xff] }
 0x9b8   : > { %6014 = vst [vmem:[#allocation4 + $0x350] sm:$0xff] %v11364_v26  ;;  %v6124_v35 = vsel %vm11894_vm8, %v11313_v12, %v6105_v27  ;;  %v6125_v10 = vsel %vm11895_vm5, %v6105_v27, %v11284_v61  ;;  %v6357_v48 = vpop.permute.xlu1 %6356  ;;  %vm11898_vm8 = vcmask 760832  }
 0x9b9   : > { %6163 = vst [vmem:[#allocation4 + $0x448] sm:$0xff] %v6124_v35  ;;  %6847 = vmatpush.msra.mxu2 %v6467_v29  ;;  %v6389_v59 = vsel %vm11896_vm7, %v11222_v34, %v6357_v48  ;;  %v6390_v18 = vsel %vm11897_vm4, %v6357_v48, %v11302_v28  ;;  %vm11899_vm7 = vmmov %vm11895_vm5  ;;  %v6460_v29 = vld [vmem:[#allocation4 + $0x90] sm:$0xff] }
 0x9ba   : > { %6164 = vst [vmem:[#allocation4 + $0x450] sm:$0xff] %v6125_v10  ;;  %v6448_v48 = vld [vmem:[#allocation4 + $0x30] sm:$0xff] }
 0x9bb   : > { %6427 = vst [vmem:[#allocation4 + $0x528] sm:$0xff] %v6389_v59  ;;  %6848 = vmatpush.msra.mxu2 %v6457_v5  ;;  %v6449_v5 = vld [vmem:[#allocation4 + $0x38] sm:$0xff] }
 0x9bc   : > { %6428 = vst [vmem:[#allocation4 + $0x530] sm:$0xff] %v6390_v18 }
 0x9bd   : > { %6849 = vmatpush.msra.mxu2 %v6447_v38  ;;  %v6450_v38 = vld [vmem:[#allocation4 + $0x40] sm:$0xff] }
 0x9be   : > { %v5827_v15 = vpop.permute.xlu2 %5826  ;;  %6850 = vmatmul.f32.vlgmr.msra.gmra.mxu2 %v11096_v23 }
 0x9bf   : > { %v5847_v61 = vsel %vm11898_vm8, %v11255_v30, %v5827_v15  ;;  %v6085_v25 = vpop.permute.xlu0 %6084  ;;  %6954 = vmatpush.msrb.mxu2 %v11271_v39  ;;  %vm11900_vm8 = vmmov %vm11897_vm4 }
 0x9c0   : > { %5886 = vst [vmem:[#allocation4 + $0x300] sm:$0xff] %v5847_v61  ;;  %v6115_v34 = vsel %vm11895_vm5, %v6083_v17, %v6085_v25  ;;  %v6116_v28 = vsel %vm11899_vm7, %v6085_v25, %v11309_v4  ;;  %vm11902_vm5 = vmmov %vm11901_vm0  ;;  %vm11904_vm7 = vcmask 31744   ;;  %v6510_v17 = vld [vmem:[#allocation4 + $0x220] sm:$0xff]  ;;  %v6561_v25 = vld [vmem:[#allocation4 + $0x3b8] sm:$0xff] }
 0x9c1   : > { %6153 = vst [vmem:[#allocation4 + $0x3f8] sm:$0xff] %v6115_v34  ;;  %6955 = vmatpush.msrb.mxu2 %v6254_v58  ;;  %v6480_v58 = vld [vmem:[#allocation4 + $0x130] sm:$0xff] }
 0x9c2   : > { %6154 = vst [vmem:[#allocation4 + $0x400] sm:$0xff] %v6116_v28 }
 0x9c3   : > { %6956 = vmatpush.msrb.mxu2 %v6125_v10  ;;  %v6459_v10 = vld [vmem:[#allocation4 + $0x88] sm:$0xff] }
 0x9c5   : > { %6957 = vmatpush.msrb.mxu2 %v6116_v28  ;;  %v6541_v28 = vld [vmem:[#allocation4 + $0x318] sm:$0xff] }
 0x9c6   : > { %v6377_v42 = vpop.permute.xlu2 %6376 }
 0x9c7   : > { %v6398_v14 = vsel %vm11897_vm4, %v11160_v31, %v6377_v42  ;;  %v6399_v30 = vsel %vm11900_vm8, %v6377_v42, %v11205_v36  ;;  %v5967_v62 = vpop.permute.xlu0 %5966  ;;  %v6531_v42 = vld [vmem:[#allocation4 + $0x2c8] sm:$0xff] }
 0x9c8   : > { %6437 = vst [vmem:[#allocation4 + $0x578] sm:$0xff] %v6398_v14  ;;  %v5986_v39 = vsel %vm11901_vm0, %v5965_v44, %v5967_v62  ;;  %v5987_v12 = vsel %vm11902_vm5, %v5967_v62, %v11329_v53  ;;  %6868 = vmatpush.msrb.mxu0 %v6398_v14  ;;  %6908 = vmatpush.msrb.mxu1 %v6399_v30  ;;  %vm11903_vm0 = vmmov %vm11897_vm4  ;;  %v6520_v53 = vld [vmem:[#allocation4 + $0x270] sm:$0xff]  ;;  %v6489_v44 = vld [vmem:[#allocation4 + $0x178] sm:$0xff] }
 0x9c9   : > { %6438 = vst [vmem:[#allocation4 + $0x580] sm:$0xff] %v6399_v30  ;;  %6958 = vmatpush.msrb.mxu2 %v5987_v12  ;;  %vm11905_vm4 = vmmov %vm11902_vm5  ;;  %vm11907_vm5 = vcmask 760832   ;;  %v6521_v14 = vld [vmem:[#allocation4 + $0x278] sm:$0xff]  ;;  %v6511_v30 = vld [vmem:[#allocation4 + $0x228] sm:$0xff] }
 0x9ca   : > { %6025 = vst [vmem:[#allocation4 + $0x3a8] sm:$0xff] %v5986_v39  ;;  %6869 = vmatpush.msrb.mxu0 %v6389_v59  ;;  %6909 = vmatpush.msrb.mxu1 %v6390_v18  ;;  %vm11906_vm8 = vmmov %vm11905_vm4  ;;  %v6571_v18 = vld [vmem:[#allocation4 + $0x408] sm:$0xff]  ;;  %v6501_v62 = vld [vmem:[#allocation4 + $0x1d8] sm:$0xff] }
 0x9cb   : > { %6026 = vst [vmem:[#allocation4 + $0x3b0] sm:$0xff] %v5987_v12  ;;  %7246 = vmatmul.msk.f32.vlgmr.msrb.gmra.mxu0 %vm6630_vm6, %v11090_v47  ;;  %7247 = vmatmul.msk.f32.vlgmr.msrb.gmra.mxu1 %vm6630_vm6, %v11090_v47  ;;  %v6691_v16 = vpop.f32.mrf.mxu0  ;;  %v6481_v12 = vld [vmem:[#allocation4 + $0x138] sm:$0xff] }
 0x9cc   : > { %6914 = vmatpush.msra.mxu1 %v11327_v63  ;;  %6874 = vmatpush.msra.mxu0 %v11323_v57  ;;  %v6530_v57 = vld [vmem:[#allocation4 + $0x2c0] sm:$0xff] }
 0x9cd   : > { %v6518_v63 = vld [vmem:[#allocation4 + $0x260] sm:$0xff] }
 0x9ce   : > { %6915 = vmatpush.msra.mxu1 %v11300_v1  ;;  %v6363_v31 = vpop.permute.xlu2 %6362  ;;  %6875 = vmatpush.msra.mxu0 %v11234_v51 }
 0x9cf   : > { %v6392_v36 = vsel %vm11903_vm0, %v11197_v6, %v6363_v31  ;;  %6431 = vst.msk [vmem:[#allocation4 + $0x548] sm:$0xff] %vm11904_vm7, %v6363_v31  ;;  %v5947_v4 = vpop.permute.xlu0 %5946  ;;  %vm11908_vm0 = vmmov %vm11907_vm5  ;;  %vm11909_vm7 = vcmask 474112   ;;  %v6471_v31 = vld [vmem:[#allocation4 + $0xe8] sm:$0xff] }
 0x9d0   : > { %6916 = vmatpush.msra.mxu1 %v6124_v35  ;;  %6430 = vst [vmem:[#allocation4 + $0x540] sm:$0xff] %v6392_v36  ;;  %v5977_v52 = vsel %vm11905_vm4, %v5945_v60, %v5947_v4  ;;  %v5978_v22 = vsel %vm11906_vm8, %v5947_v4, %v11344_v2  ;;  %6876 = vmatpush.msra.mxu0 %v11318_v11  ;;  %v6528_v11 = vld [vmem:[#allocation4 + $0x2b0] sm:$0xff]  ;;  %vm11910_vm4 = vcmask 31744   ;;  %v6581_v35 = vld [vmem:[#allocation4 + $0x458] sm:$0xff]  ;;  %v6451_v4 = vld [vmem:[#allocation4 + $0x48] sm:$0xff] }
 0x9d1   : > { %6015 = vst [vmem:[#allocation4 + $0x358] sm:$0xff] %v5977_v52  ;;  %6959 = vmatpush.msrb.mxu2 %v5978_v22  ;;  %v6500_v2 = vld [vmem:[#allocation4 + $0x1d0] sm:$0xff] }
 0x9d2   : > { %6917 = vmatpush.msra.mxu1 %v6115_v34  ;;  %6016 = vst [vmem:[#allocation4 + $0x360] sm:$0xff] %v5978_v22  ;;  %6877 = vmatpush.msra.mxu0 %v11338_v55  ;;  %v6498_v55 = vld [vmem:[#allocation4 + $0x1c0] sm:$0xff] }
 0x9d3   : > { %v6711_v60 = vpop.f32.mrf.mxu0 }
 0x9d4   : > { %6918 = vmatpush.msra.mxu1 %v5986_v39  ;;  %6878 = vmatpush.msra.mxu0 %v11353_v20  ;;  %v6478_v20 = vld [vmem:[#allocation4 + $0x120] sm:$0xff]  ;;  %v6491_v39 = vld [vmem:[#allocation4 + $0x188] sm:$0xff] }
 0x9d6   : > { %6919 = vmatpush.msra.mxu1 %v5977_v52  ;;  %6879 = vmatpush.msra.mxu0 %v11364_v26  ;;  %v6458_v26 = vld [vmem:[#allocation4 + $0x80] sm:$0xff]  ;;  %v6611_v34 = vld [vmem:[#allocation4 + $0x548] sm:$0xff]  ;;  %v6671_v52 = vpop.f32.mrf.mxu3 }
 0x9d7   : > { %v5829_v6 = vpop.permute.xlu0 %5828 }
 0x9d8   : > { %v5848_v51 = vsel %vm11907_vm5, %v5827_v15, %v5829_v6  ;;  %v5849_v1 = vsel %vm11908_vm0, %v5829_v6, %v11358_v8  ;;  %6880 = vmatpush.msra.mxu0 %v5847_v61  ;;  %v6591_v8 = vld [vmem:[#allocation4 + $0x4a8] sm:$0xff] }
 0x9d9   : > { %5887 = vst [vmem:[#allocation4 + $0x308] sm:$0xff] %v5848_v51  ;;  %6920 = vmatpush.msra.mxu1 %v5848_v51  ;;  %6960 = vmatpush.msrb.mxu2 %v5849_v1 }
 0x9da   : > { %5888 = vst [vmem:[#allocation4 + $0x310] sm:$0xff] %v5849_v1  ;;  %6881 = vmatpush.msra.mxu0 %v6528_v11 }
 0x9db   : > { %6921 = vmatpush.msra.mxu1 %v6529_v49  ;;  %6961 = vmatpush.msrb.mxu2 %v6530_v57 }
 0x9dc   : > { %6882 = vmatpush.msra.mxu0 %v6518_v63 }
 0x9dd   : > { %6922 = vmatpush.msra.mxu1 %v6519_v32  ;;  %6962 = vmatpush.msrb.mxu2 %v6520_v53 }
 0x9de   : > { %6883 = vmatpush.msra.mxu0 %v6508_v0  ;;  %v6751_v11 = vpop.f32.mrf.mxu3 }
 0x9df   : > { %v6383_v33 = vpop.permute.xlu0 %6382  ;;  %6923 = vmatpush.msra.mxu1 %v6509_v19  ;;  %6963 = vmatpush.msrb.mxu2 %v6510_v17 }
 0x9e0   : > { %v6401_v43 = vsel %vm11909_vm7, %v11274_v7, %v6383_v33  ;;  %6441 = vst.msk [vmem:[#allocation4 + $0x598] sm:$0xff] %vm11910_vm4, %v6383_v33  ;;  %6884 = vmatpush.msra.mxu0 %v6498_v55  ;;  %v6479_v7 = vld [vmem:[#allocation4 + $0x128] sm:$0xff] }
 0x9e1   : > { %6440 = vst [vmem:[#allocation4 + $0x590] sm:$0xff] %v6401_v43  ;;  %6924 = vmatpush.msra.mxu1 %v6499_v40  ;;  %6964 = vmatpush.msrb.mxu2 %v6500_v2 }
 0x9e2   : > { %6988 = vmatpush.msrb.mxu3 %v6401_v43  ;;  %6885 = vmatpush.msra.mxu0 %v6488_v13 }
 0x9e3   : > { %6925 = vmatpush.msra.mxu1 %v6489_v44  ;;  %6965 = vmatpush.msrb.mxu2 %v6490_v45 }
 0x9e4   : > { %6989 = vmatpush.msrb.mxu3 %v6392_v36  ;;  %6886 = vmatpush.msra.mxu0 %v6478_v20  ;;  %v6461_v36 = vld [vmem:[#allocation4 + $0x98] sm:$0xff] }
 0x9e5   : > { %6926 = vmatpush.msra.mxu1 %v6479_v7  ;;  %6966 = vmatpush.msrb.mxu2 %v6480_v58 }
 0x9e6   : > { %6994 = vmatpush.msra.mxu3 %v6601_v41  ;;  %6887 = vmatpush.msra.mxu0 %v6468_v50 }
 0x9e7   : > { %v11413_v37 = vpop.permute.xlu0 %6627  ;;  %6927 = vmatpush.msra.mxu1 %v6469_v46  ;;  %6967 = vmatpush.msrb.mxu2 %v6470_v3  ;;  %v6621_v61 = vld [vmem:[#allocation4 + $0x598] sm:$0xff] }
 0x9e8   : > { %6995 = vmatpush.msra.mxu3 %v6591_v8  ;;  %v6692_v27 = vadd.f32 %v6691_v16, %v11413_v37  ;;  %6888 = vmatpush.msra.mxu0 %v6458_v26 }
 0x9e9   : > { %6928 = vmatpush.msra.mxu1 %v6459_v10  ;;  %6968 = vmatpush.msrb.mxu2 %v6460_v29 }
 0x9ea   : > { %6996 = vmatpush.msra.mxu3 %v6581_v35  ;;  %v6712_v59 = vadd.f32 %v6711_v60, %v6692_v27  ;;  %6889 = vmatpush.msra.mxu0 %v6448_v48 }
 0x9eb   : > { %6890 = vmatmul.f32.vlgmr.msra.gmra.mxu0 %v11096_v23  ;;  %6929 = vmatpush.msra.mxu1 %v6449_v5 }
 0x9ec   : > { %6997 = vmatpush.msra.mxu3 %v6571_v18  ;;  %v7035_v15 = vsel %vm8383_vm12, %v6712_v59, 0.0  ;;  %6969 = vmatpush.msrb.mxu2 %v6450_v38 }
 0x9ed   : > { %7045 = vst [vmem:[%s11421_s13 + $0x8] sm:$0xff] %v7035_v15  ;;  %7028 = vmatpush.msrb.mxu0 %v6621_v61  ;;  %6930 = vmatmul.f32.vlgmr.msra.gmra.mxu1 %v11096_v23 }
 0x9ee   : > { %6970 = vmatmul.f32.vlgmr.msrb.gmra.mxu2 %v11096_v23  ;;  %6998 = vmatpush.msra.mxu3 %v6561_v25 }
 0x9ef   : > { %7029 = vmatpush.msrb.mxu0 %v6611_v34  ;;  %7249 = vmatmul.msk.f32.vlgmr.msrb.gmra.mxu3 %vm6630_vm6, %v11090_v47 }
 0x9f0   : > { %6999 = vmatpush.msra.mxu3 %v6551_v24 }
 0x9f2   : > { %7000 = vmatpush.msra.mxu3 %v6541_v28 }
 0x9f3   : > { %7250 = vmatmul.msk.f32.vlgmr.msrb.gmra.mxu0 %vm6630_vm6, %v11090_v47 }
 0x9f4   : > { %7001 = vmatpush.msra.mxu3 %v6531_v42 }
 0x9f6   : > { %7002 = vmatpush.msra.mxu3 %v6521_v14 }
 0x9f8   : > { %7003 = vmatpush.msra.mxu3 %v6511_v30 }
 0x9fa   : > { %7004 = vmatpush.msra.mxu3 %v6501_v62 }
 0x9fc   : > { %7005 = vmatpush.msra.mxu3 %v6491_v39 }
 0x9fe   : > { %7006 = vmatpush.msra.mxu3 %v6481_v12 }
 0xa00   : > { %7007 = vmatpush.msra.mxu3 %v6471_v31 }
 0xa01   : > { %v6831_v54 = vpop.f32.mrf.mxu0 }
 0xa02   : > { %7008 = vmatpush.msra.mxu3 %v6461_v36 }
 0xa04   : > { %7009 = vmatpush.msra.mxu3 %v6451_v4 }
 0xa05   : > { %7010 = vmatmul.f32.vlgmr.msra.gmra.mxu3 %v11096_v23 }
 0xa06   : > { %v6651_v47 = vpop.f32.mrf.mxu1 }
 0xa07   : > { %v6652_v22 = vadd.f32 %v6651_v47, %v11413_v37 }
 0xa08   : > { %v6791_v23 = vpop.f32.mrf.mxu3 }
 0xa09   : > { %v6672_v6 = vadd.f32 %v6671_v52, %v6652_v22 }
 0xa0b   : > { %v7034_v51 = vsel %vm8374_vm11, %v6672_v6, 0.0 }
 0xa0c   : > { %7044 = vst [vmem:[%s11421_s13] sm:$0xff] %v7034_v51 }
 0xa13   : > { %v6731_v1 = vpop.f32.mrf.mxu2 }
 0xa14   : > { %v6732_v49 = vadd.f32 %v6731_v1, %v11413_v37 }
 0xa16   : > { %v6752_v57 = vadd.f32 %v6751_v11, %v6732_v49 }
 0xa18   : > { %v7036_v63 = vsel %vm8394_vm13, %v6752_v57, 0.0 }
 0xa19   : > { %7046 = vst [vmem:[%s11421_s13 + $0x10] sm:$0xff] %v7036_v63 }
 0xa26   : > { %v6771_v32 = vpop.f32.mrf.mxu1 }
 0xa27   : > { %v6772_v53 = vadd.f32 %v6771_v32, %v11413_v37  ;;  %v6811_v16 = vpop.f32.mrf.mxu3 }
 0xa28   : > { %v6812_v0 = vadd.f32 %v6811_v16, %v11413_v37 }
 0xa29   : > { %v6792_v19 = vadd.f32 %v6791_v23, %v6772_v53 }
 0xa2a   : > { %v6832_v17 = vadd.f32 %v6831_v54, %v6812_v0 }
 0xa2b   : > { %v7037_v33 = vsel %vm8398_vm14, %v6792_v19, 0.0 }
 0xa2c   : > { %7047 = vst [vmem:[%s11421_s13 + $0x18] sm:$0xff] %v7037_v33  ;;  %v7038_v21 = vsel %vm8470_vm15, %v6832_v17, 0.0 }
 0xa2d   : > { %7048 = vst [vmem:[%s11421_s13 + $0x20] sm:$0xff] %v7038_v21 }
 0xa2f   : > { %v6951_v9 = vpop.f32.mrf.mxu3 }
 0xa41   : > { %v6851_v55 = vpop.f32.mrf.mxu2 }
 0xa42   : > { %v6852_v43 = vadd.f32 %v6851_v55, %v11413_v37 }
 0xa48   : > { %v6871_v40 = vpop.f32.mrf.mxu0  ;;  %v6911_v45 = vpop.f32.mrf.mxu1 }
 0xa49   : > { %v6872_v2 = vadd.f32 %v6871_v40, %v6852_v43 }
 0xa4b   : > { %v7039_v44 = vsel %vm8474_vm9, %v6872_v2, 0.0 }
 0xa4c   : > { %7049 = vst [vmem:[%s11421_s13 + $0x28] sm:$0xff] %v7039_v44 }
 0xa68   : > { %v6891_v20 = vpop.f32.mrf.mxu0 }
 0xa69   : > { %v6892_v56 = vadd.f32 %v6891_v20, %v11413_v37 }
 0xa6a   : > { %v6931_v41 = vpop.f32.mrf.mxu1 }
 0xa6b   : > { %v6912_v7 = vadd.f32 %v6911_v45, %v6892_v56  ;;  %v6932_v58 = vadd.f32 %v6931_v41, %v11413_v37 }
 0xa6d   : > { %v7040_v8 = vsel %vm8481_vm10, %v6912_v7, 0.0  ;;  %v6952_v46 = vadd.f32 %v6951_v9, %v6932_v58 }
 0xa6e   : > { %7050 = vst [vmem:[%s11421_s13 + $0x30] sm:$0xff] %v7040_v8 }
 0xa6f   : > { %v7041_v3 = vsel %vm8495_vm1, %v6952_v46, 0.0  ;;  %vm11916_vm1 = vmmov %vm11910_vm4 }
 0xa70   : > { %7051 = vst [vmem:[%s11421_s13 + $0x38] sm:$0xff] %v7041_v3  ;;  %v7031_v18 = vpop.f32.mrf.mxu0 }
 0xa71   : > { %v6971_v26 = vpop.f32.mrf.mxu2 }
 0xa72   : > { %v6972_v27 = vadd.f32 %v6971_v26, %v11413_v37  ;;  %v6991_v35 = vpop.f32.mrf.mxu3 }
 0xa74   : > { %v6992_v10 = vadd.f32 %v6991_v35, %v6972_v27 }
 0xa76   : > { %v7042_v48 = vsel %vm8548_vm2, %v6992_v10, 0.0 }
 0xa77   : > { %7052 = vst [vmem:[%s11421_s13 + $0x40] sm:$0xff] %v7042_v48 }
 0xa88   : > { %v7011_v59 = vpop.f32.mrf.mxu3 }
 0xa89   : > { %v7012_v5 = vadd.f32 %v7011_v59, %v11413_v37 }
 0xa8b   : > { %v7032_v38 = vadd.f32 %v7031_v18, %v7012_v5 }
 0xa8d   : > { %v7043_v61 = vsel %vm8553_vm3, %v7032_v38, 0.0 }
 0xa8e   : > { %7053 = vst.msk [vmem:[%s11421_s13 + $0x48] sm:$0xff] %vm11916_vm1, %v7043_v61 }
 0xa8f   : > { %7503 = shalt.err (!%p7500_p9)
}
 0xa90   : > { %7272 = dma.vmem_to_hbm [thread:$0]  (%p7688_p0), %s7069_s26, 1280, %s7071_s9, %s7055_s12  }
 0xa91 PF: > { %s7082_s20 = sand.u32 1, %s7538_s27   ;;  %p11917_p10 = scmp.ge.s32.totalorder %s7550_s30, 2 }
 0xa92   : > { %s7083_s10 = scalar_lea.sflag [#allocation7], %s7082_s20 }
 0xa93   : > { %p7289_p11 = pnand %p11917_p10, %p7694_p6 }
 0xa95   : > { %p7290_p12 = pneg %p7289_p11 }
 0xa97   : > { %7533 = dma.done.wait (%p7290_p12), %s7083_s10, 1280  }
 0xa98   : > { %7535 = vsyncadd (%p7290_p12), %s7083_s10, 4294966016  ;;  %s11918_s5 = sld [smem:[#allocation18_spill]]  ;;  %p23_p2 = scmp.ge.s32.totalorder %s7668_s16, 4  }
 0xa99   : > { %s11919_s29 = sld [smem:[#allocation19_spill]]  ;;  %s11920_s27 = smov %s7542_s28 }
 0xa9a   : > { %s11922_s30 = smov %s7668_s16  ;;  %25 = sbr.rel (!%p23_p2) target bundleno = 11 (0xb), region = 109 }
 0xa9e   : > { %s11921_s28 = smov %s11918_s5 }
 0xa9f   :  { %7089 = vsyncpa [#allocation6], 1 }
 0xaa0   :  { %7091 = vsyncpa [#allocation6 + $0x1], 1 }
 0xaa1   :  { %7092 = vsyncpa [#allocation9], 1 }
 0xaa2   :  { %7093 = vsyncpa [#allocation12], 1 }
 0xaa3   :  { %7094 = vsyncpa [#allocation7], 1 }
 0xaa4   :  { %7096 = vsyncpa [#allocation7 + $0x1], 1 }

</bundles_post_ra>
